<compile_context>
chip_gen: v7x
topology: tpu7x:2x2x1
jax: 0.10.0
libtpu: 0.0.40
codegen_flags: <defaults>
</compile_context>

<pallas_src>
import functools

import jax
import jax.numpy as jnp
from jax.experimental import pallas as pl
from jax.experimental.pallas import tpu as pltpu


# ----------------------------------------------------------------------------
# Fused MFIA kernel.  Single invocation (no grid); channel-major activations.
# ----------------------------------------------------------------------------
def make_mfia_kernel(B, S, nhead):
    def kernel(xh_ref, xm_ref, xl_ref,
               wqT_ref, wkvT_ref, qadd_ref, kvadd_ref,
               woT_ref, boT_ref, lnw_ref, lnb_ref,
               w1T_ref, b1T_ref, w2T_ref, b2T_ref,
               convwT_ref, convbT_ref,
               out1_ref, out2_ref, out3_ref):
        M, D = xh_ref.shape                       # M = B * S
        dh = D // nhead
        bf16 = jnp.bfloat16

        def ln(x, gamma, beta, eps=1e-5):
            # x: (D, M) channel-major; normalize over channels (axis 0).
            mu = jnp.mean(x, axis=0, keepdims=True)
            d = x - mu
            var = jnp.mean(d * d, axis=0, keepdims=True)
            return d * jax.lax.rsqrt(var + eps) * gamma + beta

        def layer(l, xqT, xkvT, add_residual):
            # Fused in-projections, lane-dense N = B*S:
            #   q^T  = (s*Wq)^T @ xq^T  + (pos_q @ (s*Wq) + s*bq)^T   (scale folded)
            #   kv^T = [Wk;Wv]^T @ xkv^T + [pos_k @ Wk + bk ; bv]^T
            qT = jnp.dot(wqT_ref[l], xqT.astype(bf16),
                         preferred_element_type=jnp.float32) + qadd_ref[l]
            kvT = jnp.dot(wkvT_ref[l], xkvT.astype(bf16),
                          preferred_element_type=jnp.float32) + kvadd_ref[l]

            ctx_cols = []
            for b in range(B):
                cols = slice(b * S, (b + 1) * S)
                qT_b = qT[:, cols]                     # (D, S)
                kT_b = kvT[:D, cols]
                vT_b = kvT[D:, cols]
                ctx_rows = []
                for hh in range(nhead):
                    rows = slice(hh * dh, (hh + 1) * dh)   # sublane slice: cheap
                    qT_h = qT_b[rows, :]                   # (dh, S)
                    kT_h = kT_b[rows, :]
                    vT_h = vT_b[rows, :]
                    # scores^T (S_k, S_q); softmax over the key (sublane) axis
                    sT = jnp.dot(jnp.transpose(kT_h).astype(bf16),
                                 qT_h.astype(bf16),
                                 preferred_element_type=jnp.float32)
                    sT = sT - jnp.max(sT, axis=0, keepdims=True)
                    p = jnp.exp(sT)
                    p = p * pl.reciprocal(jnp.sum(p, axis=0, keepdims=True),
                                          approx=True)
                    # ctx^T (dh, S_q) = v^T (dh, S_k) @ p (S_k, S_q)
                    ctx_rows.append(jnp.dot(vT_h.astype(bf16), p.astype(bf16),
                                            preferred_element_type=jnp.float32))
                ctx_cols.append(jnp.concatenate(ctx_rows, axis=0))   # (D, S)
            ctxT = jnp.concatenate(ctx_cols, axis=1)                 # (D, B*S)

            # single out-projection over all batches (K = D, N = B*S)
            attnT = jnp.dot(woT_ref[l], ctxT.astype(bf16),
                            preferred_element_type=jnp.float32) + boT_ref[l]

            src = xqT + attnT if add_residual else attnT
            src = ln(src, lnw_ref[l, 0], lnb_ref[l, 0])              # norm1

            # FFN: linear2(relu(linear1(src)))
            hT = jnp.dot(w1T_ref[l], src.astype(bf16),
                         preferred_element_type=jnp.float32) + b1T_ref[l]
            hT = jnp.maximum(hT, 0.0)
            ffnT = jnp.dot(w2T_ref[l], hT.astype(bf16),
                           preferred_element_type=jnp.float32) + b2T_ref[l]
            return ln(src + ffnT, lnw_ref[l, 1], lnb_ref[l, 1])      # norm2

        # channel-major copies of the three inputs (one in-kernel transpose each)
        xTh = jnp.transpose(xh_ref[...])
        xTm = jnp.transpose(xm_ref[...])
        xTl = jnp.transpose(xl_ref[...])

        o1 = layer(0, xTh, xTh, add_residual=True)     # TransformerEncoderLayer
        o2 = layer(1, o1, xTm, add_residual=False)     # CSMHCALayer 1
        o3 = layer(2, o1, xTl, add_residual=False)     # CSMHCALayer 2

        # 1x1 conv over channels == split-weight per-pixel matmul (no concat)
        c = (jnp.dot(convwT_ref[0], o1.astype(bf16),
                     preferred_element_type=jnp.float32)
             + jnp.dot(convwT_ref[1], o2.astype(bf16),
                       preferred_element_type=jnp.float32)
             + jnp.dot(convwT_ref[2], o3.astype(bf16),
                       preferred_element_type=jnp.float32)
             + convbT_ref[...])

        # channel-major (D, B*S) stores: last dim = 128 -> fully lane-dense
        out1_ref[...] = c.astype(out1_ref.dtype)
        out2_ref[...] = o2.astype(out2_ref.dtype)
        out3_ref[...] = o3.astype(out3_ref.dtype)

    return kernel


def mfia_forward(packed, src_h, src_m, src_l, h, w, nhead):
    """src_*: (B, S, D) float32.  Returns three (B, D, h, w) float32 tensors."""
    B, S, D = src_h.shape
    M = B * S

    args = [src_h.reshape(M, D), src_m.reshape(M, D), src_l.reshape(M, D),
            packed["wqT"], packed["wkvT"], packed["qadd"], packed["kvadd"],
            packed["woT"], packed["boT"], packed["lnw"], packed["lnb"],
            packed["w1T"], packed["b1T"], packed["w2T"], packed["b2T"],
            packed["convwT"], packed["convbT"]]

    vmem = pl.BlockSpec(memory_space=pltpu.MemorySpace.VMEM)
    out1, out2, out3 = pl.pallas_call(
        make_mfia_kernel(B, S, nhead),
        out_shape=tuple(jax.ShapeDtypeStruct((D, M), jnp.float32)
                        for _ in range(3)),
        in_specs=[vmem] * len(args),
        out_specs=(vmem, vmem, vmem),
        compiler_params=pltpu.CompilerParams(
            vmem_limit_bytes=32 * 1024 * 1024),
    )(*args)

    def to_nchw(o):
        # (D, B*S) -> (B, D, h, w): tiny reshape/transpose outside the kernel.
        return jnp.transpose(o.reshape(D, B, S), (1, 0, 2)).reshape(B, D, h, w)

    return to_nchw(out1), to_nchw(out2), to_nchw(out3)


# ----------------------------------------------------------------------------
# Parameter construction (canonical f32, (in, out) layout) + pos embeds + packing.
# ----------------------------------------------------------------------------
def build_2d_sincos_pos_embed(w, h, dim, temperature=10000.0):
    grid_w = jnp.arange(w, dtype=jnp.float32)
    grid_h = jnp.arange(h, dtype=jnp.float32)
    gw, gh = jnp.meshgrid(grid_w, grid_h, indexing="ij")
    pos_dim = dim // 4
    omega = jnp.arange(pos_dim, dtype=jnp.float32) / pos_dim
    omega = 1.0 / (temperature ** omega)
    out_w = gw.reshape(-1)[:, None] * omega[None]
    out_h = gh.reshape(-1)[:, None] * omega[None]
    return jnp.concatenate([jnp.sin(out_w), jnp.cos(out_w),
                            jnp.sin(out_h), jnp.cos(out_h)], axis=1)   # (S, D)


def init_layer_params(key, D, F):
    ks = jax.random.split(key, 6)
    s = 0.05
    return {
        "wq": jax.random.normal(ks[0], (D, D), jnp.float32) * s,
        "wk": jax.random.normal(ks[1], (D, D), jnp.float32) * s,
        "wv": jax.random.normal(ks[2], (D, D), jnp.float32) * s,
        "bq": jnp.zeros((1, D), jnp.float32),
        "bk": jnp.zeros((1, D), jnp.float32),
        "bv": jnp.zeros((1, D), jnp.float32),
        "wo": jax.random.normal(ks[3], (D, D), jnp.float32) * s,
        "bo": jnp.zeros((1, D), jnp.float32),
        "g1": jnp.ones((1, D), jnp.float32),
        "be1": jnp.zeros((1, D), jnp.float32),
        "g2": jnp.ones((1, D), jnp.float32),
        "be2": jnp.zeros((1, D), jnp.float32),
        "w1": jax.random.normal(ks[4], (D, F), jnp.float32) * s,
        "b1": jnp.zeros((1, F), jnp.float32),
        "w2": jax.random.normal(ks[5], (F, D), jnp.float32) * s,
        "b2": jnp.zeros((1, D), jnp.float32),
    }


def init_mfia_params(key, D, F):
    k1, k2, k3, k4 = jax.random.split(key, 4)
    return {
        "mhsa": init_layer_params(k1, D, F),
        "ca1": init_layer_params(k2, D, F),
        "ca2": init_layer_params(k3, D, F),
        "conv_w": jax.random.normal(k4, (3 * D, D), jnp.float32) * 0.05,
        "conv_b": jnp.zeros((1, D), jnp.float32),
    }


def pack_mfia_params(raw, pos_h, pos_m, pos_l, B, nhead):
    """Pack canonical (in, out) f32 params into the kernel's channel-major layout.

    Kernel matmul weights are stored as W^T with shape (out, in) -- the same
    layout as torch nn.Linear.weight / nn.MultiheadAttention in_proj_weight, so
    importing a PyTorch checkpoint needs no extra transpose of those tensors.
    The 1/sqrt(dh) scale and the q/k positional embeddings are folded into the
    packed q weight and additive per-position terms (exact algebra).
    """
    D = raw["mhsa"]["wq"].shape[0]
    dh = D // nhead
    scale = 1.0 / float(dh) ** 0.5
    bf16 = jnp.bfloat16

    layers = [raw["mhsa"], raw["ca1"], raw["ca2"]]
    pos_q = [pos_h, pos_h, pos_h]          # query side always uses pos_h
    pos_k = [pos_h, pos_m, pos_l]          # key side: self / mid / low level

    wqT, wkvT, qadd, kvadd = [], [], [], []
    woT, boT, lnw, lnb = [], [], [], []
    w1T, b1T, w2T, b2T = [], [], [], []
    for lp, pq, pk in zip(layers, pos_q, pos_k):
        wq_s = lp["wq"] * scale
        qa = pq @ wq_s + lp["bq"] * scale                     # (S, D)
        ka = pk @ lp["wk"] + lp["bk"]                         # (S, D)
        va = jnp.broadcast_to(lp["bv"], ka.shape)             # (S, D)
        wqT.append(wq_s.T.astype(bf16))
        wkvT.append(jnp.concatenate([lp["wk"].T, lp["wv"].T], 0).astype(bf16))
        qadd.append(jnp.tile(qa.T, (1, B)))                   # (D, B*S)
        kvadd.append(jnp.tile(jnp.concatenate([ka.T, va.T], 0), (1, B)))
        woT.append(lp["wo"].T.astype(bf16))
        boT.append(lp["bo"].T)                                # (D, 1)
        lnw.append(jnp.stack([lp["g1"].T, lp["g2"].T]))       # (2, D, 1)
        lnb.append(jnp.stack([lp["be1"].T, lp["be2"].T]))
        w1T.append(lp["w1"].T.astype(bf16))
        b1T.append(lp["b1"].T)
        w2T.append(lp["w2"].T.astype(bf16))
        b2T.append(lp["b2"].T)

    st = jnp.stack
    return {
        "wqT": st(wqT), "wkvT": st(wkvT),
        "qadd": st(qadd), "kvadd": st(kvadd),
        "woT": st(woT), "boT": st(boT),
        "lnw": st(lnw), "lnb": st(lnb),
        "w1T": st(w1T), "b1T": st(b1T), "w2T": st(w2T), "b2T": st(b2T),
        "convwT": jnp.transpose(raw["conv_w"].reshape(3, D, D),
                                (0, 2, 1)).astype(bf16),       # (3, D, D)
        "convbT": raw["conv_b"].T,                             # (D, 1)
    }


# ----------------------------------------------------------------------------
# Pure-JAX reference (module-faithful structure; same bf16/fold numerics).
# ----------------------------------------------------------------------------
def _mm_bf16(a, b):
    return jnp.matmul(a.astype(jnp.bfloat16), b.astype(jnp.bfloat16),
                      preferred_element_type=jnp.float32)


def _layer_norm(x, gamma, beta, eps=1e-5):
    mu = jnp.mean(x, axis=-1, keepdims=True)
    d = x - mu
    var = jnp.mean(d * d, axis=-1, keepdims=True)
    return d * jax.lax.rsqrt(var + eps) * gamma + beta


def _ref_layer(xq, xkv, lp, pos_q, pos_k, nhead, add_residual):
    D = xq.shape[-1]
    dh = D // nhead
    scale = 1.0 / float(dh) ** 0.5
    # with_pos_embed + scaled dot-product folded into additive projected terms
    # (algebraically identical to ((x + pos) @ W + b) * s).
    wq_s = lp["wq"] * scale
    qadd = pos_q @ wq_s + lp["bq"] * scale
    kadd = pos_k @ lp["wk"] + lp["bk"]
    q = _mm_bf16(xq, wq_s) + qadd
    k = _mm_bf16(xkv, lp["wk"]) + kadd
    v = _mm_bf16(xkv, lp["wv"]) + lp["bv"]
    heads = []
    for hh in range(nhead):
        sl = slice(hh * dh, (hh + 1) * dh)
        s = _mm_bf16(q[..., sl], jnp.swapaxes(k[..., sl], -1, -2))
        s = s - jnp.max(s, axis=-1, keepdims=True)
        pr = jnp.exp(s)
        pr = pr / jnp.sum(pr, axis=-1, keepdims=True)
        heads.append(_mm_bf16(pr, v[..., sl]))
    attn = _mm_bf16(jnp.concatenate(heads, axis=-1), lp["wo"]) + lp["bo"]
    src = xq + attn if add_residual else attn
    src = _layer_norm(src, lp["g1"], lp["be1"])
    ffn = _mm_bf16(jnp.maximum(_mm_bf16(src, lp["w1"]) + lp["b1"], 0.0),
                   lp["w2"]) + lp["b2"]
    return _layer_norm(src + ffn, lp["g2"], lp["be2"])


def _ref_forward(raw, pos_h, pos_m, pos_l, src_h, src_m, src_l, h, w, nhead):
    B, S, D = src_h.shape
    o1 = _ref_layer(src_h, src_h, raw["mhsa"], pos_h, pos_h, nhead, True)
    o2 = _ref_layer(o1, src_m, raw["ca1"], pos_h, pos_m, nhead, False)
    o3 = _ref_layer(o1, src_l, raw["ca2"], pos_h, pos_l, nhead, False)
    cat = jnp.concatenate([o1, o2, o3], axis=-1)
    cs = _mm_bf16(cat, raw["conv_w"]) + raw["conv_b"]
    to_nchw = lambda x: jnp.transpose(x, (0, 2, 1)).reshape(B, D, h, w)
    return to_nchw(cs), to_nchw(o2), to_nchw(o3)


if __name__ == "__main__":
    B, D, nhead, F = 2, 32, 4, 64
    h, w = 8, 8
    S = h * w

    key = jax.random.PRNGKey(0)
    kp, kh_, km_, kl_ = jax.random.split(key, 4)
    raw = init_mfia_params(kp, D, F)

    # sincos positional embeddings (all three levels share h x w in this demo)
    pos_h = build_2d_sincos_pos_embed(w, h, D)
    pos_m = build_2d_sincos_pos_embed(w, h, D)
    pos_l = build_2d_sincos_pos_embed(w, h, D)

    packed = pack_mfia_params(raw, pos_h, pos_m, pos_l, B, nhead)

    src_h = jax.random.normal(kh_, (B, S, D), jnp.float32)
    src_m = jax.random.normal(km_, (B, S, D), jnp.float32)
    src_l = jax.random.normal(kl_, (B, S, D), jnp.float32)

    fwd = jax.jit(functools.partial(mfia_forward, nhead=nhead),
                  static_argnames=("h", "w"))
    out1, out2, out3 = fwd(packed, src_h, src_m, src_l, h=h, w=w)
    jax.block_until_ready((out1, out2, out3))

    # sanity check vs pure-JAX reference (same bf16-operand / folded math)
    r1, r2, r3 = _ref_forward(raw, pos_h, pos_m, pos_l,
                              src_h, src_m, src_l, h, w, nhead)
    for a, b in ((out1, r1), (out2, r2), (out3, r3)):
        assert a.shape == b.shape
        err = float(jnp.max(jnp.abs(a - b)))
        assert err < 5e-2, f"mismatch vs reference: max |diff| = {err}"

    assert out1.shape == (B, D, h, w)
    assert out2.shape == (B, D, h, w)
    assert out3.shape == (B, D, h, w)
    print("KERNEL_OK")
</pallas_src>

<mosaic_0001>
module attributes {stable_mosaic.version = 11 : i64} {
  func.func @kernel(%arg0: memref<128x32xf32, #tpu.memory_space<vmem>>, %arg1: memref<128x32xf32, #tpu.memory_space<vmem>>, %arg2: memref<128x32xf32, #tpu.memory_space<vmem>>, %arg3: memref<3x32x32xbf16, #tpu.memory_space<vmem>>, %arg4: memref<3x64x32xbf16, #tpu.memory_space<vmem>>, %arg5: memref<3x32x128xf32, #tpu.memory_space<vmem>>, %arg6: memref<3x64x128xf32, #tpu.memory_space<vmem>>, %arg7: memref<3x32x32xbf16, #tpu.memory_space<vmem>>, %arg8: memref<3x32x1xf32, #tpu.memory_space<vmem>>, %arg9: memref<3x2x32x1xf32, #tpu.memory_space<vmem>>, %arg10: memref<3x2x32x1xf32, #tpu.memory_space<vmem>>, %arg11: memref<3x64x32xbf16, #tpu.memory_space<vmem>>, %arg12: memref<3x64x1xf32, #tpu.memory_space<vmem>>, %arg13: memref<3x32x64xbf16, #tpu.memory_space<vmem>>, %arg14: memref<3x32x1xf32, #tpu.memory_space<vmem>>, %arg15: memref<3x32x32xbf16, #tpu.memory_space<vmem>>, %arg16: memref<32x1xf32, #tpu.memory_space<vmem>>, %arg17: memref<32x128xf32, #tpu.memory_space<vmem>>, %arg18: memref<32x128xf32, #tpu.memory_space<vmem>>, %arg19: memref<32x128xf32, #tpu.memory_space<vmem>>) attributes {dimension_semantics = [], scalar_prefetch = 0 : i64, scratch_operands = 0 : i64, tpu.core_type = #tpu.core_type<tc>} {
    %c0 = arith.constant 0 : index
    %c0_0 = arith.constant 0 : index
    %0 = vector.load %arg0[%c0, %c0_0] : memref<128x32xf32, #tpu.memory_space<vmem>>, vector<128x32xf32>
    %1 = tpu.transpose %0, [1, 0] : vector<128x32xf32> -> vector<32x128xf32>
    %c0_1 = arith.constant 0 : index
    %c0_2 = arith.constant 0 : index
    %2 = vector.load %arg1[%c0_1, %c0_2] : memref<128x32xf32, #tpu.memory_space<vmem>>, vector<128x32xf32>
    %3 = tpu.transpose %2, [1, 0] : vector<128x32xf32> -> vector<32x128xf32>
    %c0_3 = arith.constant 0 : index
    %c0_4 = arith.constant 0 : index
    %4 = vector.load %arg2[%c0_3, %c0_4] : memref<128x32xf32, #tpu.memory_space<vmem>>, vector<128x32xf32>
    %5 = tpu.transpose %4, [1, 0] : vector<128x32xf32> -> vector<32x128xf32>
    %c0_5 = arith.constant 0 : index
    %c0_6 = arith.constant 0 : index
    %c0_7 = arith.constant 0 : index
    %6 = vector.load %arg3[%c0_5, %c0_6, %c0_7] : memref<3x32x32xbf16, #tpu.memory_space<vmem>>, vector<1x32x32xbf16>
    %7 = vector.shape_cast %6 : vector<1x32x32xbf16> to vector<32x32xbf16>
    %8 = arith.truncf %1 : vector<32x128xf32> to vector<32x128xbf16>
    %cst = arith.constant dense<0.000000e+00> : vector<32x128xf32>
    %9 = tpu.matmul %7, %8, %cst {dimension_numbers = #tpu.dot_dimension_numbers<[1], [0], [0], [1], [0, 0, 1, 1], [], []>} : vector<32x32xbf16>, vector<32x128xbf16>, vector<32x128xf32> -> vector<32x128xf32>
    %c0_8 = arith.constant 0 : index
    %c0_9 = arith.constant 0 : index
    %c0_10 = arith.constant 0 : index
    %10 = vector.load %arg5[%c0_8, %c0_9, %c0_10] : memref<3x32x128xf32, #tpu.memory_space<vmem>>, vector<1x32x128xf32>
    %11 = vector.shape_cast %10 : vector<1x32x128xf32> to vector<32x128xf32>
    %12 = arith.addf %9, %11 : vector<32x128xf32>
    %c0_11 = arith.constant 0 : index
    %c0_12 = arith.constant 0 : index
    %c0_13 = arith.constant 0 : index
    %13 = vector.load %arg4[%c0_11, %c0_12, %c0_13] : memref<3x64x32xbf16, #tpu.memory_space<vmem>>, vector<1x64x32xbf16>
    %14 = vector.shape_cast %13 : vector<1x64x32xbf16> to vector<64x32xbf16>
    %15 = arith.truncf %1 : vector<32x128xf32> to vector<32x128xbf16>
    %cst_14 = arith.constant dense<0.000000e+00> : vector<64x128xf32>
    %16 = tpu.matmul %14, %15, %cst_14 {dimension_numbers = #tpu.dot_dimension_numbers<[1], [0], [0], [1], [0, 0, 1, 1], [], []>} : vector<64x32xbf16>, vector<32x128xbf16>, vector<64x128xf32> -> vector<64x128xf32>
    %c0_15 = arith.constant 0 : index
    %c0_16 = arith.constant 0 : index
    %c0_17 = arith.constant 0 : index
    %17 = vector.load %arg6[%c0_15, %c0_16, %c0_17] : memref<3x64x128xf32, #tpu.memory_space<vmem>>, vector<1x64x128xf32>
    %18 = vector.shape_cast %17 : vector<1x64x128xf32> to vector<64x128xf32>
    %19 = arith.addf %16, %18 : vector<64x128xf32>
    %20 = vector.extract_strided_slice %12 {offsets = [0, 0], sizes = [32, 64], strides = [1, 1]} : vector<32x128xf32> to vector<32x64xf32>
    %21 = vector.extract_strided_slice %19 {offsets = [0, 0], sizes = [32, 64], strides = [1, 1]} : vector<64x128xf32> to vector<32x64xf32>
    %22 = vector.extract_strided_slice %19 {offsets = [32, 0], sizes = [32, 64], strides = [1, 1]} : vector<64x128xf32> to vector<32x64xf32>
    %23 = vector.extract_strided_slice %20 {offsets = [0, 0], sizes = [8, 64], strides = [1, 1]} : vector<32x64xf32> to vector<8x64xf32>
    %24 = vector.extract_strided_slice %21 {offsets = [0, 0], sizes = [8, 64], strides = [1, 1]} : vector<32x64xf32> to vector<8x64xf32>
    %25 = vector.extract_strided_slice %22 {offsets = [0, 0], sizes = [8, 64], strides = [1, 1]} : vector<32x64xf32> to vector<8x64xf32>
    %26 = tpu.transpose %24, [1, 0] : vector<8x64xf32> -> vector<64x8xf32>
    %27 = arith.truncf %26 : vector<64x8xf32> to vector<64x8xbf16>
    %28 = arith.truncf %23 : vector<8x64xf32> to vector<8x64xbf16>
    %cst_18 = arith.constant dense<0.000000e+00> : vector<64x64xf32>
    %29 = tpu.matmul %27, %28, %cst_18 {dimension_numbers = #tpu.dot_dimension_numbers<[1], [0], [0], [1], [0, 0, 1, 1], [], []>} : vector<64x8xbf16>, vector<8x64xbf16>, vector<64x64xf32> -> vector<64x64xf32>
    %cst_19 = arith.constant dense<0xFF800000> : vector<64xf32>
    %30 = vector.multi_reduction <maximumf>, %29, %cst_19 [0] : vector<64x64xf32> to vector<64xf32>
    %31 = vector.shape_cast %30 : vector<64xf32> to vector<1x64xf32>
    %32 = vector.broadcast %31 : vector<1x64xf32> to vector<64x64xf32>
    %33 = arith.subf %29, %32 : vector<64x64xf32>
    %34 = math.exp %33 : vector<64x64xf32>
    %cst_20 = arith.constant dense<0.000000e+00> : vector<64xf32>
    %35 = vector.multi_reduction <add>, %34, %cst_20 [0] : vector<64x64xf32> to vector<64xf32>
    %36 = vector.shape_cast %35 : vector<64xf32> to vector<1x64xf32>
    %37 = tpu.reciprocal %36 {approx = true} : vector<1x64xf32> -> vector<1x64xf32>
    %38 = vector.broadcast %37 : vector<1x64xf32> to vector<64x64xf32>
    %39 = arith.mulf %34, %38 : vector<64x64xf32>
    %40 = arith.truncf %25 : vector<8x64xf32> to vector<8x64xbf16>
    %41 = arith.truncf %39 : vector<64x64xf32> to vector<64x64xbf16>
    %cst_21 = arith.constant dense<0.000000e+00> : vector<8x64xf32>
    %42 = tpu.matmul %40, %41, %cst_21 {dimension_numbers = #tpu.dot_dimension_numbers<[1], [0], [0], [1], [0, 0, 1, 1], [], []>} : vector<8x64xbf16>, vector<64x64xbf16>, vector<8x64xf32> -> vector<8x64xf32>
    %43 = vector.extract_strided_slice %20 {offsets = [8, 0], sizes = [8, 64], strides = [1, 1]} : vector<32x64xf32> to vector<8x64xf32>
    %44 = vector.extract_strided_slice %21 {offsets = [8, 0], sizes = [8, 64], strides = [1, 1]} : vector<32x64xf32> to vector<8x64xf32>
    %45 = vector.extract_strided_slice %22 {offsets = [8, 0], sizes = [8, 64], strides = [1, 1]} : vector<32x64xf32> to vector<8x64xf32>
    %46 = tpu.transpose %44, [1, 0] : vector<8x64xf32> -> vector<64x8xf32>
    %47 = arith.truncf %46 : vector<64x8xf32> to vector<64x8xbf16>
    %48 = arith.truncf %43 : vector<8x64xf32> to vector<8x64xbf16>
    %cst_22 = arith.constant dense<0.000000e+00> : vector<64x64xf32>
    %49 = tpu.matmul %47, %48, %cst_22 {dimension_numbers = #tpu.dot_dimension_numbers<[1], [0], [0], [1], [0, 0, 1, 1], [], []>} : vector<64x8xbf16>, vector<8x64xbf16>, vector<64x64xf32> -> vector<64x64xf32>
    %cst_23 = arith.constant dense<0xFF800000> : vector<64xf32>
    %50 = vector.multi_reduction <maximumf>, %49, %cst_23 [0] : vector<64x64xf32> to vector<64xf32>
    %51 = vector.shape_cast %50 : vector<64xf32> to vector<1x64xf32>
    %52 = vector.broadcast %51 : vector<1x64xf32> to vector<64x64xf32>
    %53 = arith.subf %49, %52 : vector<64x64xf32>
    %54 = math.exp %53 : vector<64x64xf32>
    %cst_24 = arith.constant dense<0.000000e+00> : vector<64xf32>
    %55 = vector.multi_reduction <add>, %54, %cst_24 [0] : vector<64x64xf32> to vector<64xf32>
    %56 = vector.shape_cast %55 : vector<64xf32> to vector<1x64xf32>
    %57 = tpu.reciprocal %56 {approx = true} : vector<1x64xf32> -> vector<1x64xf32>
    %58 = vector.broadcast %57 : vector<1x64xf32> to vector<64x64xf32>
    %59 = arith.mulf %54, %58 : vector<64x64xf32>
    %60 = arith.truncf %45 : vector<8x64xf32> to vector<8x64xbf16>
    %61 = arith.truncf %59 : vector<64x64xf32> to vector<64x64xbf16>
    %cst_25 = arith.constant dense<0.000000e+00> : vector<8x64xf32>
    %62 = tpu.matmul %60, %61, %cst_25 {dimension_numbers = #tpu.dot_dimension_numbers<[1], [0], [0], [1], [0, 0, 1, 1], [], []>} : vector<8x64xbf16>, vector<64x64xbf16>, vector<8x64xf32> -> vector<8x64xf32>
    %63 = vector.extract_strided_slice %20 {offsets = [16, 0], sizes = [8, 64], strides = [1, 1]} : vector<32x64xf32> to vector<8x64xf32>
    %64 = vector.extract_strided_slice %21 {offsets = [16, 0], sizes = [8, 64], strides = [1, 1]} : vector<32x64xf32> to vector<8x64xf32>
    %65 = vector.extract_strided_slice %22 {offsets = [16, 0], sizes = [8, 64], strides = [1, 1]} : vector<32x64xf32> to vector<8x64xf32>
    %66 = tpu.transpose %64, [1, 0] : vector<8x64xf32> -> vector<64x8xf32>
    %67 = arith.truncf %66 : vector<64x8xf32> to vector<64x8xbf16>
    %68 = arith.truncf %63 : vector<8x64xf32> to vector<8x64xbf16>
    %cst_26 = arith.constant dense<0.000000e+00> : vector<64x64xf32>
    %69 = tpu.matmul %67, %68, %cst_26 {dimension_numbers = #tpu.dot_dimension_numbers<[1], [0], [0], [1], [0, 0, 1, 1], [], []>} : vector<64x8xbf16>, vector<8x64xbf16>, vector<64x64xf32> -> vector<64x64xf32>
    %cst_27 = arith.constant dense<0xFF800000> : vector<64xf32>
    %70 = vector.multi_reduction <maximumf>, %69, %cst_27 [0] : vector<64x64xf32> to vector<64xf32>
    %71 = vector.shape_cast %70 : vector<64xf32> to vector<1x64xf32>
    %72 = vector.broadcast %71 : vector<1x64xf32> to vector<64x64xf32>
    %73 = arith.subf %69, %72 : vector<64x64xf32>
    %74 = math.exp %73 : vector<64x64xf32>
    %cst_28 = arith.constant dense<0.000000e+00> : vector<64xf32>
    %75 = vector.multi_reduction <add>, %74, %cst_28 [0] : vector<64x64xf32> to vector<64xf32>
    %76 = vector.shape_cast %75 : vector<64xf32> to vector<1x64xf32>
    %77 = tpu.reciprocal %76 {approx = true} : vector<1x64xf32> -> vector<1x64xf32>
    %78 = vector.broadcast %77 : vector<1x64xf32> to vector<64x64xf32>
    %79 = arith.mulf %74, %78 : vector<64x64xf32>
    %80 = arith.truncf %65 : vector<8x64xf32> to vector<8x64xbf16>
    %81 = arith.truncf %79 : vector<64x64xf32> to vector<64x64xbf16>
    %cst_29 = arith.constant dense<0.000000e+00> : vector<8x64xf32>
    %82 = tpu.matmul %80, %81, %cst_29 {dimension_numbers = #tpu.dot_dimension_numbers<[1], [0], [0], [1], [0, 0, 1, 1], [], []>} : vector<8x64xbf16>, vector<64x64xbf16>, vector<8x64xf32> -> vector<8x64xf32>
    %83 = vector.extract_strided_slice %20 {offsets = [24, 0], sizes = [8, 64], strides = [1, 1]} : vector<32x64xf32> to vector<8x64xf32>
    %84 = vector.extract_strided_slice %21 {offsets = [24, 0], sizes = [8, 64], strides = [1, 1]} : vector<32x64xf32> to vector<8x64xf32>
    %85 = vector.extract_strided_slice %22 {offsets = [24, 0], sizes = [8, 64], strides = [1, 1]} : vector<32x64xf32> to vector<8x64xf32>
    %86 = tpu.transpose %84, [1, 0] : vector<8x64xf32> -> vector<64x8xf32>
    %87 = arith.truncf %86 : vector<64x8xf32> to vector<64x8xbf16>
    %88 = arith.truncf %83 : vector<8x64xf32> to vector<8x64xbf16>
    %cst_30 = arith.constant dense<0.000000e+00> : vector<64x64xf32>
    %89 = tpu.matmul %87, %88, %cst_30 {dimension_numbers = #tpu.dot_dimension_numbers<[1], [0], [0], [1], [0, 0, 1, 1], [], []>} : vector<64x8xbf16>, vector<8x64xbf16>, vector<64x64xf32> -> vector<64x64xf32>
    %cst_31 = arith.constant dense<0xFF800000> : vector<64xf32>
    %90 = vector.multi_reduction <maximumf>, %89, %cst_31 [0] : vector<64x64xf32> to vector<64xf32>
    %91 = vector.shape_cast %90 : vector<64xf32> to vector<1x64xf32>
    %92 = vector.broadcast %91 : vector<1x64xf32> to vector<64x64xf32>
    %93 = arith.subf %89, %92 : vector<64x64xf32>
    %94 = math.exp %93 : vector<64x64xf32>
    %cst_32 = arith.constant dense<0.000000e+00> : vector<64xf32>
    %95 = vector.multi_reduction <add>, %94, %cst_32 [0] : vector<64x64xf32> to vector<64xf32>
    %96 = vector.shape_cast %95 : vector<64xf32> to vector<1x64xf32>
    %97 = tpu.reciprocal %96 {approx = true} : vector<1x64xf32> -> vector<1x64xf32>
    %98 = vector.broadcast %97 : vector<1x64xf32> to vector<64x64xf32>
    %99 = arith.mulf %94, %98 : vector<64x64xf32>
    %100 = arith.truncf %85 : vector<8x64xf32> to vector<8x64xbf16>
    %101 = arith.truncf %99 : vector<64x64xf32> to vector<64x64xbf16>
    %cst_33 = arith.constant dense<0.000000e+00> : vector<8x64xf32>
    %102 = tpu.matmul %100, %101, %cst_33 {dimension_numbers = #tpu.dot_dimension_numbers<[1], [0], [0], [1], [0, 0, 1, 1], [], []>} : vector<8x64xbf16>, vector<64x64xbf16>, vector<8x64xf32> -> vector<8x64xf32>
    %103 = tpu.concatenate %42, %62, %82, %102 in 0 : vector<8x64xf32>, vector<8x64xf32>, vector<8x64xf32>, vector<8x64xf32> -> vector<32x64xf32>
    %104 = vector.extract_strided_slice %12 {offsets = [0, 64], sizes = [32, 64], strides = [1, 1]} : vector<32x128xf32> to vector<32x64xf32>
    %105 = vector.extract_strided_slice %19 {offsets = [0, 64], sizes = [32, 64], strides = [1, 1]} : vector<64x128xf32> to vector<32x64xf32>
    %106 = vector.extract_strided_slice %19 {offsets = [32, 64], sizes = [32, 64], strides = [1, 1]} : vector<64x128xf32> to vector<32x64xf32>
    %107 = vector.extract_strided_slice %104 {offsets = [0, 0], sizes = [8, 64], strides = [1, 1]} : vector<32x64xf32> to vector<8x64xf32>
    %108 = vector.extract_strided_slice %105 {offsets = [0, 0], sizes = [8, 64], strides = [1, 1]} : vector<32x64xf32> to vector<8x64xf32>
    %109 = vector.extract_strided_slice %106 {offsets = [0, 0], sizes = [8, 64], strides = [1, 1]} : vector<32x64xf32> to vector<8x64xf32>
    %110 = tpu.transpose %108, [1, 0] : vector<8x64xf32> -> vector<64x8xf32>
    %111 = arith.truncf %110 : vector<64x8xf32> to vector<64x8xbf16>
    %112 = arith.truncf %107 : vector<8x64xf32> to vector<8x64xbf16>
    %cst_34 = arith.constant dense<0.000000e+00> : vector<64x64xf32>
    %113 = tpu.matmul %111, %112, %cst_34 {dimension_numbers = #tpu.dot_dimension_numbers<[1], [0], [0], [1], [0, 0, 1, 1], [], []>} : vector<64x8xbf16>, vector<8x64xbf16>, vector<64x64xf32> -> vector<64x64xf32>
    %cst_35 = arith.constant dense<0xFF800000> : vector<64xf32>
    %114 = vector.multi_reduction <maximumf>, %113, %cst_35 [0] : vector<64x64xf32> to vector<64xf32>
    %115 = vector.shape_cast %114 : vector<64xf32> to vector<1x64xf32>
    %116 = vector.broadcast %115 : vector<1x64xf32> to vector<64x64xf32>
    %117 = arith.subf %113, %116 : vector<64x64xf32>
    %118 = math.exp %117 : vector<64x64xf32>
    %cst_36 = arith.constant dense<0.000000e+00> : vector<64xf32>
    %119 = vector.multi_reduction <add>, %118, %cst_36 [0] : vector<64x64xf32> to vector<64xf32>
    %120 = vector.shape_cast %119 : vector<64xf32> to vector<1x64xf32>
    %121 = tpu.reciprocal %120 {approx = true} : vector<1x64xf32> -> vector<1x64xf32>
    %122 = vector.broadcast %121 : vector<1x64xf32> to vector<64x64xf32>
    %123 = arith.mulf %118, %122 : vector<64x64xf32>
    %124 = arith.truncf %109 : vector<8x64xf32> to vector<8x64xbf16>
    %125 = arith.truncf %123 : vector<64x64xf32> to vector<64x64xbf16>
    %cst_37 = arith.constant dense<0.000000e+00> : vector<8x64xf32>
    %126 = tpu.matmul %124, %125, %cst_37 {dimension_numbers = #tpu.dot_dimension_numbers<[1], [0], [0], [1], [0, 0, 1, 1], [], []>} : vector<8x64xbf16>, vector<64x64xbf16>, vector<8x64xf32> -> vector<8x64xf32>
    %127 = vector.extract_strided_slice %104 {offsets = [8, 0], sizes = [8, 64], strides = [1, 1]} : vector<32x64xf32> to vector<8x64xf32>
    %128 = vector.extract_strided_slice %105 {offsets = [8, 0], sizes = [8, 64], strides = [1, 1]} : vector<32x64xf32> to vector<8x64xf32>
    %129 = vector.extract_strided_slice %106 {offsets = [8, 0], sizes = [8, 64], strides = [1, 1]} : vector<32x64xf32> to vector<8x64xf32>
    %130 = tpu.transpose %128, [1, 0] : vector<8x64xf32> -> vector<64x8xf32>
    %131 = arith.truncf %130 : vector<64x8xf32> to vector<64x8xbf16>
    %132 = arith.truncf %127 : vector<8x64xf32> to vector<8x64xbf16>
    %cst_38 = arith.constant dense<0.000000e+00> : vector<64x64xf32>
    %133 = tpu.matmul %131, %132, %cst_38 {dimension_numbers = #tpu.dot_dimension_numbers<[1], [0], [0], [1], [0, 0, 1, 1], [], []>} : vector<64x8xbf16>, vector<8x64xbf16>, vector<64x64xf32> -> vector<64x64xf32>
    %cst_39 = arith.constant dense<0xFF800000> : vector<64xf32>
    %134 = vector.multi_reduction <maximumf>, %133, %cst_39 [0] : vector<64x64xf32> to vector<64xf32>
    %135 = vector.shape_cast %134 : vector<64xf32> to vector<1x64xf32>
    %136 = vector.broadcast %135 : vector<1x64xf32> to vector<64x64xf32>
    %137 = arith.subf %133, %136 : vector<64x64xf32>
    %138 = math.exp %137 : vector<64x64xf32>
    %cst_40 = arith.constant dense<0.000000e+00> : vector<64xf32>
    %139 = vector.multi_reduction <add>, %138, %cst_40 [0] : vector<64x64xf32> to vector<64xf32>
    %140 = vector.shape_cast %139 : vector<64xf32> to vector<1x64xf32>
    %141 = tpu.reciprocal %140 {approx = true} : vector<1x64xf32> -> vector<1x64xf32>
    %142 = vector.broadcast %141 : vector<1x64xf32> to vector<64x64xf32>
    %143 = arith.mulf %138, %142 : vector<64x64xf32>
    %144 = arith.truncf %129 : vector<8x64xf32> to vector<8x64xbf16>
    %145 = arith.truncf %143 : vector<64x64xf32> to vector<64x64xbf16>
    %cst_41 = arith.constant dense<0.000000e+00> : vector<8x64xf32>
    %146 = tpu.matmul %144, %145, %cst_41 {dimension_numbers = #tpu.dot_dimension_numbers<[1], [0], [0], [1], [0, 0, 1, 1], [], []>} : vector<8x64xbf16>, vector<64x64xbf16>, vector<8x64xf32> -> vector<8x64xf32>
    %147 = vector.extract_strided_slice %104 {offsets = [16, 0], sizes = [8, 64], strides = [1, 1]} : vector<32x64xf32> to vector<8x64xf32>
    %148 = vector.extract_strided_slice %105 {offsets = [16, 0], sizes = [8, 64], strides = [1, 1]} : vector<32x64xf32> to vector<8x64xf32>
    %149 = vector.extract_strided_slice %106 {offsets = [16, 0], sizes = [8, 64], strides = [1, 1]} : vector<32x64xf32> to vector<8x64xf32>
    %150 = tpu.transpose %148, [1, 0] : vector<8x64xf32> -> vector<64x8xf32>
    %151 = arith.truncf %150 : vector<64x8xf32> to vector<64x8xbf16>
    %152 = arith.truncf %147 : vector<8x64xf32> to vector<8x64xbf16>
    %cst_42 = arith.constant dense<0.000000e+00> : vector<64x64xf32>
    %153 = tpu.matmul %151, %152, %cst_42 {dimension_numbers = #tpu.dot_dimension_numbers<[1], [0], [0], [1], [0, 0, 1, 1], [], []>} : vector<64x8xbf16>, vector<8x64xbf16>, vector<64x64xf32> -> vector<64x64xf32>
    %cst_43 = arith.constant dense<0xFF800000> : vector<64xf32>
    %154 = vector.multi_reduction <maximumf>, %153, %cst_43 [0] : vector<64x64xf32> to vector<64xf32>
    %155 = vector.shape_cast %154 : vector<64xf32> to vector<1x64xf32>
    %156 = vector.broadcast %155 : vector<1x64xf32> to vector<64x64xf32>
    %157 = arith.subf %153, %156 : vector<64x64xf32>
    %158 = math.exp %157 : vector<64x64xf32>
    %cst_44 = arith.constant dense<0.000000e+00> : vector<64xf32>
    %159 = vector.multi_reduction <add>, %158, %cst_44 [0] : vector<64x64xf32> to vector<64xf32>
    %160 = vector.shape_cast %159 : vector<64xf32> to vector<1x64xf32>
    %161 = tpu.reciprocal %160 {approx = true} : vector<1x64xf32> -> vector<1x64xf32>
    %162 = vector.broadcast %161 : vector<1x64xf32> to vector<64x64xf32>
    %163 = arith.mulf %158, %162 : vector<64x64xf32>
    %164 = arith.truncf %149 : vector<8x64xf32> to vector<8x64xbf16>
    %165 = arith.truncf %163 : vector<64x64xf32> to vector<64x64xbf16>
    %cst_45 = arith.constant dense<0.000000e+00> : vector<8x64xf32>
    %166 = tpu.matmul %164, %165, %cst_45 {dimension_numbers = #tpu.dot_dimension_numbers<[1], [0], [0], [1], [0, 0, 1, 1], [], []>} : vector<8x64xbf16>, vector<64x64xbf16>, vector<8x64xf32> -> vector<8x64xf32>
    %167 = vector.extract_strided_slice %104 {offsets = [24, 0], sizes = [8, 64], strides = [1, 1]} : vector<32x64xf32> to vector<8x64xf32>
    %168 = vector.extract_strided_slice %105 {offsets = [24, 0], sizes = [8, 64], strides = [1, 1]} : vector<32x64xf32> to vector<8x64xf32>
    %169 = vector.extract_strided_slice %106 {offsets = [24, 0], sizes = [8, 64], strides = [1, 1]} : vector<32x64xf32> to vector<8x64xf32>
    %170 = tpu.transpose %168, [1, 0] : vector<8x64xf32> -> vector<64x8xf32>
    %171 = arith.truncf %170 : vector<64x8xf32> to vector<64x8xbf16>
    %172 = arith.truncf %167 : vector<8x64xf32> to vector<8x64xbf16>
    %cst_46 = arith.constant dense<0.000000e+00> : vector<64x64xf32>
    %173 = tpu.matmul %171, %172, %cst_46 {dimension_numbers = #tpu.dot_dimension_numbers<[1], [0], [0], [1], [0, 0, 1, 1], [], []>} : vector<64x8xbf16>, vector<8x64xbf16>, vector<64x64xf32> -> vector<64x64xf32>
    %cst_47 = arith.constant dense<0xFF800000> : vector<64xf32>
    %174 = vector.multi_reduction <maximumf>, %173, %cst_47 [0] : vector<64x64xf32> to vector<64xf32>
    %175 = vector.shape_cast %174 : vector<64xf32> to vector<1x64xf32>
    %176 = vector.broadcast %175 : vector<1x64xf32> to vector<64x64xf32>
    %177 = arith.subf %173, %176 : vector<64x64xf32>
    %178 = math.exp %177 : vector<64x64xf32>
    %cst_48 = arith.constant dense<0.000000e+00> : vector<64xf32>
    %179 = vector.multi_reduction <add>, %178, %cst_48 [0] : vector<64x64xf32> to vector<64xf32>
    %180 = vector.shape_cast %179 : vector<64xf32> to vector<1x64xf32>
    %181 = tpu.reciprocal %180 {approx = true} : vector<1x64xf32> -> vector<1x64xf32>
    %182 = vector.broadcast %181 : vector<1x64xf32> to vector<64x64xf32>
    %183 = arith.mulf %178, %182 : vector<64x64xf32>
    %184 = arith.truncf %169 : vector<8x64xf32> to vector<8x64xbf16>
    %185 = arith.truncf %183 : vector<64x64xf32> to vector<64x64xbf16>
    %cst_49 = arith.constant dense<0.000000e+00> : vector<8x64xf32>
    %186 = tpu.matmul %184, %185, %cst_49 {dimension_numbers = #tpu.dot_dimension_numbers<[1], [0], [0], [1], [0, 0, 1, 1], [], []>} : vector<8x64xbf16>, vector<64x64xbf16>, vector<8x64xf32> -> vector<8x64xf32>
    %187 = tpu.concatenate %126, %146, %166, %186 in 0 : vector<8x64xf32>, vector<8x64xf32>, vector<8x64xf32>, vector<8x64xf32> -> vector<32x64xf32>
    %188 = tpu.concatenate %103, %187 in 1 : vector<32x64xf32>, vector<32x64xf32> -> vector<32x128xf32>
    %c0_50 = arith.constant 0 : index
    %c0_51 = arith.constant 0 : index
    %c0_52 = arith.constant 0 : index
    %189 = vector.load %arg7[%c0_50, %c0_51, %c0_52] : memref<3x32x32xbf16, #tpu.memory_space<vmem>>, vector<1x32x32xbf16>
    %190 = vector.shape_cast %189 : vector<1x32x32xbf16> to vector<32x32xbf16>
    %191 = arith.truncf %188 : vector<32x128xf32> to vector<32x128xbf16>
    %cst_53 = arith.constant dense<0.000000e+00> : vector<32x128xf32>
    %192 = tpu.matmul %190, %191, %cst_53 {dimension_numbers = #tpu.dot_dimension_numbers<[1], [0], [0], [1], [0, 0, 1, 1], [], []>} : vector<32x32xbf16>, vector<32x128xbf16>, vector<32x128xf32> -> vector<32x128xf32>
    %c0_54 = arith.constant 0 : index
    %c0_55 = arith.constant 0 : index
    %c0_56 = arith.constant 0 : index
    %193 = vector.load %arg8[%c0_54, %c0_55, %c0_56] : memref<3x32x1xf32, #tpu.memory_space<vmem>>, vector<1x32x1xf32>
    %194 = vector.shape_cast %193 : vector<1x32x1xf32> to vector<32x1xf32>
    %195 = vector.broadcast %194 : vector<32x1xf32> to vector<32x128xf32>
    %196 = arith.addf %192, %195 : vector<32x128xf32>
    %197 = arith.addf %1, %196 : vector<32x128xf32>
    %c0_57 = arith.constant 0 : index
    %c0_58 = arith.constant 0 : index
    %c0_59 = arith.constant 0 : index
    %c0_60 = arith.constant 0 : index
    %198 = vector.load %arg9[%c0_57, %c0_58, %c0_59, %c0_60] : memref<3x2x32x1xf32, #tpu.memory_space<vmem>>, vector<1x1x32x1xf32>
    %199 = vector.shape_cast %198 : vector<1x1x32x1xf32> to vector<32x1xf32>
    %c0_61 = arith.constant 0 : index
    %c0_62 = arith.constant 0 : index
    %c0_63 = arith.constant 0 : index
    %c0_64 = arith.constant 0 : index
    %200 = vector.load %arg10[%c0_61, %c0_62, %c0_63, %c0_64] : memref<3x2x32x1xf32, #tpu.memory_space<vmem>>, vector<1x1x32x1xf32>
    %201 = vector.shape_cast %200 : vector<1x1x32x1xf32> to vector<32x1xf32>
    %cst_65 = arith.constant dense<0.000000e+00> : vector<128xf32>
    %202 = vector.multi_reduction <add>, %197, %cst_65 [0] : vector<32x128xf32> to vector<128xf32>
    %203 = vector.shape_cast %202 : vector<128xf32> to vector<1x128xf32>
    %cst_66 = arith.constant 3.200000e+01 : f32
    %204 = vector.broadcast %cst_66 : f32 to vector<1x128xf32>
    %205 = arith.divf %203, %204 : vector<1x128xf32>
    %206 = vector.broadcast %205 : vector<1x128xf32> to vector<32x128xf32>
    %207 = arith.subf %197, %206 : vector<32x128xf32>
    %208 = arith.mulf %207, %207 : vector<32x128xf32>
    %cst_67 = arith.constant dense<0.000000e+00> : vector<128xf32>
    %209 = vector.multi_reduction <add>, %208, %cst_67 [0] : vector<32x128xf32> to vector<128xf32>
    %210 = vector.shape_cast %209 : vector<128xf32> to vector<1x128xf32>
    %cst_68 = arith.constant 3.200000e+01 : f32
    %211 = vector.broadcast %cst_68 : f32 to vector<1x128xf32>
    %212 = arith.divf %210, %211 : vector<1x128xf32>
    %cst_69 = arith.constant 9.99999974E-6 : f32
    %213 = vector.broadcast %cst_69 : f32 to vector<1x128xf32>
    %214 = arith.addf %212, %213 : vector<1x128xf32>
    %215 = math.rsqrt %214 : vector<1x128xf32>
    %216 = vector.broadcast %215 : vector<1x128xf32> to vector<32x128xf32>
    %217 = arith.mulf %207, %216 : vector<32x128xf32>
    %218 = vector.broadcast %199 : vector<32x1xf32> to vector<32x128xf32>
    %219 = arith.mulf %217, %218 : vector<32x128xf32>
    %220 = vector.broadcast %201 : vector<32x1xf32> to vector<32x128xf32>
    %221 = arith.addf %219, %220 : vector<32x128xf32>
    %c0_70 = arith.constant 0 : index
    %c0_71 = arith.constant 0 : index
    %c0_72 = arith.constant 0 : index
    %222 = vector.load %arg11[%c0_70, %c0_71, %c0_72] : memref<3x64x32xbf16, #tpu.memory_space<vmem>>, vector<1x64x32xbf16>
    %223 = vector.shape_cast %222 : vector<1x64x32xbf16> to vector<64x32xbf16>
    %224 = arith.truncf %221 : vector<32x128xf32> to vector<32x128xbf16>
    %cst_73 = arith.constant dense<0.000000e+00> : vector<64x128xf32>
    %225 = tpu.matmul %223, %224, %cst_73 {dimension_numbers = #tpu.dot_dimension_numbers<[1], [0], [0], [1], [0, 0, 1, 1], [], []>} : vector<64x32xbf16>, vector<32x128xbf16>, vector<64x128xf32> -> vector<64x128xf32>
    %c0_74 = arith.constant 0 : index
    %c0_75 = arith.constant 0 : index
    %c0_76 = arith.constant 0 : index
    %226 = vector.load %arg12[%c0_74, %c0_75, %c0_76] : memref<3x64x1xf32, #tpu.memory_space<vmem>>, vector<1x64x1xf32>
    %227 = vector.shape_cast %226 : vector<1x64x1xf32> to vector<64x1xf32>
    %228 = vector.broadcast %227 : vector<64x1xf32> to vector<64x128xf32>
    %229 = arith.addf %225, %228 : vector<64x128xf32>
    %cst_77 = arith.constant 0.000000e+00 : f32
    %230 = vector.broadcast %cst_77 : f32 to vector<64x128xf32>
    %231 = arith.maximumf %229, %230 : vector<64x128xf32>
    %c0_78 = arith.constant 0 : index
    %c0_79 = arith.constant 0 : index
    %c0_80 = arith.constant 0 : index
    %232 = vector.load %arg13[%c0_78, %c0_79, %c0_80] : memref<3x32x64xbf16, #tpu.memory_space<vmem>>, vector<1x32x64xbf16>
    %233 = vector.shape_cast %232 : vector<1x32x64xbf16> to vector<32x64xbf16>
    %234 = arith.truncf %231 : vector<64x128xf32> to vector<64x128xbf16>
    %cst_81 = arith.constant dense<0.000000e+00> : vector<32x128xf32>
    %235 = tpu.matmul %233, %234, %cst_81 {dimension_numbers = #tpu.dot_dimension_numbers<[1], [0], [0], [1], [0, 0, 1, 1], [], []>} : vector<32x64xbf16>, vector<64x128xbf16>, vector<32x128xf32> -> vector<32x128xf32>
    %c0_82 = arith.constant 0 : index
    %c0_83 = arith.constant 0 : index
    %c0_84 = arith.constant 0 : index
    %236 = vector.load %arg14[%c0_82, %c0_83, %c0_84] : memref<3x32x1xf32, #tpu.memory_space<vmem>>, vector<1x32x1xf32>
    %237 = vector.shape_cast %236 : vector<1x32x1xf32> to vector<32x1xf32>
    %238 = vector.broadcast %237 : vector<32x1xf32> to vector<32x128xf32>
    %239 = arith.addf %235, %238 : vector<32x128xf32>
    %240 = arith.addf %221, %239 : vector<32x128xf32>
    %c0_85 = arith.constant 0 : index
    %c1 = arith.constant 1 : index
    %c0_86 = arith.constant 0 : index
    %c0_87 = arith.constant 0 : index
    %241 = vector.load %arg9[%c0_85, %c1, %c0_86, %c0_87] : memref<3x2x32x1xf32, #tpu.memory_space<vmem>>, vector<1x1x32x1xf32>
    %242 = vector.shape_cast %241 : vector<1x1x32x1xf32> to vector<32x1xf32>
    %c0_88 = arith.constant 0 : index
    %c1_89 = arith.constant 1 : index
    %c0_90 = arith.constant 0 : index
    %c0_91 = arith.constant 0 : index
    %243 = vector.load %arg10[%c0_88, %c1_89, %c0_90, %c0_91] : memref<3x2x32x1xf32, #tpu.memory_space<vmem>>, vector<1x1x32x1xf32>
    %244 = vector.shape_cast %243 : vector<1x1x32x1xf32> to vector<32x1xf32>
    %cst_92 = arith.constant dense<0.000000e+00> : vector<128xf32>
    %245 = vector.multi_reduction <add>, %240, %cst_92 [0] : vector<32x128xf32> to vector<128xf32>
    %246 = vector.shape_cast %245 : vector<128xf32> to vector<1x128xf32>
    %cst_93 = arith.constant 3.200000e+01 : f32
    %247 = vector.broadcast %cst_93 : f32 to vector<1x128xf32>
    %248 = arith.divf %246, %247 : vector<1x128xf32>
    %249 = vector.broadcast %248 : vector<1x128xf32> to vector<32x128xf32>
    %250 = arith.subf %240, %249 : vector<32x128xf32>
    %251 = arith.mulf %250, %250 : vector<32x128xf32>
    %cst_94 = arith.constant dense<0.000000e+00> : vector<128xf32>
    %252 = vector.multi_reduction <add>, %251, %cst_94 [0] : vector<32x128xf32> to vector<128xf32>
    %253 = vector.shape_cast %252 : vector<128xf32> to vector<1x128xf32>
    %cst_95 = arith.constant 3.200000e+01 : f32
    %254 = vector.broadcast %cst_95 : f32 to vector<1x128xf32>
    %255 = arith.divf %253, %254 : vector<1x128xf32>
    %cst_96 = arith.constant 9.99999974E-6 : f32
    %256 = vector.broadcast %cst_96 : f32 to vector<1x128xf32>
    %257 = arith.addf %255, %256 : vector<1x128xf32>
    %258 = math.rsqrt %257 : vector<1x128xf32>
    %259 = vector.broadcast %258 : vector<1x128xf32> to vector<32x128xf32>
    %260 = arith.mulf %250, %259 : vector<32x128xf32>
    %261 = vector.broadcast %242 : vector<32x1xf32> to vector<32x128xf32>
    %262 = arith.mulf %260, %261 : vector<32x128xf32>
    %263 = vector.broadcast %244 : vector<32x1xf32> to vector<32x128xf32>
    %264 = arith.addf %262, %263 : vector<32x128xf32>
    %c1_97 = arith.constant 1 : index
    %c0_98 = arith.constant 0 : index
    %c0_99 = arith.constant 0 : index
    %265 = vector.load %arg3[%c1_97, %c0_98, %c0_99] : memref<3x32x32xbf16, #tpu.memory_space<vmem>>, vector<1x32x32xbf16>
    %266 = vector.shape_cast %265 : vector<1x32x32xbf16> to vector<32x32xbf16>
    %267 = arith.truncf %264 : vector<32x128xf32> to vector<32x128xbf16>
    %cst_100 = arith.constant dense<0.000000e+00> : vector<32x128xf32>
    %268 = tpu.matmul %266, %267, %cst_100 {dimension_numbers = #tpu.dot_dimension_numbers<[1], [0], [0], [1], [0, 0, 1, 1], [], []>} : vector<32x32xbf16>, vector<32x128xbf16>, vector<32x128xf32> -> vector<32x128xf32>
    %c1_101 = arith.constant 1 : index
    %c0_102 = arith.constant 0 : index
    %c0_103 = arith.constant 0 : index
    %269 = vector.load %arg5[%c1_101, %c0_102, %c0_103] : memref<3x32x128xf32, #tpu.memory_space<vmem>>, vector<1x32x128xf32>
    %270 = vector.shape_cast %269 : vector<1x32x128xf32> to vector<32x128xf32>
    %271 = arith.addf %268, %270 : vector<32x128xf32>
    %c1_104 = arith.constant 1 : index
    %c0_105 = arith.constant 0 : index
    %c0_106 = arith.constant 0 : index
    %272 = vector.load %arg4[%c1_104, %c0_105, %c0_106] : memref<3x64x32xbf16, #tpu.memory_space<vmem>>, vector<1x64x32xbf16>
    %273 = vector.shape_cast %272 : vector<1x64x32xbf16> to vector<64x32xbf16>
    %274 = arith.truncf %3 : vector<32x128xf32> to vector<32x128xbf16>
    %cst_107 = arith.constant dense<0.000000e+00> : vector<64x128xf32>
    %275 = tpu.matmul %273, %274, %cst_107 {dimension_numbers = #tpu.dot_dimension_numbers<[1], [0], [0], [1], [0, 0, 1, 1], [], []>} : vector<64x32xbf16>, vector<32x128xbf16>, vector<64x128xf32> -> vector<64x128xf32>
    %c1_108 = arith.constant 1 : index
    %c0_109 = arith.constant 0 : index
    %c0_110 = arith.constant 0 : index
    %276 = vector.load %arg6[%c1_108, %c0_109, %c0_110] : memref<3x64x128xf32, #tpu.memory_space<vmem>>, vector<1x64x128xf32>
    %277 = vector.shape_cast %276 : vector<1x64x128xf32> to vector<64x128xf32>
    %278 = arith.addf %275, %277 : vector<64x128xf32>
    %279 = vector.extract_strided_slice %271 {offsets = [0, 0], sizes = [32, 64], strides = [1, 1]} : vector<32x128xf32> to vector<32x64xf32>
    %280 = vector.extract_strided_slice %278 {offsets = [0, 0], sizes = [32, 64], strides = [1, 1]} : vector<64x128xf32> to vector<32x64xf32>
    %281 = vector.extract_strided_slice %278 {offsets = [32, 0], sizes = [32, 64], strides = [1, 1]} : vector<64x128xf32> to vector<32x64xf32>
    %282 = vector.extract_strided_slice %279 {offsets = [0, 0], sizes = [8, 64], strides = [1, 1]} : vector<32x64xf32> to vector<8x64xf32>
    %283 = vector.extract_strided_slice %280 {offsets = [0, 0], sizes = [8, 64], strides = [1, 1]} : vector<32x64xf32> to vector<8x64xf32>
    %284 = vector.extract_strided_slice %281 {offsets = [0, 0], sizes = [8, 64], strides = [1, 1]} : vector<32x64xf32> to vector<8x64xf32>
    %285 = tpu.transpose %283, [1, 0] : vector<8x64xf32> -> vector<64x8xf32>
    %286 = arith.truncf %285 : vector<64x8xf32> to vector<64x8xbf16>
    %287 = arith.truncf %282 : vector<8x64xf32> to vector<8x64xbf16>
    %cst_111 = arith.constant dense<0.000000e+00> : vector<64x64xf32>
    %288 = tpu.matmul %286, %287, %cst_111 {dimension_numbers = #tpu.dot_dimension_numbers<[1], [0], [0], [1], [0, 0, 1, 1], [], []>} : vector<64x8xbf16>, vector<8x64xbf16>, vector<64x64xf32> -> vector<64x64xf32>
    %cst_112 = arith.constant dense<0xFF800000> : vector<64xf32>
    %289 = vector.multi_reduction <maximumf>, %288, %cst_112 [0] : vector<64x64xf32> to vector<64xf32>
    %290 = vector.shape_cast %289 : vector<64xf32> to vector<1x64xf32>
    %291 = vector.broadcast %290 : vector<1x64xf32> to vector<64x64xf32>
    %292 = arith.subf %288, %291 : vector<64x64xf32>
    %293 = math.exp %292 : vector<64x64xf32>
    %cst_113 = arith.constant dense<0.000000e+00> : vector<64xf32>
    %294 = vector.multi_reduction <add>, %293, %cst_113 [0] : vector<64x64xf32> to vector<64xf32>
    %295 = vector.shape_cast %294 : vector<64xf32> to vector<1x64xf32>
    %296 = tpu.reciprocal %295 {approx = true} : vector<1x64xf32> -> vector<1x64xf32>
    %297 = vector.broadcast %296 : vector<1x64xf32> to vector<64x64xf32>
    %298 = arith.mulf %293, %297 : vector<64x64xf32>
    %299 = arith.truncf %284 : vector<8x64xf32> to vector<8x64xbf16>
    %300 = arith.truncf %298 : vector<64x64xf32> to vector<64x64xbf16>
    %cst_114 = arith.constant dense<0.000000e+00> : vector<8x64xf32>
    %301 = tpu.matmul %299, %300, %cst_114 {dimension_numbers = #tpu.dot_dimension_numbers<[1], [0], [0], [1], [0, 0, 1, 1], [], []>} : vector<8x64xbf16>, vector<64x64xbf16>, vector<8x64xf32> -> vector<8x64xf32>
    %302 = vector.extract_strided_slice %279 {offsets = [8, 0], sizes = [8, 64], strides = [1, 1]} : vector<32x64xf32> to vector<8x64xf32>
    %303 = vector.extract_strided_slice %280 {offsets = [8, 0], sizes = [8, 64], strides = [1, 1]} : vector<32x64xf32> to vector<8x64xf32>
    %304 = vector.extract_strided_slice %281 {offsets = [8, 0], sizes = [8, 64], strides = [1, 1]} : vector<32x64xf32> to vector<8x64xf32>
    %305 = tpu.transpose %303, [1, 0] : vector<8x64xf32> -> vector<64x8xf32>
    %306 = arith.truncf %305 : vector<64x8xf32> to vector<64x8xbf16>
    %307 = arith.truncf %302 : vector<8x64xf32> to vector<8x64xbf16>
    %cst_115 = arith.constant dense<0.000000e+00> : vector<64x64xf32>
    %308 = tpu.matmul %306, %307, %cst_115 {dimension_numbers = #tpu.dot_dimension_numbers<[1], [0], [0], [1], [0, 0, 1, 1], [], []>} : vector<64x8xbf16>, vector<8x64xbf16>, vector<64x64xf32> -> vector<64x64xf32>
    %cst_116 = arith.constant dense<0xFF800000> : vector<64xf32>
    %309 = vector.multi_reduction <maximumf>, %308, %cst_116 [0] : vector<64x64xf32> to vector<64xf32>
    %310 = vector.shape_cast %309 : vector<64xf32> to vector<1x64xf32>
    %311 = vector.broadcast %310 : vector<1x64xf32> to vector<64x64xf32>
    %312 = arith.subf %308, %311 : vector<64x64xf32>
    %313 = math.exp %312 : vector<64x64xf32>
    %cst_117 = arith.constant dense<0.000000e+00> : vector<64xf32>
    %314 = vector.multi_reduction <add>, %313, %cst_117 [0] : vector<64x64xf32> to vector<64xf32>
    %315 = vector.shape_cast %314 : vector<64xf32> to vector<1x64xf32>
    %316 = tpu.reciprocal %315 {approx = true} : vector<1x64xf32> -> vector<1x64xf32>
    %317 = vector.broadcast %316 : vector<1x64xf32> to vector<64x64xf32>
    %318 = arith.mulf %313, %317 : vector<64x64xf32>
    %319 = arith.truncf %304 : vector<8x64xf32> to vector<8x64xbf16>
    %320 = arith.truncf %318 : vector<64x64xf32> to vector<64x64xbf16>
    %cst_118 = arith.constant dense<0.000000e+00> : vector<8x64xf32>
    %321 = tpu.matmul %319, %320, %cst_118 {dimension_numbers = #tpu.dot_dimension_numbers<[1], [0], [0], [1], [0, 0, 1, 1], [], []>} : vector<8x64xbf16>, vector<64x64xbf16>, vector<8x64xf32> -> vector<8x64xf32>
    %322 = vector.extract_strided_slice %279 {offsets = [16, 0], sizes = [8, 64], strides = [1, 1]} : vector<32x64xf32> to vector<8x64xf32>
    %323 = vector.extract_strided_slice %280 {offsets = [16, 0], sizes = [8, 64], strides = [1, 1]} : vector<32x64xf32> to vector<8x64xf32>
    %324 = vector.extract_strided_slice %281 {offsets = [16, 0], sizes = [8, 64], strides = [1, 1]} : vector<32x64xf32> to vector<8x64xf32>
    %325 = tpu.transpose %323, [1, 0] : vector<8x64xf32> -> vector<64x8xf32>
    %326 = arith.truncf %325 : vector<64x8xf32> to vector<64x8xbf16>
    %327 = arith.truncf %322 : vector<8x64xf32> to vector<8x64xbf16>
    %cst_119 = arith.constant dense<0.000000e+00> : vector<64x64xf32>
    %328 = tpu.matmul %326, %327, %cst_119 {dimension_numbers = #tpu.dot_dimension_numbers<[1], [0], [0], [1], [0, 0, 1, 1], [], []>} : vector<64x8xbf16>, vector<8x64xbf16>, vector<64x64xf32> -> vector<64x64xf32>
    %cst_120 = arith.constant dense<0xFF800000> : vector<64xf32>
    %329 = vector.multi_reduction <maximumf>, %328, %cst_120 [0] : vector<64x64xf32> to vector<64xf32>
    %330 = vector.shape_cast %329 : vector<64xf32> to vector<1x64xf32>
    %331 = vector.broadcast %330 : vector<1x64xf32> to vector<64x64xf32>
    %332 = arith.subf %328, %331 : vector<64x64xf32>
    %333 = math.exp %332 : vector<64x64xf32>
    %cst_121 = arith.constant dense<0.000000e+00> : vector<64xf32>
    %334 = vector.multi_reduction <add>, %333, %cst_121 [0] : vector<64x64xf32> to vector<64xf32>
    %335 = vector.shape_cast %334 : vector<64xf32> to vector<1x64xf32>
    %336 = tpu.reciprocal %335 {approx = true} : vector<1x64xf32> -> vector<1x64xf32>
    %337 = vector.broadcast %336 : vector<1x64xf32> to vector<64x64xf32>
    %338 = arith.mulf %333, %337 : vector<64x64xf32>
    %339 = arith.truncf %324 : vector<8x64xf32> to vector<8x64xbf16>
    %340 = arith.truncf %338 : vector<64x64xf32> to vector<64x64xbf16>
    %cst_122 = arith.constant dense<0.000000e+00> : vector<8x64xf32>
    %341 = tpu.matmul %339, %340, %cst_122 {dimension_numbers = #tpu.dot_dimension_numbers<[1], [0], [0], [1], [0, 0, 1, 1], [], []>} : vector<8x64xbf16>, vector<64x64xbf16>, vector<8x64xf32> -> vector<8x64xf32>
    %342 = vector.extract_strided_slice %279 {offsets = [24, 0], sizes = [8, 64], strides = [1, 1]} : vector<32x64xf32> to vector<8x64xf32>
    %343 = vector.extract_strided_slice %280 {offsets = [24, 0], sizes = [8, 64], strides = [1, 1]} : vector<32x64xf32> to vector<8x64xf32>
    %344 = vector.extract_strided_slice %281 {offsets = [24, 0], sizes = [8, 64], strides = [1, 1]} : vector<32x64xf32> to vector<8x64xf32>
    %345 = tpu.transpose %343, [1, 0] : vector<8x64xf32> -> vector<64x8xf32>
    %346 = arith.truncf %345 : vector<64x8xf32> to vector<64x8xbf16>
    %347 = arith.truncf %342 : vector<8x64xf32> to vector<8x64xbf16>
    %cst_123 = arith.constant dense<0.000000e+00> : vector<64x64xf32>
    %348 = tpu.matmul %346, %347, %cst_123 {dimension_numbers = #tpu.dot_dimension_numbers<[1], [0], [0], [1], [0, 0, 1, 1], [], []>} : vector<64x8xbf16>, vector<8x64xbf16>, vector<64x64xf32> -> vector<64x64xf32>
    %cst_124 = arith.constant dense<0xFF800000> : vector<64xf32>
    %349 = vector.multi_reduction <maximumf>, %348, %cst_124 [0] : vector<64x64xf32> to vector<64xf32>
    %350 = vector.shape_cast %349 : vector<64xf32> to vector<1x64xf32>
    %351 = vector.broadcast %350 : vector<1x64xf32> to vector<64x64xf32>
    %352 = arith.subf %348, %351 : vector<64x64xf32>
    %353 = math.exp %352 : vector<64x64xf32>
    %cst_125 = arith.constant dense<0.000000e+00> : vector<64xf32>
    %354 = vector.multi_reduction <add>, %353, %cst_125 [0] : vector<64x64xf32> to vector<64xf32>
    %355 = vector.shape_cast %354 : vector<64xf32> to vector<1x64xf32>
    %356 = tpu.reciprocal %355 {approx = true} : vector<1x64xf32> -> vector<1x64xf32>
    %357 = vector.broadcast %356 : vector<1x64xf32> to vector<64x64xf32>
    %358 = arith.mulf %353, %357 : vector<64x64xf32>
    %359 = arith.truncf %344 : vector<8x64xf32> to vector<8x64xbf16>
    %360 = arith.truncf %358 : vector<64x64xf32> to vector<64x64xbf16>
    %cst_126 = arith.constant dense<0.000000e+00> : vector<8x64xf32>
    %361 = tpu.matmul %359, %360, %cst_126 {dimension_numbers = #tpu.dot_dimension_numbers<[1], [0], [0], [1], [0, 0, 1, 1], [], []>} : vector<8x64xbf16>, vector<64x64xbf16>, vector<8x64xf32> -> vector<8x64xf32>
    %362 = tpu.concatenate %301, %321, %341, %361 in 0 : vector<8x64xf32>, vector<8x64xf32>, vector<8x64xf32>, vector<8x64xf32> -> vector<32x64xf32>
    %363 = vector.extract_strided_slice %271 {offsets = [0, 64], sizes = [32, 64], strides = [1, 1]} : vector<32x128xf32> to vector<32x64xf32>
    %364 = vector.extract_strided_slice %278 {offsets = [0, 64], sizes = [32, 64], strides = [1, 1]} : vector<64x128xf32> to vector<32x64xf32>
    %365 = vector.extract_strided_slice %278 {offsets = [32, 64], sizes = [32, 64], strides = [1, 1]} : vector<64x128xf32> to vector<32x64xf32>
    %366 = vector.extract_strided_slice %363 {offsets = [0, 0], sizes = [8, 64], strides = [1, 1]} : vector<32x64xf32> to vector<8x64xf32>
    %367 = vector.extract_strided_slice %364 {offsets = [0, 0], sizes = [8, 64], strides = [1, 1]} : vector<32x64xf32> to vector<8x64xf32>
    %368 = vector.extract_strided_slice %365 {offsets = [0, 0], sizes = [8, 64], strides = [1, 1]} : vector<32x64xf32> to vector<8x64xf32>
    %369 = tpu.transpose %367, [1, 0] : vector<8x64xf32> -> vector<64x8xf32>
    %370 = arith.truncf %369 : vector<64x8xf32> to vector<64x8xbf16>
    %371 = arith.truncf %366 : vector<8x64xf32> to vector<8x64xbf16>
    %cst_127 = arith.constant dense<0.000000e+00> : vector<64x64xf32>
    %372 = tpu.matmul %370, %371, %cst_127 {dimension_numbers = #tpu.dot_dimension_numbers<[1], [0], [0], [1], [0, 0, 1, 1], [], []>} : vector<64x8xbf16>, vector<8x64xbf16>, vector<64x64xf32> -> vector<64x64xf32>
    %cst_128 = arith.constant dense<0xFF800000> : vector<64xf32>
    %373 = vector.multi_reduction <maximumf>, %372, %cst_128 [0] : vector<64x64xf32> to vector<64xf32>
    %374 = vector.shape_cast %373 : vector<64xf32> to vector<1x64xf32>
    %375 = vector.broadcast %374 : vector<1x64xf32> to vector<64x64xf32>
    %376 = arith.subf %372, %375 : vector<64x64xf32>
    %377 = math.exp %376 : vector<64x64xf32>
    %cst_129 = arith.constant dense<0.000000e+00> : vector<64xf32>
    %378 = vector.multi_reduction <add>, %377, %cst_129 [0] : vector<64x64xf32> to vector<64xf32>
    %379 = vector.shape_cast %378 : vector<64xf32> to vector<1x64xf32>
    %380 = tpu.reciprocal %379 {approx = true} : vector<1x64xf32> -> vector<1x64xf32>
    %381 = vector.broadcast %380 : vector<1x64xf32> to vector<64x64xf32>
    %382 = arith.mulf %377, %381 : vector<64x64xf32>
    %383 = arith.truncf %368 : vector<8x64xf32> to vector<8x64xbf16>
    %384 = arith.truncf %382 : vector<64x64xf32> to vector<64x64xbf16>
    %cst_130 = arith.constant dense<0.000000e+00> : vector<8x64xf32>
    %385 = tpu.matmul %383, %384, %cst_130 {dimension_numbers = #tpu.dot_dimension_numbers<[1], [0], [0], [1], [0, 0, 1, 1], [], []>} : vector<8x64xbf16>, vector<64x64xbf16>, vector<8x64xf32> -> vector<8x64xf32>
    %386 = vector.extract_strided_slice %363 {offsets = [8, 0], sizes = [8, 64], strides = [1, 1]} : vector<32x64xf32> to vector<8x64xf32>
    %387 = vector.extract_strided_slice %364 {offsets = [8, 0], sizes = [8, 64], strides = [1, 1]} : vector<32x64xf32> to vector<8x64xf32>
    %388 = vector.extract_strided_slice %365 {offsets = [8, 0], sizes = [8, 64], strides = [1, 1]} : vector<32x64xf32> to vector<8x64xf32>
    %389 = tpu.transpose %387, [1, 0] : vector<8x64xf32> -> vector<64x8xf32>
    %390 = arith.truncf %389 : vector<64x8xf32> to vector<64x8xbf16>
    %391 = arith.truncf %386 : vector<8x64xf32> to vector<8x64xbf16>
    %cst_131 = arith.constant dense<0.000000e+00> : vector<64x64xf32>
    %392 = tpu.matmul %390, %391, %cst_131 {dimension_numbers = #tpu.dot_dimension_numbers<[1], [0], [0], [1], [0, 0, 1, 1], [], []>} : vector<64x8xbf16>, vector<8x64xbf16>, vector<64x64xf32> -> vector<64x64xf32>
    %cst_132 = arith.constant dense<0xFF800000> : vector<64xf32>
    %393 = vector.multi_reduction <maximumf>, %392, %cst_132 [0] : vector<64x64xf32> to vector<64xf32>
    %394 = vector.shape_cast %393 : vector<64xf32> to vector<1x64xf32>
    %395 = vector.broadcast %394 : vector<1x64xf32> to vector<64x64xf32>
    %396 = arith.subf %392, %395 : vector<64x64xf32>
    %397 = math.exp %396 : vector<64x64xf32>
    %cst_133 = arith.constant dense<0.000000e+00> : vector<64xf32>
    %398 = vector.multi_reduction <add>, %397, %cst_133 [0] : vector<64x64xf32> to vector<64xf32>
    %399 = vector.shape_cast %398 : vector<64xf32> to vector<1x64xf32>
    %400 = tpu.reciprocal %399 {approx = true} : vector<1x64xf32> -> vector<1x64xf32>
    %401 = vector.broadcast %400 : vector<1x64xf32> to vector<64x64xf32>
    %402 = arith.mulf %397, %401 : vector<64x64xf32>
    %403 = arith.truncf %388 : vector<8x64xf32> to vector<8x64xbf16>
    %404 = arith.truncf %402 : vector<64x64xf32> to vector<64x64xbf16>
    %cst_134 = arith.constant dense<0.000000e+00> : vector<8x64xf32>
    %405 = tpu.matmul %403, %404, %cst_134 {dimension_numbers = #tpu.dot_dimension_numbers<[1], [0], [0], [1], [0, 0, 1, 1], [], []>} : vector<8x64xbf16>, vector<64x64xbf16>, vector<8x64xf32> -> vector<8x64xf32>
    %406 = vector.extract_strided_slice %363 {offsets = [16, 0], sizes = [8, 64], strides = [1, 1]} : vector<32x64xf32> to vector<8x64xf32>
    %407 = vector.extract_strided_slice %364 {offsets = [16, 0], sizes = [8, 64], strides = [1, 1]} : vector<32x64xf32> to vector<8x64xf32>
    %408 = vector.extract_strided_slice %365 {offsets = [16, 0], sizes = [8, 64], strides = [1, 1]} : vector<32x64xf32> to vector<8x64xf32>
    %409 = tpu.transpose %407, [1, 0] : vector<8x64xf32> -> vector<64x8xf32>
    %410 = arith.truncf %409 : vector<64x8xf32> to vector<64x8xbf16>
    %411 = arith.truncf %406 : vector<8x64xf32> to vector<8x64xbf16>
    %cst_135 = arith.constant dense<0.000000e+00> : vector<64x64xf32>
    %412 = tpu.matmul %410, %411, %cst_135 {dimension_numbers = #tpu.dot_dimension_numbers<[1], [0], [0], [1], [0, 0, 1, 1], [], []>} : vector<64x8xbf16>, vector<8x64xbf16>, vector<64x64xf32> -> vector<64x64xf32>
    %cst_136 = arith.constant dense<0xFF800000> : vector<64xf32>
    %413 = vector.multi_reduction <maximumf>, %412, %cst_136 [0] : vector<64x64xf32> to vector<64xf32>
    %414 = vector.shape_cast %413 : vector<64xf32> to vector<1x64xf32>
    %415 = vector.broadcast %414 : vector<1x64xf32> to vector<64x64xf32>
    %416 = arith.subf %412, %415 : vector<64x64xf32>
    %417 = math.exp %416 : vector<64x64xf32>
    %cst_137 = arith.constant dense<0.000000e+00> : vector<64xf32>
    %418 = vector.multi_reduction <add>, %417, %cst_137 [0] : vector<64x64xf32> to vector<64xf32>
    %419 = vector.shape_cast %418 : vector<64xf32> to vector<1x64xf32>
    %420 = tpu.reciprocal %419 {approx = true} : vector<1x64xf32> -> vector<1x64xf32>
    %421 = vector.broadcast %420 : vector<1x64xf32> to vector<64x64xf32>
    %422 = arith.mulf %417, %421 : vector<64x64xf32>
    %423 = arith.truncf %408 : vector<8x64xf32> to vector<8x64xbf16>
    %424 = arith.truncf %422 : vector<64x64xf32> to vector<64x64xbf16>
    %cst_138 = arith.constant dense<0.000000e+00> : vector<8x64xf32>
    %425 = tpu.matmul %423, %424, %cst_138 {dimension_numbers = #tpu.dot_dimension_numbers<[1], [0], [0], [1], [0, 0, 1, 1], [], []>} : vector<8x64xbf16>, vector<64x64xbf16>, vector<8x64xf32> -> vector<8x64xf32>
    %426 = vector.extract_strided_slice %363 {offsets = [24, 0], sizes = [8, 64], strides = [1, 1]} : vector<32x64xf32> to vector<8x64xf32>
    %427 = vector.extract_strided_slice %364 {offsets = [24, 0], sizes = [8, 64], strides = [1, 1]} : vector<32x64xf32> to vector<8x64xf32>
    %428 = vector.extract_strided_slice %365 {offsets = [24, 0], sizes = [8, 64], strides = [1, 1]} : vector<32x64xf32> to vector<8x64xf32>
    %429 = tpu.transpose %427, [1, 0] : vector<8x64xf32> -> vector<64x8xf32>
    %430 = arith.truncf %429 : vector<64x8xf32> to vector<64x8xbf16>
    %431 = arith.truncf %426 : vector<8x64xf32> to vector<8x64xbf16>
    %cst_139 = arith.constant dense<0.000000e+00> : vector<64x64xf32>
    %432 = tpu.matmul %430, %431, %cst_139 {dimension_numbers = #tpu.dot_dimension_numbers<[1], [0], [0], [1], [0, 0, 1, 1], [], []>} : vector<64x8xbf16>, vector<8x64xbf16>, vector<64x64xf32> -> vector<64x64xf32>
    %cst_140 = arith.constant dense<0xFF800000> : vector<64xf32>
    %433 = vector.multi_reduction <maximumf>, %432, %cst_140 [0] : vector<64x64xf32> to vector<64xf32>
    %434 = vector.shape_cast %433 : vector<64xf32> to vector<1x64xf32>
    %435 = vector.broadcast %434 : vector<1x64xf32> to vector<64x64xf32>
    %436 = arith.subf %432, %435 : vector<64x64xf32>
    %437 = math.exp %436 : vector<64x64xf32>
    %cst_141 = arith.constant dense<0.000000e+00> : vector<64xf32>
    %438 = vector.multi_reduction <add>, %437, %cst_141 [0] : vector<64x64xf32> to vector<64xf32>
    %439 = vector.shape_cast %438 : vector<64xf32> to vector<1x64xf32>
    %440 = tpu.reciprocal %439 {approx = true} : vector<1x64xf32> -> vector<1x64xf32>
    %441 = vector.broadcast %440 : vector<1x64xf32> to vector<64x64xf32>
    %442 = arith.mulf %437, %441 : vector<64x64xf32>
    %443 = arith.truncf %428 : vector<8x64xf32> to vector<8x64xbf16>
    %444 = arith.truncf %442 : vector<64x64xf32> to vector<64x64xbf16>
    %cst_142 = arith.constant dense<0.000000e+00> : vector<8x64xf32>
    %445 = tpu.matmul %443, %444, %cst_142 {dimension_numbers = #tpu.dot_dimension_numbers<[1], [0], [0], [1], [0, 0, 1, 1], [], []>} : vector<8x64xbf16>, vector<64x64xbf16>, vector<8x64xf32> -> vector<8x64xf32>
    %446 = tpu.concatenate %385, %405, %425, %445 in 0 : vector<8x64xf32>, vector<8x64xf32>, vector<8x64xf32>, vector<8x64xf32> -> vector<32x64xf32>
    %447 = tpu.concatenate %362, %446 in 1 : vector<32x64xf32>, vector<32x64xf32> -> vector<32x128xf32>
    %c1_143 = arith.constant 1 : index
    %c0_144 = arith.constant 0 : index
    %c0_145 = arith.constant 0 : index
    %448 = vector.load %arg7[%c1_143, %c0_144, %c0_145] : memref<3x32x32xbf16, #tpu.memory_space<vmem>>, vector<1x32x32xbf16>
    %449 = vector.shape_cast %448 : vector<1x32x32xbf16> to vector<32x32xbf16>
    %450 = arith.truncf %447 : vector<32x128xf32> to vector<32x128xbf16>
    %cst_146 = arith.constant dense<0.000000e+00> : vector<32x128xf32>
    %451 = tpu.matmul %449, %450, %cst_146 {dimension_numbers = #tpu.dot_dimension_numbers<[1], [0], [0], [1], [0, 0, 1, 1], [], []>} : vector<32x32xbf16>, vector<32x128xbf16>, vector<32x128xf32> -> vector<32x128xf32>
    %c1_147 = arith.constant 1 : index
    %c0_148 = arith.constant 0 : index
    %c0_149 = arith.constant 0 : index
    %452 = vector.load %arg8[%c1_147, %c0_148, %c0_149] : memref<3x32x1xf32, #tpu.memory_space<vmem>>, vector<1x32x1xf32>
    %453 = vector.shape_cast %452 : vector<1x32x1xf32> to vector<32x1xf32>
    %454 = vector.broadcast %453 : vector<32x1xf32> to vector<32x128xf32>
    %455 = arith.addf %451, %454 : vector<32x128xf32>
    %c1_150 = arith.constant 1 : index
    %c0_151 = arith.constant 0 : index
    %c0_152 = arith.constant 0 : index
    %c0_153 = arith.constant 0 : index
    %456 = vector.load %arg9[%c1_150, %c0_151, %c0_152, %c0_153] : memref<3x2x32x1xf32, #tpu.memory_space<vmem>>, vector<1x1x32x1xf32>
    %457 = vector.shape_cast %456 : vector<1x1x32x1xf32> to vector<32x1xf32>
    %c1_154 = arith.constant 1 : index
    %c0_155 = arith.constant 0 : index
    %c0_156 = arith.constant 0 : index
    %c0_157 = arith.constant 0 : index
    %458 = vector.load %arg10[%c1_154, %c0_155, %c0_156, %c0_157] : memref<3x2x32x1xf32, #tpu.memory_space<vmem>>, vector<1x1x32x1xf32>
    %459 = vector.shape_cast %458 : vector<1x1x32x1xf32> to vector<32x1xf32>
    %cst_158 = arith.constant dense<0.000000e+00> : vector<128xf32>
    %460 = vector.multi_reduction <add>, %455, %cst_158 [0] : vector<32x128xf32> to vector<128xf32>
    %461 = vector.shape_cast %460 : vector<128xf32> to vector<1x128xf32>
    %cst_159 = arith.constant 3.200000e+01 : f32
    %462 = vector.broadcast %cst_159 : f32 to vector<1x128xf32>
    %463 = arith.divf %461, %462 : vector<1x128xf32>
    %464 = vector.broadcast %463 : vector<1x128xf32> to vector<32x128xf32>
    %465 = arith.subf %455, %464 : vector<32x128xf32>
    %466 = arith.mulf %465, %465 : vector<32x128xf32>
    %cst_160 = arith.constant dense<0.000000e+00> : vector<128xf32>
    %467 = vector.multi_reduction <add>, %466, %cst_160 [0] : vector<32x128xf32> to vector<128xf32>
    %468 = vector.shape_cast %467 : vector<128xf32> to vector<1x128xf32>
    %cst_161 = arith.constant 3.200000e+01 : f32
    %469 = vector.broadcast %cst_161 : f32 to vector<1x128xf32>
    %470 = arith.divf %468, %469 : vector<1x128xf32>
    %cst_162 = arith.constant 9.99999974E-6 : f32
    %471 = vector.broadcast %cst_162 : f32 to vector<1x128xf32>
    %472 = arith.addf %470, %471 : vector<1x128xf32>
    %473 = math.rsqrt %472 : vector<1x128xf32>
    %474 = vector.broadcast %473 : vector<1x128xf32> to vector<32x128xf32>
    %475 = arith.mulf %465, %474 : vector<32x128xf32>
    %476 = vector.broadcast %457 : vector<32x1xf32> to vector<32x128xf32>
    %477 = arith.mulf %475, %476 : vector<32x128xf32>
    %478 = vector.broadcast %459 : vector<32x1xf32> to vector<32x128xf32>
    %479 = arith.addf %477, %478 : vector<32x128xf32>
    %c1_163 = arith.constant 1 : index
    %c0_164 = arith.constant 0 : index
    %c0_165 = arith.constant 0 : index
    %480 = vector.load %arg11[%c1_163, %c0_164, %c0_165] : memref<3x64x32xbf16, #tpu.memory_space<vmem>>, vector<1x64x32xbf16>
    %481 = vector.shape_cast %480 : vector<1x64x32xbf16> to vector<64x32xbf16>
    %482 = arith.truncf %479 : vector<32x128xf32> to vector<32x128xbf16>
    %cst_166 = arith.constant dense<0.000000e+00> : vector<64x128xf32>
    %483 = tpu.matmul %481, %482, %cst_166 {dimension_numbers = #tpu.dot_dimension_numbers<[1], [0], [0], [1], [0, 0, 1, 1], [], []>} : vector<64x32xbf16>, vector<32x128xbf16>, vector<64x128xf32> -> vector<64x128xf32>
    %c1_167 = arith.constant 1 : index
    %c0_168 = arith.constant 0 : index
    %c0_169 = arith.constant 0 : index
    %484 = vector.load %arg12[%c1_167, %c0_168, %c0_169] : memref<3x64x1xf32, #tpu.memory_space<vmem>>, vector<1x64x1xf32>
    %485 = vector.shape_cast %484 : vector<1x64x1xf32> to vector<64x1xf32>
    %486 = vector.broadcast %485 : vector<64x1xf32> to vector<64x128xf32>
    %487 = arith.addf %483, %486 : vector<64x128xf32>
    %cst_170 = arith.constant 0.000000e+00 : f32
    %488 = vector.broadcast %cst_170 : f32 to vector<64x128xf32>
    %489 = arith.maximumf %487, %488 : vector<64x128xf32>
    %c1_171 = arith.constant 1 : index
    %c0_172 = arith.constant 0 : index
    %c0_173 = arith.constant 0 : index
    %490 = vector.load %arg13[%c1_171, %c0_172, %c0_173] : memref<3x32x64xbf16, #tpu.memory_space<vmem>>, vector<1x32x64xbf16>
    %491 = vector.shape_cast %490 : vector<1x32x64xbf16> to vector<32x64xbf16>
    %492 = arith.truncf %489 : vector<64x128xf32> to vector<64x128xbf16>
    %cst_174 = arith.constant dense<0.000000e+00> : vector<32x128xf32>
    %493 = tpu.matmul %491, %492, %cst_174 {dimension_numbers = #tpu.dot_dimension_numbers<[1], [0], [0], [1], [0, 0, 1, 1], [], []>} : vector<32x64xbf16>, vector<64x128xbf16>, vector<32x128xf32> -> vector<32x128xf32>
    %c1_175 = arith.constant 1 : index
    %c0_176 = arith.constant 0 : index
    %c0_177 = arith.constant 0 : index
    %494 = vector.load %arg14[%c1_175, %c0_176, %c0_177] : memref<3x32x1xf32, #tpu.memory_space<vmem>>, vector<1x32x1xf32>
    %495 = vector.shape_cast %494 : vector<1x32x1xf32> to vector<32x1xf32>
    %496 = vector.broadcast %495 : vector<32x1xf32> to vector<32x128xf32>
    %497 = arith.addf %493, %496 : vector<32x128xf32>
    %498 = arith.addf %479, %497 : vector<32x128xf32>
    %c1_178 = arith.constant 1 : index
    %c1_179 = arith.constant 1 : index
    %c0_180 = arith.constant 0 : index
    %c0_181 = arith.constant 0 : index
    %499 = vector.load %arg9[%c1_178, %c1_179, %c0_180, %c0_181] : memref<3x2x32x1xf32, #tpu.memory_space<vmem>>, vector<1x1x32x1xf32>
    %500 = vector.shape_cast %499 : vector<1x1x32x1xf32> to vector<32x1xf32>
    %c1_182 = arith.constant 1 : index
    %c1_183 = arith.constant 1 : index
    %c0_184 = arith.constant 0 : index
    %c0_185 = arith.constant 0 : index
    %501 = vector.load %arg10[%c1_182, %c1_183, %c0_184, %c0_185] : memref<3x2x32x1xf32, #tpu.memory_space<vmem>>, vector<1x1x32x1xf32>
    %502 = vector.shape_cast %501 : vector<1x1x32x1xf32> to vector<32x1xf32>
    %cst_186 = arith.constant dense<0.000000e+00> : vector<128xf32>
    %503 = vector.multi_reduction <add>, %498, %cst_186 [0] : vector<32x128xf32> to vector<128xf32>
    %504 = vector.shape_cast %503 : vector<128xf32> to vector<1x128xf32>
    %cst_187 = arith.constant 3.200000e+01 : f32
    %505 = vector.broadcast %cst_187 : f32 to vector<1x128xf32>
    %506 = arith.divf %504, %505 : vector<1x128xf32>
    %507 = vector.broadcast %506 : vector<1x128xf32> to vector<32x128xf32>
    %508 = arith.subf %498, %507 : vector<32x128xf32>
    %509 = arith.mulf %508, %508 : vector<32x128xf32>
    %cst_188 = arith.constant dense<0.000000e+00> : vector<128xf32>
    %510 = vector.multi_reduction <add>, %509, %cst_188 [0] : vector<32x128xf32> to vector<128xf32>
    %511 = vector.shape_cast %510 : vector<128xf32> to vector<1x128xf32>
    %cst_189 = arith.constant 3.200000e+01 : f32
    %512 = vector.broadcast %cst_189 : f32 to vector<1x128xf32>
    %513 = arith.divf %511, %512 : vector<1x128xf32>
    %cst_190 = arith.constant 9.99999974E-6 : f32
    %514 = vector.broadcast %cst_190 : f32 to vector<1x128xf32>
    %515 = arith.addf %513, %514 : vector<1x128xf32>
    %516 = math.rsqrt %515 : vector<1x128xf32>
    %517 = vector.broadcast %516 : vector<1x128xf32> to vector<32x128xf32>
    %518 = arith.mulf %508, %517 : vector<32x128xf32>
    %519 = vector.broadcast %500 : vector<32x1xf32> to vector<32x128xf32>
    %520 = arith.mulf %518, %519 : vector<32x128xf32>
    %521 = vector.broadcast %502 : vector<32x1xf32> to vector<32x128xf32>
    %522 = arith.addf %520, %521 : vector<32x128xf32>
    %c2 = arith.constant 2 : index
    %c0_191 = arith.constant 0 : index
    %c0_192 = arith.constant 0 : index
    %523 = vector.load %arg3[%c2, %c0_191, %c0_192] : memref<3x32x32xbf16, #tpu.memory_space<vmem>>, vector<1x32x32xbf16>
    %524 = vector.shape_cast %523 : vector<1x32x32xbf16> to vector<32x32xbf16>
    %525 = arith.truncf %264 : vector<32x128xf32> to vector<32x128xbf16>
    %cst_193 = arith.constant dense<0.000000e+00> : vector<32x128xf32>
    %526 = tpu.matmul %524, %525, %cst_193 {dimension_numbers = #tpu.dot_dimension_numbers<[1], [0], [0], [1], [0, 0, 1, 1], [], []>} : vector<32x32xbf16>, vector<32x128xbf16>, vector<32x128xf32> -> vector<32x128xf32>
    %c2_194 = arith.constant 2 : index
    %c0_195 = arith.constant 0 : index
    %c0_196 = arith.constant 0 : index
    %527 = vector.load %arg5[%c2_194, %c0_195, %c0_196] : memref<3x32x128xf32, #tpu.memory_space<vmem>>, vector<1x32x128xf32>
    %528 = vector.shape_cast %527 : vector<1x32x128xf32> to vector<32x128xf32>
    %529 = arith.addf %526, %528 : vector<32x128xf32>
    %c2_197 = arith.constant 2 : index
    %c0_198 = arith.constant 0 : index
    %c0_199 = arith.constant 0 : index
    %530 = vector.load %arg4[%c2_197, %c0_198, %c0_199] : memref<3x64x32xbf16, #tpu.memory_space<vmem>>, vector<1x64x32xbf16>
    %531 = vector.shape_cast %530 : vector<1x64x32xbf16> to vector<64x32xbf16>
    %532 = arith.truncf %5 : vector<32x128xf32> to vector<32x128xbf16>
    %cst_200 = arith.constant dense<0.000000e+00> : vector<64x128xf32>
    %533 = tpu.matmul %531, %532, %cst_200 {dimension_numbers = #tpu.dot_dimension_numbers<[1], [0], [0], [1], [0, 0, 1, 1], [], []>} : vector<64x32xbf16>, vector<32x128xbf16>, vector<64x128xf32> -> vector<64x128xf32>
    %c2_201 = arith.constant 2 : index
    %c0_202 = arith.constant 0 : index
    %c0_203 = arith.constant 0 : index
    %534 = vector.load %arg6[%c2_201, %c0_202, %c0_203] : memref<3x64x128xf32, #tpu.memory_space<vmem>>, vector<1x64x128xf32>
    %535 = vector.shape_cast %534 : vector<1x64x128xf32> to vector<64x128xf32>
    %536 = arith.addf %533, %535 : vector<64x128xf32>
    %537 = vector.extract_strided_slice %529 {offsets = [0, 0], sizes = [32, 64], strides = [1, 1]} : vector<32x128xf32> to vector<32x64xf32>
    %538 = vector.extract_strided_slice %536 {offsets = [0, 0], sizes = [32, 64], strides = [1, 1]} : vector<64x128xf32> to vector<32x64xf32>
    %539 = vector.extract_strided_slice %536 {offsets = [32, 0], sizes = [32, 64], strides = [1, 1]} : vector<64x128xf32> to vector<32x64xf32>
    %540 = vector.extract_strided_slice %537 {offsets = [0, 0], sizes = [8, 64], strides = [1, 1]} : vector<32x64xf32> to vector<8x64xf32>
    %541 = vector.extract_strided_slice %538 {offsets = [0, 0], sizes = [8, 64], strides = [1, 1]} : vector<32x64xf32> to vector<8x64xf32>
    %542 = vector.extract_strided_slice %539 {offsets = [0, 0], sizes = [8, 64], strides = [1, 1]} : vector<32x64xf32> to vector<8x64xf32>
    %543 = tpu.transpose %541, [1, 0] : vector<8x64xf32> -> vector<64x8xf32>
    %544 = arith.truncf %543 : vector<64x8xf32> to vector<64x8xbf16>
    %545 = arith.truncf %540 : vector<8x64xf32> to vector<8x64xbf16>
    %cst_204 = arith.constant dense<0.000000e+00> : vector<64x64xf32>
    %546 = tpu.matmul %544, %545, %cst_204 {dimension_numbers = #tpu.dot_dimension_numbers<[1], [0], [0], [1], [0, 0, 1, 1], [], []>} : vector<64x8xbf16>, vector<8x64xbf16>, vector<64x64xf32> -> vector<64x64xf32>
    %cst_205 = arith.constant dense<0xFF800000> : vector<64xf32>
    %547 = vector.multi_reduction <maximumf>, %546, %cst_205 [0] : vector<64x64xf32> to vector<64xf32>
    %548 = vector.shape_cast %547 : vector<64xf32> to vector<1x64xf32>
    %549 = vector.broadcast %548 : vector<1x64xf32> to vector<64x64xf32>
    %550 = arith.subf %546, %549 : vector<64x64xf32>
    %551 = math.exp %550 : vector<64x64xf32>
    %cst_206 = arith.constant dense<0.000000e+00> : vector<64xf32>
    %552 = vector.multi_reduction <add>, %551, %cst_206 [0] : vector<64x64xf32> to vector<64xf32>
    %553 = vector.shape_cast %552 : vector<64xf32> to vector<1x64xf32>
    %554 = tpu.reciprocal %553 {approx = true} : vector<1x64xf32> -> vector<1x64xf32>
    %555 = vector.broadcast %554 : vector<1x64xf32> to vector<64x64xf32>
    %556 = arith.mulf %551, %555 : vector<64x64xf32>
    %557 = arith.truncf %542 : vector<8x64xf32> to vector<8x64xbf16>
    %558 = arith.truncf %556 : vector<64x64xf32> to vector<64x64xbf16>
    %cst_207 = arith.constant dense<0.000000e+00> : vector<8x64xf32>
    %559 = tpu.matmul %557, %558, %cst_207 {dimension_numbers = #tpu.dot_dimension_numbers<[1], [0], [0], [1], [0, 0, 1, 1], [], []>} : vector<8x64xbf16>, vector<64x64xbf16>, vector<8x64xf32> -> vector<8x64xf32>
    %560 = vector.extract_strided_slice %537 {offsets = [8, 0], sizes = [8, 64], strides = [1, 1]} : vector<32x64xf32> to vector<8x64xf32>
    %561 = vector.extract_strided_slice %538 {offsets = [8, 0], sizes = [8, 64], strides = [1, 1]} : vector<32x64xf32> to vector<8x64xf32>
    %562 = vector.extract_strided_slice %539 {offsets = [8, 0], sizes = [8, 64], strides = [1, 1]} : vector<32x64xf32> to vector<8x64xf32>
    %563 = tpu.transpose %561, [1, 0] : vector<8x64xf32> -> vector<64x8xf32>
    %564 = arith.truncf %563 : vector<64x8xf32> to vector<64x8xbf16>
    %565 = arith.truncf %560 : vector<8x64xf32> to vector<8x64xbf16>
    %cst_208 = arith.constant dense<0.000000e+00> : vector<64x64xf32>
    %566 = tpu.matmul %564, %565, %cst_208 {dimension_numbers = #tpu.dot_dimension_numbers<[1], [0], [0], [1], [0, 0, 1, 1], [], []>} : vector<64x8xbf16>, vector<8x64xbf16>, vector<64x64xf32> -> vector<64x64xf32>
    %cst_209 = arith.constant dense<0xFF800000> : vector<64xf32>
    %567 = vector.multi_reduction <maximumf>, %566, %cst_209 [0] : vector<64x64xf32> to vector<64xf32>
    %568 = vector.shape_cast %567 : vector<64xf32> to vector<1x64xf32>
    %569 = vector.broadcast %568 : vector<1x64xf32> to vector<64x64xf32>
    %570 = arith.subf %566, %569 : vector<64x64xf32>
    %571 = math.exp %570 : vector<64x64xf32>
    %cst_210 = arith.constant dense<0.000000e+00> : vector<64xf32>
    %572 = vector.multi_reduction <add>, %571, %cst_210 [0] : vector<64x64xf32> to vector<64xf32>
    %573 = vector.shape_cast %572 : vector<64xf32> to vector<1x64xf32>
    %574 = tpu.reciprocal %573 {approx = true} : vector<1x64xf32> -> vector<1x64xf32>
    %575 = vector.broadcast %574 : vector<1x64xf32> to vector<64x64xf32>
    %576 = arith.mulf %571, %575 : vector<64x64xf32>
    %577 = arith.truncf %562 : vector<8x64xf32> to vector<8x64xbf16>
    %578 = arith.truncf %576 : vector<64x64xf32> to vector<64x64xbf16>
    %cst_211 = arith.constant dense<0.000000e+00> : vector<8x64xf32>
    %579 = tpu.matmul %577, %578, %cst_211 {dimension_numbers = #tpu.dot_dimension_numbers<[1], [0], [0], [1], [0, 0, 1, 1], [], []>} : vector<8x64xbf16>, vector<64x64xbf16>, vector<8x64xf32> -> vector<8x64xf32>
    %580 = vector.extract_strided_slice %537 {offsets = [16, 0], sizes = [8, 64], strides = [1, 1]} : vector<32x64xf32> to vector<8x64xf32>
    %581 = vector.extract_strided_slice %538 {offsets = [16, 0], sizes = [8, 64], strides = [1, 1]} : vector<32x64xf32> to vector<8x64xf32>
    %582 = vector.extract_strided_slice %539 {offsets = [16, 0], sizes = [8, 64], strides = [1, 1]} : vector<32x64xf32> to vector<8x64xf32>
    %583 = tpu.transpose %581, [1, 0] : vector<8x64xf32> -> vector<64x8xf32>
    %584 = arith.truncf %583 : vector<64x8xf32> to vector<64x8xbf16>
    %585 = arith.truncf %580 : vector<8x64xf32> to vector<8x64xbf16>
    %cst_212 = arith.constant dense<0.000000e+00> : vector<64x64xf32>
    %586 = tpu.matmul %584, %585, %cst_212 {dimension_numbers = #tpu.dot_dimension_numbers<[1], [0], [0], [1], [0, 0, 1, 1], [], []>} : vector<64x8xbf16>, vector<8x64xbf16>, vector<64x64xf32> -> vector<64x64xf32>
    %cst_213 = arith.constant dense<0xFF800000> : vector<64xf32>
    %587 = vector.multi_reduction <maximumf>, %586, %cst_213 [0] : vector<64x64xf32> to vector<64xf32>
    %588 = vector.shape_cast %587 : vector<64xf32> to vector<1x64xf32>
    %589 = vector.broadcast %588 : vector<1x64xf32> to vector<64x64xf32>
    %590 = arith.subf %586, %589 : vector<64x64xf32>
    %591 = math.exp %590 : vector<64x64xf32>
    %cst_214 = arith.constant dense<0.000000e+00> : vector<64xf32>
    %592 = vector.multi_reduction <add>, %591, %cst_214 [0] : vector<64x64xf32> to vector<64xf32>
    %593 = vector.shape_cast %592 : vector<64xf32> to vector<1x64xf32>
    %594 = tpu.reciprocal %593 {approx = true} : vector<1x64xf32> -> vector<1x64xf32>
    %595 = vector.broadcast %594 : vector<1x64xf32> to vector<64x64xf32>
    %596 = arith.mulf %591, %595 : vector<64x64xf32>
    %597 = arith.truncf %582 : vector<8x64xf32> to vector<8x64xbf16>
    %598 = arith.truncf %596 : vector<64x64xf32> to vector<64x64xbf16>
    %cst_215 = arith.constant dense<0.000000e+00> : vector<8x64xf32>
    %599 = tpu.matmul %597, %598, %cst_215 {dimension_numbers = #tpu.dot_dimension_numbers<[1], [0], [0], [1], [0, 0, 1, 1], [], []>} : vector<8x64xbf16>, vector<64x64xbf16>, vector<8x64xf32> -> vector<8x64xf32>
    %600 = vector.extract_strided_slice %537 {offsets = [24, 0], sizes = [8, 64], strides = [1, 1]} : vector<32x64xf32> to vector<8x64xf32>
    %601 = vector.extract_strided_slice %538 {offsets = [24, 0], sizes = [8, 64], strides = [1, 1]} : vector<32x64xf32> to vector<8x64xf32>
    %602 = vector.extract_strided_slice %539 {offsets = [24, 0], sizes = [8, 64], strides = [1, 1]} : vector<32x64xf32> to vector<8x64xf32>
    %603 = tpu.transpose %601, [1, 0] : vector<8x64xf32> -> vector<64x8xf32>
    %604 = arith.truncf %603 : vector<64x8xf32> to vector<64x8xbf16>
    %605 = arith.truncf %600 : vector<8x64xf32> to vector<8x64xbf16>
    %cst_216 = arith.constant dense<0.000000e+00> : vector<64x64xf32>
    %606 = tpu.matmul %604, %605, %cst_216 {dimension_numbers = #tpu.dot_dimension_numbers<[1], [0], [0], [1], [0, 0, 1, 1], [], []>} : vector<64x8xbf16>, vector<8x64xbf16>, vector<64x64xf32> -> vector<64x64xf32>
    %cst_217 = arith.constant dense<0xFF800000> : vector<64xf32>
    %607 = vector.multi_reduction <maximumf>, %606, %cst_217 [0] : vector<64x64xf32> to vector<64xf32>
    %608 = vector.shape_cast %607 : vector<64xf32> to vector<1x64xf32>
    %609 = vector.broadcast %608 : vector<1x64xf32> to vector<64x64xf32>
    %610 = arith.subf %606, %609 : vector<64x64xf32>
    %611 = math.exp %610 : vector<64x64xf32>
    %cst_218 = arith.constant dense<0.000000e+00> : vector<64xf32>
    %612 = vector.multi_reduction <add>, %611, %cst_218 [0] : vector<64x64xf32> to vector<64xf32>
    %613 = vector.shape_cast %612 : vector<64xf32> to vector<1x64xf32>
    %614 = tpu.reciprocal %613 {approx = true} : vector<1x64xf32> -> vector<1x64xf32>
    %615 = vector.broadcast %614 : vector<1x64xf32> to vector<64x64xf32>
    %616 = arith.mulf %611, %615 : vector<64x64xf32>
    %617 = arith.truncf %602 : vector<8x64xf32> to vector<8x64xbf16>
    %618 = arith.truncf %616 : vector<64x64xf32> to vector<64x64xbf16>
    %cst_219 = arith.constant dense<0.000000e+00> : vector<8x64xf32>
    %619 = tpu.matmul %617, %618, %cst_219 {dimension_numbers = #tpu.dot_dimension_numbers<[1], [0], [0], [1], [0, 0, 1, 1], [], []>} : vector<8x64xbf16>, vector<64x64xbf16>, vector<8x64xf32> -> vector<8x64xf32>
    %620 = tpu.concatenate %559, %579, %599, %619 in 0 : vector<8x64xf32>, vector<8x64xf32>, vector<8x64xf32>, vector<8x64xf32> -> vector<32x64xf32>
    %621 = vector.extract_strided_slice %529 {offsets = [0, 64], sizes = [32, 64], strides = [1, 1]} : vector<32x128xf32> to vector<32x64xf32>
    %622 = vector.extract_strided_slice %536 {offsets = [0, 64], sizes = [32, 64], strides = [1, 1]} : vector<64x128xf32> to vector<32x64xf32>
    %623 = vector.extract_strided_slice %536 {offsets = [32, 64], sizes = [32, 64], strides = [1, 1]} : vector<64x128xf32> to vector<32x64xf32>
    %624 = vector.extract_strided_slice %621 {offsets = [0, 0], sizes = [8, 64], strides = [1, 1]} : vector<32x64xf32> to vector<8x64xf32>
    %625 = vector.extract_strided_slice %622 {offsets = [0, 0], sizes = [8, 64], strides = [1, 1]} : vector<32x64xf32> to vector<8x64xf32>
    %626 = vector.extract_strided_slice %623 {offsets = [0, 0], sizes = [8, 64], strides = [1, 1]} : vector<32x64xf32> to vector<8x64xf32>
    %627 = tpu.transpose %625, [1, 0] : vector<8x64xf32> -> vector<64x8xf32>
    %628 = arith.truncf %627 : vector<64x8xf32> to vector<64x8xbf16>
    %629 = arith.truncf %624 : vector<8x64xf32> to vector<8x64xbf16>
    %cst_220 = arith.constant dense<0.000000e+00> : vector<64x64xf32>
    %630 = tpu.matmul %628, %629, %cst_220 {dimension_numbers = #tpu.dot_dimension_numbers<[1], [0], [0], [1], [0, 0, 1, 1], [], []>} : vector<64x8xbf16>, vector<8x64xbf16>, vector<64x64xf32> -> vector<64x64xf32>
    %cst_221 = arith.constant dense<0xFF800000> : vector<64xf32>
    %631 = vector.multi_reduction <maximumf>, %630, %cst_221 [0] : vector<64x64xf32> to vector<64xf32>
    %632 = vector.shape_cast %631 : vector<64xf32> to vector<1x64xf32>
    %633 = vector.broadcast %632 : vector<1x64xf32> to vector<64x64xf32>
    %634 = arith.subf %630, %633 : vector<64x64xf32>
    %635 = math.exp %634 : vector<64x64xf32>
    %cst_222 = arith.constant dense<0.000000e+00> : vector<64xf32>
    %636 = vector.multi_reduction <add>, %635, %cst_222 [0] : vector<64x64xf32> to vector<64xf32>
    %637 = vector.shape_cast %636 : vector<64xf32> to vector<1x64xf32>
    %638 = tpu.reciprocal %637 {approx = true} : vector<1x64xf32> -> vector<1x64xf32>
    %639 = vector.broadcast %638 : vector<1x64xf32> to vector<64x64xf32>
    %640 = arith.mulf %635, %639 : vector<64x64xf32>
    %641 = arith.truncf %626 : vector<8x64xf32> to vector<8x64xbf16>
    %642 = arith.truncf %640 : vector<64x64xf32> to vector<64x64xbf16>
    %cst_223 = arith.constant dense<0.000000e+00> : vector<8x64xf32>
    %643 = tpu.matmul %641, %642, %cst_223 {dimension_numbers = #tpu.dot_dimension_numbers<[1], [0], [0], [1], [0, 0, 1, 1], [], []>} : vector<8x64xbf16>, vector<64x64xbf16>, vector<8x64xf32> -> vector<8x64xf32>
    %644 = vector.extract_strided_slice %621 {offsets = [8, 0], sizes = [8, 64], strides = [1, 1]} : vector<32x64xf32> to vector<8x64xf32>
    %645 = vector.extract_strided_slice %622 {offsets = [8, 0], sizes = [8, 64], strides = [1, 1]} : vector<32x64xf32> to vector<8x64xf32>
    %646 = vector.extract_strided_slice %623 {offsets = [8, 0], sizes = [8, 64], strides = [1, 1]} : vector<32x64xf32> to vector<8x64xf32>
    %647 = tpu.transpose %645, [1, 0] : vector<8x64xf32> -> vector<64x8xf32>
    %648 = arith.truncf %647 : vector<64x8xf32> to vector<64x8xbf16>
    %649 = arith.truncf %644 : vector<8x64xf32> to vector<8x64xbf16>
    %cst_224 = arith.constant dense<0.000000e+00> : vector<64x64xf32>
    %650 = tpu.matmul %648, %649, %cst_224 {dimension_numbers = #tpu.dot_dimension_numbers<[1], [0], [0], [1], [0, 0, 1, 1], [], []>} : vector<64x8xbf16>, vector<8x64xbf16>, vector<64x64xf32> -> vector<64x64xf32>
    %cst_225 = arith.constant dense<0xFF800000> : vector<64xf32>
    %651 = vector.multi_reduction <maximumf>, %650, %cst_225 [0] : vector<64x64xf32> to vector<64xf32>
    %652 = vector.shape_cast %651 : vector<64xf32> to vector<1x64xf32>
    %653 = vector.broadcast %652 : vector<1x64xf32> to vector<64x64xf32>
    %654 = arith.subf %650, %653 : vector<64x64xf32>
    %655 = math.exp %654 : vector<64x64xf32>
    %cst_226 = arith.constant dense<0.000000e+00> : vector<64xf32>
    %656 = vector.multi_reduction <add>, %655, %cst_226 [0] : vector<64x64xf32> to vector<64xf32>
    %657 = vector.shape_cast %656 : vector<64xf32> to vector<1x64xf32>
    %658 = tpu.reciprocal %657 {approx = true} : vector<1x64xf32> -> vector<1x64xf32>
    %659 = vector.broadcast %658 : vector<1x64xf32> to vector<64x64xf32>
    %660 = arith.mulf %655, %659 : vector<64x64xf32>
    %661 = arith.truncf %646 : vector<8x64xf32> to vector<8x64xbf16>
    %662 = arith.truncf %660 : vector<64x64xf32> to vector<64x64xbf16>
    %cst_227 = arith.constant dense<0.000000e+00> : vector<8x64xf32>
    %663 = tpu.matmul %661, %662, %cst_227 {dimension_numbers = #tpu.dot_dimension_numbers<[1], [0], [0], [1], [0, 0, 1, 1], [], []>} : vector<8x64xbf16>, vector<64x64xbf16>, vector<8x64xf32> -> vector<8x64xf32>
    %664 = vector.extract_strided_slice %621 {offsets = [16, 0], sizes = [8, 64], strides = [1, 1]} : vector<32x64xf32> to vector<8x64xf32>
    %665 = vector.extract_strided_slice %622 {offsets = [16, 0], sizes = [8, 64], strides = [1, 1]} : vector<32x64xf32> to vector<8x64xf32>
    %666 = vector.extract_strided_slice %623 {offsets = [16, 0], sizes = [8, 64], strides = [1, 1]} : vector<32x64xf32> to vector<8x64xf32>
    %667 = tpu.transpose %665, [1, 0] : vector<8x64xf32> -> vector<64x8xf32>
    %668 = arith.truncf %667 : vector<64x8xf32> to vector<64x8xbf16>
    %669 = arith.truncf %664 : vector<8x64xf32> to vector<8x64xbf16>
    %cst_228 = arith.constant dense<0.000000e+00> : vector<64x64xf32>
    %670 = tpu.matmul %668, %669, %cst_228 {dimension_numbers = #tpu.dot_dimension_numbers<[1], [0], [0], [1], [0, 0, 1, 1], [], []>} : vector<64x8xbf16>, vector<8x64xbf16>, vector<64x64xf32> -> vector<64x64xf32>
    %cst_229 = arith.constant dense<0xFF800000> : vector<64xf32>
    %671 = vector.multi_reduction <maximumf>, %670, %cst_229 [0] : vector<64x64xf32> to vector<64xf32>
    %672 = vector.shape_cast %671 : vector<64xf32> to vector<1x64xf32>
    %673 = vector.broadcast %672 : vector<1x64xf32> to vector<64x64xf32>
    %674 = arith.subf %670, %673 : vector<64x64xf32>
    %675 = math.exp %674 : vector<64x64xf32>
    %cst_230 = arith.constant dense<0.000000e+00> : vector<64xf32>
    %676 = vector.multi_reduction <add>, %675, %cst_230 [0] : vector<64x64xf32> to vector<64xf32>
    %677 = vector.shape_cast %676 : vector<64xf32> to vector<1x64xf32>
    %678 = tpu.reciprocal %677 {approx = true} : vector<1x64xf32> -> vector<1x64xf32>
    %679 = vector.broadcast %678 : vector<1x64xf32> to vector<64x64xf32>
    %680 = arith.mulf %675, %679 : vector<64x64xf32>
    %681 = arith.truncf %666 : vector<8x64xf32> to vector<8x64xbf16>
    %682 = arith.truncf %680 : vector<64x64xf32> to vector<64x64xbf16>
    %cst_231 = arith.constant dense<0.000000e+00> : vector<8x64xf32>
    %683 = tpu.matmul %681, %682, %cst_231 {dimension_numbers = #tpu.dot_dimension_numbers<[1], [0], [0], [1], [0, 0, 1, 1], [], []>} : vector<8x64xbf16>, vector<64x64xbf16>, vector<8x64xf32> -> vector<8x64xf32>
    %684 = vector.extract_strided_slice %621 {offsets = [24, 0], sizes = [8, 64], strides = [1, 1]} : vector<32x64xf32> to vector<8x64xf32>
    %685 = vector.extract_strided_slice %622 {offsets = [24, 0], sizes = [8, 64], strides = [1, 1]} : vector<32x64xf32> to vector<8x64xf32>
    %686 = vector.extract_strided_slice %623 {offsets = [24, 0], sizes = [8, 64], strides = [1, 1]} : vector<32x64xf32> to vector<8x64xf32>
    %687 = tpu.transpose %685, [1, 0] : vector<8x64xf32> -> vector<64x8xf32>
    %688 = arith.truncf %687 : vector<64x8xf32> to vector<64x8xbf16>
    %689 = arith.truncf %684 : vector<8x64xf32> to vector<8x64xbf16>
    %cst_232 = arith.constant dense<0.000000e+00> : vector<64x64xf32>
    %690 = tpu.matmul %688, %689, %cst_232 {dimension_numbers = #tpu.dot_dimension_numbers<[1], [0], [0], [1], [0, 0, 1, 1], [], []>} : vector<64x8xbf16>, vector<8x64xbf16>, vector<64x64xf32> -> vector<64x64xf32>
    %cst_233 = arith.constant dense<0xFF800000> : vector<64xf32>
    %691 = vector.multi_reduction <maximumf>, %690, %cst_233 [0] : vector<64x64xf32> to vector<64xf32>
    %692 = vector.shape_cast %691 : vector<64xf32> to vector<1x64xf32>
    %693 = vector.broadcast %692 : vector<1x64xf32> to vector<64x64xf32>
    %694 = arith.subf %690, %693 : vector<64x64xf32>
    %695 = math.exp %694 : vector<64x64xf32>
    %cst_234 = arith.constant dense<0.000000e+00> : vector<64xf32>
    %696 = vector.multi_reduction <add>, %695, %cst_234 [0] : vector<64x64xf32> to vector<64xf32>
    %697 = vector.shape_cast %696 : vector<64xf32> to vector<1x64xf32>
    %698 = tpu.reciprocal %697 {approx = true} : vector<1x64xf32> -> vector<1x64xf32>
    %699 = vector.broadcast %698 : vector<1x64xf32> to vector<64x64xf32>
    %700 = arith.mulf %695, %699 : vector<64x64xf32>
    %701 = arith.truncf %686 : vector<8x64xf32> to vector<8x64xbf16>
    %702 = arith.truncf %700 : vector<64x64xf32> to vector<64x64xbf16>
    %cst_235 = arith.constant dense<0.000000e+00> : vector<8x64xf32>
    %703 = tpu.matmul %701, %702, %cst_235 {dimension_numbers = #tpu.dot_dimension_numbers<[1], [0], [0], [1], [0, 0, 1, 1], [], []>} : vector<8x64xbf16>, vector<64x64xbf16>, vector<8x64xf32> -> vector<8x64xf32>
    %704 = tpu.concatenate %643, %663, %683, %703 in 0 : vector<8x64xf32>, vector<8x64xf32>, vector<8x64xf32>, vector<8x64xf32> -> vector<32x64xf32>
    %705 = tpu.concatenate %620, %704 in 1 : vector<32x64xf32>, vector<32x64xf32> -> vector<32x128xf32>
    %c2_236 = arith.constant 2 : index
    %c0_237 = arith.constant 0 : index
    %c0_238 = arith.constant 0 : index
    %706 = vector.load %arg7[%c2_236, %c0_237, %c0_238] : memref<3x32x32xbf16, #tpu.memory_space<vmem>>, vector<1x32x32xbf16>
    %707 = vector.shape_cast %706 : vector<1x32x32xbf16> to vector<32x32xbf16>
    %708 = arith.truncf %705 : vector<32x128xf32> to vector<32x128xbf16>
    %cst_239 = arith.constant dense<0.000000e+00> : vector<32x128xf32>
    %709 = tpu.matmul %707, %708, %cst_239 {dimension_numbers = #tpu.dot_dimension_numbers<[1], [0], [0], [1], [0, 0, 1, 1], [], []>} : vector<32x32xbf16>, vector<32x128xbf16>, vector<32x128xf32> -> vector<32x128xf32>
    %c2_240 = arith.constant 2 : index
    %c0_241 = arith.constant 0 : index
    %c0_242 = arith.constant 0 : index
    %710 = vector.load %arg8[%c2_240, %c0_241, %c0_242] : memref<3x32x1xf32, #tpu.memory_space<vmem>>, vector<1x32x1xf32>
    %711 = vector.shape_cast %710 : vector<1x32x1xf32> to vector<32x1xf32>
    %712 = vector.broadcast %711 : vector<32x1xf32> to vector<32x128xf32>
    %713 = arith.addf %709, %712 : vector<32x128xf32>
    %c2_243 = arith.constant 2 : index
    %c0_244 = arith.constant 0 : index
    %c0_245 = arith.constant 0 : index
    %c0_246 = arith.constant 0 : index
    %714 = vector.load %arg9[%c2_243, %c0_244, %c0_245, %c0_246] : memref<3x2x32x1xf32, #tpu.memory_space<vmem>>, vector<1x1x32x1xf32>
    %715 = vector.shape_cast %714 : vector<1x1x32x1xf32> to vector<32x1xf32>
    %c2_247 = arith.constant 2 : index
    %c0_248 = arith.constant 0 : index
    %c0_249 = arith.constant 0 : index
    %c0_250 = arith.constant 0 : index
    %716 = vector.load %arg10[%c2_247, %c0_248, %c0_249, %c0_250] : memref<3x2x32x1xf32, #tpu.memory_space<vmem>>, vector<1x1x32x1xf32>
    %717 = vector.shape_cast %716 : vector<1x1x32x1xf32> to vector<32x1xf32>
    %cst_251 = arith.constant dense<0.000000e+00> : vector<128xf32>
    %718 = vector.multi_reduction <add>, %713, %cst_251 [0] : vector<32x128xf32> to vector<128xf32>
    %719 = vector.shape_cast %718 : vector<128xf32> to vector<1x128xf32>
    %cst_252 = arith.constant 3.200000e+01 : f32
    %720 = vector.broadcast %cst_252 : f32 to vector<1x128xf32>
    %721 = arith.divf %719, %720 : vector<1x128xf32>
    %722 = vector.broadcast %721 : vector<1x128xf32> to vector<32x128xf32>
    %723 = arith.subf %713, %722 : vector<32x128xf32>
    %724 = arith.mulf %723, %723 : vector<32x128xf32>
    %cst_253 = arith.constant dense<0.000000e+00> : vector<128xf32>
    %725 = vector.multi_reduction <add>, %724, %cst_253 [0] : vector<32x128xf32> to vector<128xf32>
    %726 = vector.shape_cast %725 : vector<128xf32> to vector<1x128xf32>
    %cst_254 = arith.constant 3.200000e+01 : f32
    %727 = vector.broadcast %cst_254 : f32 to vector<1x128xf32>
    %728 = arith.divf %726, %727 : vector<1x128xf32>
    %cst_255 = arith.constant 9.99999974E-6 : f32
    %729 = vector.broadcast %cst_255 : f32 to vector<1x128xf32>
    %730 = arith.addf %728, %729 : vector<1x128xf32>
    %731 = math.rsqrt %730 : vector<1x128xf32>
    %732 = vector.broadcast %731 : vector<1x128xf32> to vector<32x128xf32>
    %733 = arith.mulf %723, %732 : vector<32x128xf32>
    %734 = vector.broadcast %715 : vector<32x1xf32> to vector<32x128xf32>
    %735 = arith.mulf %733, %734 : vector<32x128xf32>
    %736 = vector.broadcast %717 : vector<32x1xf32> to vector<32x128xf32>
    %737 = arith.addf %735, %736 : vector<32x128xf32>
    %c2_256 = arith.constant 2 : index
    %c0_257 = arith.constant 0 : index
    %c0_258 = arith.constant 0 : index
    %738 = vector.load %arg11[%c2_256, %c0_257, %c0_258] : memref<3x64x32xbf16, #tpu.memory_space<vmem>>, vector<1x64x32xbf16>
    %739 = vector.shape_cast %738 : vector<1x64x32xbf16> to vector<64x32xbf16>
    %740 = arith.truncf %737 : vector<32x128xf32> to vector<32x128xbf16>
    %cst_259 = arith.constant dense<0.000000e+00> : vector<64x128xf32>
    %741 = tpu.matmul %739, %740, %cst_259 {dimension_numbers = #tpu.dot_dimension_numbers<[1], [0], [0], [1], [0, 0, 1, 1], [], []>} : vector<64x32xbf16>, vector<32x128xbf16>, vector<64x128xf32> -> vector<64x128xf32>
    %c2_260 = arith.constant 2 : index
    %c0_261 = arith.constant 0 : index
    %c0_262 = arith.constant 0 : index
    %742 = vector.load %arg12[%c2_260, %c0_261, %c0_262] : memref<3x64x1xf32, #tpu.memory_space<vmem>>, vector<1x64x1xf32>
    %743 = vector.shape_cast %742 : vector<1x64x1xf32> to vector<64x1xf32>
    %744 = vector.broadcast %743 : vector<64x1xf32> to vector<64x128xf32>
    %745 = arith.addf %741, %744 : vector<64x128xf32>
    %cst_263 = arith.constant 0.000000e+00 : f32
    %746 = vector.broadcast %cst_263 : f32 to vector<64x128xf32>
    %747 = arith.maximumf %745, %746 : vector<64x128xf32>
    %c2_264 = arith.constant 2 : index
    %c0_265 = arith.constant 0 : index
    %c0_266 = arith.constant 0 : index
    %748 = vector.load %arg13[%c2_264, %c0_265, %c0_266] : memref<3x32x64xbf16, #tpu.memory_space<vmem>>, vector<1x32x64xbf16>
    %749 = vector.shape_cast %748 : vector<1x32x64xbf16> to vector<32x64xbf16>
    %750 = arith.truncf %747 : vector<64x128xf32> to vector<64x128xbf16>
    %cst_267 = arith.constant dense<0.000000e+00> : vector<32x128xf32>
    %751 = tpu.matmul %749, %750, %cst_267 {dimension_numbers = #tpu.dot_dimension_numbers<[1], [0], [0], [1], [0, 0, 1, 1], [], []>} : vector<32x64xbf16>, vector<64x128xbf16>, vector<32x128xf32> -> vector<32x128xf32>
    %c2_268 = arith.constant 2 : index
    %c0_269 = arith.constant 0 : index
    %c0_270 = arith.constant 0 : index
    %752 = vector.load %arg14[%c2_268, %c0_269, %c0_270] : memref<3x32x1xf32, #tpu.memory_space<vmem>>, vector<1x32x1xf32>
    %753 = vector.shape_cast %752 : vector<1x32x1xf32> to vector<32x1xf32>
    %754 = vector.broadcast %753 : vector<32x1xf32> to vector<32x128xf32>
    %755 = arith.addf %751, %754 : vector<32x128xf32>
    %756 = arith.addf %737, %755 : vector<32x128xf32>
    %c2_271 = arith.constant 2 : index
    %c1_272 = arith.constant 1 : index
    %c0_273 = arith.constant 0 : index
    %c0_274 = arith.constant 0 : index
    %757 = vector.load %arg9[%c2_271, %c1_272, %c0_273, %c0_274] : memref<3x2x32x1xf32, #tpu.memory_space<vmem>>, vector<1x1x32x1xf32>
    %758 = vector.shape_cast %757 : vector<1x1x32x1xf32> to vector<32x1xf32>
    %c2_275 = arith.constant 2 : index
    %c1_276 = arith.constant 1 : index
    %c0_277 = arith.constant 0 : index
    %c0_278 = arith.constant 0 : index
    %759 = vector.load %arg10[%c2_275, %c1_276, %c0_277, %c0_278] : memref<3x2x32x1xf32, #tpu.memory_space<vmem>>, vector<1x1x32x1xf32>
    %760 = vector.shape_cast %759 : vector<1x1x32x1xf32> to vector<32x1xf32>
    %cst_279 = arith.constant dense<0.000000e+00> : vector<128xf32>
    %761 = vector.multi_reduction <add>, %756, %cst_279 [0] : vector<32x128xf32> to vector<128xf32>
    %762 = vector.shape_cast %761 : vector<128xf32> to vector<1x128xf32>
    %cst_280 = arith.constant 3.200000e+01 : f32
    %763 = vector.broadcast %cst_280 : f32 to vector<1x128xf32>
    %764 = arith.divf %762, %763 : vector<1x128xf32>
    %765 = vector.broadcast %764 : vector<1x128xf32> to vector<32x128xf32>
    %766 = arith.subf %756, %765 : vector<32x128xf32>
    %767 = arith.mulf %766, %766 : vector<32x128xf32>
    %cst_281 = arith.constant dense<0.000000e+00> : vector<128xf32>
    %768 = vector.multi_reduction <add>, %767, %cst_281 [0] : vector<32x128xf32> to vector<128xf32>
    %769 = vector.shape_cast %768 : vector<128xf32> to vector<1x128xf32>
    %cst_282 = arith.constant 3.200000e+01 : f32
    %770 = vector.broadcast %cst_282 : f32 to vector<1x128xf32>
    %771 = arith.divf %769, %770 : vector<1x128xf32>
    %cst_283 = arith.constant 9.99999974E-6 : f32
    %772 = vector.broadcast %cst_283 : f32 to vector<1x128xf32>
    %773 = arith.addf %771, %772 : vector<1x128xf32>
    %774 = math.rsqrt %773 : vector<1x128xf32>
    %775 = vector.broadcast %774 : vector<1x128xf32> to vector<32x128xf32>
    %776 = arith.mulf %766, %775 : vector<32x128xf32>
    %777 = vector.broadcast %758 : vector<32x1xf32> to vector<32x128xf32>
    %778 = arith.mulf %776, %777 : vector<32x128xf32>
    %779 = vector.broadcast %760 : vector<32x1xf32> to vector<32x128xf32>
    %780 = arith.addf %778, %779 : vector<32x128xf32>
    %c0_284 = arith.constant 0 : index
    %c0_285 = arith.constant 0 : index
    %c0_286 = arith.constant 0 : index
    %781 = vector.load %arg15[%c0_284, %c0_285, %c0_286] : memref<3x32x32xbf16, #tpu.memory_space<vmem>>, vector<1x32x32xbf16>
    %782 = vector.shape_cast %781 : vector<1x32x32xbf16> to vector<32x32xbf16>
    %783 = arith.truncf %264 : vector<32x128xf32> to vector<32x128xbf16>
    %cst_287 = arith.constant dense<0.000000e+00> : vector<32x128xf32>
    %784 = tpu.matmul %782, %783, %cst_287 {dimension_numbers = #tpu.dot_dimension_numbers<[1], [0], [0], [1], [0, 0, 1, 1], [], []>} : vector<32x32xbf16>, vector<32x128xbf16>, vector<32x128xf32> -> vector<32x128xf32>
    %c1_288 = arith.constant 1 : index
    %c0_289 = arith.constant 0 : index
    %c0_290 = arith.constant 0 : index
    %785 = vector.load %arg15[%c1_288, %c0_289, %c0_290] : memref<3x32x32xbf16, #tpu.memory_space<vmem>>, vector<1x32x32xbf16>
    %786 = vector.shape_cast %785 : vector<1x32x32xbf16> to vector<32x32xbf16>
    %787 = arith.truncf %522 : vector<32x128xf32> to vector<32x128xbf16>
    %cst_291 = arith.constant dense<0.000000e+00> : vector<32x128xf32>
    %788 = tpu.matmul %786, %787, %cst_291 {dimension_numbers = #tpu.dot_dimension_numbers<[1], [0], [0], [1], [0, 0, 1, 1], [], []>} : vector<32x32xbf16>, vector<32x128xbf16>, vector<32x128xf32> -> vector<32x128xf32>
    %789 = arith.addf %784, %788 : vector<32x128xf32>
    %c2_292 = arith.constant 2 : index
    %c0_293 = arith.constant 0 : index
    %c0_294 = arith.constant 0 : index
    %790 = vector.load %arg15[%c2_292, %c0_293, %c0_294] : memref<3x32x32xbf16, #tpu.memory_space<vmem>>, vector<1x32x32xbf16>
    %791 = vector.shape_cast %790 : vector<1x32x32xbf16> to vector<32x32xbf16>
    %792 = arith.truncf %780 : vector<32x128xf32> to vector<32x128xbf16>
    %cst_295 = arith.constant dense<0.000000e+00> : vector<32x128xf32>
    %793 = tpu.matmul %791, %792, %cst_295 {dimension_numbers = #tpu.dot_dimension_numbers<[1], [0], [0], [1], [0, 0, 1, 1], [], []>} : vector<32x32xbf16>, vector<32x128xbf16>, vector<32x128xf32> -> vector<32x128xf32>
    %794 = arith.addf %789, %793 : vector<32x128xf32>
    %c0_296 = arith.constant 0 : index
    %c0_297 = arith.constant 0 : index
    %795 = vector.load %arg16[%c0_296, %c0_297] : memref<32x1xf32, #tpu.memory_space<vmem>>, vector<32x1xf32>
    %796 = vector.broadcast %795 : vector<32x1xf32> to vector<32x128xf32>
    %797 = arith.addf %794, %796 : vector<32x128xf32>
    %c0_298 = arith.constant 0 : index
    %c0_299 = arith.constant 0 : index
    %798 = vector.load %arg17[%c0_298, %c0_299] : memref<32x128xf32, #tpu.memory_space<vmem>>, vector<32x128xf32>
    tpu.vector_store %arg17[%c0_298, %c0_299], %797 {strides = array<i32>} : memref<32x128xf32, #tpu.memory_space<vmem>>, vector<32x128xf32>,
    %c0_300 = arith.constant 0 : index
    %c0_301 = arith.constant 0 : index
    %799 = vector.load %arg18[%c0_300, %c0_301] : memref<32x128xf32, #tpu.memory_space<vmem>>, vector<32x128xf32>
    tpu.vector_store %arg18[%c0_300, %c0_301], %522 {strides = array<i32>} : memref<32x128xf32, #tpu.memory_space<vmem>>, vector<32x128xf32>,
    %c0_302 = arith.constant 0 : index
    %c0_303 = arith.constant 0 : index
    %800 = vector.load %arg19[%c0_302, %c0_303] : memref<32x128xf32, #tpu.memory_space<vmem>>, vector<32x128xf32>
    tpu.vector_store %arg19[%c0_302, %c0_303], %780 {strides = array<i32>} : memref<32x128xf32, #tpu.memory_space<vmem>>, vector<32x128xf32>,
    return
  }
}

</mosaic_0001>

<bundles_post_ra>
// kernel: mfia_forward.1
= control target key start
LH: loop header
LB: loop body
LE: loop exit
PB: predicated region body
PF: predicated region fallthrough
CT: control target
= control target key end

     0   :  { %vm224_vm0 = vcmask 261120   ;;  %vm443_vm1 = vcmask 1043456   ;;  %vm430_vm2 = vcmask 64512   ;;  %vm10953_vm3 = vmmov 0   ;;  %s14500_s0 = inlined_call_operand.vmem [shape: f32[128,32], index: 0, kind: input, shape index: {}]   ;;  %s14501_s4 = inlined_call_operand.vmem [shape: bf16[3,64,32], index: 4, kind: input, shape index: {}]   ;;  %s14502_s3 = inlined_call_operand.vmem [shape: bf16[3,32,32], index: 3, kind: input, shape index: {}]   ;;  %s14503_s6 = inlined_call_operand.vmem [shape: f32[3,64,128], index: 6, kind: input, shape index: {}]   ;;  %s14504_s5 = inlined_call_operand.vmem [shape: f32[3,32,128], index: 5, kind: input, shape index: {}]   ;;  %s14505_s7 = inlined_call_operand.vmem [shape: bf16[3,32,32], index: 7, kind: input, shape index: {}]   ;;  %s14506_s8 = inlined_call_operand.vmem [shape: f32[3,32,1], index: 8, kind: input, shape index: {}]   ;;  %s14507_s9 = inlined_call_operand.vmem [shape: f32[3,2,32,1], index: 9, kind: input, shape index: {}]   ;;  %s14508_s10 = inlined_call_operand.vmem [shape: f32[3,2,32,1], index: 10, kind: input, shape index: {}]   ;;  %s14509_s12 = inlined_call_operand.vmem [shape: f32[3,64,1], index: 12, kind: input, shape index: {}]   ;;  %s14510_s14 = inlined_call_operand.vmem [shape: f32[3,32,1], index: 14, kind: input, shape index: {}]   ;;  %s14511_s11 = inlined_call_operand.vmem [shape: bf16[3,64,32], index: 11, kind: input, shape index: {}]   ;;  %s14512_s1 = inlined_call_operand.vmem [shape: f32[128,32], index: 1, kind: input, shape index: {}]   ;;  %s14513_s13 = inlined_call_operand.vmem [shape: bf16[3,32,64], index: 13, kind: input, shape index: {}]   ;;  %s14514_s2 = inlined_call_operand.vmem [shape: f32[128,32], index: 2, kind: input, shape index: {}]   ;;  %s14515_s16 = inlined_call_operand.vmem [shape: f32[32,1], index: 16, kind: input, shape index: {}]   ;;  %s14516_s18 = inlined_call_operand.vmem [shape: f32[32,128], index: 18, kind: output, shape index: {1}]   ;;  %s14517_s15 = inlined_call_operand.vmem [shape: bf16[3,32,32], index: 15, kind: input, shape index: {}]   ;;  %s14518_s19 = inlined_call_operand.vmem [shape: f32[32,128], index: 19, kind: output, shape index: {2}]   ;;  %s14519_s17 = inlined_call_operand.vmem [shape: f32[32,128], index: 17, kind: output, shape index: {0}]  }
   0x1   :  { %14542 = sst [smem:[#allocation19_spill]] %s14500_s0  ;;  %v210_v43 = vld [vmem:[%s14504_s5] sm:$0xff]  ;;  %v211_v49 = vld [vmem:[%s14504_s5 + $0x8] sm:$0xff]  ;;  %v212_v52 = vld [vmem:[%s14504_s5 + $0x10] sm:$0xff]  ;;  %vm512_vm4 = vcmask 523264  }
   0x2   :  { %14543 = sst [smem:[#allocation20_spill]] %s14501_s4  ;;  %s14546_s20 = sld [smem:[#allocation19_spill]] }
   0x3   :  { %14544 = sst [smem:[#allocation21_spill]] %s14502_s3  ;;  %s14547_s0 = sld [smem:[#allocation20_spill]] }
   0x4   :  { %14545 = sst [smem:[#allocation22_spill]] %s14503_s6  ;;  %s14548_s4 = sld [smem:[#allocation21_spill]] }
   0x5   :  { %s14553_s3 = sld [smem:[#allocation22_spill]] }
   0x8   :  { %v60_v0 = vld [vmem:[%s14546_s20] sm:$0xff]  ;;  %v61_v1 = vld [vmem:[%s14546_s20 + $0x8] sm:$0xff]  ;;  %v62_v2 = vld [vmem:[%s14546_s20 + $0x10] sm:$0xff] }
   0x9   :  { %76 = vxpose.xlu0.b32.start [1/16] (narrow) %v60_v0, 32  ;;  %v63_v3 = vld [vmem:[%s14546_s20 + $0x18] sm:$0xff]  ;;  %v64_v4 = vld [vmem:[%s14546_s20 + $0x20] sm:$0xff]  ;;  %v65_v5 = vld [vmem:[%s14546_s20 + $0x28] sm:$0xff] }
   0xa   :  { %v10459_v6 = vld [vmem:[%s14547_s0] sm:$0xff]   ;;  %v66_v8 = vld [vmem:[%s14546_s20 + $0x30] sm:$0xff]  ;;  %v67_v9 = vld [vmem:[%s14546_s20 + $0x38] sm:$0xff] }
   0xb   :  { %9329 = vmatprep.mubr.msk.bf16.mxu1 %vm224_vm0, %v10459_v6  ;;  %v10461_v7 = vld [vmem:[%s14548_s4] sm:$0xff]   ;;  %v69_v11 = vld [vmem:[%s14546_s20 + $0x48] sm:$0xff]  ;;  %v70_v12 = vld [vmem:[%s14546_s20 + $0x50] sm:$0xff] }
   0xc   :  { %9321 = vmatprep.mubr.msk.bf16.mxu0 %vm224_vm0, %v10461_v7  ;;  %v68_v10 = vld [vmem:[%s14546_s20 + $0x40] sm:$0xff]  ;;  %v71_v13 = vld [vmem:[%s14546_s20 + $0x58] sm:$0xff]  ;;  %v73_v15 = vld [vmem:[%s14546_s20 + $0x68] sm:$0xff] }
   0xd   :  { %77 = vxpose.xlu0.b32.cont [2/16] (narrow) %v61_v1, 32  ;;  %v72_v14 = vld [vmem:[%s14546_s20 + $0x60] sm:$0xff]  ;;  %v74_v16 = vld [vmem:[%s14546_s20 + $0x70] sm:$0xff]  ;;  %v75_v17 = vld [vmem:[%s14546_s20 + $0x78] sm:$0xff]  ;;  %s10951_s20 = smov 64  }
   0xe   :  { %v10460_v24 = vld [vmem:[%s14547_s0 + $0x8] sm:$0xff]   ;;  %v288_v26 = vld [vmem:[%s14553_s3] sm:$0xff]  ;;  %v290_v27 = vld [vmem:[%s14553_s3 + $0x10] sm:$0xff] }
   0xf   :  { %v10462_v25 = vld [vmem:[%s14548_s4 + $0x8] sm:$0xff]   ;;  %v291_v29 = vld [vmem:[%s14553_s3 + $0x18] sm:$0xff]  ;;  %v10463_v55 = vld [vmem:[%s14547_s0 + $0x10] sm:$0xff]  }
  0x10   :  { %v289_v32 = vld [vmem:[%s14553_s3 + $0x8] sm:$0xff]  ;;  %v10464_v56 = vld [vmem:[%s14547_s0 + $0x18] sm:$0xff]  }
  0x11   :  { %78 = vxpose.xlu0.b32.cont [3/16] (narrow) %v62_v2, 32 }
  0x15   :  { %79 = vxpose.xlu0.b32.cont [4/16] (narrow) %v63_v3, 32 }
  0x19   :  { %80 = vxpose.xlu0.b32.cont [5/16] (narrow) %v64_v4, 32 }
  0x1d   :  { %81 = vxpose.xlu0.b32.cont [6/16] (narrow) %v65_v5, 32 }
  0x21   :  { %82 = vxpose.xlu0.b32.cont [7/16] (narrow) %v66_v8, 32 }
  0x25   :  { %83 = vxpose.xlu0.b32.cont [8/16] (narrow) %v67_v9, 32 }
  0x29   :  { %84 = vxpose.xlu0.b32.cont [9/16] (narrow) %v68_v10, 32 }
  0x2d   :  { %85 = vxpose.xlu0.b32.cont [10/16] (narrow) %v69_v11, 32 }
  0x31   :  { %86 = vxpose.xlu0.b32.cont [11/16] (narrow) %v70_v12, 32 }
  0x35   :  { %87 = vxpose.xlu0.b32.cont [12/16] (narrow) %v71_v13, 32 }
  0x39   :  { %88 = vxpose.xlu0.b32.cont [13/16] (narrow) %v72_v14, 32 }
  0x3d   :  { %89 = vxpose.xlu0.b32.cont [14/16] (narrow) %v73_v15, 32  ;;  %v213_v15 = vld [vmem:[%s14504_s5 + $0x18] sm:$0xff] }
  0x41   :  { %90 = vxpose.xlu0.b32.cont [15/16] (narrow) %v74_v16, 32 }
  0x45   :  { %91 = vxpose.xlu0.b32.end [16/16] (narrow) %v75_v17, 32 }
  0x89   :  { %v11111_v18 = vpop.trf.xlu0 }
  0x8a   :  { %14549 = vst [vmem:[#allocation2_spill] sm:$0xff] %v11111_v18 }
  0x8d   :  { %v11113_v19 = vpop.trf.xlu0 }
  0x8e   :  { %14550 = vst [vmem:[#allocation3_spill] sm:$0xff] %v11113_v19  ;;  %v208_v20 = vpack.c.bf16 %v11113_v19, %v11111_v18 }
  0x90   :  { %9317 = vmatprep.subr.bf16.mxu0 %v208_v20  ;;  %9325 = vmatprep.subr.bf16.mxu1 %v208_v20 }
  0x91   :  { %9318 = vmatpush3.bf16.msra.mxu0 %v208_v20  ;;  %9326 = vmatpush3.bf16.msra.mxu1 %v208_v20  ;;  %v11117_v21 = vpop.trf.xlu0 }
  0x92   :  { %14551 = vst [vmem:[#allocation4_spill] sm:$0xff] %v11117_v21 }
  0x95   :  { %v11119_v22 = vpop.trf.xlu0 }
  0x96   :  { %14552 = vst [vmem:[#allocation5_spill] sm:$0xff] %v11119_v22  ;;  %v209_v23 = vpack.c.bf16 %v11119_v22, %v11117_v21 }
  0x98   :  { %9319 = vmatprep.subr.bf16.mxu0 %v209_v23  ;;  %9327 = vmatprep.subr.bf16.mxu1 %v209_v23 }
  0x99   :  { %9320 = vmatpush3.bf16.msra.mxu0 %v209_v23  ;;  %9328 = vmatpush3.bf16.msra.mxu1 %v209_v23 }
  0x9c   :  { %9330 = vmatmul.mubr.msk.bf16.vlgmr.msra.gmra.mrb[0].mxu1 %vm224_vm0, %v10460_v24  ;;  %9322 = vmatmul.mubr.msk.bf16.vlgmr.msra.gmra.mrb[0].mxu0 %vm224_vm0, %v10462_v25 }
  0x9d   :  { %9333 = vmatprep.mubr.msk.bf16.mxu1 %vm224_vm0, %v10463_v55 }
  0xa4   :  { %9334 = vmatmul.mubr.msk.bf16.gmra.mrb[4].mxu1 %vm224_vm0, %v10464_v56 }
 0x16f   :  { %v9331_v28 = vpop.f32.mrb[0].mxu1  ;;  %v9323_v30 = vpop.f32.mrb[0].mxu0 }
 0x170   :  { %v362_v31 = vpop.f32.mrb[1].mxu1  ;;  %v371_v35 = vadd.f32 %v9331_v28, %v290_v27  ;;  %v265_v42 = vpop.f32.mrb[1].mxu0  ;;  %v274_v53 = vadd.f32 %v9323_v30, %v212_v52 }
 0x171   :  { %v363_v33 = vadd.f32 %v362_v31, %v288_v26  ;;  %v9332_v34 = vpop.f32.mrb[2].mxu1  ;;  %v266_v44 = vadd.f32 %v265_v42, %v210_v43  ;;  %v9324_v47 = vpop.f32.mrb[2].mxu0 }
 0x172   :  { %v374_v36 = vadd.f32 %v9332_v34, %v291_v29  ;;  %v365_v37 = vpop.f32.mrb[3].mxu1  ;;  %v268_v48 = vpop.f32.mrb[3].mxu0  ;;  %v11159_v54 = vpack.c.bf16 %v274_v53, %v274_v53  ;;  %v277_v20 = vadd.f32 %v9324_v47, %v213_v15  ;;  %v292_v47 = vld [vmem:[%s14553_s3 + $0x20] sm:$0xff] }
 0x173   :  { %v366_v38 = vadd.f32 %v365_v37, %v289_v32  ;;  %393 = vxpose.xlu1.b32.start.end [1/1] (short) (narrow) %v363_v33, 64  ;;  %v429_v45 = vpack.c.bf16 %v266_v44, %v266_v44  ;;  %v269_v50 = vadd.f32 %v268_v48, %v211_v49 }
 0x174   :  { %v10061_v39 = vpack.i.bf16 %v374_v36, %v371_v35  ;;  %v11188_v29 = vpack.c.bf16 %v277_v20, %v277_v20 }
 0x175   :  { %v10071_v40 = vpack.i.bf16 %v371_v35, %v366_v38  ;;  %v10066_v41 = vpack.i.bf16 %v366_v38, %v363_v33  ;;  %10033 = vmatprep.subr.msk.bf16.mxu0 %vm443_vm1, %v429_v45  ;;  %v445_v46 = vsel %vm443_vm1, %v429_v45, 0  ;;  %v11152_v51 = vpack.c.bf16 %v269_v50, %v269_v50 }
 0x176   :  { %10062 = vrot.lane.b32.xlu0 %v10061_v39, %s10951_s20  ;;  %9338 = vmatpush3.bf16.msra.mxu0 %v445_v46 }
 0x177   :  { %v9335_v39 = vpop.f32.mrb[4].mxu1 }
 0x178   :  { %v378_v46 = vpop.f32.mrb[5].mxu1 }
 0x179   :  { %v379_v50 = vadd.f32 %v378_v46, %v292_v47 }
 0x17a   :  { %1645 = vrot.lane.b32.xlu0 %v11152_v51, %s10951_s20 }
 0x1ad   :  { %1893 = vrot.lane.b32.xlu1 %v11159_v54, %s10951_s20 }
 0x1b1   :  { %10067 = vrot.lane.b32.xlu1 %v10066_v41, %s10951_s20 }
 0x1da   :  { %10072 = vxpose.xlu1.b32.start.end [1/1] (short) (narrow) %v10071_v40, 64 }
 0x1e8   :  { %v10063_v10 = vpop.permute.xlu0 %10062 }
 0x1e9   :  { %v10064_v11 = vunpack.i.l.bf16 %v10063_v10  ;;  %v10065_v33 = vunpack.i.h.bf16 %v10063_v10 }
 0x1ec   :  { %v11198_v34 = vpop.permute.xlu0 %1645 }
 0x1f3   :  { %v409_v57 = vpop.trf.xlu1 }
 0x1f7   :  { %v410_v58 = vpop.trf.xlu1 }
 0x1f8   :  { %v425_v59 = vpack.c.bf16 %v410_v58, %v409_v57 }
 0x1fa   :  { %9339 = vmatprep.mubr.msk.bf16.mxu0 %vm430_vm2, %v425_v59  ;;  %v11214_v59 = vpack.c.bf16 %v379_v50, %v379_v50 }
 0x1fb   :  { %v411_v60 = vpop.trf.xlu1 }
 0x1ff   :  { %v412_v61 = vpop.trf.xlu1 }
 0x200   :  { %v426_v62 = vpack.c.bf16 %v412_v61, %v411_v60  ;;  %v295_v60 = vld [vmem:[%s14553_s3 + $0x38] sm:$0xff]  ;;  %v9336_v61 = vpop.f32.mrb[6].mxu1 }
 0x202   :  { %9340 = vmatmul.mubr.msk.bf16.vlgmr.msra.gmra.mrb[4].mxu0 %vm430_vm2, %v426_v62 }
 0x203   :  { %v413_v63 = vpop.trf.xlu1 }
 0x207   :  { %v414_v0 = vpop.trf.xlu1 }
 0x208   :  { %v427_v1 = vpack.c.bf16 %v414_v0, %v413_v63  ;;  %v390_v0 = vadd.f32 %v9336_v61, %v295_v60 }
 0x20a   :  { %9343 = vmatprep.mubr.msk.bf16.mxu0 %vm430_vm2, %v427_v1  ;;  %v381_v1 = vpop.f32.mrb[7].mxu1 }
 0x20b   :  { %v415_v2 = vpop.trf.xlu1 }
 0x20f   :  { %v416_v3 = vpop.trf.xlu1 }
 0x210   :  { %v428_v4 = vpack.c.bf16 %v416_v3, %v415_v2 }
 0x212   :  { %9344 = vmatmul.mubr.msk.bf16.gmra.mrb[8].mxu0 %vm430_vm2, %v428_v4 }
 0x214   :  { %1397 = vrot.lane.b32.xlu1 %v429_v45, %s10951_s20  ;;  %v294_v45 = vld [vmem:[%s14553_s3 + $0x30] sm:$0xff] }
 0x215   :  { %v387_v53 = vadd.f32 %v9335_v39, %v294_v45 }
 0x217   :  { %v11219_v63 = vpack.c.bf16 %v387_v53, %v387_v53 }
 0x219   :  { %14554 = vst [vmem:[#allocation6_spill] sm:$0xff] %v11219_v63 }
 0x21f   :  { %v11177_v5 = vpop.permute.xlu1 %1893 }
 0x223   :  { %v10068_v6 = vpop.permute.xlu1 %10067 }
 0x224   :  { %v10069_v7 = vunpack.i.l.bf16 %v10068_v6  ;;  %v10070_v9 = vunpack.i.h.bf16 %v10068_v6  ;;  %v11229_v6 = vpack.c.bf16 %v390_v0, %v390_v0 }
 0x226   :  { %v10113_v8 = vpack.i.bf16 %v10069_v7, %v374_v36  ;;  %v14524_v36 = vmov 0.0   ;;  %14555 = vst [vmem:[#allocation7_spill] sm:$0xff] %v11229_v6 }
 0x227   :  { %9347 = vmatprep.subr.bf16.mxu0 %v14524_v36  ;;  %9369 = vmatprep.subr.bf16.mxu1 %v14524_v36 }
 0x228   :  { %10114 = vxpose.xlu0.b32.start.end [1/1] (short) (narrow) %v10113_v8, 64  ;;  %9355 = vmatprep.mubr.msk.bf16.mxu0 %vm10953_vm3, %v14524_v36  ;;  %v293_v8 = vld [vmem:[%s14553_s3 + $0x28] sm:$0xff] }
 0x229   :  { %9377 = vmatprep.mubr.msk.bf16.mxu1 %vm10953_vm3, %v14524_v36 }
 0x23d   :  { %1608 = vxpose.xlu1.b32.start.end [1/1] (short) (narrow) %v10070_v9, 64  ;;  %v382_v9 = vadd.f32 %v381_v1, %v293_v8 }
 0x23f   :  { %v11244_v10 = vpack.c.bf16 %v382_v9, %v382_v9 }
 0x25a   :  { %1856 = vxpose.xlu1.b32.start.end [1/1] (short) (narrow) %v10064_v11, 64  ;;  %v10073_v12 = vpop.trf.xlu1 }
 0x25b   :  { %v10077_v55 = vunpack.i.h.bf16 %v10073_v12  ;;  %v10074_v56 = vunpack.i.l.bf16 %v10073_v12 }
 0x25e   :  { %v10078_v13 = vpop.trf.xlu1 }
 0x25f   :  { %v10082_v57 = vunpack.i.h.bf16 %v10078_v13  ;;  %v10079_v58 = vunpack.i.l.bf16 %v10078_v13 }
 0x261   :  { %v11223_v2 = vpack.c.bf16 %v10079_v58, %v10074_v56  ;;  %v11225_v3 = vpack.c.bf16 %v10082_v57, %v10077_v55 }
 0x262   :  { %v10083_v14 = vpop.trf.xlu1 }
 0x263   :  { %v10087_v16 = vunpack.i.h.bf16 %v10083_v14  ;;  %v10084_v17 = vunpack.i.l.bf16 %v10083_v14 }
 0x266   :  { %v10088_v23 = vpop.trf.xlu1 }
 0x267   :  { %v10092_v24 = vunpack.i.h.bf16 %v10088_v23  ;;  %v10089_v25 = vunpack.i.l.bf16 %v10088_v23 }
 0x269   :  { %v11182_v26 = vpack.c.bf16 %v10089_v25, %v10084_v17  ;;  %v11184_v27 = vpack.c.bf16 %v10092_v24, %v10087_v16 }
 0x26a   :  { %v11186_v28 = vpop.trf.xlu1 }
 0x26d   :  { %2141 = vrot.lane.b32.xlu0 %v11188_v29, %s10951_s20 }
 0x26e   :  { %v11192_v30 = vpop.trf.xlu1 }
 0x272   :  { %v11194_v31 = vpop.trf.xlu1 }
 0x276   :  { %v11196_v32 = vpop.trf.xlu1 }
 0x28b   :  { %2104 = vxpose.xlu0.b32.start.end [1/1] (short) (narrow) %v10065_v33, 64 }
 0x294   :  { %1559 = vrot.lane.b32.xlu1 %v11214_v59, %s10951_s20 }
 0x298   :  { %2055 = vrot.lane.b32.xlu1 %v11219_v63, %s10951_s20 }
 0x29c   :  { %2303 = vrot.lane.b32.xlu1 %v11229_v6, %s10951_s20 }
 0x2a8   :  { %v10115_v35 = vpop.trf.xlu0 }
 0x2a9   :  { %v10119_v15 = vunpack.i.h.bf16 %v10115_v35  ;;  %v10116_v16 = vunpack.i.l.bf16 %v10115_v35 }
 0x2ac   :  { %v10120_v37 = vpop.trf.xlu0 }
 0x2ad   :  { %v10124_v17 = vunpack.i.h.bf16 %v10120_v37  ;;  %v10121_v20 = vunpack.i.l.bf16 %v10120_v37 }
 0x2af   :  { %v11248_v23 = vpack.c.bf16 %v10121_v20, %v10116_v16  ;;  %v11250_v24 = vpack.c.bf16 %v10124_v17, %v10119_v15 }
 0x2b0   :  { %v10125_v38 = vpop.trf.xlu0 }
 0x2b1   :  { %v10129_v40 = vunpack.i.h.bf16 %v10125_v38  ;;  %v10126_v41 = vunpack.i.l.bf16 %v10125_v38 }
 0x2b4   :  { %v10130_v42 = vpop.trf.xlu0 }
 0x2b5   :  { %v10134_v43 = vunpack.i.h.bf16 %v10130_v42  ;;  %v10131_v44 = vunpack.i.l.bf16 %v10130_v42 }
 0x2b7   :  { %v11208_v48 = vpack.c.bf16 %v10131_v44, %v10126_v41  ;;  %v11210_v49 = vpack.c.bf16 %v10134_v43, %v10129_v40 }
 0x2b8   :  { %v11212_v52 = vpop.trf.xlu0 }
 0x2b9   :  { %v10139_v33 = vunpack.i.h.bf16 %v11212_v52  ;;  %v10136_v41 = vunpack.i.l.bf16 %v11212_v52 }
 0x2bc   :  { %v10140_v62 = vpop.trf.xlu0 }
 0x2bd   :  { %v10144_v44 = vunpack.i.h.bf16 %v10140_v62  ;;  %v10141_v53 = vunpack.i.l.bf16 %v10140_v62 }
 0x2bf   :  { %v11262_v61 = vpack.c.bf16 %v10141_v53, %v10136_v41  ;;  %v11264_v0 = vpack.c.bf16 %v10144_v44, %v10139_v33 }
 0x2c0   :  { %v11227_v4 = vpop.trf.xlu0 }
 0x2c4   :  { %v11233_v7 = vpop.trf.xlu0 }
 0x2d0   :  { %1807 = vrot.lane.b32.xlu0 %v11244_v10, %s10951_s20 }
 0x2d5   :  { %v9341_v11 = vpop.f32.mrb[4].mxu0 }
 0x2d6   :  { %v481_v12 = vpop.f32.mrb[5].mxu0  ;;  %v515_v38 = vsel %vm512_vm4, %v9341_v11, -inf }
 0x2d7   :  { %v9342_v13 = vpop.f32.mrb[6].mxu0  ;;  %v513_v42 = vsel %vm512_vm4, %v481_v12, -inf }
 0x2d8   :  { %v484_v14 = vpop.f32.mrb[7].mxu0  ;;  %v516_v45 = vsel %vm512_vm4, %v9342_v13, -inf }
 0x2d9   :  { %v514_v55 = vsel %vm512_vm4, %v484_v14, -inf }
 0x2e5   :  { %v9345_v25 = vpop.f32.mrb[8].mxu0 }
 0x2e6   :  { %v521_v39 = vsel %vm512_vm4, %v9345_v25, -inf  ;;  %v497_v40 = vpop.f32.mrb[9].mxu0 }
 0x2e7   :  { %v522_v35 = vmax.f32 %v515_v38, %v521_v39  ;;  %v517_v37 = vsel %vm512_vm4, %v497_v40, -inf  ;;  %v9346_v43 = vpop.f32.mrb[10].mxu0 }
 0x2e8   :  { %v518_v46 = vmax.f32 %v513_v42, %v517_v37  ;;  %v523_v47 = vsel %vm512_vm4, %v9346_v43, -inf  ;;  %v500_v50 = vpop.f32.mrb[11].mxu0 }
 0x2e9   :  { %v524_v56 = vmax.f32 %v516_v45, %v523_v47  ;;  %v519_v57 = vsel %vm512_vm4, %v500_v50, -inf }
 0x2ea   :  { %v520_v52 = vmax.f32 %v514_v55, %v519_v57 }
 0x2eb   :  { %v526_v58 = vmax.f32 %v522_v35, %v524_v56 }
 0x2ec   :  { %v525_v60 = vmax.f32 %v518_v46, %v520_v52 }
 0x2ee   :  { %v527_v1 = vmax.f32 %v525_v60, %v526_v58 }
 0x2f0   :  { %v528_v8 = vrot.slane %v527_v1, 4 }
 0x2f2   :  { %v529_v9 = vmax.f32 %v527_v1, %v528_v8 }
 0x2f4   :  { %v530_v15 = vrot.slane %v529_v9, 2 }
 0x2f6   :  { %v531_v16 = vmax.f32 %v529_v9, %v530_v15 }
 0x2f8   :  { %v532_v17 = vrot.slane %v531_v16, 1 }
 0x2fa   :  { %v533_v20 = vmax.f32 %v531_v16, %v532_v17 }
 0x2fc   :  { %v534_v62 = vsub.f32 %v481_v12, %v533_v20  ;;  %v535_v38 = vsub.f32 %v484_v14, %v533_v20  ;;  %v536_v39 = vsub.f32 %v9341_v11, %v533_v20  ;;  %v537_v42 = vsub.f32 %v9342_v13, %v533_v20 }
 0x2fd   :  { %v538_v37 = vsub.f32 %v497_v40, %v533_v20  ;;  %v539_v45 = vsub.f32 %v500_v50, %v533_v20  ;;  %v540_v47 = vsub.f32 %v9345_v25, %v533_v20  ;;  %v541_v35 = vsub.f32 %v9346_v43, %v533_v20 }
 0x2fe   :  { %v542_v46 = vmul.f32 1.442695, %v534_v62  ;;  %v544_v41 = vmul.f32 1.442695, %v535_v38  ;;  %v546_v53 = vmul.f32 1.442695, %v536_v39 }
 0x2ff   :  { %v548_v33 = vmul.f32 1.442695, %v537_v42  ;;  %v550_v44 = vmul.f32 1.442695, %v538_v37  ;;  %v552_v55 = vmul.f32 1.442695, %v539_v45 }
 0x300   :  { %10507 = vpow2.f32 %v542_v46  ;;  %v554_v56 = vmul.f32 1.442695, %v540_v47  ;;  %v556_v12 = vmul.f32 1.442695, %v541_v35 }
 0x301   :  { %10509 = vpow2.f32 %v544_v41 }
 0x302   :  { %10511 = vpow2.f32 %v546_v53 }
 0x303   :  { %10513 = vpow2.f32 %v548_v33 }
 0x304   :  { %10515 = vpow2.f32 %v550_v44 }
 0x305   :  { %10517 = vpow2.f32 %v552_v55 }
 0x306   :  { %10519 = vpow2.f32 %v554_v56 }
 0x307   :  { %10521 = vpow2.f32 %v556_v12 }
 0x30a   :  { %v10508_v11 = vpop.eup %10507 }
 0x30b   :  { %v10510_v13 = vpop.eup %10509  ;;  %v558_v14 = vsel %vm512_vm4, %v10508_v11, 0.0 }
 0x30c   :  { %v10512_v25 = vpop.eup %10511  ;;  %v559_v40 = vsel %vm512_vm4, %v10510_v13, 0.0 }
 0x30d   :  { %v10514_v43 = vpop.eup %10513  ;;  %v560_v50 = vadd.f32 %v559_v40, %v558_v14  ;;  %v561_v57 = vsel %vm512_vm4, %v10512_v25, 0.0 }
 0x30e   :  { %v10516_v52 = vpop.eup %10515  ;;  %v563_v60 = vsel %vm512_vm4, %v10514_v43, 0.0 }
 0x30f   :  { %v562_v58 = vadd.f32 %v561_v57, %v560_v50  ;;  %v10518_v1 = vpop.eup %10517  ;;  %v565_v9 = vsel %vm512_vm4, %v10516_v52, 0.0 }
 0x310   :  { %v10520_v15 = vpop.eup %10519  ;;  %v567_v17 = vsel %vm512_vm4, %v10518_v1, 0.0 }
 0x311   :  { %v564_v8 = vadd.f32 %v563_v60, %v562_v58  ;;  %v10522_v20 = vpop.eup %10521  ;;  %v569_v38 = vsel %vm512_vm4, %v10520_v15, 0.0 }
 0x312   :  { %v571_v42 = vsel %vm512_vm4, %v10522_v20, 0.0 }
 0x313   :  { %v566_v16 = vadd.f32 %v565_v9, %v564_v8 }
 0x315   :  { %v568_v62 = vadd.f32 %v567_v17, %v566_v16 }
 0x317   :  { %v570_v39 = vadd.f32 %v569_v38, %v568_v62  ;;  %v1166_v38 = vsel %vm443_vm1, %v11188_v29, 0 }
 0x319   :  { %v572_v37 = vadd.f32 %v571_v42, %v570_v39  ;;  %v10107_v42 = vunpack.i.h.bf16 %v11194_v31 }
 0x31b   :  { %v573_v45 = vrot.slane %v572_v37, 4 }
 0x31d   :  { %v574_v47 = vadd.f32 %v573_v45, %v572_v37 }
 0x31f   :  { %v575_v35 = vrot.slane %v574_v47, 2 }
 0x321   :  { %v576_v46 = vadd.f32 %v575_v35, %v574_v47  ;;  %v10149_v47 = vunpack.i.h.bf16 %v11227_v4  ;;  %v10154_v35 = vunpack.i.h.bf16 %v11233_v7 }
 0x323   :  { %v577_v41 = vrot.slane %v576_v46, 1 }
 0x325   :  { %v578_v53 = vadd.f32 %v577_v41, %v576_v46  ;;  %v1395_v41 = vpack.c.bf16 %v10154_v35, %v10149_v47 }
 0x327   :  { %10523 = vrcp.f32 %v578_v53 }
 0x331   :  { %v10524_v33 = vpop.eup %10523 }
 0x332   :  { %v580_v44 = vmul.f32 %v10524_v33, %v10508_v11  ;;  %v581_v55 = vmul.f32 %v10524_v33, %v10510_v13  ;;  %v582_v56 = vmul.f32 %v10524_v33, %v10512_v25  ;;  %v583_v12 = vmul.f32 %v10524_v33, %v10514_v43  ;;  %v1398_v11 = vpop.permute.xlu1 %1397 }
 0x333   :  { %v584_v14 = vmul.f32 %v10524_v33, %v10516_v52  ;;  %v585_v40 = vmul.f32 %v10524_v33, %v10518_v1  ;;  %v586_v50 = vmul.f32 %v10524_v33, %v10520_v15  ;;  %v587_v57 = vmul.f32 %v10524_v33, %v10522_v20 }
 0x334   :  { %v589_v58 = vpack.c.bf16 %v581_v55, %v580_v44  ;;  %v590_v60 = vpack.c.bf16 %v583_v12, %v582_v56  ;;  %v686_v13 = vsel %vm443_vm1, %v11152_v51, 0  ;;  %v10094_v43 = vunpack.i.l.bf16 %v11186_v28 }
 0x335   :  { %v591_v8 = vpack.c.bf16 %v585_v40, %v584_v14  ;;  %v592_v9 = vpack.c.bf16 %v587_v57, %v586_v50  ;;  %v10099_v52 = vunpack.i.l.bf16 %v11192_v30 }
 0x336   :  { %9348 = vmatpush3.bf16.msra.mxu0 %v589_v58  ;;  %v1624_v25 = vpop.trf.xlu1 }
 0x337   :  { %9349 = vmatprep.subr.bf16.mxu0 %v14524_v36  ;;  %v670_v1 = vpack.c.bf16 %v10099_v52, %v10094_v43 }
 0x33a   :  { %9350 = vmatpush3.bf16.msra.mxu0 %v590_v60  ;;  %v1625_v15 = vpop.trf.xlu1 }
 0x33b   :  { %9351 = vmatprep.subr.bf16.mxu0 %v14524_v36  ;;  %v1640_v53 = vpack.c.bf16 %v1625_v15, %v1624_v25 }
 0x33e   :  { %9352 = vmatpush3.bf16.msra.mxu0 %v591_v8  ;;  %v1626_v16 = vpop.trf.xlu1 }
 0x33f   :  { %9353 = vmatprep.subr.bf16.mxu0 %v14524_v36 }
 0x342   :  { %9354 = vmatpush3.bf16.msra.mxu0 %v592_v9  ;;  %v1627_v20 = vpop.trf.xlu1 }
 0x343   :  { %10034 = vmatprep.subr.msk.bf16.mxu0 %vm443_vm1, %v11152_v51  ;;  %v926_v51 = vsel %vm443_vm1, %v11159_v54, 0  ;;  %v1641_v33 = vpack.c.bf16 %v1627_v20, %v1626_v16 }
 0x345   :  { %9356 = vmatmul.mubr.msk.bf16.vlgmr.msra.gmra.mrb[12].mxu0 %vm512_vm4, %v11214_v59  ;;  %v10104_v59 = vunpack.i.l.bf16 %v11194_v31  ;;  %v10146_v31 = vunpack.i.l.bf16 %v11227_v4  ;;  %v1908_v4 = vsel %vm443_vm1, %v11177_v5, 0 }
 0x346   :  { %9360 = vmatpush3.bf16.msra.mxu0 %v686_v13  ;;  %9361 = vmatprep.mubr.msk.bf16.mxu0 %vm430_vm2, %v11223_v2  ;;  %v10109_v2 = vunpack.i.l.bf16 %v11196_v32  ;;  %v1628_v39 = vpop.trf.xlu1 }
 0x347   :  { %10035 = vmatprep.subr.msk.bf16.mxu0 %vm443_vm1, %v11159_v54  ;;  %v10102_v54 = vunpack.i.h.bf16 %v11192_v30 }
 0x348   :  { %v671_v17 = vpack.c.bf16 %v10109_v2, %v10104_v59 }
 0x34a   :  { %v1629_v30 = vpop.trf.xlu1 }
 0x34b   :  { %v1642_v44 = vpack.c.bf16 %v1629_v30, %v1628_v39 }
 0x34d   :  { %9362 = vmatmul.mubr.msk.bf16.vlgmr.msra.gmra.mrb[16].mxu0 %vm430_vm2, %v11182_v26  ;;  %v10097_v26 = vunpack.i.h.bf16 %v11186_v28 }
 0x34e   :  { %9382 = vmatpush3.bf16.msra.mxu0 %v926_v51  ;;  %9365 = vmatprep.mubr.msk.bf16.mxu0 %vm430_vm2, %v670_v1 }
 0x34f   :  { %10036 = vmatprep.subr.msk.bf16.mxu0 %vm443_vm1, %v11188_v29  ;;  %v910_v62 = vpack.c.bf16 %v10102_v54, %v10097_v26  ;;  %v1412_v29 = vsel %vm443_vm1, %v1398_v11, 0 }
 0x355   :  { %9366 = vmatmul.mubr.msk.bf16.gmra.mrb[20].mxu0 %vm430_vm2, %v671_v17 }
 0x356   :  { %9383 = vmatprep.mubr.msk.bf16.mxu0 %vm430_vm2, %v11225_v3  ;;  %v10112_v3 = vunpack.i.h.bf16 %v11196_v32  ;;  %v10151_v32 = vunpack.i.l.bf16 %v11233_v7 }
 0x358   :  { %v911_v28 = vpack.c.bf16 %v10112_v3, %v10107_v42  ;;  %v1151_v45 = vpack.c.bf16 %v10151_v32, %v10146_v31 }
 0x35d   :  { %9384 = vmatmul.mubr.msk.bf16.vlgmr.msra.gmra.mrb[24].mxu0 %vm430_vm2, %v11184_v27  ;;  %v1630_v27 = vpop.trf.xlu1 }
 0x35e   :  { %9404 = vmatpush3.bf16.msra.mxu0 %v1166_v38  ;;  %9387 = vmatprep.mubr.msk.bf16.mxu0 %vm430_vm2, %v910_v62 }
 0x35f   :  { %10037 = vmatprep.subr.msk.bf16.mxu0 %vm443_vm1, %v1398_v11 }
 0x361   :  { %v1631_v37 = vpop.trf.xlu1 }
 0x362   :  { %v1643_v56 = vpack.c.bf16 %v1631_v37, %v1630_v27 }
 0x365   :  { %9388 = vmatmul.mubr.msk.bf16.gmra.mrb[28].mxu0 %vm430_vm2, %v911_v28 }
 0x366   :  { %9405 = vmatprep.mubr.msk.bf16.mxu0 %vm430_vm2, %v11248_v23  ;;  %v1872_v23 = vpop.trf.xlu1 }
 0x36d   :  { %9406 = vmatmul.mubr.msk.bf16.vlgmr.msra.gmra.mrb[32].mxu0 %vm430_vm2, %v11208_v48  ;;  %v1873_v48 = vpop.trf.xlu1 }
 0x36e   :  { %9426 = vmatpush3.bf16.msra.mxu0 %v1412_v29  ;;  %9409 = vmatprep.mubr.msk.bf16.mxu0 %vm430_vm2, %v11262_v61  ;;  %v1660_v61 = vsel %vm443_vm1, %v11198_v34, 0  ;;  %v1888_v12 = vpack.c.bf16 %v1873_v48, %v1872_v23 }
 0x36f   :  { %10038 = vmatprep.subr.msk.bf16.mxu0 %vm443_vm1, %v11198_v34 }
 0x371   :  { %v1874_v46 = vpop.trf.xlu1 }
 0x375   :  { %9410 = vmatmul.mubr.msk.bf16.gmra.mrb[36].mxu0 %vm430_vm2, %v1151_v45 }
 0x376   :  { %9427 = vmatprep.mubr.msk.bf16.mxu0 %vm430_vm2, %v11250_v24  ;;  %v2142_v24 = vpop.permute.xlu0 %2141 }
 0x377   :  { %v2156_v58 = vsel %vm443_vm1, %v2142_v24, 0 }
 0x37a   :  { %v2120_v34 = vpop.trf.xlu0 }
 0x37d   :  { %9428 = vmatmul.mubr.msk.bf16.vlgmr.msra.gmra.mrb[40].mxu0 %vm430_vm2, %v11210_v49  ;;  %v1875_v49 = vpop.trf.xlu1 }
 0x37e   :  { %9448 = vmatpush3.bf16.msra.mxu0 %v1660_v61  ;;  %9431 = vmatprep.mubr.msk.bf16.mxu0 %vm430_vm2, %v11264_v0  ;;  %v2121_v0 = vpop.trf.xlu0  ;;  %v1889_v57 = vpack.c.bf16 %v1875_v49, %v1874_v46 }
 0x37f   :  { %10039 = vmatprep.subr.msk.bf16.mxu0 %vm443_vm1, %v11177_v5  ;;  %v2136_v11 = vpack.c.bf16 %v2121_v0, %v2120_v34 }
 0x381   :  { %v1876_v7 = vpop.trf.xlu1 }
 0x382   :  { %v2122_v55 = vpop.trf.xlu0 }
 0x385   :  { %9432 = vmatmul.mubr.msk.bf16.gmra.mrb[44].mxu0 %vm430_vm2, %v1395_v41  ;;  %v1877_v14 = vpop.trf.xlu1 }
 0x386   :  { %9449 = vmatprep.mubr.msk.bf16.mxu0 %vm430_vm2, %v1640_v53  ;;  %v2123_v40 = vpop.trf.xlu0  ;;  %v1890_v5 = vpack.c.bf16 %v1877_v14, %v1876_v7 }
 0x387   :  { %v2137_v43 = vpack.c.bf16 %v2123_v40, %v2122_v55 }
 0x389   :  { %v1878_v50 = vpop.trf.xlu1 }
 0x38a   :  { %v2124_v60 = vpop.trf.xlu0 }
 0x38d   :  { %9450 = vmatmul.mubr.msk.bf16.vlgmr.msra.gmra.mrb[48].mxu0 %vm430_vm2, %v1641_v33  ;;  %v1879_v8 = vpop.trf.xlu1 }
 0x38e   :  { %9470 = vmatpush3.bf16.msra.mxu0 %v1908_v4  ;;  %9453 = vmatprep.mubr.msk.bf16.mxu0 %vm430_vm2, %v1642_v44  ;;  %v1891_v9 = vpack.c.bf16 %v1879_v8, %v1878_v50  ;;  %v2125_v13 = vpop.trf.xlu0 }
 0x38f   :  { %10040 = vmatprep.subr.msk.bf16.mxu0 %vm443_vm1, %v2142_v24  ;;  %v2138_v52 = vpack.c.bf16 %v2125_v13, %v2124_v60 }
 0x392   :  { %v2126_v25 = vpop.trf.xlu0 }
 0x395   :  { %9454 = vmatmul.mubr.msk.bf16.gmra.mrb[52].mxu0 %vm430_vm2, %v1643_v56 }
 0x396   :  { %9471 = vmatprep.mubr.msk.bf16.mxu0 %vm430_vm2, %v1888_v12  ;;  %v2127_v1 = vpop.trf.xlu0 }
 0x397   :  { %v2139_v15 = vpack.c.bf16 %v2127_v1, %v2126_v25 }
 0x39d   :  { %9472 = vmatmul.mubr.msk.bf16.vlgmr.msra.gmra.mrb[56].mxu0 %vm430_vm2, %v1889_v57 }
 0x39e   :  { %9492 = vmatpush3.bf16.msra.mxu0 %v2156_v58  ;;  %9475 = vmatprep.mubr.msk.bf16.mxu0 %vm430_vm2, %v1890_v5 }
 0x3a5   :  { %9476 = vmatmul.mubr.msk.bf16.gmra.mrb[60].mxu0 %vm430_vm2, %v1891_v9 }
 0x3a6   :  { %9493 = vmatprep.mubr.msk.bf16.mxu0 %vm430_vm2, %v2136_v11 }
 0x3ad   :  { %9494 = vmatmul.mubr.msk.bf16.vlgmr.msra.gmra.mrb[64].mxu0 %vm430_vm2, %v2137_v43 }
 0x3ae   :  { %9497 = vmatprep.mubr.msk.bf16.mxu0 %vm430_vm2, %v2138_v52 }
 0x3b5   :  { %9498 = vmatmul.mubr.msk.bf16.gmra.mrb[68].mxu0 %vm430_vm2, %v2139_v15 }
 0x418   :  { %v11353_v51 = vpop.f32.mrb[12].mxu0 }
 0x419   :  { %14556 = vst [vmem:[#allocation8_spill] sm:$0xff] %v11353_v51  ;;  %v9357_v59 = vpop.f32.mrb[13].mxu0 }
 0x41a   :  { %v633_v2 = vpop.f32.mrb[14].mxu0 }
 0x41b   :  { %v9358_v16 = vpop.f32.mrb[15].mxu0 }
 0x420   :  { %v9363_v17 = vpop.f32.mrb[16].mxu0 }
 0x421   :  { %v722_v26 = vpop.f32.mrb[17].mxu0  ;;  %v755_v38 = vsel %vm512_vm4, %v9363_v17, -inf }
 0x422   :  { %v9364_v54 = vpop.f32.mrb[18].mxu0  ;;  %v753_v3 = vsel %vm512_vm4, %v722_v26, -inf }
 0x423   :  { %v725_v20 = vpop.f32.mrb[19].mxu0  ;;  %v756_v29 = vsel %vm512_vm4, %v9364_v54, -inf }
 0x424   :  { %v754_v45 = vsel %vm512_vm4, %v725_v20, -inf }
 0x428   :  { %v11355_v62 = vpop.f32.mrb[20].mxu0 }
 0x429   :  { %v761_v39 = vsel %vm512_vm4, %v11355_v62, -inf  ;;  %v738_v42 = vpop.f32.mrb[21].mxu0 }
 0x42a   :  { %v762_v28 = vmax.f32 %v755_v38, %v761_v39  ;;  %v757_v30 = vsel %vm512_vm4, %v738_v42, -inf  ;;  %v11362_v27 = vpop.f32.mrb[22].mxu0 }
 0x42b   :  { %v758_v31 = vmax.f32 %v753_v3, %v757_v30  ;;  %v763_v32 = vsel %vm512_vm4, %v11362_v27, -inf  ;;  %v741_v37 = vpop.f32.mrb[23].mxu0 }
 0x42c   :  { %v764_v23 = vmax.f32 %v756_v29, %v763_v32  ;;  %v759_v48 = vsel %vm512_vm4, %v741_v37, -inf }
 0x42d   :  { %v760_v61 = vmax.f32 %v754_v45, %v759_v48 }
 0x42e   :  { %v766_v47 = vmax.f32 %v762_v28, %v764_v23 }
 0x42f   :  { %v765_v35 = vmax.f32 %v758_v31, %v760_v61 }
 0x430   :  { %v11369_v24 = vpop.f32.mrb[24].mxu0 }
 0x431   :  { %v767_v46 = vmax.f32 %v765_v35, %v766_v47  ;;  %v11371_v41 = vpop.f32.mrb[25].mxu0  ;;  %v995_v7 = vsel %vm512_vm4, %v11369_v24, -inf }
 0x432   :  { %v11373_v53 = vpop.f32.mrb[26].mxu0  ;;  %v993_v12 = vsel %vm512_vm4, %v11371_v41, -inf }
 0x433   :  { %v768_v34 = vrot.slane %v767_v46, 4  ;;  %v11375_v49 = vpop.f32.mrb[27].mxu0  ;;  %v996_v5 = vsel %vm512_vm4, %v11373_v53, -inf }
 0x434   :  { %v994_v9 = vsel %vm512_vm4, %v11375_v49, -inf }
 0x435   :  { %v769_v33 = vmax.f32 %v767_v46, %v768_v34 }
 0x437   :  { %v770_v44 = vrot.slane %v769_v33, 2 }
 0x438   :  { %v11377_v0 = vpop.f32.mrb[28].mxu0 }
 0x439   :  { %v771_v4 = vmax.f32 %v769_v33, %v770_v44  ;;  %v1001_v55 = vsel %vm512_vm4, %v11377_v0, -inf  ;;  %v11383_v56 = vpop.f32.mrb[29].mxu0 }
 0x43a   :  { %v1002_v14 = vmax.f32 %v995_v7, %v1001_v55  ;;  %v997_v40 = vsel %vm512_vm4, %v11383_v56, -inf  ;;  %v11389_v50 = vpop.f32.mrb[30].mxu0 }
 0x43b   :  { %v772_v57 = vrot.slane %v771_v4, 1  ;;  %v998_v58 = vmax.f32 %v993_v12, %v997_v40  ;;  %v1003_v60 = vsel %vm512_vm4, %v11389_v50, -inf  ;;  %v11395_v8 = vpop.f32.mrb[31].mxu0 }
 0x43c   :  { %v1004_v11 = vmax.f32 %v996_v5, %v1003_v60  ;;  %v999_v13 = vsel %vm512_vm4, %v11395_v8, -inf }
 0x43d   :  { %v773_v25 = vmax.f32 %v771_v4, %v772_v57  ;;  %v1000_v43 = vmax.f32 %v994_v9, %v999_v13 }
 0x43e   :  { %v1006_v52 = vmax.f32 %v1002_v14, %v1004_v11 }
 0x43f   :  { %v774_v1 = vsub.f32 %v722_v26, %v773_v25  ;;  %v775_v15 = vsub.f32 %v725_v20, %v773_v25  ;;  %v776_v59 = vsub.f32 %v9363_v17, %v773_v25  ;;  %v777_v2 = vsub.f32 %v9364_v54, %v773_v25 }
 0x440   :  { %v778_v16 = vsub.f32 %v738_v42, %v773_v25  ;;  %v779_v38 = vsub.f32 %v741_v37, %v773_v25  ;;  %v780_v39 = vsub.f32 %v11355_v62, %v773_v25  ;;  %v781_v3 = vsub.f32 %v11362_v27, %v773_v25  ;;  %v11403_v28 = vpop.f32.mrb[32].mxu0 }
 0x441   :  { %v782_v30 = vmul.f32 1.442695, %v774_v1  ;;  %v784_v29 = vmul.f32 1.442695, %v775_v15  ;;  %v786_v31 = vmul.f32 1.442695, %v776_v59  ;;  %v1005_v32 = vmax.f32 %v998_v58, %v1000_v43 }
 0x442   :  { %v788_v45 = vmul.f32 1.442695, %v777_v2  ;;  %v790_v23 = vmul.f32 1.442695, %v778_v16  ;;  %v11405_v26 = vpop.f32.mrb[33].mxu0  ;;  %v1235_v35 = vsel %vm512_vm4, %v11403_v28, -inf }
 0x443   :  { %10525 = vpow2.f32 %v782_v30  ;;  %v1007_v48 = vmax.f32 %v1005_v32, %v1006_v52  ;;  %v792_v17 = vmul.f32 1.442695, %v779_v38  ;;  %v11407_v54 = vpop.f32.mrb[34].mxu0  ;;  %v794_v20 = vmul.f32 1.442695, %v780_v39 }
 0x444   :  { %10527 = vpow2.f32 %v784_v29  ;;  %v11409_v42 = vpop.f32.mrb[35].mxu0  ;;  %v796_v27 = vmul.f32 1.442695, %v781_v3  ;;  %v1233_v33 = vsel %vm512_vm4, %v11405_v26, -inf  ;;  %v1236_v12 = vsel %vm512_vm4, %v11407_v54, -inf }
 0x445   :  { %10529 = vpow2.f32 %v786_v31  ;;  %v1008_v62 = vrot.slane %v1007_v48, 4  ;;  %v1234_v5 = vsel %vm512_vm4, %v11409_v42, -inf }
 0x446   :  { %10531 = vpow2.f32 %v788_v45 }
 0x447   :  { %10533 = vpow2.f32 %v790_v23  ;;  %v1009_v37 = vmax.f32 %v1007_v48, %v1008_v62 }
 0x448   :  { %10535 = vpow2.f32 %v792_v17  ;;  %v11411_v61 = vpop.f32.mrb[36].mxu0 }
 0x449   :  { %10537 = vpow2.f32 %v794_v20  ;;  %v1010_v47 = vrot.slane %v1009_v37, 2  ;;  %v1241_v46 = vsel %vm512_vm4, %v11411_v61, -inf  ;;  %v11417_v34 = vpop.f32.mrb[37].mxu0 }
 0x44a   :  { %10539 = vpow2.f32 %v796_v27  ;;  %v1242_v44 = vmax.f32 %v1235_v35, %v1241_v46  ;;  %v1237_v4 = vsel %vm512_vm4, %v11417_v34, -inf  ;;  %v11423_v7 = vpop.f32.mrb[38].mxu0 }
 0x44b   :  { %v1011_v55 = vmax.f32 %v1009_v37, %v1010_v47  ;;  %v1238_v14 = vmax.f32 %v1233_v33, %v1237_v4  ;;  %v1243_v40 = vsel %vm512_vm4, %v11423_v7, -inf  ;;  %v11429_v57 = vpop.f32.mrb[39].mxu0 }
 0x44c   :  { %v1244_v58 = vmax.f32 %v1236_v12, %v1243_v40  ;;  %v1239_v60 = vsel %vm512_vm4, %v11429_v57, -inf }
 0x44d   :  { %v11435_v9 = vpop.eup %10525  ;;  %v1012_v11 = vrot.slane %v1011_v55, 1  ;;  %v1240_v13 = vmax.f32 %v1234_v5, %v1239_v60 }
 0x44e   :  { %v11437_v25 = vpop.eup %10527  ;;  %v798_v43 = vsel %vm512_vm4, %v11435_v9, 0.0  ;;  %v1246_v52 = vmax.f32 %v1242_v44, %v1244_v58 }
 0x44f   :  { %v11441_v1 = vpop.eup %10529  ;;  %v799_v15 = vsel %vm512_vm4, %v11437_v25, 0.0  ;;  %v1013_v59 = vmax.f32 %v1011_v55, %v1012_v11  ;;  %v1245_v2 = vmax.f32 %v1238_v14, %v1240_v13 }
 0x450   :  { %v11445_v16 = vpop.eup %10531  ;;  %v800_v38 = vadd.f32 %v799_v15, %v798_v43  ;;  %v801_v39 = vsel %vm512_vm4, %v11441_v1, 0.0  ;;  %v11449_v3 = vpop.f32.mrb[40].mxu0 }
 0x451   :  { %v11451_v30 = vpop.eup %10533  ;;  %v803_v29 = vsel %vm512_vm4, %v11445_v16, 0.0  ;;  %v1014_v31 = vsub.f32 %v11371_v41, %v1013_v59  ;;  %v1015_v32 = vsub.f32 %v11375_v49, %v1013_v59  ;;  %v1016_v45 = vsub.f32 %v11369_v24, %v1013_v59  ;;  %v11458_v23 = vpop.f32.mrb[41].mxu0 }
 0x452   :  { %v11460_v48 = vpop.eup %10535  ;;  %v802_v17 = vadd.f32 %v801_v39, %v800_v38  ;;  %v805_v20 = vsel %vm512_vm4, %v11451_v30, 0.0  ;;  %v1017_v62 = vsub.f32 %v11373_v53, %v1013_v59  ;;  %v1018_v27 = vsub.f32 %v11383_v56, %v1013_v59  ;;  %v11466_v37 = vpop.f32.mrb[42].mxu0 }
 0x453   :  { %v11468_v47 = vpop.eup %10537  ;;  %v807_v41 = vsel %vm512_vm4, %v11460_v48, 0.0  ;;  %v1019_v24 = vsub.f32 %v11395_v8, %v1013_v59  ;;  %v1020_v49 = vsub.f32 %v11377_v0, %v1013_v59  ;;  %v1021_v35 = vsub.f32 %v11389_v50, %v1013_v59  ;;  %v11475_v46 = vpop.f32.mrb[43].mxu0 }
 0x454   :  { %v11477_v33 = vpop.eup %10539  ;;  %v804_v53 = vadd.f32 %v803_v29, %v802_v17  ;;  %v809_v56 = vsel %vm512_vm4, %v11468_v47, 0.0  ;;  %v1022_v44 = vmul.f32 1.442695, %v1014_v31  ;;  %v1024_v4 = vmul.f32 1.442695, %v1015_v32 }
 0x455   :  { %v811_v55 = vsel %vm512_vm4, %v11477_v33, 0.0  ;;  %v1026_v12 = vmul.f32 1.442695, %v1016_v45  ;;  %v1028_v14 = vmul.f32 1.442695, %v1017_v62  ;;  %v1247_v8 = vmax.f32 %v1245_v2, %v1246_v52 }
 0x456   :  { %v806_v40 = vadd.f32 %v805_v20, %v804_v53  ;;  %10541 = vpow2.f32 %v1022_v44  ;;  %v1030_v0 = vmul.f32 1.442695, %v1018_v27  ;;  %v1032_v50 = vmul.f32 1.442695, %v1019_v24 }
 0x457   :  { %10543 = vpow2.f32 %v1024_v4  ;;  %v1034_v5 = vmul.f32 1.442695, %v1020_v49  ;;  %v1036_v58 = vmul.f32 1.442695, %v1021_v35  ;;  %v1248_v60 = vrot.slane %v1247_v8, 4 }
 0x458   :  { %v808_v11 = vadd.f32 %v807_v41, %v806_v40  ;;  %10545 = vpow2.f32 %v1026_v12  ;;  %v1481_v13 = vsel %vm512_vm4, %v11449_v3, -inf  ;;  %v1479_v43 = vsel %vm512_vm4, %v11458_v23, -inf  ;;  %v11487_v15 = vpop.f32.mrb[44].mxu0 }
 0x459   :  { %10547 = vpow2.f32 %v1028_v14  ;;  %v1249_v52 = vmax.f32 %v1247_v8, %v1248_v60  ;;  %v1482_v59 = vsel %vm512_vm4, %v11466_v37, -inf  ;;  %v1480_v2 = vsel %vm512_vm4, %v11475_v46, -inf  ;;  %v11493_v38 = vpop.f32.mrb[45].mxu0 }
 0x45a   :  { %v810_v39 = vadd.f32 %v809_v56, %v808_v11  ;;  %10549 = vpow2.f32 %v1030_v0  ;;  %v1487_v29 = vsel %vm512_vm4, %v11487_v15, -inf  ;;  %v1483_v31 = vsel %vm512_vm4, %v11493_v38, -inf  ;;  %v11499_v32 = vpop.f32.mrb[46].mxu0 }
 0x45b   :  { %10551 = vpow2.f32 %v1032_v50  ;;  %v1250_v45 = vrot.slane %v1249_v52, 2  ;;  %v1488_v17 = vmax.f32 %v1481_v13, %v1487_v29  ;;  %v1484_v20 = vmax.f32 %v1479_v43, %v1483_v31  ;;  %v11501_v62 = vpop.f32.mrb[47].mxu0 }
 0x45c   :  { %v812_v27 = vadd.f32 %v811_v55, %v810_v39  ;;  %10553 = vpow2.f32 %v1034_v5  ;;  %v1489_v41 = vsel %vm512_vm4, %v11499_v32, -inf  ;;  %v1485_v24 = vsel %vm512_vm4, %v11501_v62, -inf }
 0x45d   :  { %10555 = vpow2.f32 %v1036_v58  ;;  %v1251_v49 = vmax.f32 %v1249_v52, %v1250_v45  ;;  %v1490_v35 = vmax.f32 %v1482_v59, %v1489_v41  ;;  %v1486_v53 = vmax.f32 %v1480_v2, %v1485_v24 }
 0x45e   :  { %v813_v56 = vrot.slane %v812_v27, 4 }
 0x45f   :  { %v1252_v44 = vrot.slane %v1251_v49, 1  ;;  %v1492_v4 = vmax.f32 %v1488_v17, %v1490_v35  ;;  %v1491_v12 = vmax.f32 %v1484_v20, %v1486_v53 }
 0x460   :  { %v11507_v14 = vpop.eup %10541  ;;  %v814_v8 = vadd.f32 %v813_v56, %v812_v27  ;;  %v11509_v40 = vpop.f32.mrb[48].mxu0 }
 0x461   :  { %v11511_v55 = vpop.eup %10543  ;;  %v1038_v0 = vsel %vm512_vm4, %v11507_v14, 0.0  ;;  %v1253_v50 = vmax.f32 %v1251_v49, %v1252_v44  ;;  %v1493_v5 = vmax.f32 %v1491_v12, %v1492_v4  ;;  %v11515_v58 = vpop.f32.mrb[49].mxu0  ;;  %v11523_v43 = vsel %vm512_vm4, %v11509_v40, -inf }
 0x462   :  { %v11517_v60 = vpop.eup %10545  ;;  %v815_v11 = vrot.slane %v814_v8, 2  ;;  %v1039_v13 = vsel %vm512_vm4, %v11511_v55, 0.0  ;;  %v11527_v52 = vsel %vm512_vm4, %v11515_v58, -inf  ;;  %v11529_v59 = vpop.f32.mrb[50].mxu0 }
 0x463   :  { %v11531_v2 = vpop.eup %10547  ;;  %v1040_v39 = vadd.f32 %v1039_v13, %v1038_v0  ;;  %v1041_v29 = vsel %vm512_vm4, %v11517_v60, 0.0  ;;  %v1254_v31 = vsub.f32 %v11405_v26, %v1253_v50  ;;  %v1255_v45 = vsub.f32 %v11409_v42, %v1253_v50  ;;  %v11537_v17 = vpop.f32.mrb[51].mxu0 }
 0x464   :  { %v11539_v20 = vpop.eup %10549  ;;  %v816_v27 = vadd.f32 %v815_v11, %v814_v8  ;;  %v1043_v41 = vsel %vm512_vm4, %v11531_v2, 0.0  ;;  %v1256_v24 = vsub.f32 %v11403_v28, %v1253_v50  ;;  %v1257_v49 = vsub.f32 %v11407_v54, %v1253_v50 }
 0x465   :  { %v11545_v35 = vpop.eup %10551  ;;  %v1042_v53 = vadd.f32 %v1041_v29, %v1040_v39  ;;  %v1045_v26 = vsel %vm512_vm4, %v11539_v20, 0.0  ;;  %v1258_v42 = vsub.f32 %v11417_v34, %v1253_v50  ;;  %v1259_v56 = vsub.f32 %v11429_v57, %v1253_v50 }
 0x466   :  { %v11551_v44 = vpop.eup %10553  ;;  %v817_v4 = vrot.slane %v816_v27, 1  ;;  %v1047_v12 = vsel %vm512_vm4, %v11545_v35, 0.0  ;;  %v1260_v28 = vsub.f32 %v11411_v61, %v1253_v50  ;;  %v1261_v54 = vsub.f32 %v11423_v7, %v1253_v50 }
 0x467   :  { %14557 = vst [vmem:[#allocation9_spill] sm:$0xff] %v11551_v44  ;;  %v11557_v8 = vpop.eup %10555  ;;  %v1044_v0 = vadd.f32 %v1043_v41, %v1042_v53  ;;  %v1049_v11 = vsel %vm512_vm4, %v11551_v44, 0.0  ;;  %v1262_v13 = vmul.f32 1.442695, %v1254_v31  ;;  %v1264_v34 = vmul.f32 1.442695, %v1255_v45 }
 0x468   :  { %14558 = vst [vmem:[#allocation10_spill] sm:$0xff] %v11557_v8  ;;  %v818_v39 = vadd.f32 %v817_v4, %v816_v27  ;;  %v1051_v57 = vsel %vm512_vm4, %v11557_v8, 0.0  ;;  %v1266_v29 = vmul.f32 1.442695, %v1256_v24  ;;  %v1268_v36 = vmul.f32 1.442695, %v1257_v49 }
 0x469   :  { %v11563_v22 = vpop.f32.mrb[52].mxu0  ;;  %v1046_v21 = vadd.f32 %v1045_v26, %v1044_v0  ;;  %10557 = vpow2.f32 %v1262_v13  ;;  %v1270_v61 = vmul.f32 1.442695, %v1258_v42  ;;  %v1272_v7 = vmul.f32 1.442695, %v1259_v56 }
 0x46a   :  { %v11565_v50 = vpop.f32.mrb[53].mxu0  ;;  %10559 = vrcp.f32 %v818_v39  ;;  %v1274_v41 = vmul.f32 1.442695, %v1260_v28  ;;  %v1276_v53 = vmul.f32 1.442695, %v1261_v54  ;;  %v1494_v19 = vrot.slane %v1493_v5, 4 }
 0x46b   :  { %v11567_v31 = vpop.f32.mrb[54].mxu0  ;;  %v1048_v45 = vadd.f32 %v1047_v12, %v1046_v21  ;;  %10561 = vpow2.f32 %v1264_v34  ;;  %v1730_v27 = vsel %vm512_vm4, %v11529_v59, -inf  ;;  %v1728_v24 = vsel %vm512_vm4, %v11537_v17, -inf }
 0x46c   :  { %v11573_v49 = vpop.f32.mrb[55].mxu0  ;;  %10563 = vpow2.f32 %v1266_v29  ;;  %v1495_v26 = vmax.f32 %v1493_v5, %v1494_v19  ;;  %v1735_v42 = vsel %vm512_vm4, %v11563_v22, -inf  ;;  %v1731_v56 = vsel %vm512_vm4, %v11565_v50, -inf }
 0x46d   :  { %v1050_v4 = vadd.f32 %v1049_v11, %v1048_v45  ;;  %10565 = vpow2.f32 %v1268_v36  ;;  %v1736_v21 = vmax.f32 %v11523_v43, %v1735_v42  ;;  %v1732_v12 = vmax.f32 %v11527_v52, %v1731_v56 }
 0x46e   :  { %10567 = vpow2.f32 %v1270_v61  ;;  %v1496_v28 = vrot.slane %v1495_v26, 2  ;;  %v1737_v54 = vsel %vm512_vm4, %v11567_v31, -inf  ;;  %v1733_v19 = vsel %vm512_vm4, %v11573_v49, -inf }
 0x46f   :  { %v1052_v5 = vadd.f32 %v1051_v57, %v1050_v4  ;;  %10569 = vpow2.f32 %v1272_v7  ;;  %v1738_v0 = vmax.f32 %v1730_v27, %v1737_v54  ;;  %v1734_v13 = vmax.f32 %v1728_v24, %v1733_v19 }
 0x470   :  { %10571 = vpow2.f32 %v1274_v41  ;;  %v1497_v34 = vmax.f32 %v1495_v26, %v1496_v28  ;;  %v11585_v11 = vpop.f32.mrb[56].mxu0 }
 0x471   :  { %v1053_v36 = vrot.slane %v1052_v5, 4  ;;  %10573 = vpow2.f32 %v1276_v53  ;;  %v1740_v43 = vmax.f32 %v1736_v21, %v1738_v0  ;;  %v1739_v52 = vmax.f32 %v1732_v12, %v1734_v13  ;;  %v11587_v39 = vpop.f32.mrb[57].mxu0 }
 0x472   :  { %v1498_v29 = vrot.slane %v1497_v34, 1  ;;  %v11589_v61 = vpop.f32.mrb[58].mxu0  ;;  %v11595_v7 = vsel %vm512_vm4, %v11585_v11, -inf  ;;  %v11599_v41 = vsel %vm512_vm4, %v11587_v39, -inf }
 0x473   :  { %v11591_v45 = vpop.eup %10557  ;;  %v1054_v42 = vadd.f32 %v1053_v36, %v1052_v5  ;;  %v1741_v57 = vmax.f32 %v1739_v52, %v1740_v43  ;;  %v11601_v53 = vpop.f32.mrb[59].mxu0  ;;  %v11609_v56 = vsel %vm512_vm4, %v11589_v61, -inf }
 0x474   :  { %14559 = vst [vmem:[#allocation11_spill] sm:$0xff] %v11591_v45  ;;  %v11603_v27 = vpop.eup %10559  ;;  %v1278_v24 = vsel %vm512_vm4, %v11591_v45, 0.0  ;;  %v1499_v26 = vmax.f32 %v1497_v34, %v1498_v29  ;;  %v11613_v4 = vsel %vm512_vm4, %v11601_v53, -inf }
 0x475   :  { %v11615_v21 = vpop.eup %10561  ;;  %v1055_v12 = vrot.slane %v1054_v42, 2  ;;  %v1742_v28 = vrot.slane %v1741_v57, 4  ;;  %v820_v54 = vmul.f32 %v11603_v27, %v11435_v9  ;;  %v821_v19 = vmul.f32 %v11603_v27, %v11437_v25 }
 0x476   :  { %14560 = vst [vmem:[#allocation12_spill] sm:$0xff] %v11615_v21  ;;  %v11621_v5 = vpop.eup %10563  ;;  %v1279_v0 = vsel %vm512_vm4, %v11615_v21, 0.0  ;;  %v1500_v13 = vsub.f32 %v11458_v23, %v1499_v26  ;;  %v1501_v34 = vsub.f32 %v11475_v46, %v1499_v26  ;;  %v1502_v36 = vsub.f32 %v11449_v3, %v1499_v26 }
 0x477   :  { %14561 = vst [vmem:[#allocation13_spill] sm:$0xff] %v11621_v5  ;;  %v11628_v43 = vpop.eup %10565  ;;  %v1056_v52 = vadd.f32 %v1055_v12, %v1054_v42  ;;  %v1280_v29 = vadd.f32 %v1279_v0, %v1278_v24  ;;  %v1281_v9 = vsel %vm512_vm4, %v11621_v5, 0.0  ;;  %v1503_v25 = vsub.f32 %v11466_v37, %v1499_v26 }
 0x478   :  { %14562 = vst [vmem:[#allocation14_spill] sm:$0xff] %v11628_v43  ;;  %v11633_v18 = vpop.eup %10567  ;;  %v1283_v51 = vsel %vm512_vm4, %v11628_v43, 0.0  ;;  %v1504_v23 = vsub.f32 %v11493_v38, %v1499_v26  ;;  %v1505_v46 = vsub.f32 %v11501_v62, %v1499_v26  ;;  %v1506_v3 = vsub.f32 %v11487_v15, %v1499_v26  ;;  %v11640_v6 = vpop.f32.mrb[60].mxu0 }
 0x479   :  { %14563 = vst [vmem:[#allocation15_spill] sm:$0xff] %v11633_v18  ;;  %v11642_v42 = vpop.eup %10569  ;;  %v1057_v24 = vrot.slane %v1056_v52, 1  ;;  %v1282_v12 = vadd.f32 %v1281_v9, %v1280_v29  ;;  %v1285_v37 = vsel %vm512_vm4, %v11633_v18, 0.0  ;;  %v1507_v0 = vsub.f32 %v11499_v32, %v1499_v26  ;;  %v11647_v63 = vpop.f32.mrb[61].mxu0 }
 0x47a   :  { %14564 = vst [vmem:[#allocation16_spill] sm:$0xff] %v11642_v42  ;;  %v11649_v43 = vpop.eup %10571  ;;  %v1287_v38 = vsel %vm512_vm4, %v11642_v42, 0.0  ;;  %v1508_v62 = vmul.f32 1.442695, %v1500_v13  ;;  %v1510_v15 = vmul.f32 1.442695, %v1501_v34  ;;  %v1743_v5 = vmax.f32 %v1741_v57, %v1742_v28 }
 0x47b   :  { %v11653_v21 = vpop.f32.mrb[62].mxu0  ;;  %v11655_v45 = vpop.eup %10573  ;;  %v1058_v29 = vadd.f32 %v1057_v24, %v1056_v52  ;;  %v1284_v9 = vadd.f32 %v1283_v51, %v1282_v12  ;;  %v1289_v18 = vsel %vm512_vm4, %v11649_v43, 0.0  ;;  %v1512_v32 = vmul.f32 1.442695, %v1502_v36 }
 0x47c   :  { %v11659_v26 = vpop.f32.mrb[63].mxu0  ;;  %v1291_v8 = vsel %vm512_vm4, %v11655_v45, 0.0  ;;  %10575 = vpow2.f32 %v1508_v62  ;;  %v1514_v42 = vmul.f32 1.442695, %v1503_v25  ;;  %v1516_v13 = vmul.f32 1.442695, %v1504_v23 }
 0x47d   :  { %10577 = vrcp.f32 %v1058_v29  ;;  %v1286_v57 = vadd.f32 %v1285_v37, %v1284_v9  ;;  %v1518_v28 = vmul.f32 1.442695, %v1505_v46  ;;  %v1520_v34 = vmul.f32 1.442695, %v1506_v3 }
 0x47e   :  { %10579 = vpow2.f32 %v1510_v15  ;;  %v1522_v44 = vmul.f32 1.442695, %v1507_v0  ;;  %v1744_v52 = vrot.slane %v1743_v5, 2  ;;  %v829_v51 = vpack.c.bf16 %v821_v19, %v820_v54 }
 0x47f   :  { %v1288_v24 = vadd.f32 %v1287_v38, %v1286_v57  ;;  %10581 = vpow2.f32 %v1512_v32  ;;  %v1983_v36 = vsel %vm512_vm4, %v11640_v6, -inf  ;;  %v1979_v12 = vsel %vm512_vm4, %v11647_v63, -inf }
 0x480   :  { %10583 = vpow2.f32 %v1514_v42  ;;  %v1745_v62 = vmax.f32 %v1743_v5, %v1744_v52  ;;  %9370 = vmatpush3.bf16.msra.mxu1 %v829_v51  ;;  %v1984_v25 = vmax.f32 %v11595_v7, %v1983_v36  ;;  %v1980_v23 = vmax.f32 %v11599_v41, %v1979_v12  ;;  %v11669_v46 = vpop.f32.mrb[64].mxu0 }
 0x481   :  { %v1290_v3 = vadd.f32 %v1289_v18, %v1288_v24  ;;  %10585 = vpow2.f32 %v1516_v13  ;;  %v1985_v54 = vsel %vm512_vm4, %v11653_v21, -inf  ;;  %v14565_v19 = vmov 0.0   ;;  %v11676_v0 = vpop.f32.mrb[65].mxu0 }
 0x482   :  { %9371 = vmatprep.subr.bf16.mxu1 %v14565_v19  ;;  %v1981_v37 = vsel %vm512_vm4, %v11659_v26, -inf  ;;  %10587 = vpow2.f32 %v1518_v28  ;;  %v1746_v5 = vrot.slane %v1745_v62, 1  ;;  %v1986_v7 = vmax.f32 %v11609_v56, %v1985_v54  ;;  %v11680_v42 = vpop.f32.mrb[66].mxu0 }
 0x483   :  { %v1982_v41 = vmax.f32 %v11613_v4, %v1981_v37  ;;  %v1292_v18 = vadd.f32 %v1291_v8, %v1290_v3  ;;  %10589 = vpow2.f32 %v1520_v34  ;;  %v822_v38 = vmul.f32 %v11603_v27, %v11441_v1  ;;  %v11686_v29 = vpop.f32.mrb[67].mxu0 }
 0x484   :  { %v823_v15 = vmul.f32 %v11603_v27, %v11445_v16  ;;  %10591 = vpow2.f32 %v1522_v44  ;;  %v1747_v9 = vmax.f32 %v1745_v62, %v1746_v5  ;;  %v1988_v32 = vmax.f32 %v1984_v25, %v1986_v7 }
 0x485   :  { %v1987_v13 = vmax.f32 %v1980_v23, %v1982_v41  ;;  %v1293_v57 = vrot.slane %v1292_v18, 4  ;;  %v824_v4 = vmul.f32 %v11603_v27, %v11451_v30  ;;  %v825_v8 = vmul.f32 %v11603_v27, %v11460_v48 }
 0x486   :  { %v830_v56 = vpack.c.bf16 %v823_v15, %v822_v38  ;;  %v11692_v28 = vpop.eup %10575  ;;  %v1748_v1 = vsub.f32 %v11515_v58, %v1747_v9  ;;  %v1749_v16 = vsub.f32 %v11537_v17, %v1747_v9  ;;  %v1750_v34 = vsub.f32 %v11509_v40, %v1747_v9 }
 0x487   :  { %v1751_v44 = vsub.f32 %v11529_v59, %v1747_v9  ;;  %v11698_v52 = vpop.eup %10577  ;;  %v1294_v51 = vadd.f32 %v1293_v57, %v1292_v18  ;;  %v1524_v24 = vsel %vm512_vm4, %v11692_v28, 0.0  ;;  %v1752_v30 = vsub.f32 %v11565_v50, %v1747_v9 }
 0x488   :  { %v1753_v48 = vsub.f32 %v11573_v49, %v1747_v9  ;;  %9372 = vmatpush3.bf16.msra.mxu1 %v830_v56  ;;  %v11704_v36 = vpop.eup %10579  ;;  %v1754_v58 = vsub.f32 %v11563_v22, %v1747_v9  ;;  %v1755_v17 = vsub.f32 %v11567_v31, %v1747_v9  ;;  %v1756_v40 = vmul.f32 1.442695, %v1748_v1  ;;  %v11709_v59 = vpop.f32.mrb[68].mxu0 }
 0x489   :  { %v1758_v12 = vmul.f32 1.442695, %v1749_v16  ;;  %9373 = vmatprep.subr.bf16.mxu1 %v14565_v19  ;;  %v11711_v62 = vpop.eup %10581  ;;  %v1295_v25 = vrot.slane %v1294_v51, 2  ;;  %v1525_v50 = vsel %vm512_vm4, %v11704_v36, 0.0  ;;  %v1760_v49 = vmul.f32 1.442695, %v1750_v34 }
 0x48a   :  { %v1762_v23 = vmul.f32 1.442695, %v1751_v44  ;;  %v11715_v3 = vpop.eup %10583  ;;  %v1526_v54 = vadd.f32 %v1525_v50, %v1524_v24  ;;  %v1527_v22 = vsel %vm512_vm4, %v11711_v62, 0.0  ;;  %10593 = vpow2.f32 %v1756_v40  ;;  %v11719_v37 = vpop.f32.mrb[69].mxu0 }
 0x48b   :  { %v1764_v31 = vmul.f32 1.442695, %v1752_v30  ;;  %v11721_v5 = vpop.eup %10585  ;;  %v1296_v7 = vadd.f32 %v1295_v25, %v1294_v51  ;;  %v1529_v41 = vsel %vm512_vm4, %v11715_v3, 0.0  ;;  %10595 = vpow2.f32 %v1758_v12  ;;  %v11725_v38 = vpop.f32.mrb[70].mxu0 }
 0x48c   :  { %v1766_v18 = vmul.f32 1.442695, %v1753_v48  ;;  %v11727_v15 = vpop.eup %10587  ;;  %v1528_v9 = vadd.f32 %v1527_v22, %v1526_v54  ;;  %v1531_v57 = vsel %vm512_vm4, %v11721_v5, 0.0  ;;  %10597 = vpow2.f32 %v1760_v49  ;;  %v11731_v1 = vpop.f32.mrb[71].mxu0 }
 0x48d   :  { %v1768_v56 = vmul.f32 1.442695, %v1754_v58  ;;  %v11733_v16 = vpop.eup %10589  ;;  %v1297_v34 = vrot.slane %v1296_v7, 1  ;;  %v1533_v44 = vsel %vm512_vm4, %v11727_v15, 0.0  ;;  %10599 = vpow2.f32 %v1762_v23 }
 0x48e   :  { %v1770_v51 = vmul.f32 1.442695, %v1755_v17  ;;  %v11737_v24 = vpop.eup %10591  ;;  %v1530_v30 = vadd.f32 %v1529_v41, %v1528_v9  ;;  %v1535_v48 = vsel %vm512_vm4, %v11733_v16, 0.0  ;;  %10601 = vpow2.f32 %v1764_v31 }
 0x48f   :  { %v1989_v40 = vmax.f32 %v1987_v13, %v1988_v32  ;;  %v1298_v12 = vadd.f32 %v1297_v34, %v1296_v7  ;;  %v1537_v58 = vsel %vm512_vm4, %v11737_v24, 0.0  ;;  %10603 = vpow2.f32 %v1766_v18 }
 0x490   :  { %v831_v25 = vpack.c.bf16 %v825_v8, %v824_v4  ;;  %v1532_v50 = vadd.f32 %v1531_v57, %v1530_v30  ;;  %10605 = vpow2.f32 %v1768_v56  ;;  %v2225_v17 = vsel %vm512_vm4, %v11669_v46, -inf }
 0x491   :  { %v1990_v49 = vrot.slane %v1989_v40, 4  ;;  %10607 = vrcp.f32 %v1298_v12  ;;  %v2223_v23 = vsel %vm512_vm4, %v11676_v0, -inf  ;;  %v2226_v32 = vsel %vm512_vm4, %v11680_v42, -inf }
 0x492   :  { %9374 = vmatpush3.bf16.msra.mxu1 %v831_v25  ;;  %v2224_v13 = vsel %vm512_vm4, %v11686_v29, -inf  ;;  %v1534_v54 = vadd.f32 %v1533_v44, %v1532_v50  ;;  %10609 = vpow2.f32 %v1770_v51  ;;  %v826_v8 = vmul.f32 %v11603_v27, %v11468_v47 }
 0x493   :  { %v1991_v4 = vmax.f32 %v1989_v40, %v1990_v49  ;;  %9375 = vmatprep.subr.bf16.mxu1 %v14565_v19  ;;  %v827_v22 = vmul.f32 %v11603_v27, %v11477_v33  ;;  %v1060_v31 = vmul.f32 %v11698_v52, %v11507_v14  ;;  %v1061_v7 = vmul.f32 %v11698_v52, %v11511_v55 }
 0x494   :  { %v2231_v41 = vsel %vm512_vm4, %v11709_v59, -inf  ;;  %v11762_v18 = vpop.eup %10593  ;;  %v1536_v9 = vadd.f32 %v1535_v48, %v1534_v54  ;;  %v2227_v47 = vsel %vm512_vm4, %v11719_v37, -inf  ;;  %v2233_v40 = vsel %vm512_vm4, %v11725_v38, -inf }
 0x495   :  { %v1992_v57 = vrot.slane %v1991_v4, 2  ;;  %v2232_v56 = vmax.f32 %v2225_v17, %v2231_v41  ;;  %v11766_v34 = vpop.eup %10595  ;;  %v1772_v33 = vsel %vm512_vm4, %v11762_v18, 0.0  ;;  %v832_v14 = vpack.c.bf16 %v827_v22, %v826_v8 }
 0x496   :  { %v1069_v27 = vpack.c.bf16 %v1061_v7, %v1060_v31  ;;  %v2228_v44 = vmax.f32 %v2223_v23, %v2227_v47  ;;  %v11770_v55 = vpop.eup %10597  ;;  %v1538_v51 = vadd.f32 %v1537_v58, %v1536_v9  ;;  %v1773_v30 = vsel %vm512_vm4, %v11766_v34, 0.0 }
 0x497   :  { %v1993_v48 = vmax.f32 %v1991_v4, %v1992_v57  ;;  %v11776_v12 = vpop.eup %10599  ;;  %v1774_v25 = vadd.f32 %v1773_v30, %v1772_v33  ;;  %v1775_v50 = vsel %vm512_vm4, %v11770_v55, 0.0  ;;  %9376 = vmatpush3.bf16.msra.mxu1 %v832_v14  ;;  %v2234_v49 = vmax.f32 %v2226_v32, %v2233_v40 }
 0x498   :  { %v2229_v17 = vsel %vm512_vm4, %v11731_v1, -inf  ;;  %v11782_v23 = vpop.eup %10601  ;;  %v1539_v58 = vrot.slane %v1538_v51, 4  ;;  %v1777_v54 = vsel %vm512_vm4, %v11776_v12, 0.0  ;;  %9391 = vmatprep.subr.bf16.mxu1 %v14565_v19  ;;  %v1062_v41 = vmul.f32 %v11698_v52, %v11517_v60 }
 0x499   :  { %v1994_v4 = vrot.slane %v1993_v48, 1  ;;  %v2230_v8 = vmax.f32 %v2224_v13, %v2229_v17  ;;  %v11787_v22 = vpop.eup %10603  ;;  %v1776_v31 = vadd.f32 %v1775_v50, %v1774_v25  ;;  %v1779_v7 = vsel %vm512_vm4, %v11782_v23, 0.0 }
 0x49a   :  { %v2236_v32 = vmax.f32 %v2232_v56, %v2234_v49  ;;  %v11793_v9 = vpop.eup %10605  ;;  %v1540_v57 = vadd.f32 %v1539_v58, %v1538_v51  ;;  %v1781_v47 = vsel %vm512_vm4, %v11787_v22, 0.0  ;;  %9378 = vmatmul.mubr.msk.bf16.vlgmr.msra.gmra.mrb[8].mxu1 %vm512_vm4, %v11244_v10  ;;  %v1063_v60 = vmul.f32 %v11698_v52, %v11531_v2 }
 0x49b   :  { %14566 = vst [vmem:[#allocation17_spill] sm:$0xff] %v11793_v9  ;;  %v1995_v33 = vmax.f32 %v1993_v48, %v1994_v4  ;;  %v2235_v13 = vmax.f32 %v2228_v44, %v2230_v8  ;;  %v11799_v14 = vpop.eup %10607  ;;  %v1778_v30 = vadd.f32 %v1777_v54, %v1776_v31  ;;  %v1783_v56 = vsel %vm512_vm4, %v11793_v9, 0.0  ;;  %9392 = vmatpush3.bf16.msra.mxu1 %v1069_v27 }
 0x49c   :  { %v1064_v51 = vmul.f32 %v11698_v52, %v11539_v20  ;;  %9399 = vmatprep.mubr.msk.bf16.mxu1 %vm10953_vm3, %v14565_v19  ;;  %v11809_v48 = vpop.eup %10609  ;;  %v1541_v10 = vrot.slane %v1540_v57, 2  ;;  %9393 = vmatprep.subr.bf16.mxu1 %v14565_v19 }
 0x49d   :  { %14567 = vst [vmem:[#allocation18_spill] sm:$0xff] %v11809_v48  ;;  %v1996_v44 = vsub.f32 %v11587_v39, %v1995_v33  ;;  %v1997_v40 = vsub.f32 %v11601_v53, %v1995_v33  ;;  %v1998_v25 = vsub.f32 %v11585_v11, %v1995_v33  ;;  %v1780_v27 = vadd.f32 %v1779_v7, %v1778_v30 }
 0x49e   :  { %v1785_v2 = vsel %vm512_vm4, %v11809_v48, 0.0  ;;  %v1999_v20 = vsub.f32 %v11589_v61, %v1995_v33  ;;  %v2000_v50 = vsub.f32 %v11647_v63, %v1995_v33  ;;  %v1542_v49 = vadd.f32 %v1541_v10, %v1540_v57 }
 0x49f   :  { %v2001_v17 = vsub.f32 %v11659_v26, %v1995_v33  ;;  %v2002_v58 = vsub.f32 %v11640_v6, %v1995_v33  ;;  %v2003_v39 = vsub.f32 %v11653_v21, %v1995_v33  ;;  %v1782_v53 = vadd.f32 %v1781_v47, %v1780_v27  ;;  %v14568_v33 = vld [vmem:[#allocation9_spill] sm:$0xff] }
 0x4a0   :  { %v2004_v54 = vmul.f32 1.442695, %v1996_v44  ;;  %v2006_v11 = vmul.f32 1.442695, %v1997_v40  ;;  %v2008_v4 = vmul.f32 1.442695, %v1998_v25  ;;  %v2237_v30 = vmax.f32 %v2235_v13, %v2236_v32 }
 0x4a1   :  { %v1543_v8 = vrot.slane %v1542_v49, 1  ;;  %v2010_v31 = vmul.f32 1.442695, %v1999_v20  ;;  %v2012_v7 = vmul.f32 1.442695, %v2000_v50  ;;  %v1784_v48 = vadd.f32 %v1783_v56, %v1782_v53  ;;  %v14569_v32 = vld [vmem:[#allocation10_spill] sm:$0xff] }
 0x4a2   :  { %10611 = vpow2.f32 %v2004_v54  ;;  %v2014_v61 = vmul.f32 1.442695, %v2001_v17  ;;  %v2016_v9 = vmul.f32 1.442695, %v2002_v58  ;;  %v2018_v57 = vmul.f32 1.442695, %v2003_v39 }
 0x4a3   :  { %v1544_v63 = vadd.f32 %v1543_v8, %v1542_v49  ;;  %10613 = vpow2.f32 %v2006_v11  ;;  %v2238_v26 = vrot.slane %v2237_v30, 4  ;;  %v1786_v10 = vadd.f32 %v1785_v2, %v1784_v48  ;;  %v14570_v25 = vld [vmem:[#allocation11_spill] sm:$0xff]  ;;  %v14572_v20 = vld [vmem:[#allocation13_spill] sm:$0xff]  ;;  %v14573_v50 = vld [vmem:[#allocation14_spill] sm:$0xff] }
 0x4a4   :  { %10615 = vpow2.f32 %v2008_v4  ;;  %v1070_v6 = vpack.c.bf16 %v1063_v60, %v1062_v41  ;;  %v1065_v21 = vmul.f32 %v11698_v52, %v11545_v35  ;;  %v1066_v44 = vmul.f32 %v11698_v52, %v14568_v33  ;;  %v14571_v60 = vld [vmem:[#allocation12_spill] sm:$0xff]  ;;  %v14574_v58 = vld [vmem:[#allocation15_spill] sm:$0xff] }
 0x4a5   :  { %10617 = vrcp.f32 %v1544_v63  ;;  %v2239_v47 = vmax.f32 %v2237_v30, %v2238_v26  ;;  %v1067_v13 = vmul.f32 %v11698_v52, %v14569_v32  ;;  %v1787_v56 = vrot.slane %v1786_v10, 4  ;;  %v14575_v11 = vld [vmem:[#allocation16_spill] sm:$0xff] }
 0x4a6   :  { %10619 = vpow2.f32 %v2010_v31  ;;  %9394 = vmatpush3.bf16.msra.mxu1 %v1070_v6  ;;  %v1071_v40 = vpack.c.bf16 %v1065_v21, %v1064_v51  ;;  %v1300_v48 = vmul.f32 %v11799_v14, %v14570_v25  ;;  %v1301_v27 = vmul.f32 %v11799_v14, %v14571_v60  ;;  %v14576_v60 = vld [vmem:[#allocation6_spill] sm:$0xff] }
 0x4a7   :  { %10621 = vpow2.f32 %v2012_v7  ;;  %v2240_v41 = vrot.slane %v2239_v47, 2  ;;  %9395 = vmatprep.subr.bf16.mxu1 %v14565_v19  ;;  %v1072_v35 = vpack.c.bf16 %v1067_v13, %v1066_v44  ;;  %v1788_v2 = vadd.f32 %v1787_v56, %v1786_v10 }
 0x4a8   :  { %10623 = vpow2.f32 %v2014_v61  ;;  %v11835_v52 = vmul.f32 %v11799_v14, %v14572_v20  ;;  %v11839_v51 = vmul.f32 %v11799_v14, %v14573_v50  ;;  %v1309_v17 = vpack.c.bf16 %v1301_v27, %v1300_v48 }
 0x4a9   :  { %10625 = vpow2.f32 %v2016_v9  ;;  %v2241_v49 = vmax.f32 %v2239_v47, %v2240_v41  ;;  %v11843_v39 = vmul.f32 %v11799_v14, %v14574_v58  ;;  %v1789_v53 = vrot.slane %v1788_v2, 2 }
 0x4aa   :  { %10627 = vpow2.f32 %v2018_v57  ;;  %9396 = vmatpush3.bf16.msra.mxu1 %v1071_v40  ;;  %v1310_v54 = vpack.c.bf16 %v11839_v51, %v11835_v52  ;;  %v11849_v4 = vmul.f32 %v11799_v14, %v14575_v11  ;;  %v11854_v9 = vmul.f32 %v11799_v14, %v11649_v43 }
 0x4ab   :  { %v2242_v8 = vrot.slane %v2241_v49, 1  ;;  %9397 = vmatprep.subr.bf16.mxu1 %v14565_v19  ;;  %v11858_v31 = vmul.f32 %v11799_v14, %v11655_v45  ;;  %v1790_v30 = vadd.f32 %v1789_v53, %v1788_v2 }
 0x4ac   :  { %v11860_v7 = vpop.eup %10611  ;;  %v1311_v61 = vpack.c.bf16 %v11849_v4, %v11843_v39 }
 0x4ad   :  { %v11864_v63 = vpop.eup %10613  ;;  %v2020_v57 = vsel %vm512_vm4, %v11860_v7, 0.0  ;;  %v2243_v26 = vmax.f32 %v2241_v49, %v2242_v8  ;;  %v1312_v43 = vpack.c.bf16 %v11858_v31, %v11854_v9  ;;  %v1791_v6 = vrot.slane %v1790_v30, 1 }
 0x4ae   :  { %v11870_v10 = vpop.eup %10615  ;;  %v2021_v45 = vsel %vm512_vm4, %v11864_v63, 0.0  ;;  %9398 = vmatpush3.bf16.msra.mxu1 %v1072_v35 }
 0x4af   :  { %v10618_v14 = vpop.eup %10617  ;;  %v2022_v21 = vadd.f32 %v2021_v45, %v2020_v57  ;;  %v2023_v47 = vsel %vm512_vm4, %v11870_v10, 0.0  ;;  %v2244_v33 = vsub.f32 %v11676_v0, %v2243_v26  ;;  %v2245_v44 = vsub.f32 %v11686_v29, %v2243_v26  ;;  %9413 = vmatprep.subr.bf16.mxu1 %v14565_v19 }
 0x4b0   :  { %v11879_v32 = vpop.eup %10619  ;;  %v1792_v13 = vadd.f32 %v1791_v6, %v1790_v30  ;;  %v2246_v56 = vsub.f32 %v11669_v46, %v2243_v26  ;;  %v2247_v40 = vsub.f32 %v11680_v42, %v2243_v26  ;;  %v2248_v25 = vsub.f32 %v11719_v37, %v2243_v26 }
 0x4b1   :  { %v11884_v48 = vpop.eup %10621  ;;  %v2024_v41 = vadd.f32 %v2023_v47, %v2022_v21  ;;  %v2249_v35 = vsub.f32 %v11731_v1, %v2243_v26  ;;  %v2250_v0 = vsub.f32 %v11709_v59, %v2243_v26  ;;  %9400 = vmatmul.mubr.msk.bf16.vlgmr.msra.gmra.mrb[12].mxu1 %vm512_vm4, %v14576_v60  ;;  %v2025_v46 = vsel %vm512_vm4, %v11879_v32, 0.0 }
 0x4b2   :  { %v11890_v29 = vpop.eup %10623  ;;  %10629 = vrcp.f32 %v1792_v13  ;;  %v2251_v42 = vsub.f32 %v11725_v38, %v2243_v26  ;;  %v2252_v27 = vmul.f32 1.442695, %v2244_v33  ;;  %9414 = vmatpush3.bf16.msra.mxu1 %v1309_v17  ;;  %9421 = vmatprep.mubr.msk.bf16.mxu1 %vm10953_vm3, %v14565_v19  ;;  %v2027_v59 = vsel %vm512_vm4, %v11884_v48, 0.0 }
 0x4b3   :  { %v11897_v37 = vpop.eup %10625  ;;  %v2026_v1 = vadd.f32 %v2025_v46, %v2024_v41  ;;  %v2254_v2 = vmul.f32 1.442695, %v2245_v44  ;;  %v2256_v20 = vmul.f32 1.442695, %v2246_v56  ;;  %9415 = vmatprep.subr.bf16.mxu1 %v14565_v19  ;;  %v2029_v38 = vsel %vm512_vm4, %v11890_v29, 0.0  ;;  %v14579_v46 = vld [vmem:[#allocation7_spill] sm:$0xff] }
 0x4b4   :  { %v11902_v52 = vpop.eup %10627  ;;  %v2031_v50 = vsel %vm512_vm4, %v11897_v37, 0.0  ;;  %10631 = vpow2.f32 %v2252_v27  ;;  %v2258_v51 = vmul.f32 1.442695, %v2247_v40  ;;  %v2260_v58 = vmul.f32 1.442695, %v2248_v25 }
 0x4b5   :  { %v2028_v49 = vadd.f32 %v2027_v59, %v2026_v1  ;;  %v2033_v17 = vsel %vm512_vm4, %v11902_v52, 0.0  ;;  %10633 = vpow2.f32 %v2254_v2  ;;  %v2262_v53 = vmul.f32 1.442695, %v2249_v35 }
 0x4b6   :  { %10635 = vpow2.f32 %v2256_v20  ;;  %v2264_v11 = vmul.f32 1.442695, %v2250_v0  ;;  %9416 = vmatpush3.bf16.msra.mxu1 %v1310_v54  ;;  %v1546_v8 = vmul.f32 %v10618_v14, %v11692_v28  ;;  %v1547_v57 = vmul.f32 %v10618_v14, %v11704_v36 }
 0x4b7   :  { %v2030_v30 = vadd.f32 %v2029_v38, %v2028_v49  ;;  %10637 = vpow2.f32 %v2258_v51  ;;  %9417 = vmatprep.subr.bf16.mxu1 %v14565_v19  ;;  %v1548_v26 = vmul.f32 %v10618_v14, %v11711_v62  ;;  %v2266_v6 = vmul.f32 1.442695, %v2251_v42 }
 0x4b8   :  { %v1549_v45 = vmul.f32 %v10618_v14, %v11715_v3  ;;  %v11916_v21 = vmul.f32 %v10618_v14, %v11721_v5  ;;  %v11919_v47 = vmul.f32 %v10618_v14, %v11727_v15  ;;  %10639 = vpow2.f32 %v2260_v58 }
 0x4b9   :  { %v2032_v54 = vadd.f32 %v2031_v50, %v2030_v30  ;;  %v1554_v28 = vpack.c.bf16 %v1547_v57, %v1546_v8  ;;  %v11922_v33 = vmul.f32 %v10618_v14, %v11733_v16  ;;  %10641 = vpow2.f32 %v2262_v53 }
 0x4ba   :  { %9418 = vmatpush3.bf16.msra.mxu1 %v1311_v61  ;;  %v1555_v36 = vpack.c.bf16 %v1549_v45, %v1548_v26  ;;  %v1556_v62 = vpack.c.bf16 %v11919_v47, %v11916_v21  ;;  %v1553_v3 = vmul.f32 %v10618_v14, %v11737_v24  ;;  %10643 = vpow2.f32 %v2264_v11  ;;  %v1560_v47 = vpop.permute.xlu1 %1559 }
 0x4bb   :  { %v2034_v5 = vadd.f32 %v2033_v17, %v2032_v54  ;;  %9419 = vmatprep.subr.bf16.mxu1 %v14565_v19  ;;  %10645 = vpow2.f32 %v2266_v6 }
 0x4bc   :  { %v10630_v15 = vpop.eup %10629  ;;  %v1557_v16 = vpack.c.bf16 %v1553_v3, %v11922_v33 }
 0x4bd   :  { %v2035_v44 = vrot.slane %v2034_v5, 4  ;;  %v1794_v13 = vmul.f32 %v10630_v15, %v11762_v18  ;;  %v1795_v39 = vmul.f32 %v10630_v15, %v11766_v34  ;;  %v11935_v4 = vmul.f32 %v10630_v15, %v11770_v55  ;;  %v14577_v18 = vld [vmem:[#allocation17_spill] sm:$0xff] }
 0x4be   :  { %v11937_v61 = vpop.eup %10631  ;;  %9420 = vmatpush3.bf16.msra.mxu1 %v1312_v43  ;;  %v11943_v24 = vmul.f32 %v10630_v15, %v11776_v12  ;;  %v11946_v14 = vmul.f32 %v10630_v15, %v11782_v23  ;;  %v11949_v56 = vmul.f32 %v10630_v15, %v11787_v22  ;;  %v11952_v34 = vmul.f32 %v10630_v15, %v14577_v18  ;;  %v14578_v12 = vld [vmem:[#allocation18_spill] sm:$0xff] }
 0x4bf   :  { %v11954_v55 = vpop.eup %10633  ;;  %v2036_v40 = vadd.f32 %v2035_v44, %v2034_v5  ;;  %v2268_v25 = vsel %vm512_vm4, %v11937_v61, 0.0  ;;  %9435 = vmatprep.subr.bf16.mxu1 %v14565_v19  ;;  %v1802_v9 = vpack.c.bf16 %v1795_v39, %v1794_v13  ;;  %v11960_v31 = vmul.f32 %v10630_v15, %v14578_v12 }
 0x4c0   :  { %v11962_v23 = vpop.eup %10635  ;;  %v2269_v22 = vsel %vm512_vm4, %v11954_v55, 0.0  ;;  %v1803_v43 = vpack.c.bf16 %v11943_v24, %v11935_v4  ;;  %v1804_v41 = vpack.c.bf16 %v11949_v56, %v11946_v14 }
 0x4c1   :  { %v11970_v35 = vpop.eup %10637  ;;  %v2037_v0 = vrot.slane %v2036_v40, 2  ;;  %v2270_v60 = vadd.f32 %v2269_v22, %v2268_v25  ;;  %9422 = vmatmul.mubr.msk.bf16.vlgmr.msra.gmra.mrb[16].mxu1 %vm512_vm4, %v14579_v46  ;;  %v1805_v42 = vpack.c.bf16 %v11960_v31, %v11952_v34  ;;  %v2271_v27 = vsel %vm512_vm4, %v11962_v23, 0.0 }
 0x4c2   :  { %9436 = vmatpush3.bf16.msra.mxu1 %v1554_v28  ;;  %9443 = vmatprep.mubr.msk.bf16.mxu1 %vm10953_vm3, %v14565_v19  ;;  %v11980_v1 = vpop.eup %10639  ;;  %v2273_v38 = vsel %vm512_vm4, %v11970_v35, 0.0 }
 0x4c3   :  { %v2038_v59 = vadd.f32 %v2037_v0, %v2036_v40  ;;  %v2272_v2 = vadd.f32 %v2271_v27, %v2270_v60  ;;  %9437 = vmatprep.subr.bf16.mxu1 %v14565_v19  ;;  %v11983_v20 = vpop.eup %10641  ;;  %v2275_v58 = vsel %vm512_vm4, %v11980_v1, 0.0 }
 0x4c4   :  { %v11987_v50 = vpop.eup %10643  ;;  %v2277_v8 = vsel %vm512_vm4, %v11983_v20, 0.0 }
 0x4c5   :  { %v2039_v51 = vrot.slane %v2038_v59, 1  ;;  %v2274_v49 = vadd.f32 %v2273_v38, %v2272_v2  ;;  %v11989_v17 = vpop.eup %10645  ;;  %v2279_v57 = vsel %vm512_vm4, %v11987_v50, 0.0 }
 0x4c6   :  { %9438 = vmatpush3.bf16.msra.mxu1 %v1555_v36  ;;  %v2281_v6 = vsel %vm512_vm4, %v11989_v17, 0.0 }
 0x4c7   :  { %v2040_v53 = vadd.f32 %v2039_v51, %v2038_v59  ;;  %v2276_v11 = vadd.f32 %v2275_v58, %v2274_v49  ;;  %9439 = vmatprep.subr.bf16.mxu1 %v14565_v19 }
 0x4c9   :  { %10647 = vrcp.f32 %v2040_v53  ;;  %v2278_v30 = vadd.f32 %v2277_v8, %v2276_v11 }
 0x4ca   :  { %9440 = vmatpush3.bf16.msra.mxu1 %v1556_v62 }
 0x4cb   :  { %v2280_v26 = vadd.f32 %v2279_v57, %v2278_v30  ;;  %9441 = vmatprep.subr.bf16.mxu1 %v14565_v19 }
 0x4cd   :  { %v2282_v45 = vadd.f32 %v2281_v6, %v2280_v26  ;;  %v10465_v6 = vld [vmem:[%s14505_s7] sm:$0xff]  }
 0x4ce   :  { %9442 = vmatpush3.bf16.msra.mxu1 %v1557_v16  ;;  %9517 = vmatprep.mubr.msk.bf16.mxu0 %vm224_vm0, %v10465_v6  ;;  %v117_v6 = vld [vmem:[%s14512_s1 + $0x48] sm:$0xff] }
 0x4cf   :  { %v2283_v21 = vrot.slane %v2282_v45, 4  ;;  %9457 = vmatprep.subr.bf16.mxu1 %v14565_v19 }
 0x4d1   :  { %v2284_v54 = vadd.f32 %v2283_v21, %v2282_v45  ;;  %9444 = vmatmul.mubr.msk.bf16.vlgmr.msra.gmra.mrb[20].mxu1 %vm512_vm4, %v1560_v47  ;;  %v10954_v21 = vmov 0   ;;  %v2374_v47 = vld [vmem:[%s14506_s8] sm:$0xff] }
 0x4d2   :  { %9458 = vmatpush3.bf16.msra.mxu1 %v1802_v9  ;;  %9465 = vmatprep.mubr.msk.bf16.mxu1 %vm10953_vm3, %v14565_v19 }
 0x4d3   :  { %v10648_v28 = vpop.eup %10647  ;;  %v2285_v33 = vrot.slane %v2284_v54, 2  ;;  %9459 = vmatprep.subr.bf16.mxu1 %v14565_v19  ;;  %10165 = vset.pattern.permute.xlu0 %v10954_v21 }
 0x4d4   :  { %v2042_v36 = vmul.f32 %v10648_v28, %v11860_v7  ;;  %v2043_v62 = vmul.f32 %v10648_v28, %v11864_v63  ;;  %v2044_v3 = vmul.f32 %v10648_v28, %v11870_v10  ;;  %v2045_v5 = vmul.f32 %v10648_v28, %v11879_v32  ;;  %v1808_v32 = vpop.permute.xlu0 %1807  ;;  %10166 = vset.pattern.permute.xlu1 %v10954_v21 }
 0x4d5   :  { %v2286_v15 = vadd.f32 %v2285_v33, %v2284_v54  ;;  %v2046_v16 = vmul.f32 %v10648_v28, %v11884_v48  ;;  %v2047_v44 = vmul.f32 %v10648_v28, %v11890_v29  ;;  %v2048_v13 = vmul.f32 %v10648_v28, %v11897_v37  ;;  %2380 = vperm.xlu0 %10165, %v2374_v47  }
 0x4d6   :  { %9460 = vmatpush3.bf16.msra.mxu1 %v1803_v43  ;;  %v2050_v39 = vpack.c.bf16 %v2043_v62, %v2042_v36  ;;  %v2051_v4 = vpack.c.bf16 %v2045_v5, %v2044_v3  ;;  %v2049_v24 = vmul.f32 %v10648_v28, %v11902_v52  ;;  %v2377_v36 = vld [vmem:[%s14506_s8 + $0x18] sm:$0xff]  ;;  %v2375_v3 = vld [vmem:[%s14506_s8 + $0x8] sm:$0xff] }
 0x4d7   :  { %v2287_v14 = vrot.slane %v2286_v15, 1  ;;  %9461 = vmatprep.subr.bf16.mxu1 %v14565_v19  ;;  %v2052_v7 = vpack.c.bf16 %v2047_v44, %v2046_v16  ;;  %v2468_v5 = vld [vmem:[%s14507_s9 + $0x8] sm:$0xff]  ;;  %v2467_v44 = vld [vmem:[%s14507_s9] sm:$0xff] }
 0x4d8   :  { %v2053_v63 = vpack.c.bf16 %v2049_v24, %v2048_v13  ;;  %v2472_v16 = vld [vmem:[%s14508_s10 + $0x8] sm:$0xff]  ;;  %v2470_v13 = vld [vmem:[%s14507_s9 + $0x18] sm:$0xff]  ;;  %v2469_v24 = vld [vmem:[%s14507_s9 + $0x10] sm:$0xff] }
 0x4d9   :  { %v2288_v10 = vadd.f32 %v2287_v14, %v2286_v15  ;;  %2395 = vperm.xlu0 %10165, %v2377_v36   ;;  %v2376_v15 = vld [vmem:[%s14506_s8 + $0x10] sm:$0xff]  ;;  %v2569_v14 = vld [vmem:[%s14509_s12 + $0x8] sm:$0xff] }
 0x4da   :  { %9462 = vmatpush3.bf16.msra.mxu1 %v1804_v41 }
 0x4db   :  { %10649 = vrcp.f32 %v2288_v10  ;;  %9463 = vmatprep.subr.bf16.mxu1 %v14565_v19  ;;  %v2568_v10 = vld [vmem:[%s14509_s12] sm:$0xff] }
 0x4dd   :  { %2517 = vperm.xlu0 %10165, %v2468_v5  }
 0x4de   :  { %9464 = vmatpush3.bf16.msra.mxu1 %v1805_v42 }
 0x4df   :  { %9479 = vmatprep.subr.bf16.mxu1 %v14565_v19 }
 0x4e1   :  { %9466 = vmatmul.mubr.msk.bf16.vlgmr.msra.gmra.mrb[24].mxu1 %vm512_vm4, %v1808_v32  ;;  %2541 = vperm.xlu0 %10165, %v2472_v16   ;;  %v2573_v32 = vld [vmem:[%s14509_s12 + $0x28] sm:$0xff]  ;;  %v119_v16 = vld [vmem:[%s14512_s1 + $0x58] sm:$0xff] }
 0x4e2   :  { %9480 = vmatpush3.bf16.msra.mxu1 %v2050_v39  ;;  %9487 = vmatprep.mubr.msk.bf16.mxu1 %vm10953_vm3, %v14565_v19  ;;  %v2471_v39 = vld [vmem:[%s14508_s10] sm:$0xff] }
 0x4e3   :  { %9481 = vmatprep.subr.bf16.mxu1 %v14565_v19 }
 0x4e5   :  { %v10650_v48 = vpop.eup %10649  ;;  %2527 = vperm.xlu0 %10165, %v2470_v13   ;;  %v14581_v13 = vld [vmem:[#allocation2_spill] sm:$0xff] }
 0x4e6   :  { %9482 = vmatpush3.bf16.msra.mxu1 %v2051_v4  ;;  %v2290_v29 = vmul.f32 %v10650_v48, %v11937_v61  ;;  %v2291_v37 = vmul.f32 %v10650_v48, %v11954_v55  ;;  %v2292_v52 = vmul.f32 %v10650_v48, %v11962_v23  ;;  %v2293_v56 = vmul.f32 %v10650_v48, %v11970_v35  ;;  %v2056_v55 = vpop.permute.xlu1 %2055  ;;  %v2474_v4 = vld [vmem:[%s14508_s10 + $0x18] sm:$0xff] }
 0x4e7   :  { %9483 = vmatprep.subr.bf16.mxu1 %v14565_v19  ;;  %v2294_v18 = vmul.f32 %v10650_v48, %v11980_v1  ;;  %v2295_v34 = vmul.f32 %v10650_v48, %v11983_v20  ;;  %v2296_v40 = vmul.f32 %v10650_v48, %v11987_v50  ;;  %v2297_v25 = vmul.f32 %v10650_v48, %v11989_v17  ;;  %v2570_v48 = vld [vmem:[%s14509_s12 + $0x10] sm:$0xff] }
 0x4e8   :  { %v2298_v9 = vpack.c.bf16 %v2291_v37, %v2290_v29  ;;  %v2299_v12 = vpack.c.bf16 %v2293_v56, %v2292_v52  ;;  %v2575_v29 = vld [vmem:[%s14509_s12 + $0x38] sm:$0xff]  ;;  %v2572_v37 = vld [vmem:[%s14509_s12 + $0x20] sm:$0xff]  ;;  %v2730_v52 = vld [vmem:[%s14510_s14 + $0x8] sm:$0xff] }
 0x4e9   :  { %v2300_v31 = vpack.c.bf16 %v2295_v34, %v2294_v18  ;;  %v2301_v61 = vpack.c.bf16 %v2297_v25, %v2296_v40  ;;  %2551 = vperm.xlu0 %10165, %v2474_v4   ;;  %v2574_v56 = vld [vmem:[%s14509_s12 + $0x30] sm:$0xff]  ;;  %v2732_v18 = vld [vmem:[%s14510_s14 + $0x18] sm:$0xff]  ;;  %v2729_v34 = vld [vmem:[%s14510_s14] sm:$0xff] }
 0x4ea   :  { %9484 = vmatpush3.bf16.msra.mxu1 %v2052_v7  ;;  %v2304_v23 = vpop.permute.xlu1 %2303  ;;  %v2473_v7 = vld [vmem:[%s14508_s10 + $0x10] sm:$0xff]  ;;  %v8679_v40 = vld [vmem:[%s14507_s9 + $0x20] sm:$0xff] }
 0x4eb   :  { %9485 = vmatprep.subr.bf16.mxu1 %v14565_v19  ;;  %v2731_v25 = vld [vmem:[%s14510_s14 + $0x10] sm:$0xff] }
 0x4ed   :  { %2583 = vperm.xlu0 %10165, %v2569_v14  }
 0x4ee   :  { %9486 = vmatpush3.bf16.msra.mxu1 %v2053_v63  ;;  %v2571_v63 = vld [vmem:[%s14509_s12 + $0x18] sm:$0xff] }
 0x4ef   :  { %9501 = vmatprep.subr.bf16.mxu1 %v14565_v19 }
 0x4f1   :  { %9488 = vmatmul.mubr.msk.bf16.vlgmr.msra.gmra.mrb[28].mxu1 %vm512_vm4, %v2056_v55  ;;  %2593 = vperm.xlu0 %10165, %v2571_v63   ;;  %v8682_v55 = vld [vmem:[%s14507_s9 + $0x38] sm:$0xff] }
 0x4f2   :  { %9502 = vmatpush3.bf16.msra.mxu1 %v2298_v9  ;;  %9509 = vmatprep.mubr.msk.bf16.mxu1 %vm10953_vm3, %v14565_v19  ;;  %v8680_v9 = vld [vmem:[%s14507_s9 + $0x28] sm:$0xff] }
 0x4f3   :  { %9503 = vmatprep.subr.bf16.mxu1 %v14565_v19 }
 0x4f5   :  { %2603 = vperm.xlu0 %10165, %v2573_v32   ;;  %v120_v32 = vld [vmem:[%s14512_s1 + $0x60] sm:$0xff] }
 0x4f6   :  { %9504 = vmatpush3.bf16.msra.mxu1 %v2299_v12  ;;  %v8683_v12 = vld [vmem:[%s14508_s10 + $0x20] sm:$0xff] }
 0x4f7   :  { %9505 = vmatprep.subr.bf16.mxu1 %v14565_v19 }
 0x4f9   :  { %2613 = vperm.xlu0 %10165, %v2575_v29  }
 0x4fa   :  { %9506 = vmatpush3.bf16.msra.mxu1 %v2300_v31  ;;  %v8684_v31 = vld [vmem:[%s14508_s10 + $0x28] sm:$0xff] }
 0x4fb   :  { %9507 = vmatprep.subr.bf16.mxu1 %v14565_v19 }
 0x4fd   :  { %2740 = vperm.xlu0 %10165, %v2730_v52  }
 0x4fe   :  { %9508 = vmatpush3.bf16.msra.mxu1 %v2301_v61  ;;  %v8681_v61 = vld [vmem:[%s14507_s9 + $0x30] sm:$0xff] }
 0x501   :  { %9510 = vmatmul.mubr.msk.bf16.vlgmr.msra.gmra.mrb[32].mxu1 %vm512_vm4, %v2304_v23  ;;  %2750 = vperm.xlu0 %10165, %v2732_v18   ;;  %v8685_v23 = vld [vmem:[%s14508_s10 + $0x30] sm:$0xff] }
 0x505   :  { %2868 = vperm.xlu0 %10165, %v8679_v40  }
 0x509   :  { %2873 = vperm.xlu0 %10165, %v8680_v9  }
 0x50d   :  { %2892 = vperm.xlu0 %10165, %v8683_v12  }
 0x511   :  { %2897 = vperm.xlu0 %10165, %v8684_v31  }
 0x515   :  { %2878 = vperm.xlu0 %10165, %v8681_v61  }
 0x519   :  { %2883 = vperm.xlu0 %10165, %v8682_v55  }
 0x51d   :  { %2902 = vperm.xlu0 %10165, %v8685_v23  }
 0x554   :  { %v2381_v21 = vpop.permute.xlu0 %2380 }
 0x56d   :  { %v12039_v22 = vpop.f32.mrb[8].mxu1 }
 0x56e   :  { %v9379_v43 = vpop.f32.mrb[9].mxu1 }
 0x56f   :  { %v873_v41 = vpop.f32.mrb[10].mxu1  ;;  %v8686_v43 = vld [vmem:[%s14508_s10 + $0x38] sm:$0xff] }
 0x570   :  { %v9380_v35 = vpop.f32.mrb[11].mxu1  ;;  %2907 = vperm.xlu0 %10165, %v8686_v43  }
 0x584   :  { %v12041_v0 = vpop.f32.mrb[12].mxu1 }
 0x585   :  { %v9401_v60 = vpop.f32.mrb[13].mxu1 }
 0x586   :  { %v1113_v46 = vpop.f32.mrb[14].mxu1 }
 0x587   :  { %v9402_v42 = vpop.f32.mrb[15].mxu1  ;;  %v14580_v46 = vld [vmem:[#allocation8_spill] sm:$0xff] }
 0x594   :  { %v12043_v27 = vpop.f32.mrb[16].mxu1 }
 0x595   :  { %v9423_v1 = vpop.f32.mrb[17].mxu1 }
 0x596   :  { %v1353_v59 = vpop.f32.mrb[18].mxu1 }
 0x597   :  { %v9424_v2 = vpop.f32.mrb[19].mxu1 }
 0x5a4   :  { %v1598_v20 = vpop.f32.mrb[20].mxu1 }
 0x5a5   :  { %v9445_v38 = vpop.f32.mrb[21].mxu1 }
 0x5a6   :  { %v1601_v50 = vpop.f32.mrb[22].mxu1 }
 0x5a7   :  { %v9446_v51 = vpop.f32.mrb[23].mxu1 }
 0x5b4   :  { %v1846_v49 = vpop.f32.mrb[24].mxu1 }
 0x5b5   :  { %v10155_v17 = vpack.i.bf16 %v1846_v49, %v1598_v20  ;;  %v9467_v58 = vpop.f32.mrb[25].mxu1 }
 0x5b6   :  { %v1849_v53 = vpop.f32.mrb[26].mxu1  ;;  %v110_v58 = vld [vmem:[%s14512_s1 + $0x10] sm:$0xff] }
 0x5b7   :  { %10156 = vrot.lane.b32.xlu1 %v10155_v17, %s10951_s20  ;;  %v9468_v11 = vpop.f32.mrb[27].mxu1  ;;  %v10466_v17 = vld [vmem:[%s14505_s7 + $0x8] sm:$0xff]   ;;  %v111_v53 = vld [vmem:[%s14512_s1 + $0x18] sm:$0xff] }
 0x5b8   :  { %v112_v11 = vld [vmem:[%s14512_s1 + $0x20] sm:$0xff] }
 0x5c4   :  { %v2094_v8 = vpop.f32.mrb[28].mxu1 }
 0x5c5   :  { %v9489_v30 = vpop.f32.mrb[29].mxu1 }
 0x5c6   :  { %v2097_v57 = vpop.f32.mrb[30].mxu1  ;;  %v114_v30 = vld [vmem:[%s14512_s1 + $0x30] sm:$0xff] }
 0x5c7   :  { %v9490_v26 = vpop.f32.mrb[31].mxu1  ;;  %v115_v57 = vld [vmem:[%s14512_s1 + $0x38] sm:$0xff] }
 0x5c8   :  { %v116_v26 = vld [vmem:[%s14512_s1 + $0x40] sm:$0xff] }
 0x5d4   :  { %v2342_v45 = vpop.f32.mrb[32].mxu1 }
 0x5d5   :  { %v10160_v54 = vpack.i.bf16 %v2342_v45, %v2094_v8  ;;  %v9511_v28 = vpop.f32.mrb[33].mxu1  ;;  %v113_v8 = vld [vmem:[%s14512_s1 + $0x28] sm:$0xff] }
 0x5d6   :  { %v2345_v33 = vpop.f32.mrb[34].mxu1 }
 0x5d7   :  { %10161 = vrot.lane.b32.xlu1 %v10160_v54, %s10951_s20  ;;  %v9512_v62 = vpop.f32.mrb[35].mxu1  ;;  %v118_v54 = vld [vmem:[%s14512_s1 + $0x50] sm:$0xff] }
 0x5db   :  { %2385 = vperm.xlu1 %10166, %v2375_v3  }
 0x5df   :  { %2390 = vperm.xlu1 %10166, %v2376_v15  }
 0x5e3   :  { %2512 = vperm.xlu1 %10166, %v2467_v44   ;;  %v2396_v44 = vpop.permute.xlu0 %2395 }
 0x5e7   :  { %2536 = vperm.xlu1 %10166, %v2471_v39  }
 0x5eb   :  { %2522 = vperm.xlu1 %10166, %v2469_v24   ;;  %v14582_v24 = vld [vmem:[#allocation3_spill] sm:$0xff] }
 0x5ef   :  { %2546 = vperm.xlu1 %10166, %v2473_v7   ;;  %v14583_v7 = vld [vmem:[#allocation4_spill] sm:$0xff] }
 0x5f3   :  { %2578 = vperm.xlu1 %10166, %v2568_v10  }
 0x5f7   :  { %2588 = vperm.xlu1 %10166, %v2570_v48   ;;  %v14584_v48 = vld [vmem:[#allocation5_spill] sm:$0xff] }
 0x5fb   :  { %2598 = vperm.xlu1 %10166, %v2572_v37  }
 0x5ff   :  { %2608 = vperm.xlu1 %10166, %v2574_v56   ;;  %v121_v56 = vld [vmem:[%s14512_s1 + $0x68] sm:$0xff] }
 0x603   :  { %2735 = vperm.xlu1 %10166, %v2729_v34  }
 0x607   :  { %2745 = vperm.xlu1 %10166, %v2731_v25  }
 0x629   :  { %v10157_v41 = vpop.permute.xlu1 %10156 }
 0x62a   :  { %v10159_v35 = vunpack.i.h.bf16 %v10157_v41  ;;  %v10158_v60 = vunpack.i.l.bf16 %v10157_v41 }
 0x62c   :  { %v2364_v42 = vsel %vm512_vm4, %v14580_v46, %v10158_v60  ;;  %v2365_v1 = vsel %vm512_vm4, %v12039_v22, %v10159_v35  ;;  %v10467_v22 = vld [vmem:[%s14511_s11] sm:$0xff]  }
 0x62d   :  { %v2372_v59 = vpack.c.bf16 %v2365_v1, %v2364_v42  ;;  %9525 = vmatprep.mubr.msk.bf16.mxu1 %vm224_vm0, %v10467_v22 }
 0x62f   :  { %9513 = vmatprep.subr.bf16.mxu0 %v2372_v59 }
 0x630   :  { %9514 = vmatpush3.bf16.msra.mxu0 %v2372_v59 }
 0x649   :  { %v10162_v2 = vpop.permute.xlu1 %10161 }
 0x64a   :  { %v10164_v20 = vunpack.i.h.bf16 %v10162_v2  ;;  %v10163_v38 = vunpack.i.l.bf16 %v10162_v2 }
 0x64c   :  { %v2366_v50 = vsel %vm512_vm4, %v12041_v0, %v10163_v38  ;;  %v2367_v51 = vsel %vm512_vm4, %v12043_v27, %v10164_v20  ;;  %v108_v0 = vld [vmem:[%s14512_s1] sm:$0xff]  ;;  %v109_v27 = vld [vmem:[%s14512_s1 + $0x8] sm:$0xff] }
 0x64d   :  { %v2373_v49 = vpack.c.bf16 %v2367_v51, %v2366_v50  ;;  %124 = vxpose.xlu1.b32.start [1/16] (narrow) %v108_v0, 32 }
 0x64f   :  { %9515 = vmatprep.subr.bf16.mxu0 %v2373_v49 }
 0x650   :  { %9516 = vmatpush3.bf16.msra.mxu0 %v2373_v49 }
 0x651   :  { %125 = vxpose.xlu1.b32.cont [2/16] (narrow) %v109_v27, 32 }
 0x653   :  { %9518 = vmatmul.mubr.msk.bf16.vlgmr.msra.gmra.mrb[72].mxu0 %vm224_vm0, %v10466_v17  ;;  %v2518_v17 = vpop.permute.xlu0 %2517 }
 0x655   :  { %126 = vxpose.xlu1.b32.cont [3/16] (narrow) %v110_v58, 32 }
 0x657   :  { %v2542_v58 = vpop.permute.xlu0 %2541 }
 0x659   :  { %127 = vxpose.xlu1.b32.cont [4/16] (narrow) %v111_v53, 32 }
 0x65a   :  { %v2386_v45 = vpop.permute.xlu1 %2385 }
 0x65d   :  { %128 = vxpose.xlu1.b32.cont [5/16] (narrow) %v112_v11, 32  ;;  %v2528_v11 = vpop.permute.xlu0 %2527 }
 0x65e   :  { %v2391_v62 = vpop.permute.xlu1 %2390 }
 0x661   :  { %129 = vxpose.xlu1.b32.cont [6/16] (narrow) %v113_v8, 32 }
 0x662   :  { %v2513_v22 = vpop.permute.xlu1 %2512 }
 0x665   :  { %130 = vxpose.xlu1.b32.cont [7/16] (narrow) %v114_v30, 32 }
 0x666   :  { %v2537_v53 = vpop.permute.xlu1 %2536 }
 0x669   :  { %131 = vxpose.xlu1.b32.cont [8/16] (narrow) %v115_v57, 32 }
 0x66a   :  { %v2523_v8 = vpop.permute.xlu1 %2522 }
 0x66d   :  { %132 = vxpose.xlu1.b32.cont [9/16] (narrow) %v116_v26, 32 }
 0x671   :  { %133 = vxpose.xlu1.b32.cont [10/16] (narrow) %v117_v6, 32 }
 0x675   :  { %134 = vxpose.xlu1.b32.cont [11/16] (narrow) %v118_v54, 32 }
 0x679   :  { %135 = vxpose.xlu1.b32.cont [12/16] (narrow) %v119_v16, 32 }
 0x67d   :  { %136 = vxpose.xlu1.b32.cont [13/16] (narrow) %v120_v32, 32 }
 0x681   :  { %137 = vxpose.xlu1.b32.cont [14/16] (narrow) %v121_v56, 32 }
 0x726   :  { %v9519_v47 = vpop.f32.mrb[72].mxu0 }
 0x727   :  { %v2448_v28 = vpop.f32.mrb[73].mxu0  ;;  %v2457_v5 = vadd.f32 %v9519_v47, %v2391_v62 }
 0x728   :  { %v2449_v33 = vadd.f32 %v2448_v28, %v2381_v21  ;;  %v9520_v36 = vpop.f32.mrb[74].mxu0 }
 0x729   :  { %v2451_v3 = vpop.f32.mrb[75].mxu0  ;;  %v2460_v4 = vadd.f32 %v9520_v36, %v2396_v44  ;;  %v2465_v63 = vadd.f32 %v2457_v5, %v14583_v7  ;;  %v2547_v36 = vpop.permute.xlu1 %2546  ;;  %v10471_v7 = vld [vmem:[%s14513_s13] sm:$0xff]  }
 0x72a   :  { %v2452_v15 = vadd.f32 %v2451_v3, %v2386_v45  ;;  %v2463_v39 = vadd.f32 %v2449_v33, %v14581_v13  ;;  %v2552_v33 = vpop.permute.xlu0 %2551  ;;  %v10468_v13 = vld [vmem:[%s14511_s11 + $0x8] sm:$0xff]   ;;  %9541 = vmatprep.mubr.msk.bf16.mxu0 %vm512_vm4, %v10471_v7 }
 0x72b   :  { %v2466_v29 = vadd.f32 %v2460_v4, %v14584_v48  ;;  %v10470_v4 = vld [vmem:[%s14511_s11 + $0x18] sm:$0xff]  }
 0x72c   :  { %v2464_v14 = vadd.f32 %v2452_v15, %v14582_v24  ;;  %v122_v24 = vld [vmem:[%s14512_s1 + $0x70] sm:$0xff] }
 0x72d   :  { %138 = vxpose.xlu1.b32.cont [15/16] (narrow) %v122_v24, 32 }
 0x72e   :  { %v2475_v10 = vadd.f32 %v2464_v14, %v2463_v39 }
 0x730   :  { %v2476_v37 = vadd.f32 %v2475_v10, %v2465_v63 }
 0x732   :  { %v2477_v52 = vadd.f32 %v2476_v37, %v2466_v29 }
 0x734   :  { %v2478_v18 = vrot.slane %v2477_v52, 4 }
 0x736   :  { %v2479_v34 = vadd.f32 %v2478_v18, %v2477_v52 }
 0x738   :  { %v2480_v40 = vrot.slane %v2479_v34, 2 }
 0x73a   :  { %v2481_v25 = vadd.f32 %v2480_v40, %v2479_v34 }
 0x73c   :  { %v2482_v9 = vrot.slane %v2481_v25, 1 }
 0x73e   :  { %v2483_v12 = vadd.f32 %v2482_v9, %v2481_v25 }
 0x740   :  { %v2485_v31 = vmul.f32 0.03125, %v2483_v12 }
 0x742   :  { %v2486_v61 = vsub.f32 %v2463_v39, %v2485_v31  ;;  %v2487_v55 = vsub.f32 %v2464_v14, %v2485_v31  ;;  %v2488_v23 = vsub.f32 %v2465_v63, %v2485_v31  ;;  %v2489_v43 = vsub.f32 %v2466_v29, %v2485_v31  ;;  %v10469_v39 = vld [vmem:[%s14511_s11 + $0x10] sm:$0xff]   ;;  %v123_v14 = vld [vmem:[%s14512_s1 + $0x78] sm:$0xff]  ;;  %v2579_v63 = vpop.permute.xlu1 %2578  ;;  %v2584_v29 = vpop.permute.xlu0 %2583 }
 0x743   :  { %139 = vxpose.xlu1.b32.end [16/16] (narrow) %v123_v14, 32 }
 0x744   :  { %v2490_v41 = vmul.f32 %v2486_v61, %v2486_v61  ;;  %v2491_v35 = vmul.f32 %v2487_v55, %v2487_v55  ;;  %v2492_v60 = vmul.f32 %v2488_v23, %v2488_v23  ;;  %v2493_v42 = vmul.f32 %v2489_v43, %v2489_v43 }
 0x746   :  { %v2494_v46 = vadd.f32 %v2491_v35, %v2490_v41  ;;  %v2589_v10 = vpop.permute.xlu1 %2588  ;;  %v2594_v52 = vpop.permute.xlu0 %2593 }
 0x748   :  { %v2495_v1 = vadd.f32 %v2494_v46, %v2492_v60 }
 0x74a   :  { %v2496_v59 = vadd.f32 %v2495_v1, %v2493_v42  ;;  %v2599_v32 = vpop.permute.xlu1 %2598 }
 0x74c   :  { %v2497_v2 = vrot.slane %v2496_v59, 4 }
 0x74e   :  { %v2498_v20 = vadd.f32 %v2497_v2, %v2496_v59  ;;  %v2609_v48 = vpop.permute.xlu1 %2608 }
 0x750   :  { %v2499_v38 = vrot.slane %v2498_v20, 2 }
 0x752   :  { %v2500_v50 = vadd.f32 %v2499_v38, %v2498_v20  ;;  %v12243_v37 = vpop.permute.xlu1 %2735 }
 0x754   :  { %v2501_v51 = vrot.slane %v2500_v50, 1 }
 0x756   :  { %v2502_v49 = vadd.f32 %v2501_v51, %v2500_v50  ;;  %v12245_v56 = vpop.permute.xlu1 %2745 }
 0x758   :  { %v2503_v0 = vmul.f32 0.03125, %v2502_v49 }
 0x75a   :  { %v2504_v27 = vadd.f32 1e-05, %v2503_v0 }
 0x75c   :  { %10651 = vrsqrt.f32 %v2504_v27 }
 0x766   :  { %v10652_v30 = vpop.eup %10651 }
 0x767   :  { %v2507_v57 = vmul.f32 %v10652_v30, %v2487_v55  ;;  %v2506_v26 = vmul.f32 %v10652_v30, %v2486_v61  ;;  %v2508_v6 = vmul.f32 %v10652_v30, %v2488_v23  ;;  %v2509_v45 = vmul.f32 %v10652_v30, %v2489_v43  ;;  %v2604_v55 = vpop.permute.xlu0 %2603 }
 0x769   :  { %v2530_v21 = vmul.f32 %v2513_v22, %v2506_v26  ;;  %v2531_v47 = vmul.f32 %v2518_v17, %v2507_v57  ;;  %v2532_v54 = vmul.f32 %v2523_v8, %v2508_v6  ;;  %v2533_v28 = vmul.f32 %v2528_v11, %v2509_v45  ;;  %v10472_v6 = vld [vmem:[%s14513_s13 + $0x8] sm:$0xff]   ;;  %v10473_v45 = vld [vmem:[%s14547_s0 + $0x20] sm:$0xff]  }
 0x76b   :  { %v12209_v62 = vadd.f32 %v2537_v53, %v2530_v21  ;;  %v12211_v3 = vadd.f32 %v2542_v58, %v2531_v47  ;;  %v12213_v5 = vadd.f32 %v2547_v36, %v2532_v54  ;;  %v12215_v15 = vadd.f32 %v2552_v33, %v2533_v28  ;;  %v2614_v38 = vpop.permute.xlu0 %2613  ;;  %v10474_v47 = vld [vmem:[%s14547_s0 + $0x28] sm:$0xff]   ;;  %v10475_v54 = vld [vmem:[%s14548_s4 + $0x10] sm:$0xff]  }
 0x76d   :  { %v2566_v16 = vpack.c.bf16 %v12211_v3, %v12209_v62  ;;  %v2567_v44 = vpack.c.bf16 %v12215_v15, %v12213_v5 }
 0x76f   :  { %9521 = vmatprep.subr.bf16.mxu1 %v2566_v16  ;;  %v2741_v28 = vpop.permute.xlu0 %2740 }
 0x770   :  { %9522 = vmatpush3.bf16.msra.mxu1 %v2566_v16 }
 0x771   :  { %9523 = vmatprep.subr.bf16.mxu1 %v2567_v44 }
 0x773   :  { %v2751_v24 = vpop.permute.xlu0 %2750 }
 0x774   :  { %9524 = vmatpush3.bf16.msra.mxu1 %v2567_v44 }
 0x777   :  { %9526 = vmatmul.mubr.msk.bf16.vlgmr.msra.gmra.mrb[36].mxu1 %vm224_vm0, %v10468_v13 }
 0x778   :  { %9529 = vmatprep.mubr.msk.bf16.mxu1 %vm224_vm0, %v10469_v39 }
 0x77f   :  { %9530 = vmatmul.mubr.msk.bf16.gmra.mrb[40].mxu1 %vm224_vm0, %v10470_v4 }
 0x780   :  { %9549 = vmatprep.mubr.msk.bf16.mxu1 %vm224_vm0, %v10475_v54 }
 0x787   :  { %v140_v61 = vpop.trf.xlu1 }
 0x78b   :  { %v141_v20 = vpop.trf.xlu1 }
 0x78c   :  { %v3000_v57 = vpack.c.bf16 %v141_v20, %v140_v61 }
 0x78f   :  { %v142_v8 = vpop.trf.xlu1 }
 0x793   :  { %v143_v26 = vpop.trf.xlu1 }
 0x794   :  { %v3001_v21 = vpack.c.bf16 %v143_v26, %v142_v8 }
 0x84a   :  { %v9527_v18 = vpop.f32.mrb[36].mxu1 }
 0x84b   :  { %v2691_v34 = vadd.f32 %v9527_v18, %v2589_v10  ;;  %v2682_v40 = vpop.f32.mrb[37].mxu1  ;;  %v8709_v10 = vld [vmem:[%s14553_s3 + $0x50] sm:$0xff] }
 0x84c   :  { %v2683_v25 = vadd.f32 %v2682_v40, %v2579_v63  ;;  %v9528_v9 = vpop.f32.mrb[38].mxu1 }
 0x84d   :  { %v2694_v12 = vadd.f32 %v9528_v9, %v2594_v52  ;;  %v2685_v31 = vpop.f32.mrb[39].mxu1  ;;  %v2715_v43 = vmax.f32 %v2691_v34, 0.0  ;;  %v8710_v52 = vld [vmem:[%s14553_s3 + $0x58] sm:$0xff] }
 0x84e   :  { %v2686_v23 = vadd.f32 %v2685_v31, %v2584_v29  ;;  %v2713_v35 = vmax.f32 %v2683_v25, 0.0 }
 0x84f   :  { %v2716_v41 = vmax.f32 %v2694_v12, 0.0 }
 0x850   :  { %v2714_v60 = vmax.f32 %v2686_v23, 0.0 }
 0x851   :  { %v2726_v46 = vpack.c.bf16 %v2716_v41, %v2715_v43 }
 0x852   :  { %v2725_v42 = vpack.c.bf16 %v2714_v60, %v2713_v35  ;;  %v9531_v1 = vpop.f32.mrb[40].mxu1 }
 0x853   :  { %v2707_v59 = vadd.f32 %v9531_v1, %v2609_v48  ;;  %v2698_v2 = vpop.f32.mrb[41].mxu1 }
 0x854   :  { %v2699_v50 = vadd.f32 %v2698_v2, %v2599_v32  ;;  %v9532_v51 = vpop.f32.mrb[42].mxu1  ;;  %9533 = vmatprep.subr.bf16.mxu0 %v2725_v42  ;;  %v8707_v32 = vld [vmem:[%s14553_s3 + $0x40] sm:$0xff] }
 0x855   :  { %v2710_v49 = vadd.f32 %v9532_v51, %v2614_v38  ;;  %v2701_v17 = vpop.f32.mrb[43].mxu1  ;;  %9534 = vmatpush3.bf16.msra.mxu0 %v2725_v42  ;;  %v2719_v0 = vmax.f32 %v2707_v59, 0.0  ;;  %v2869_v42 = vpop.permute.xlu0 %2868 }
 0x856   :  { %v2702_v22 = vadd.f32 %v2701_v17, %v2604_v55  ;;  %9535 = vmatprep.subr.bf16.mxu0 %v2726_v46  ;;  %v2717_v58 = vmax.f32 %v2699_v50, 0.0 }
 0x857   :  { %v2720_v27 = vmax.f32 %v2710_v49, 0.0 }
 0x858   :  { %v2718_v53 = vmax.f32 %v2702_v22, 0.0 }
 0x859   :  { %v2728_v11 = vpack.c.bf16 %v2720_v27, %v2719_v0  ;;  %9536 = vmatpush3.bf16.msra.mxu0 %v2726_v46  ;;  %v2874_v51 = vpop.permute.xlu0 %2873 }
 0x85a   :  { %v2727_v30 = vpack.c.bf16 %v2718_v53, %v2717_v58 }
 0x85c   :  { %9537 = vmatprep.subr.bf16.mxu0 %v2727_v30 }
 0x85d   :  { %9538 = vmatpush3.bf16.msra.mxu0 %v2727_v30  ;;  %v2893_v58 = vpop.permute.xlu0 %2892 }
 0x85e   :  { %9539 = vmatprep.subr.bf16.mxu0 %v2728_v11 }
 0x861   :  { %9540 = vmatpush3.bf16.msra.mxu0 %v2728_v11  ;;  %v2898_v30 = vpop.permute.xlu0 %2897 }
 0x862   :  { %9553 = vmatprep.subr.bf16.mxu0 %v3000_v57 }
 0x864   :  { %9542 = vmatmul.mubr.msk.bf16.vlgmr.msra.gmra.mrb[76].mxu0 %vm512_vm4, %v10472_v6 }
 0x865   :  { %9554 = vmatpush3.bf16.msra.mxu0 %v3000_v57  ;;  %9557 = vmatprep.mubr.msk.bf16.mxu0 %vm224_vm0, %v10473_v45  ;;  %v2879_v45 = vpop.permute.xlu0 %2878 }
 0x866   :  { %9555 = vmatprep.subr.bf16.mxu0 %v3001_v21 }
 0x869   :  { %9556 = vmatpush3.bf16.msra.mxu0 %v3001_v21  ;;  %v2884_v54 = vpop.permute.xlu0 %2883 }
 0x86a   :  { %9575 = vmatprep.subr.bf16.mxu0 %v14565_v19 }
 0x86c   :  { %9558 = vmatmul.mubr.msk.bf16.vlgmr.msra.gmra.mrb[80].mxu0 %vm224_vm0, %v10474_v47 }
 0x937   :  { %v9543_v33 = vpop.f32.mrb[76].mxu0 }
 0x938   :  { %v2803_v36 = vpop.f32.mrb[77].mxu0  ;;  %v2812_v39 = vadd.f32 %v9543_v33, %v12245_v56 }
 0x939   :  { %v2804_v16 = vadd.f32 %v2803_v36, %v12243_v37  ;;  %v9544_v44 = vpop.f32.mrb[78].mxu0 }
 0x93a   :  { %v2806_v13 = vpop.f32.mrb[79].mxu0  ;;  %v2815_v7 = vadd.f32 %v9544_v44, %v2751_v24  ;;  %v2820_v48 = vadd.f32 %v2812_v39, %v12213_v5 }
 0x93b   :  { %v2807_v4 = vadd.f32 %v2806_v13, %v2741_v28  ;;  %v2818_v14 = vadd.f32 %v2804_v16, %v12209_v62  ;;  %v2903_v28 = vpop.permute.xlu0 %2902 }
 0x93c   :  { %v2821_v18 = vadd.f32 %v2815_v7, %v12215_v15 }
 0x93d   :  { %v2819_v63 = vadd.f32 %v2807_v4, %v12211_v3  ;;  %v8708_v3 = vld [vmem:[%s14553_s3 + $0x48] sm:$0xff] }
 0x93f   :  { %v2832_v29 = vadd.f32 %v2819_v63, %v2818_v14  ;;  %v9559_v37 = vpop.f32.mrb[80].mxu0  ;;  %v2908_v7 = vpop.permute.xlu0 %2907 }
 0x940   :  { %v3086_v62 = vadd.f32 %v9559_v37, %v8709_v10  ;;  %v3077_v56 = vpop.f32.mrb[81].mxu0 }
 0x941   :  { %v2833_v34 = vadd.f32 %v2832_v29, %v2820_v48  ;;  %v3078_v40 = vadd.f32 %v8707_v32, %v3077_v56  ;;  %v9560_v25 = vpop.f32.mrb[82].mxu0 }
 0x942   :  { %v3089_v9 = vadd.f32 %v9560_v25, %v8710_v52  ;;  %v3080_v12 = vpop.f32.mrb[83].mxu0  ;;  %v10476_v52 = vld [vmem:[%s14548_s4 + $0x18] sm:$0xff]  }
 0x943   :  { %v2834_v5 = vadd.f32 %v2833_v34, %v2821_v18  ;;  %v3081_v31 = vadd.f32 %v8708_v3, %v3080_v12 }
 0x944   :  { %v10256_v61 = vpack.i.bf16 %v3089_v9, %v3086_v62 }
 0x945   :  { %v2835_v55 = vrot.slane %v2834_v5, 4  ;;  %v10209_v23 = vpack.i.bf16 %v3081_v31, %v3078_v40 }
 0x946   :  { %10215 = vxpose.xlu1.b32.start.end [1/1] (short) (narrow) %v10256_v61, 64 }
 0x947   :  { %v2836_v43 = vadd.f32 %v2835_v55, %v2834_v5  ;;  %10168 = vxpose.xlu0.b32.start.end [1/1] (short) (narrow) %v10209_v23, 64 }
 0x949   :  { %v2837_v41 = vrot.slane %v2836_v43, 2 }
 0x94b   :  { %v2838_v35 = vadd.f32 %v2837_v41, %v2836_v43 }
 0x94d   :  { %v2839_v60 = vrot.slane %v2838_v35, 1 }
 0x94f   :  { %v2840_v46 = vadd.f32 %v2839_v60, %v2838_v35 }
 0x951   :  { %v2841_v1 = vmul.f32 0.03125, %v2840_v46 }
 0x953   :  { %v2842_v15 = vsub.f32 %v2818_v14, %v2841_v1  ;;  %v2843_v59 = vsub.f32 %v2819_v63, %v2841_v1  ;;  %v2844_v2 = vsub.f32 %v2820_v48, %v2841_v1  ;;  %v2845_v20 = vsub.f32 %v2821_v18, %v2841_v1 }
 0x955   :  { %v2846_v38 = vmul.f32 %v2842_v15, %v2842_v15  ;;  %v2847_v50 = vmul.f32 %v2843_v59, %v2843_v59  ;;  %v2848_v49 = vmul.f32 %v2844_v2, %v2844_v2  ;;  %v2849_v22 = vmul.f32 %v2845_v20, %v2845_v20 }
 0x957   :  { %v2850_v17 = vadd.f32 %v2847_v50, %v2846_v38 }
 0x959   :  { %v2851_v0 = vadd.f32 %v2850_v17, %v2848_v49  ;;  %v10477_v49 = vld [vmem:[%s14547_s0 + $0x30] sm:$0xff]   ;;  %v10478_v17 = vld [vmem:[%s14547_s0 + $0x38] sm:$0xff]  }
 0x95a   :  { %9561 = vmatprep.mubr.msk.bf16.mxu0 %vm224_vm0, %v10477_v49 }
 0x95b   :  { %v2852_v27 = vadd.f32 %v2851_v0, %v2849_v22  ;;  %9562 = vmatmul.mubr.msk.bf16.gmra.mrb[84].mxu0 %vm224_vm0, %v10478_v17  ;;  %v8693_v22 = vld [vmem:[%s14504_s5 + $0x30] sm:$0xff]  ;;  %v8691_v0 = vld [vmem:[%s14504_s5 + $0x20] sm:$0xff] }
 0x95c   :  { %9583 = vmatprep.mubr.msk.bf16.mxu0 %vm10953_vm3, %v14565_v19 }
 0x95d   :  { %v2853_v53 = vrot.slane %v2852_v27, 4 }
 0x95f   :  { %v2854_v11 = vadd.f32 %v2853_v53, %v2852_v27 }
 0x961   :  { %v2855_v8 = vrot.slane %v2854_v11, 2 }
 0x963   :  { %v2856_v57 = vadd.f32 %v2855_v8, %v2854_v11  ;;  %v8692_v8 = vld [vmem:[%s14504_s5 + $0x28] sm:$0xff] }
 0x965   :  { %v2857_v26 = vrot.slane %v2856_v57, 1 }
 0x967   :  { %v2858_v6 = vadd.f32 %v2857_v26, %v2856_v57 }
 0x969   :  { %v2859_v21 = vmul.f32 0.03125, %v2858_v6 }
 0x96b   :  { %v2860_v47 = vadd.f32 1e-05, %v2859_v21 }
 0x96d   :  { %10653 = vrsqrt.f32 %v2860_v47 }
 0x977   :  { %v10654_v33 = vpop.eup %10653 }
 0x978   :  { %v2862_v36 = vmul.f32 %v10654_v33, %v2842_v15  ;;  %v2863_v16 = vmul.f32 %v10654_v33, %v2843_v59  ;;  %v2864_v44 = vmul.f32 %v10654_v33, %v2844_v2  ;;  %v2865_v13 = vmul.f32 %v10654_v33, %v2845_v20 }
 0x97a   :  { %v2886_v39 = vmul.f32 %v2869_v42, %v2862_v36  ;;  %v2887_v4 = vmul.f32 %v2874_v51, %v2863_v16  ;;  %v2888_v24 = vmul.f32 %v2879_v45, %v2864_v44  ;;  %v2889_v14 = vmul.f32 %v2884_v54, %v2865_v13 }
 0x97c   :  { %v2910_v63 = vadd.f32 %v2893_v58, %v2886_v39  ;;  %v2911_v10 = vadd.f32 %v2898_v30, %v2887_v4  ;;  %v2912_v32 = vadd.f32 %v2903_v28, %v2888_v24  ;;  %v2913_v48 = vadd.f32 %v2908_v7, %v2889_v14  ;;  %v8694_v58 = vld [vmem:[%s14504_s5 + $0x38] sm:$0xff] }
 0x97e   :  { %v12282_v29 = vpack.c.bf16 %v2911_v10, %v2910_v63  ;;  %v12284_v37 = vpack.c.bf16 %v2913_v48, %v2912_v32 }
 0x980   :  { %9545 = vmatprep.subr.bf16.mxu1 %v12282_v29  ;;  %10257 = vrot.lane.b32.xlu1 %v10256_v61, %s10951_s20 }
 0x981   :  { %9546 = vmatpush3.bf16.msra.mxu1 %v12282_v29 }
 0x982   :  { %9547 = vmatprep.subr.bf16.mxu1 %v12284_v37 }
 0x985   :  { %9548 = vmatpush3.bf16.msra.mxu1 %v12284_v37 }
 0x988   :  { %9550 = vmatmul.mubr.msk.bf16.vlgmr.msra.gmra.mrb[44].mxu1 %vm224_vm0, %v10476_v52 }
 0x98c   :  { %10210 = vrot.lane.b32.xlu0 %v10209_v23, %s10951_s20 }
 0x9c6   :  { %v12296_v62 = vpop.trf.xlu1 }
 0x9c7   :  { %v10169_v56 = vpop.trf.xlu0 }
 0x9c8   :  { %v10170_v55 = vunpack.i.l.bf16 %v10169_v56  ;;  %v10173_v46 = vunpack.i.h.bf16 %v10169_v56  ;;  %v10217_v56 = vunpack.i.l.bf16 %v12296_v62 }
 0x9ca   :  { %v12298_v3 = vpop.trf.xlu1 }
 0x9cb   :  { %v10174_v18 = vpop.trf.xlu0 }
 0x9cc   :  { %v10175_v23 = vunpack.i.l.bf16 %v10174_v18  ;;  %v10178_v15 = vunpack.i.h.bf16 %v10174_v18  ;;  %v10222_v18 = vunpack.i.l.bf16 %v12298_v3 }
 0x9ce   :  { %v12300_v34 = vpop.trf.xlu1  ;;  %v3140_v60 = vpack.c.bf16 %v10175_v23, %v10170_v55  ;;  %v3380_v20 = vpack.c.bf16 %v10178_v15, %v10173_v46  ;;  %v10220_v15 = vunpack.i.h.bf16 %v12296_v62 }
 0x9cf   :  { %v12302_v40 = vpop.trf.xlu0  ;;  %v10230_v17 = vunpack.i.h.bf16 %v12300_v34 }
 0x9d0   :  { %9567 = vmatprep.mubr.msk.bf16.mxu1 %vm430_vm2, %v3140_v60  ;;  %v10180_v30 = vunpack.i.l.bf16 %v12302_v40  ;;  %v10183_v14 = vunpack.i.h.bf16 %v12302_v40 }
 0x9d2   :  { %v12304_v25 = vpop.trf.xlu1 }
 0x9d3   :  { %v12306_v9 = vpop.trf.xlu0 }
 0x9d4   :  { %v10185_v57 = vunpack.i.l.bf16 %v12306_v9  ;;  %v10188_v7 = vunpack.i.h.bf16 %v12306_v9  ;;  %v3620_v9 = vpack.c.bf16 %v10222_v18, %v10217_v56 }
 0x9d6   :  { %v12308_v12 = vpop.trf.xlu1  ;;  %v3141_v16 = vpack.c.bf16 %v10185_v57, %v10180_v30  ;;  %v3381_v32 = vpack.c.bf16 %v10188_v7, %v10183_v14 }
 0x9d7   :  { %v12310_v5 = vpop.trf.xlu0  ;;  %v10237_v55 = vunpack.i.l.bf16 %v12308_v12 }
 0x9d8   :  { %v10190_v45 = vunpack.i.l.bf16 %v12310_v5  ;;  %v10193_v63 = vunpack.i.h.bf16 %v12310_v5  ;;  %v10227_v5 = vunpack.i.l.bf16 %v12300_v34 }
 0x9da   :  { %v12312_v31 = vpop.trf.xlu1 }
 0x9db   :  { %v12314_v61 = vpop.trf.xlu0  ;;  %v10242_v23 = vunpack.i.l.bf16 %v12312_v31  ;;  %v10245_v49 = vunpack.i.h.bf16 %v12312_v31 }
 0x9dc   :  { %v10195_v21 = vunpack.i.l.bf16 %v12314_v61  ;;  %v10198_v10 = vunpack.i.h.bf16 %v12314_v61  ;;  %v10232_v61 = vunpack.i.l.bf16 %v12304_v25 }
 0x9dd   :  { %v3622_v60 = vpack.c.bf16 %v10242_v23, %v10237_v55 }
 0x9de   :  { %v12316_v43 = vpop.trf.xlu1  ;;  %v3142_v4 = vpack.c.bf16 %v10195_v21, %v10190_v45  ;;  %v3382_v48 = vpack.c.bf16 %v10198_v10, %v10193_v63 }
 0x9df   :  { %v10199_v41 = vpop.trf.xlu0  ;;  %v10247_v46 = vunpack.i.l.bf16 %v12316_v43 }
 0x9e0   :  { %v10200_v42 = vunpack.i.l.bf16 %v10199_v41  ;;  %v10203_v38 = vunpack.i.h.bf16 %v10199_v41  ;;  %v3621_v41 = vpack.c.bf16 %v10232_v61, %v10227_v5 }
 0x9e2   :  { %v12318_v35 = vpop.trf.xlu1 }
 0x9e3   :  { %v10204_v1 = vpop.trf.xlu0 }
 0x9e4   :  { %v10205_v59 = vunpack.i.l.bf16 %v10204_v1  ;;  %v10208_v50 = vunpack.i.h.bf16 %v10204_v1 }
 0x9e6   :  { %v3143_v2 = vpack.c.bf16 %v10205_v59, %v10200_v42  ;;  %v3383_v51 = vpack.c.bf16 %v10208_v50, %v10203_v38  ;;  %v10252_v42 = vunpack.i.l.bf16 %v12318_v35  ;;  %v10225_v59 = vunpack.i.h.bf16 %v12298_v3 }
 0x9e7   :  { %v10250_v3 = vunpack.i.h.bf16 %v12316_v43 }
 0x9e8   :  { %v3860_v50 = vpack.c.bf16 %v10225_v59, %v10220_v15 }
 0x9fe   :  { %v10211_v40 = vpop.permute.xlu0 %10210 }
 0xa5b   :  { %v9551_v27 = vpop.f32.mrb[44].mxu1 }
 0xa5c   :  { %v2985_v53 = vadd.f32 %v9551_v27, %v8693_v22  ;;  %v2976_v11 = vpop.f32.mrb[45].mxu1  ;;  %v10235_v22 = vunpack.i.h.bf16 %v12304_v25  ;;  %v10255_v27 = vunpack.i.h.bf16 %v12318_v35 }
 0xa5d   :  { %v2977_v26 = vadd.f32 %v8691_v0, %v2976_v11  ;;  %v9552_v6 = vpop.f32.mrb[46].mxu1 }
 0xa5e   :  { %v3624_v47 = vpack.c.bf16 %v2985_v53, %v2985_v53  ;;  %v2988_v54 = vadd.f32 %v9552_v6, %v8694_v58  ;;  %v2979_v28 = vpop.f32.mrb[47].mxu1  ;;  %v3861_v0 = vpack.c.bf16 %v10235_v22, %v10230_v17  ;;  %v3863_v58 = vpack.c.bf16 %v10255_v27, %v10250_v3 }
 0xa5f   :  { %v3144_v33 = vpack.c.bf16 %v2977_v26, %v2977_v26  ;;  %v2980_v36 = vadd.f32 %v8692_v8, %v2979_v28 }
 0xa60   :  { %4605 = vrot.lane.b32.xlu1 %v3624_v47, %s10951_s20  ;;  %v3864_v39 = vpack.c.bf16 %v2988_v54, %v2988_v54  ;;  %v3638_v52 = vsel %vm443_vm1, %v3624_v47, 0 }
 0xa61   :  { %v3384_v44 = vpack.c.bf16 %v2980_v36, %v2980_v36  ;;  %4109 = vrot.lane.b32.xlu0 %v3144_v33, %s10951_s20  ;;  %10041 = vmatprep.subr.msk.bf16.mxu1 %vm443_vm1, %v3144_v33  ;;  %v3158_v13 = vsel %vm443_vm1, %v3144_v33, 0 }
 0xa62   :  { %9566 = vmatpush3.bf16.msra.mxu1 %v3158_v13  ;;  %v3878_v1 = vsel %vm443_vm1, %v3864_v39, 0 }
 0xa63   :  { %10042 = vmatprep.subr.msk.bf16.mxu1 %vm443_vm1, %v3384_v44  ;;  %v3398_v24 = vsel %vm443_vm1, %v3384_v44, 0 }
 0xa64   :  { %4853 = vrot.lane.b32.xlu1 %v3864_v39, %s10951_s20 }
 0xa65   :  { %4357 = vrot.lane.b32.xlu0 %v3384_v44, %s10951_s20  ;;  %9568 = vmatmul.mubr.msk.bf16.vlgmr.msra.gmra.mrb[48].mxu1 %vm430_vm2, %v3141_v16 }
 0xa66   :  { %9588 = vmatpush3.bf16.msra.mxu1 %v3398_v24  ;;  %9571 = vmatprep.mubr.msk.bf16.mxu1 %vm430_vm2, %v3142_v4 }
 0xa67   :  { %10043 = vmatprep.subr.msk.bf16.mxu1 %vm443_vm1, %v3624_v47 }
 0xa6d   :  { %9572 = vmatmul.mubr.msk.bf16.gmra.mrb[52].mxu1 %vm430_vm2, %v3143_v2  ;;  %v10258_v2 = vpop.permute.xlu1 %10257 }
 0xa6e   :  { %9589 = vmatprep.mubr.msk.bf16.mxu1 %vm430_vm2, %v3380_v20  ;;  %v3623_v20 = vpack.c.bf16 %v10252_v42, %v10247_v46  ;;  %v10260_v38 = vunpack.i.h.bf16 %v10258_v2  ;;  %v8711_v42 = vld [vmem:[%s14553_s3 + $0x60] sm:$0xff] }
 0xa75   :  { %9590 = vmatmul.mubr.msk.bf16.vlgmr.msra.gmra.mrb[56].mxu1 %vm430_vm2, %v3381_v32 }
 0xa76   :  { %9610 = vmatpush3.bf16.msra.mxu1 %v3638_v52  ;;  %9593 = vmatprep.mubr.msk.bf16.mxu1 %vm430_vm2, %v3382_v48 }
 0xa77   :  { %10044 = vmatprep.subr.msk.bf16.mxu1 %vm443_vm1, %v3864_v39 }
 0xa7d   :  { %9594 = vmatmul.mubr.msk.bf16.gmra.mrb[60].mxu1 %vm430_vm2, %v3383_v51  ;;  %v10240_v51 = vunpack.i.h.bf16 %v12308_v12  ;;  %v10259_v12 = vunpack.i.l.bf16 %v10258_v2 }
 0xa7e   :  { %9611 = vmatprep.mubr.msk.bf16.mxu1 %vm430_vm2, %v3620_v9 }
 0xa7f   :  { %v3862_v62 = vpack.c.bf16 %v10245_v49, %v10240_v51 }
 0xa83   :  { %10262 = vxpose.xlu0.b32.start.end [1/1] (short) (narrow) %v10211_v40, 64 }
 0xa85   :  { %9612 = vmatmul.mubr.msk.bf16.vlgmr.msra.gmra.mrb[64].mxu1 %vm430_vm2, %v3621_v41  ;;  %v9563_v41 = vpop.f32.mrb[84].mxu0 }
 0xa86   :  { %9632 = vmatpush3.bf16.msra.mxu1 %v3878_v1  ;;  %9615 = vmatprep.mubr.msk.bf16.mxu1 %vm430_vm2, %v3622_v60  ;;  %v3093_v46 = vpop.f32.mrb[85].mxu0 }
 0xa87   :  { %v3094_v1 = vadd.f32 %v8711_v42, %v3093_v46 }
 0xa89   :  { %v12415_v2 = vpack.c.bf16 %v3094_v1, %v3094_v1 }
 0xa8d   :  { %4816 = vxpose.xlu1.b32.start.end [1/1] (short) (narrow) %v10260_v38, 64  ;;  %9616 = vmatmul.mubr.msk.bf16.gmra.mrb[68].mxu1 %vm430_vm2, %v3623_v20 }
 0xa8e   :  { %9633 = vmatprep.mubr.msk.bf16.mxu1 %vm430_vm2, %v3860_v50 }
 0xa95   :  { %9634 = vmatmul.mubr.msk.bf16.vlgmr.msra.gmra.mrb[72].mxu1 %vm430_vm2, %v3861_v0 }
 0xa96   :  { %9637 = vmatprep.mubr.msk.bf16.mxu1 %vm430_vm2, %v3862_v62 }
 0xa9d   :  { %9638 = vmatmul.mubr.msk.bf16.gmra.mrb[76].mxu1 %vm430_vm2, %v3863_v58 }
 0xaa0   :  { %4568 = vxpose.xlu0.b32.start.end [1/1] (short) (narrow) %v10259_v12, 64 }
 0xad2   :  { %v4606_v54 = vpop.permute.xlu1 %4605 }
 0xad3   :  { %v4110_v31 = vpop.permute.xlu0 %4109  ;;  %v4620_v60 = vsel %vm443_vm1, %v4606_v54, 0 }
 0xad4   :  { %v4124_v34 = vsel %vm443_vm1, %v4110_v31, 0  ;;  %10045 = vmatprep.subr.msk.bf16.mxu1 %vm443_vm1, %v4110_v31 }
 0xad5   :  { %9654 = vmatpush3.bf16.msra.mxu1 %v4124_v34 }
 0xad6   :  { %v4854_v4 = vpop.permute.xlu1 %4853 }
 0xad7   :  { %v4358_v25 = vpop.permute.xlu0 %4357  ;;  %v4868_v34 = vsel %vm443_vm1, %v4854_v4, 0 }
 0xad8   :  { %10046 = vmatprep.subr.msk.bf16.mxu1 %vm443_vm1, %v4358_v25  ;;  %v4372_v47 = vsel %vm443_vm1, %v4358_v25, 0  ;;  %v8713_v25 = vld [vmem:[%s14553_s3 + $0x70] sm:$0xff] }
 0xae5   :  { %4271 = vrot.lane.b32.xlu0 %v12415_v2, %s10951_s20 }
 0xb03   :  { %v10263_v43 = vpop.trf.xlu0 }
 0xb04   :  { %v10264_v53 = vunpack.i.l.bf16 %v10263_v43  ;;  %v10267_v7 = vunpack.i.h.bf16 %v10263_v43  ;;  %v9564_v43 = vpop.f32.mrb[86].mxu0 }
 0xb07   :  { %v10268_v35 = vpop.trf.xlu0 }
 0xb08   :  { %v10269_v11 = vunpack.i.l.bf16 %v10268_v35  ;;  %v10272_v13 = vunpack.i.h.bf16 %v10268_v35  ;;  %v8712_v35 = vld [vmem:[%s14553_s3 + $0x68] sm:$0xff] }
 0xb0a   :  { %v4104_v8 = vpack.c.bf16 %v10269_v11, %v10264_v53  ;;  %v4352_v32 = vpack.c.bf16 %v10272_v13, %v10267_v7  ;;  %v3102_v11 = vadd.f32 %v9563_v41, %v8713_v25 }
 0xb0b   :  { %v10273_v30 = vpop.trf.xlu0 }
 0xb0c   :  { %9655 = vmatprep.mubr.msk.bf16.mxu1 %vm430_vm2, %v4104_v8  ;;  %v10274_v26 = vunpack.i.l.bf16 %v10273_v30  ;;  %v10277_v40 = vunpack.i.h.bf16 %v10273_v30  ;;  %v8714_v8 = vld [vmem:[%s14553_s3 + $0x78] sm:$0xff]  ;;  %v3096_v30 = vpop.f32.mrb[87].mxu0 }
 0xb0d   :  { %v12403_v48 = vpop.trf.xlu1 }
 0xb0f   :  { %v10278_v57 = vpop.trf.xlu0 }
 0xb10   :  { %v10279_v6 = vunpack.i.l.bf16 %v10278_v57  ;;  %v10282_v52 = vunpack.i.h.bf16 %v10278_v57  ;;  %v3097_v57 = vadd.f32 %v8712_v35, %v3096_v30 }
 0xb11   :  { %v12406_v61 = vpop.trf.xlu1 }
 0xb12   :  { %v4105_v45 = vpack.c.bf16 %v10279_v6, %v10274_v26  ;;  %v4353_v5 = vpack.c.bf16 %v10282_v52, %v10277_v40  ;;  %v12443_v6 = vpack.c.bf16 %v3102_v11, %v3102_v11 }
 0xb13   :  { %v10283_v21 = vpop.trf.xlu0 }
 0xb14   :  { %9656 = vmatmul.mubr.msk.bf16.vlgmr.msra.gmra.mrb[80].mxu1 %vm430_vm2, %v4105_v45  ;;  %v10284_v33 = vunpack.i.l.bf16 %v10283_v21  ;;  %v10287_v9 = vunpack.i.h.bf16 %v10283_v21  ;;  %v3105_v21 = vadd.f32 %v9564_v43, %v8714_v8  ;;  %4767 = vrot.lane.b32.xlu0 %v12443_v6, %s10951_s20 }
 0xb15   :  { %9676 = vmatpush3.bf16.msra.mxu1 %v4372_v47  ;;  %v12417_v38 = vpop.trf.xlu1  ;;  %v12447_v47 = vpack.c.bf16 %v3097_v57, %v3097_v57 }
 0xb16   :  { %10047 = vmatprep.subr.msk.bf16.mxu1 %vm443_vm1, %v4606_v54 }
 0xb17   :  { %v10288_v28 = vpop.trf.xlu0  ;;  %4519 = vrot.lane.b32.xlu1 %v12447_v47, %s10951_s20 }
 0xb18   :  { %v10289_v36 = vunpack.i.l.bf16 %v10288_v28  ;;  %v10292_v56 = vunpack.i.h.bf16 %v10288_v28 }
 0xb19   :  { %v4835_v22 = vpop.trf.xlu1 }
 0xb1a   :  { %v4106_v16 = vpack.c.bf16 %v10289_v36, %v10284_v33  ;;  %v4354_v23 = vpack.c.bf16 %v10292_v56, %v10287_v9  ;;  %v4849_v41 = vpack.c.bf16 %v4835_v22, %v12417_v38 }
 0xb1b   :  { %v10293_v44 = vpop.trf.xlu0 }
 0xb1c   :  { %9659 = vmatprep.mubr.msk.bf16.mxu1 %vm430_vm2, %v4106_v16  ;;  %v10294_v24 = vunpack.i.l.bf16 %v10293_v44  ;;  %v10297_v20 = vunpack.i.h.bf16 %v10293_v44 }
 0xb1d   :  { %v4836_v53 = vpop.trf.xlu1 }
 0xb1f   :  { %v10298_v39 = vpop.trf.xlu0 }
 0xb20   :  { %v10299_v14 = vunpack.i.l.bf16 %v10298_v39  ;;  %v10302_v15 = vunpack.i.h.bf16 %v10298_v39 }
 0xb22   :  { %v4107_v63 = vpack.c.bf16 %v10299_v14, %v10294_v24  ;;  %v4355_v50 = vpack.c.bf16 %v10302_v15, %v10297_v20 }
 0xb23   :  { %v4584_v10 = vpop.trf.xlu0 }
 0xb24   :  { %9660 = vmatmul.mubr.msk.bf16.gmra.mrb[84].mxu1 %vm430_vm2, %v4107_v63 }
 0xb25   :  { %9677 = vmatprep.mubr.msk.bf16.mxu1 %vm430_vm2, %v4352_v32 }
 0xb27   :  { %v4585_v18 = vpop.trf.xlu0 }
 0xb28   :  { %v4600_v51 = vpack.c.bf16 %v4585_v18, %v4584_v10  ;;  %v4837_v10 = vpop.trf.xlu1 }
 0xb29   :  { %v4850_v42 = vpack.c.bf16 %v4837_v10, %v4836_v53 }
 0xb2b   :  { %v4586_v55 = vpop.trf.xlu0 }
 0xb2c   :  { %9678 = vmatmul.mubr.msk.bf16.vlgmr.msra.gmra.mrb[88].mxu1 %vm430_vm2, %v4353_v5 }
 0xb2d   :  { %9698 = vmatpush3.bf16.msra.mxu1 %v4620_v60  ;;  %9681 = vmatprep.mubr.msk.bf16.mxu1 %vm430_vm2, %v4354_v23  ;;  %v4838_v23 = vpop.trf.xlu1 }
 0xb2e   :  { %10048 = vmatprep.subr.msk.bf16.mxu1 %vm443_vm1, %v4854_v4  ;;  %v4848_v4 = vpack.c.bf16 %v12406_v61, %v12403_v48  ;;  %v12478_v48 = vpack.c.bf16 %v3105_v21, %v3105_v21 }
 0xb2f   :  { %v4587_v59 = vpop.trf.xlu0 }
 0xb30   :  { %v4601_v3 = vpack.c.bf16 %v4587_v59, %v4586_v55  ;;  %5015 = vrot.lane.b32.xlu1 %v12478_v48, %s10951_s20 }
 0xb31   :  { %v4839_v20 = vpop.trf.xlu1 }
 0xb33   :  { %v4588_v49 = vpop.trf.xlu0 }
 0xb34   :  { %9682 = vmatmul.mubr.msk.bf16.gmra.mrb[92].mxu1 %vm430_vm2, %v4355_v50 }
 0xb35   :  { %9699 = vmatprep.mubr.msk.bf16.mxu1 %vm430_vm2, %v4600_v51 }
 0xb37   :  { %v4589_v17 = vpop.trf.xlu0 }
 0xb38   :  { %v12423_v62 = vpop.f32.mrb[48].mxu1  ;;  %v4602_v58 = vpack.c.bf16 %v4589_v17, %v4588_v49 }
 0xb39   :  { %v12425_v0 = vpop.f32.mrb[49].mxu1  ;;  %v3227_v54 = vsel %vm512_vm4, %v12423_v62, -inf }
 0xb3a   :  { %v12427_v27 = vpop.f32.mrb[50].mxu1  ;;  %v3225_v36 = vsel %vm512_vm4, %v12425_v0, -inf }
 0xb3b   :  { %v4590_v12 = vpop.trf.xlu0  ;;  %v12429_v31 = vpop.f32.mrb[51].mxu1  ;;  %v3228_v24 = vsel %vm512_vm4, %v12427_v27, -inf }
 0xb3c   :  { %9700 = vmatmul.mubr.msk.bf16.vlgmr.msra.gmra.mrb[96].mxu1 %vm430_vm2, %v4601_v3  ;;  %v3226_v32 = vsel %vm512_vm4, %v12429_v31, -inf }
 0xb3d   :  { %9720 = vmatpush3.bf16.msra.mxu1 %v4868_v34  ;;  %9703 = vmatprep.mubr.msk.bf16.mxu1 %vm430_vm2, %v4602_v58  ;;  %v4851_v58 = vpack.c.bf16 %v4839_v20, %v4838_v23 }
 0xb3f   :  { %v4591_v26 = vpop.trf.xlu0 }
 0xb40   :  { %v12445_v45 = vpop.f32.mrb[52].mxu1  ;;  %v4603_v44 = vpack.c.bf16 %v4591_v26, %v4590_v12 }
 0xb41   :  { %v3233_v28 = vsel %vm512_vm4, %v12445_v45, -inf  ;;  %v12453_v33 = vpop.f32.mrb[53].mxu1 }
 0xb42   :  { %v3234_v16 = vmax.f32 %v3227_v54, %v3233_v28  ;;  %v3229_v13 = vsel %vm512_vm4, %v12453_v33, -inf  ;;  %v12461_v39 = vpop.f32.mrb[54].mxu1 }
 0xb43   :  { %v3230_v14 = vmax.f32 %v3225_v36, %v3229_v13  ;;  %v3235_v7 = vsel %vm512_vm4, %v12461_v39, -inf  ;;  %v12471_v63 = vpop.f32.mrb[55].mxu1 }
 0xb44   :  { %v3236_v52 = vmax.f32 %v3228_v24, %v3235_v7  ;;  %v3231_v56 = vsel %vm512_vm4, %v12471_v63, -inf  ;;  %9704 = vmatmul.mubr.msk.bf16.gmra.mrb[100].mxu1 %vm430_vm2, %v4603_v44 }
 0xb45   :  { %v3232_v18 = vmax.f32 %v3226_v32, %v3231_v56  ;;  %9721 = vmatprep.mubr.msk.bf16.mxu1 %vm430_vm2, %v4848_v4 }
 0xb46   :  { %v3238_v40 = vmax.f32 %v3234_v16, %v3236_v52 }
 0xb47   :  { %v3237_v9 = vmax.f32 %v3230_v14, %v3232_v18 }
 0xb48   :  { %v12483_v5 = vpop.f32.mrb[56].mxu1 }
 0xb49   :  { %v3239_v61 = vmax.f32 %v3237_v9, %v3238_v40  ;;  %v12485_v55 = vpop.f32.mrb[57].mxu1  ;;  %v3467_v49 = vsel %vm512_vm4, %v12483_v5, -inf }
 0xb4a   :  { %v12488_v60 = vpop.f32.mrb[58].mxu1  ;;  %v3465_v22 = vsel %vm512_vm4, %v12485_v55, -inf }
 0xb4b   :  { %v3240_v46 = vrot.slane %v3239_v61, 4  ;;  %v12490_v1 = vpop.f32.mrb[59].mxu1  ;;  %v3468_v43 = vsel %vm512_vm4, %v12488_v60, -inf }
 0xb4c   :  { %9722 = vmatmul.mubr.msk.bf16.vlgmr.msra.gmra.mrb[104].mxu1 %vm430_vm2, %v4849_v41  ;;  %v3466_v8 = vsel %vm512_vm4, %v12490_v1, -inf }
 0xb4d   :  { %v3241_v15 = vmax.f32 %v3239_v61, %v3240_v46  ;;  %9725 = vmatprep.mubr.msk.bf16.mxu1 %vm430_vm2, %v4850_v42 }
 0xb4f   :  { %v3242_v59 = vrot.slane %v3241_v15, 2 }
 0xb50   :  { %v12494_v50 = vpop.f32.mrb[60].mxu1 }
 0xb51   :  { %v3243_v51 = vmax.f32 %v3241_v15, %v3242_v59  ;;  %v3473_v38 = vsel %vm512_vm4, %v12494_v50, -inf  ;;  %v12500_v17 = vpop.f32.mrb[61].mxu1 }
 0xb52   :  { %v3474_v3 = vmax.f32 %v3467_v49, %v3473_v38  ;;  %v3469_v12 = vsel %vm512_vm4, %v12500_v17, -inf  ;;  %v12506_v34 = vpop.f32.mrb[62].mxu1 }
 0xb53   :  { %v3244_v25 = vrot.slane %v3243_v51, 1  ;;  %v3470_v35 = vmax.f32 %v3465_v22, %v3469_v12  ;;  %v3475_v53 = vsel %vm512_vm4, %v12506_v34, -inf  ;;  %v12512_v11 = vpop.f32.mrb[63].mxu1 }
 0xb54   :  { %v3476_v30 = vmax.f32 %v3468_v43, %v3475_v53  ;;  %v3471_v57 = vsel %vm512_vm4, %v12512_v11, -inf  ;;  %9726 = vmatmul.mubr.msk.bf16.gmra.mrb[108].mxu1 %vm430_vm2, %v4851_v58 }
 0xb55   :  { %v3245_v26 = vmax.f32 %v3243_v51, %v3244_v25  ;;  %v3472_v21 = vmax.f32 %v3466_v8, %v3471_v57 }
 0xb56   :  { %v3478_v54 = vmax.f32 %v3474_v3, %v3476_v30 }
 0xb57   :  { %v3246_v28 = vsub.f32 %v12425_v0, %v3245_v26  ;;  %v3247_v36 = vsub.f32 %v12429_v31, %v3245_v26  ;;  %v3248_v16 = vsub.f32 %v12423_v62, %v3245_v26  ;;  %v3249_v44 = vsub.f32 %v12427_v27, %v3245_v26 }
 0xb58   :  { %v3250_v13 = vsub.f32 %v12453_v33, %v3245_v26  ;;  %v3251_v4 = vsub.f32 %v12471_v63, %v3245_v26  ;;  %v3252_v24 = vsub.f32 %v12445_v45, %v3245_v26  ;;  %v3253_v14 = vsub.f32 %v12461_v39, %v3245_v26  ;;  %v12527_v7 = vpop.f32.mrb[64].mxu1 }
 0xb59   :  { %v3254_v10 = vmul.f32 1.442695, %v3246_v28  ;;  %v3256_v32 = vmul.f32 1.442695, %v3247_v36  ;;  %v3258_v52 = vmul.f32 1.442695, %v3248_v16  ;;  %v3477_v0 = vmax.f32 %v3470_v35, %v3472_v21 }
 0xb5a   :  { %v3260_v56 = vmul.f32 1.442695, %v3249_v44  ;;  %v3262_v31 = vmul.f32 1.442695, %v3250_v13  ;;  %v12529_v18 = vpop.f32.mrb[65].mxu1  ;;  %v3707_v61 = vsel %vm512_vm4, %v12527_v7, -inf }
 0xb5b   :  { %10655 = vpow2.f32 %v3254_v10  ;;  %v3479_v62 = vmax.f32 %v3477_v0, %v3478_v54  ;;  %v3264_v27 = vmul.f32 1.442695, %v3251_v4  ;;  %v12531_v33 = vpop.f32.mrb[66].mxu1  ;;  %v3266_v45 = vmul.f32 1.442695, %v3252_v24 }
 0xb5c   :  { %10657 = vpow2.f32 %v3256_v32  ;;  %v12533_v39 = vpop.f32.mrb[67].mxu1  ;;  %v3268_v40 = vmul.f32 1.442695, %v3253_v14  ;;  %v3705_v23 = vsel %vm512_vm4, %v12529_v18, -inf  ;;  %v3708_v42 = vsel %vm512_vm4, %v12531_v33, -inf }
 0xb5d   :  { %10659 = vpow2.f32 %v3258_v52  ;;  %v3480_v63 = vrot.slane %v3479_v62, 4  ;;  %v3706_v20 = vsel %vm512_vm4, %v12533_v39, -inf }
 0xb5e   :  { %10661 = vpow2.f32 %v3260_v56 }
 0xb5f   :  { %10663 = vpow2.f32 %v3262_v31  ;;  %v3481_v9 = vmax.f32 %v3479_v62, %v3480_v63 }
 0xb60   :  { %10665 = vpow2.f32 %v3264_v27  ;;  %v12539_v41 = vpop.f32.mrb[68].mxu1 }
 0xb61   :  { %10667 = vpow2.f32 %v3266_v45  ;;  %v3482_v46 = vrot.slane %v3481_v9, 2  ;;  %v3713_v15 = vsel %vm512_vm4, %v12539_v41, -inf  ;;  %v12545_v59 = vpop.f32.mrb[69].mxu1 }
 0xb62   :  { %10669 = vpow2.f32 %v3268_v40  ;;  %v3714_v51 = vmax.f32 %v3707_v61, %v3713_v15  ;;  %v3709_v49 = vsel %vm512_vm4, %v12545_v59, -inf  ;;  %v12551_v38 = vpop.f32.mrb[70].mxu1 }
 0xb63   :  { %v3483_v22 = vmax.f32 %v3481_v9, %v3482_v46  ;;  %v3710_v3 = vmax.f32 %v3705_v23, %v3709_v49  ;;  %v3715_v58 = vsel %vm512_vm4, %v12551_v38, -inf  ;;  %v12555_v12 = vpop.f32.mrb[71].mxu1 }
 0xb64   :  { %v3716_v25 = vmax.f32 %v3708_v42, %v3715_v58  ;;  %v3711_v43 = vsel %vm512_vm4, %v12555_v12, -inf }
 0xb65   :  { %v12559_v35 = vpop.eup %10655  ;;  %v3484_v53 = vrot.slane %v3483_v22, 1  ;;  %v3712_v8 = vmax.f32 %v3706_v20, %v3711_v43 }
 0xb66   :  { %v12561_v30 = vpop.eup %10657  ;;  %v3270_v57 = vsel %vm512_vm4, %v12559_v35, 0.0  ;;  %v3718_v26 = vmax.f32 %v3714_v51, %v3716_v25 }
 0xb67   :  { %v12565_v21 = vpop.eup %10659  ;;  %v3271_v54 = vsel %vm512_vm4, %v12561_v30, 0.0  ;;  %v3485_v28 = vmax.f32 %v3483_v22, %v3484_v53  ;;  %v3717_v36 = vmax.f32 %v3710_v3, %v3712_v8 }
 0xb68   :  { %v12569_v16 = vpop.eup %10661  ;;  %v3272_v44 = vadd.f32 %v3271_v54, %v3270_v57  ;;  %v12571_v13 = vpop.f32.mrb[72].mxu1  ;;  %v3273_v24 = vsel %vm512_vm4, %v12565_v21, 0.0 }
 0xb69   :  { %v12573_v4 = vpop.eup %10663  ;;  %v3486_v14 = vsub.f32 %v12485_v55, %v3485_v28  ;;  %v3487_v10 = vsub.f32 %v12490_v1, %v3485_v28  ;;  %v3488_v32 = vsub.f32 %v12483_v5, %v3485_v28  ;;  %v12580_v52 = vpop.f32.mrb[73].mxu1  ;;  %v3489_v31 = vsub.f32 %v12488_v60, %v3485_v28 }
 0xb6a   :  { %v12582_v0 = vpop.eup %10665  ;;  %v3274_v56 = vadd.f32 %v3273_v24, %v3272_v44  ;;  %v3490_v62 = vsub.f32 %v12500_v17, %v3485_v28  ;;  %v12586_v27 = vpop.f32.mrb[74].mxu1  ;;  %v3275_v55 = vsel %vm512_vm4, %v12569_v16, 0.0  ;;  %v3491_v1 = vsub.f32 %v12512_v11, %v3485_v28 }
 0xb6b   :  { %v12588_v45 = vpop.eup %10667  ;;  %v3492_v5 = vsub.f32 %v12494_v50, %v3485_v28  ;;  %v3493_v63 = vsub.f32 %v12506_v34, %v3485_v28  ;;  %v12595_v40 = vpop.f32.mrb[75].mxu1  ;;  %v3277_v17 = vsel %vm512_vm4, %v12573_v4, 0.0  ;;  %v3494_v61 = vmul.f32 1.442695, %v3486_v14 }
 0xb6c   :  { %v12597_v9 = vpop.eup %10669  ;;  %v3276_v60 = vadd.f32 %v3275_v55, %v3274_v56  ;;  %v3496_v23 = vmul.f32 1.442695, %v3487_v10  ;;  %v3279_v46 = vsel %vm512_vm4, %v12582_v0, 0.0  ;;  %v3498_v42 = vmul.f32 1.442695, %v3488_v32 }
 0xb6d   :  { %v3500_v15 = vmul.f32 1.442695, %v3489_v31  ;;  %v3719_v11 = vmax.f32 %v3717_v36, %v3718_v26  ;;  %v3281_v50 = vsel %vm512_vm4, %v12588_v45, 0.0  ;;  %v3283_v34 = vsel %vm512_vm4, %v12597_v9, 0.0 }
 0xb6e   :  { %v3278_v20 = vadd.f32 %v3277_v17, %v3276_v60  ;;  %10671 = vpow2.f32 %v3494_v61  ;;  %v3502_v51 = vmul.f32 1.442695, %v3490_v62  ;;  %v3504_v49 = vmul.f32 1.442695, %v3491_v1 }
 0xb6f   :  { %10673 = vpow2.f32 %v3496_v23  ;;  %v3720_v22 = vrot.slane %v3719_v11, 4  ;;  %v3506_v58 = vmul.f32 1.442695, %v3492_v5  ;;  %v3508_v25 = vmul.f32 1.442695, %v3493_v63 }
 0xb70   :  { %v3280_v3 = vadd.f32 %v3279_v46, %v3278_v20  ;;  %10675 = vpow2.f32 %v3498_v42  ;;  %v12607_v43 = vpop.f32.mrb[76].mxu1  ;;  %v3947_v8 = vsel %vm512_vm4, %v12571_v13, -inf  ;;  %v3945_v57 = vsel %vm512_vm4, %v12580_v52, -inf }
 0xb71   :  { %10677 = vpow2.f32 %v3500_v15  ;;  %v3721_v53 = vmax.f32 %v3719_v11, %v3720_v22  ;;  %v12613_v26 = vpop.f32.mrb[77].mxu1  ;;  %v3948_v28 = vsel %vm512_vm4, %v12586_v27, -inf  ;;  %v3953_v36 = vsel %vm512_vm4, %v12607_v43, -inf }
 0xb72   :  { %v3282_v54 = vadd.f32 %v3281_v50, %v3280_v3  ;;  %v3949_v44 = vsel %vm512_vm4, %v12613_v26, -inf  ;;  %v12621_v24 = vpop.f32.mrb[78].mxu1  ;;  %10679 = vpow2.f32 %v3502_v51  ;;  %v3954_v10 = vmax.f32 %v3947_v8, %v3953_v36 }
 0xb73   :  { %v3722_v14 = vrot.slane %v3721_v53, 2  ;;  %v3950_v32 = vmax.f32 %v3945_v57, %v3949_v44  ;;  %v12623_v56 = vpop.f32.mrb[79].mxu1  ;;  %v3946_v62 = vsel %vm512_vm4, %v12595_v40, -inf  ;;  %v3955_v55 = vsel %vm512_vm4, %v12621_v24, -inf }
 0xb74   :  { %v3284_v31 = vadd.f32 %v3283_v34, %v3282_v54  ;;  %v3951_v1 = vsel %vm512_vm4, %v12623_v56, -inf  ;;  %10681 = vpow2.f32 %v3504_v49  ;;  %v3956_v63 = vmax.f32 %v3948_v28, %v3955_v55 }
 0xb75   :  { %v3723_v5 = vmax.f32 %v3721_v53, %v3722_v14  ;;  %v3952_v60 = vmax.f32 %v3946_v62, %v3951_v1  ;;  %10683 = vpow2.f32 %v3506_v58 }
 0xb76   :  { %v3285_v17 = vrot.slane %v3284_v31, 4  ;;  %v3958_v23 = vmax.f32 %v3954_v10, %v3956_v63  ;;  %10685 = vpow2.f32 %v3508_v25 }
 0xb77   :  { %v3724_v61 = vrot.slane %v3723_v5, 1  ;;  %v3957_v46 = vmax.f32 %v3950_v32, %v3952_v60 }
 0xb78   :  { %v12631_v42 = vpop.eup %10671  ;;  %v3286_v15 = vadd.f32 %v3285_v17, %v3284_v31 }
 0xb79   :  { %v12633_v11 = vpop.eup %10673  ;;  %v3510_v20 = vsel %vm512_vm4, %v12631_v42, 0.0  ;;  %v3725_v50 = vmax.f32 %v3723_v5, %v3724_v61  ;;  %v3959_v34 = vmax.f32 %v3957_v46, %v3958_v23 }
 0xb7a   :  { %v12637_v51 = vpop.eup %10675  ;;  %v3287_v49 = vrot.slane %v3286_v15, 2  ;;  %v3511_v22 = vsel %vm512_vm4, %v12633_v11, 0.0 }
 0xb7b   :  { %v12641_v3 = vpop.eup %10677  ;;  %v3512_v58 = vadd.f32 %v3511_v22, %v3510_v20  ;;  %v3726_v53 = vsub.f32 %v12529_v18, %v3725_v50  ;;  %v3727_v8 = vsub.f32 %v12533_v39, %v3725_v50  ;;  %v3513_v25 = vsel %vm512_vm4, %v12637_v51, 0.0 }
 0xb7c   :  { %v3288_v57 = vadd.f32 %v3287_v49, %v3286_v15  ;;  %v3728_v54 = vsub.f32 %v12527_v7, %v3725_v50  ;;  %v3729_v28 = vsub.f32 %v12531_v33, %v3725_v50  ;;  %v12649_v36 = vpop.eup %10679  ;;  %v3730_v14 = vsub.f32 %v12545_v59, %v3725_v50 }
 0xb7d   :  { %v3514_v44 = vadd.f32 %v3513_v25, %v3512_v58  ;;  %v3731_v10 = vsub.f32 %v12555_v12, %v3725_v50  ;;  %v3515_v18 = vsel %vm512_vm4, %v12641_v3, 0.0  ;;  %v3732_v39 = vsub.f32 %v12539_v41, %v3725_v50 }
 0xb7e   :  { %v3289_v32 = vrot.slane %v3288_v57, 1  ;;  %v3733_v31 = vsub.f32 %v12551_v38, %v3725_v50  ;;  %v12657_v62 = vpop.eup %10681  ;;  %v3734_v55 = vmul.f32 1.442695, %v3726_v53  ;;  %v3736_v33 = vmul.f32 1.442695, %v3727_v8 }
 0xb7f   :  { %v3516_v7 = vadd.f32 %v3515_v18, %v3514_v44  ;;  %v3517_v5 = vsel %vm512_vm4, %v12649_v36, 0.0  ;;  %v3738_v59 = vmul.f32 1.442695, %v3728_v54  ;;  %v12661_v63 = vpop.eup %10683  ;;  %v3740_v60 = vmul.f32 1.442695, %v3729_v28 }
 0xb80   :  { %v3290_v1 = vadd.f32 %v3289_v32, %v3288_v57  ;;  %10687 = vpow2.f32 %v3734_v55  ;;  %v3519_v41 = vsel %vm512_vm4, %v12657_v62, 0.0  ;;  %v3742_v38 = vmul.f32 1.442695, %v3730_v14  ;;  %v12665_v61 = vpop.eup %10685 }
 0xb81   :  { %v3518_v12 = vadd.f32 %v3517_v5, %v3516_v7  ;;  %v3960_v17 = vrot.slane %v3959_v34, 4  ;;  %v3744_v46 = vmul.f32 1.442695, %v3731_v10  ;;  %v3521_v15 = vsel %vm512_vm4, %v12661_v63, 0.0 }
 0xb82   :  { %10689 = vrcp.f32 %v3290_v1  ;;  %v3746_v20 = vmul.f32 1.442695, %v3732_v39  ;;  %v3523_v22 = vsel %vm512_vm4, %v12665_v61, 0.0  ;;  %v3748_v8 = vmul.f32 1.442695, %v3733_v31 }
 0xb83   :  { %v3520_v23 = vadd.f32 %v3519_v41, %v3518_v12  ;;  %10691 = vpow2.f32 %v3736_v33  ;;  %v3961_v50 = vmax.f32 %v3959_v34, %v3960_v17 }
 0xb84   :  { %10693 = vpow2.f32 %v3738_v59 }
 0xb85   :  { %v3522_v49 = vadd.f32 %v3521_v15, %v3520_v23  ;;  %10695 = vpow2.f32 %v3740_v60  ;;  %v3962_v58 = vrot.slane %v3961_v50, 2 }
 0xb86   :  { %10697 = vpow2.f32 %v3742_v38 }
 0xb87   :  { %v3524_v53 = vadd.f32 %v3523_v22, %v3522_v49  ;;  %10699 = vpow2.f32 %v3744_v46  ;;  %v3963_v57 = vmax.f32 %v3961_v50, %v3962_v58 }
 0xb88   :  { %10701 = vpow2.f32 %v3746_v20 }
 0xb89   :  { %v3525_v25 = vrot.slane %v3524_v53, 4  ;;  %v3964_v54 = vrot.slane %v3963_v57, 1  ;;  %10703 = vpow2.f32 %v3748_v8 }
 0xb8a   :  { %v12671_v28 = vpop.eup %10687 }
 0xb8b   :  { %v3526_v44 = vadd.f32 %v3525_v25, %v3524_v53  ;;  %v3750_v34 = vsel %vm512_vm4, %v12671_v28, 0.0  ;;  %v3965_v10 = vmax.f32 %v3963_v57, %v3964_v54 }
 0xb8c   :  { %v10690_v14 = vpop.eup %10689 }
 0xb8d   :  { %v12675_v32 = vpop.eup %10691  ;;  %v3527_v18 = vrot.slane %v3526_v44, 2  ;;  %v3292_v39 = vmul.f32 %v10690_v14, %v12559_v35  ;;  %v3293_v7 = vmul.f32 %v10690_v14, %v12561_v30  ;;  %v3294_v31 = vmul.f32 %v10690_v14, %v12565_v21 }
 0xb8e   :  { %v12680_v55 = vpop.eup %10693  ;;  %v3751_v33 = vsel %vm512_vm4, %v12675_v32, 0.0  ;;  %v3966_v1 = vsub.f32 %v12580_v52, %v3965_v10  ;;  %v3967_v5 = vsub.f32 %v12595_v40, %v3965_v10  ;;  %v3968_v59 = vsub.f32 %v12571_v13, %v3965_v10 }
 0xb8f   :  { %v12687_v12 = vpop.eup %10695  ;;  %v3528_v60 = vadd.f32 %v3527_v18, %v3526_v44  ;;  %v3752_v41 = vadd.f32 %v3751_v33, %v3750_v34  ;;  %v3969_v35 = vsub.f32 %v12586_v27, %v3965_v10  ;;  %v3753_v21 = vsel %vm512_vm4, %v12680_v55, 0.0 }
 0xb90   :  { %v12690_v30 = vpop.eup %10697  ;;  %v3970_v38 = vsub.f32 %v12613_v26, %v3965_v10  ;;  %v3971_v17 = vsub.f32 %v12623_v56, %v3965_v10  ;;  %v3972_v52 = vsub.f32 %v12607_v43, %v3965_v10  ;;  %v3973_v46 = vsub.f32 %v12621_v24, %v3965_v10 }
 0xb91   :  { %v12697_v40 = vpop.eup %10699  ;;  %v3529_v13 = vrot.slane %v3528_v60, 1  ;;  %v3754_v23 = vadd.f32 %v3753_v21, %v3752_v41  ;;  %v3755_v27 = vsel %vm512_vm4, %v12687_v12, 0.0  ;;  %v3974_v20 = vmul.f32 1.442695, %v3966_v1 }
 0xb92   :  { %v12700_v15 = vpop.eup %10701  ;;  %v3976_v50 = vmul.f32 1.442695, %v3967_v5  ;;  %v3301_v49 = vpack.c.bf16 %v3293_v7, %v3292_v39  ;;  %v3978_v58 = vmul.f32 1.442695, %v3968_v59  ;;  %v3757_v43 = vsel %vm512_vm4, %v12690_v30, 0.0 }
 0xb93   :  { %v3530_v22 = vadd.f32 %v3529_v13, %v3528_v60  ;;  %v3756_v26 = vadd.f32 %v3755_v27, %v3754_v23  ;;  %10705 = vpow2.f32 %v3974_v20  ;;  %v3980_v56 = vmul.f32 1.442695, %v3969_v35  ;;  %v12711_v57 = vpop.eup %10703 }
 0xb94   :  { %9576 = vmatpush3.bf16.msra.mxu0 %v3301_v49  ;;  %v3759_v24 = vsel %vm512_vm4, %v12697_v40, 0.0  ;;  %v3761_v8 = vsel %vm512_vm4, %v12700_v15, 0.0  ;;  %v3982_v25 = vmul.f32 1.442695, %v3970_v38  ;;  %v3295_v54 = vmul.f32 %v10690_v14, %v12569_v16 }
 0xb95   :  { %10707 = vrcp.f32 %v3530_v22  ;;  %v3758_v53 = vadd.f32 %v3757_v43, %v3756_v26  ;;  %9577 = vmatprep.subr.bf16.mxu0 %v14565_v19  ;;  %v3296_v44 = vmul.f32 %v10690_v14, %v12573_v4  ;;  %v3297_v10 = vmul.f32 %v10690_v14, %v12582_v0 }
 0xb96   :  { %10709 = vpow2.f32 %v3976_v50  ;;  %v3298_v18 = vmul.f32 %v10690_v14, %v12588_v45  ;;  %v3984_v39 = vmul.f32 1.442695, %v3971_v17  ;;  %v3302_v7 = vpack.c.bf16 %v3295_v54, %v3294_v31 }
 0xb97   :  { %v3760_v34 = vadd.f32 %v3759_v24, %v3758_v53  ;;  %10711 = vpow2.f32 %v3978_v58  ;;  %v3299_v33 = vmul.f32 %v10690_v14, %v12597_v9  ;;  %v3303_v5 = vpack.c.bf16 %v3297_v10, %v3296_v44 }
 0xb98   :  { %10713 = vpow2.f32 %v3980_v56  ;;  %v3763_v59 = vsel %vm512_vm4, %v12711_v57, 0.0  ;;  %v3986_v16 = vmul.f32 1.442695, %v3972_v52  ;;  %9578 = vmatpush3.bf16.msra.mxu0 %v3302_v7  ;;  %v3988_v41 = vmul.f32 1.442695, %v3973_v46 }
 0xb99   :  { %v3762_v1 = vadd.f32 %v3761_v8, %v3760_v34  ;;  %10715 = vpow2.f32 %v3982_v25  ;;  %v3304_v4 = vpack.c.bf16 %v3299_v33, %v3298_v18  ;;  %9579 = vmatprep.subr.bf16.mxu0 %v14565_v19 }
 0xb9a   :  { %10717 = vpow2.f32 %v3984_v39 }
 0xb9b   :  { %v3764_v60 = vadd.f32 %v3763_v59, %v3762_v1  ;;  %10719 = vpow2.f32 %v3986_v16 }
 0xb9c   :  { %9580 = vmatpush3.bf16.msra.mxu0 %v3303_v5  ;;  %10721 = vpow2.f32 %v3988_v41 }
 0xb9d   :  { %v3765_v0 = vrot.slane %v3764_v60, 4  ;;  %v12721_v45 = vpop.eup %10705  ;;  %9581 = vmatprep.subr.bf16.mxu0 %v14565_v19 }
 0xb9e   :  { %v3990_v31 = vsel %vm512_vm4, %v12721_v45, 0.0 }
 0xb9f   :  { %v10708_v9 = vpop.eup %10707  ;;  %v3766_v14 = vadd.f32 %v3765_v0, %v3764_v60 }
 0xba0   :  { %v12726_v35 = vpop.eup %10709  ;;  %v3532_v21 = vmul.f32 %v10708_v9, %v12631_v42  ;;  %v3533_v38 = vmul.f32 %v10708_v9, %v12633_v11  ;;  %v3534_v17 = vmul.f32 %v10708_v9, %v12637_v51  ;;  %v3535_v52 = vmul.f32 %v10708_v9, %v12641_v3  ;;  %9582 = vmatpush3.bf16.msra.mxu0 %v3304_v4 }
 0xba1   :  { %v12732_v13 = vpop.eup %10711  ;;  %v3767_v23 = vrot.slane %v3766_v14, 2  ;;  %v3991_v46 = vsel %vm512_vm4, %v12726_v35, 0.0  ;;  %v3536_v27 = vmul.f32 %v10708_v9, %v12649_v36  ;;  %v3537_v20 = vmul.f32 %v10708_v9, %v12657_v62  ;;  %9597 = vmatprep.subr.bf16.mxu0 %v14565_v19 }
 0xba2   :  { %v12738_v50 = vpop.eup %10713  ;;  %v3992_v49 = vadd.f32 %v3991_v46, %v3990_v31  ;;  %v3541_v42 = vpack.c.bf16 %v3533_v38, %v3532_v21  ;;  %v3542_v11 = vpack.c.bf16 %v3535_v52, %v3534_v17  ;;  %v3993_v51 = vsel %vm512_vm4, %v12732_v13, 0.0 }
 0xba3   :  { %v3768_v22 = vadd.f32 %v3767_v23, %v3766_v14  ;;  %v3543_v3 = vpack.c.bf16 %v3537_v20, %v3536_v27  ;;  %v3538_v26 = vmul.f32 %v10708_v9, %v12661_v63  ;;  %v12744_v58 = vpop.eup %10715  ;;  %v3539_v62 = vmul.f32 %v10708_v9, %v12665_v61  ;;  %9584 = vmatmul.mubr.msk.bf16.vlgmr.msra.gmra.mrb[88].mxu0 %vm512_vm4, %v12415_v2 }
 0xba4   :  { %v3994_v36 = vadd.f32 %v3993_v51, %v3992_v49  ;;  %v3995_v56 = vsel %vm512_vm4, %v12738_v50, 0.0  ;;  %v10718_v53 = vpop.eup %10717  ;;  %9598 = vmatpush3.bf16.msra.mxu0 %v3541_v42  ;;  %9605 = vmatprep.mubr.msk.bf16.mxu0 %vm10953_vm3, %v14565_v19  ;;  %v3997_v25 = vsel %vm512_vm4, %v12744_v58, 0.0 }
 0xba5   :  { %v3769_v43 = vrot.slane %v3768_v22, 1  ;;  %v3544_v8 = vpack.c.bf16 %v3539_v62, %v3538_v26  ;;  %9599 = vmatprep.subr.bf16.mxu0 %v14565_v19  ;;  %v10720_v61 = vpop.eup %10719  ;;  %v3999_v34 = vsel %vm512_vm4, %v10718_v53, 0.0 }
 0xba6   :  { %v3996_v24 = vadd.f32 %v3995_v56, %v3994_v36  ;;  %v10722_v44 = vpop.eup %10721  ;;  %v4001_v10 = vsel %vm512_vm4, %v10720_v61, 0.0 }
 0xba7   :  { %v3770_v63 = vadd.f32 %v3769_v43, %v3768_v22  ;;  %v4003_v39 = vsel %vm512_vm4, %v10722_v44, 0.0 }
 0xba8   :  { %v3998_v54 = vadd.f32 %v3997_v25, %v3996_v24  ;;  %9600 = vmatpush3.bf16.msra.mxu0 %v3542_v11 }
 0xba9   :  { %10723 = vrcp.f32 %v3770_v63  ;;  %9601 = vmatprep.subr.bf16.mxu0 %v14565_v19 }
 0xbaa   :  { %v4000_v2 = vadd.f32 %v3999_v34, %v3998_v54 }
 0xbac   :  { %v4002_v18 = vadd.f32 %v4001_v10, %v4000_v2  ;;  %9602 = vmatpush3.bf16.msra.mxu0 %v3543_v3 }
 0xbad   :  { %9603 = vmatprep.subr.bf16.mxu0 %v14565_v19 }
 0xbae   :  { %v4004_v7 = vadd.f32 %v4003_v39, %v4002_v18 }
 0xbb0   :  { %v4005_v33 = vrot.slane %v4004_v7, 4  ;;  %9604 = vmatpush3.bf16.msra.mxu0 %v3544_v8 }
 0xbb1   :  { %9619 = vmatprep.subr.bf16.mxu0 %v14565_v19 }
 0xbb2   :  { %v4006_v1 = vadd.f32 %v4005_v33, %v4004_v7 }
 0xbb3   :  { %v10724_v5 = vpop.eup %10723  ;;  %9606 = vmatmul.mubr.msk.bf16.vlgmr.msra.gmra.mrb[92].mxu0 %vm512_vm4, %v12447_v47 }
 0xbb4   :  { %v4007_v59 = vrot.slane %v4006_v1, 2  ;;  %v3772_v16 = vmul.f32 %v10724_v5, %v12671_v28  ;;  %v3773_v4 = vmul.f32 %v10724_v5, %v12675_v32  ;;  %v3774_v60 = vmul.f32 %v10724_v5, %v12680_v55  ;;  %9627 = vmatprep.mubr.msk.bf16.mxu0 %vm10953_vm3, %v14565_v19 }
 0xbb5   :  { %v3775_v41 = vmul.f32 %v10724_v5, %v12687_v12  ;;  %v3776_v0 = vmul.f32 %v10724_v5, %v12690_v30  ;;  %v3777_v9 = vmul.f32 %v10724_v5, %v12697_v40  ;;  %v3778_v14 = vmul.f32 %v10724_v5, %v12700_v15 }
 0xbb6   :  { %v4008_v31 = vadd.f32 %v4007_v59, %v4006_v1  ;;  %v3781_v21 = vpack.c.bf16 %v3773_v4, %v3772_v16  ;;  %v3779_v38 = vmul.f32 %v10724_v5, %v12711_v57 }
 0xbb7   :  { %v3782_v28 = vpack.c.bf16 %v3775_v41, %v3774_v60  ;;  %v3783_v32 = vpack.c.bf16 %v3777_v9, %v3776_v0 }
 0xbb8   :  { %v4009_v55 = vrot.slane %v4008_v31, 1  ;;  %9620 = vmatpush3.bf16.msra.mxu0 %v3781_v21  ;;  %v3784_v47 = vpack.c.bf16 %v3779_v38, %v3778_v14 }
 0xbb9   :  { %9621 = vmatprep.subr.bf16.mxu0 %v14565_v19 }
 0xbba   :  { %v4010_v12 = vadd.f32 %v4009_v55, %v4008_v31 }
 0xbbc   :  { %10725 = vrcp.f32 %v4010_v12  ;;  %9622 = vmatpush3.bf16.msra.mxu0 %v3782_v28 }
 0xbbd   :  { %9623 = vmatprep.subr.bf16.mxu0 %v14565_v19 }
 0xbc0   :  { %9624 = vmatpush3.bf16.msra.mxu0 %v3783_v32 }
 0xbc1   :  { %9625 = vmatprep.subr.bf16.mxu0 %v14565_v19 }
 0xbc4   :  { %9626 = vmatpush3.bf16.msra.mxu0 %v3784_v47 }
 0xbc5   :  { %9641 = vmatprep.subr.bf16.mxu0 %v14565_v19 }
 0xbc6   :  { %v10726_v30 = vpop.eup %10725 }
 0xbc7   :  { %9628 = vmatmul.mubr.msk.bf16.vlgmr.msra.gmra.mrb[96].mxu0 %vm512_vm4, %v12443_v6  ;;  %v4012_v40 = vmul.f32 %v10726_v30, %v12721_v45  ;;  %v4013_v15 = vmul.f32 %v10726_v30, %v12726_v35  ;;  %v4014_v57 = vmul.f32 %v10726_v30, %v12732_v13  ;;  %v4015_v17 = vmul.f32 %v10726_v30, %v12738_v50 }
 0xbc8   :  { %v4016_v52 = vmul.f32 %v10726_v30, %v12744_v58  ;;  %v4017_v23 = vmul.f32 %v10726_v30, %v10718_v53  ;;  %v4018_v46 = vmul.f32 %v10726_v30, %v10720_v61  ;;  %v4019_v27 = vmul.f32 %v10726_v30, %v10722_v44  ;;  %9649 = vmatprep.mubr.msk.bf16.mxu0 %vm10953_vm3, %v14565_v19 }
 0xbc9   :  { %v4021_v20 = vpack.c.bf16 %v4013_v15, %v4012_v40  ;;  %v4022_v49 = vpack.c.bf16 %v4015_v17, %v4014_v57 }
 0xbca   :  { %v4023_v42 = vpack.c.bf16 %v4017_v23, %v4016_v52  ;;  %v4024_v6 = vpack.c.bf16 %v4019_v27, %v4018_v46 }
 0xbcb   :  { %9642 = vmatpush3.bf16.msra.mxu0 %v4021_v20 }
 0xbcc   :  { %9643 = vmatprep.subr.bf16.mxu0 %v14565_v19 }
 0xbcf   :  { %9644 = vmatpush3.bf16.msra.mxu0 %v4022_v49 }
 0xbd0   :  { %9645 = vmatprep.subr.bf16.mxu0 %v14565_v19 }
 0xbd3   :  { %9646 = vmatpush3.bf16.msra.mxu0 %v4023_v42 }
 0xbd4   :  { %9647 = vmatprep.subr.bf16.mxu0 %v14565_v19 }
 0xbd7   :  { %9648 = vmatpush3.bf16.msra.mxu0 %v4024_v6 }
 0xbd8   :  { %9663 = vmatprep.subr.bf16.mxu0 %v14565_v19 }
 0xbda   :  { %9650 = vmatmul.mubr.msk.bf16.vlgmr.msra.gmra.mrb[100].mxu0 %vm512_vm4, %v12478_v48 }
 0xbdb   :  { %9671 = vmatprep.mubr.msk.bf16.mxu0 %vm10953_vm3, %v14565_v19 }
 0xbe7   :  { %v9657_v45 = vpop.f32.mrb[80].mxu1 }
 0xbe8   :  { %v4160_v35 = vpop.f32.mrb[81].mxu1  ;;  %v4193_v22 = vsel %vm512_vm4, %v9657_v45, -inf }
 0xbe9   :  { %v9658_v13 = vpop.f32.mrb[82].mxu1  ;;  %v4191_v26 = vsel %vm512_vm4, %v4160_v35, -inf }
 0xbea   :  { %v4163_v50 = vpop.f32.mrb[83].mxu1  ;;  %v4194_v62 = vsel %vm512_vm4, %v9658_v13, -inf }
 0xbeb   :  { %v4192_v24 = vsel %vm512_vm4, %v4163_v50, -inf }
 0xbf7   :  { %v12795_v11 = vpop.f32.mrb[84].mxu1 }
 0xbf8   :  { %v4199_v51 = vsel %vm512_vm4, %v12795_v11, -inf  ;;  %v4176_v3 = vpop.f32.mrb[85].mxu1 }
 0xbf9   :  { %v4200_v58 = vmax.f32 %v4193_v22, %v4199_v51  ;;  %v4195_v48 = vsel %vm512_vm4, %v4176_v3, -inf  ;;  %v12802_v36 = vpop.f32.mrb[86].mxu1 }
 0xbfa   :  { %v4196_v43 = vmax.f32 %v4191_v26, %v4195_v48  ;;  %v4201_v56 = vsel %vm512_vm4, %v12802_v36, -inf  ;;  %v4179_v53 = vpop.f32.mrb[87].mxu1 }
 0xbfb   :  { %v4202_v8 = vmax.f32 %v4194_v62, %v4201_v56  ;;  %v4197_v63 = vsel %vm512_vm4, %v4179_v53, -inf }
 0xbfc   :  { %v4198_v25 = vmax.f32 %v4192_v24, %v4197_v63 }
 0xbfd   :  { %v4204_v61 = vmax.f32 %v4200_v58, %v4202_v8 }
 0xbfe   :  { %v4203_v54 = vmax.f32 %v4196_v43, %v4198_v25 }
 0xbff   :  { %v12809_v44 = vpop.f32.mrb[88].mxu1 }
 0xc00   :  { %v4205_v34 = vmax.f32 %v4203_v54, %v4204_v61  ;;  %v12811_v2 = vpop.f32.mrb[89].mxu1  ;;  %v4441_v59 = vsel %vm512_vm4, %v12809_v44, -inf }
 0xc01   :  { %v12813_v10 = vpop.f32.mrb[90].mxu1  ;;  %v4439_v60 = vsel %vm512_vm4, %v12811_v2, -inf }
 0xc02   :  { %v4206_v18 = vrot.slane %v4205_v34, 4  ;;  %v12815_v39 = vpop.f32.mrb[91].mxu1  ;;  %v4442_v31 = vsel %vm512_vm4, %v12813_v10, -inf }
 0xc03   :  { %v4440_v32 = vsel %vm512_vm4, %v12815_v39, -inf }
 0xc04   :  { %v4207_v7 = vmax.f32 %v4205_v34, %v4206_v18 }
 0xc06   :  { %v4208_v33 = vrot.slane %v4207_v7, 2 }
 0xc07   :  { %v12817_v1 = vpop.f32.mrb[92].mxu1 }
 0xc08   :  { %v4209_v5 = vmax.f32 %v4207_v7, %v4208_v33  ;;  %v4447_v16 = vsel %vm512_vm4, %v12817_v1, -inf  ;;  %v12823_v4 = vpop.f32.mrb[93].mxu1 }
 0xc09   :  { %v4448_v41 = vmax.f32 %v4441_v59, %v4447_v16  ;;  %v4443_v0 = vsel %vm512_vm4, %v12823_v4, -inf  ;;  %v12829_v9 = vpop.f32.mrb[94].mxu1 }
 0xc0a   :  { %v4210_v14 = vrot.slane %v4209_v5, 1  ;;  %v4444_v21 = vmax.f32 %v4439_v60, %v4443_v0  ;;  %v4449_v38 = vsel %vm512_vm4, %v12829_v9, -inf  ;;  %v12835_v28 = vpop.f32.mrb[95].mxu1 }
 0xc0b   :  { %v4450_v55 = vmax.f32 %v4442_v31, %v4449_v38  ;;  %v4445_v47 = vsel %vm512_vm4, %v12835_v28, -inf }
 0xc0c   :  { %v4211_v12 = vmax.f32 %v4209_v5, %v4210_v14  ;;  %v4446_v30 = vmax.f32 %v4440_v32, %v4445_v47 }
 0xc0d   :  { %v4452_v40 = vmax.f32 %v4448_v41, %v4450_v55 }
 0xc0e   :  { %v4212_v15 = vsub.f32 %v4160_v35, %v4211_v12  ;;  %v4213_v57 = vsub.f32 %v4163_v50, %v4211_v12  ;;  %v4214_v17 = vsub.f32 %v9657_v45, %v4211_v12  ;;  %v4215_v52 = vsub.f32 %v9658_v13, %v4211_v12 }
 0xc0f   :  { %v4216_v23 = vsub.f32 %v4176_v3, %v4211_v12  ;;  %v4217_v46 = vsub.f32 %v4179_v53, %v4211_v12  ;;  %v4218_v27 = vsub.f32 %v12795_v11, %v4211_v12  ;;  %v4219_v20 = vsub.f32 %v12802_v36, %v4211_v12  ;;  %v12843_v49 = vpop.f32.mrb[96].mxu1 }
 0xc10   :  { %v4220_v42 = vmul.f32 1.442695, %v4212_v15  ;;  %v4222_v6 = vmul.f32 1.442695, %v4213_v57  ;;  %v4224_v22 = vmul.f32 1.442695, %v4214_v17  ;;  %v4451_v51 = vmax.f32 %v4444_v21, %v4446_v30 }
 0xc11   :  { %v4226_v26 = vmul.f32 1.442695, %v4215_v52  ;;  %v4228_v58 = vmul.f32 1.442695, %v4216_v23  ;;  %v12845_v35 = vpop.f32.mrb[97].mxu1  ;;  %v4689_v53 = vsel %vm512_vm4, %v12843_v49, -inf }
 0xc12   :  { %10727 = vpow2.f32 %v4220_v42  ;;  %v4453_v48 = vmax.f32 %v4451_v51, %v4452_v40  ;;  %v4230_v45 = vmul.f32 1.442695, %v4217_v46  ;;  %v12847_v13 = vpop.f32.mrb[98].mxu1  ;;  %v4232_v50 = vmul.f32 1.442695, %v4218_v27 }
 0xc13   :  { %10729 = vpow2.f32 %v4222_v6  ;;  %v12849_v3 = vpop.f32.mrb[99].mxu1  ;;  %v4234_v36 = vmul.f32 1.442695, %v4219_v20  ;;  %v4687_v63 = vsel %vm512_vm4, %v12845_v35, -inf  ;;  %v4690_v18 = vsel %vm512_vm4, %v12847_v13, -inf }
 0xc14   :  { %10731 = vpow2.f32 %v4224_v22  ;;  %v4454_v11 = vrot.slane %v4453_v48, 4  ;;  %v4688_v59 = vsel %vm512_vm4, %v12849_v3, -inf }
 0xc15   :  { %10733 = vpow2.f32 %v4226_v26 }
 0xc16   :  { %10735 = vpow2.f32 %v4228_v58  ;;  %v4455_v62 = vmax.f32 %v4453_v48, %v4454_v11 }
 0xc17   :  { %10737 = vpow2.f32 %v4230_v45  ;;  %v12851_v43 = vpop.f32.mrb[100].mxu1 }
 0xc18   :  { %10739 = vpow2.f32 %v4232_v50  ;;  %v4456_v56 = vrot.slane %v4455_v62, 2  ;;  %v4695_v24 = vsel %vm512_vm4, %v12851_v43, -inf  ;;  %v12857_v8 = vpop.f32.mrb[101].mxu1 }
 0xc19   :  { %10741 = vpow2.f32 %v4234_v36  ;;  %v4696_v25 = vmax.f32 %v4689_v53, %v4695_v24  ;;  %v4691_v61 = vsel %vm512_vm4, %v12857_v8, -inf  ;;  %v12863_v54 = vpop.f32.mrb[102].mxu1 }
 0xc1a   :  { %v4457_v34 = vmax.f32 %v4455_v62, %v4456_v56  ;;  %v4692_v7 = vmax.f32 %v4687_v63, %v4691_v61  ;;  %v4697_v33 = vsel %vm512_vm4, %v12863_v54, -inf  ;;  %v12869_v5 = vpop.f32.mrb[103].mxu1 }
 0xc1b   :  { %v4698_v16 = vmax.f32 %v4690_v18, %v4697_v33  ;;  %v4693_v60 = vsel %vm512_vm4, %v12869_v5, -inf }
 0xc1c   :  { %v12875_v41 = vpop.eup %10727  ;;  %v4458_v0 = vrot.slane %v4457_v34, 1  ;;  %v4694_v14 = vmax.f32 %v4688_v59, %v4693_v60 }
 0xc1d   :  { %v12877_v31 = vpop.eup %10729  ;;  %v4236_v21 = vsel %vm512_vm4, %v12875_v41, 0.0  ;;  %v4700_v38 = vmax.f32 %v4696_v25, %v4698_v16 }
 0xc1e   :  { %v12881_v32 = vpop.eup %10731  ;;  %v4237_v55 = vsel %vm512_vm4, %v12877_v31, 0.0  ;;  %v4459_v47 = vmax.f32 %v4457_v34, %v4458_v0  ;;  %v4699_v12 = vmax.f32 %v4692_v7, %v4694_v14 }
 0xc1f   :  { %v12885_v30 = vpop.eup %10733  ;;  %v4238_v40 = vadd.f32 %v4237_v55, %v4236_v21  ;;  %v12887_v15 = vpop.f32.mrb[104].mxu1  ;;  %v4239_v17 = vsel %vm512_vm4, %v12881_v32, 0.0 }
 0xc20   :  { %v12889_v57 = vpop.eup %10735  ;;  %v4460_v52 = vsub.f32 %v12811_v2, %v4459_v47  ;;  %v4461_v23 = vsub.f32 %v12815_v39, %v4459_v47  ;;  %v4462_v46 = vsub.f32 %v12809_v44, %v4459_v47  ;;  %v12896_v27 = vpop.f32.mrb[105].mxu1  ;;  %v4463_v6 = vsub.f32 %v12813_v10, %v4459_v47 }
 0xc21   :  { %v12898_v20 = vpop.eup %10737  ;;  %v4240_v42 = vadd.f32 %v4239_v17, %v4238_v40  ;;  %v4464_v22 = vsub.f32 %v12823_v4, %v4459_v47  ;;  %v12902_v51 = vpop.f32.mrb[106].mxu1  ;;  %v4241_v2 = vsel %vm512_vm4, %v12885_v30, 0.0  ;;  %v4465_v39 = vsub.f32 %v12835_v28, %v4459_v47 }
 0xc22   :  { %v12904_v26 = vpop.eup %10739  ;;  %v4466_v44 = vsub.f32 %v12817_v1, %v4459_v47  ;;  %v4467_v58 = vsub.f32 %v12829_v9, %v4459_v47  ;;  %v12911_v48 = vpop.f32.mrb[107].mxu1  ;;  %v4243_v4 = vsel %vm512_vm4, %v12889_v57, 0.0  ;;  %v4468_v50 = vmul.f32 1.442695, %v4460_v52 }
 0xc23   :  { %v12913_v45 = vpop.eup %10741  ;;  %v4242_v10 = vadd.f32 %v4241_v2, %v4240_v42  ;;  %v4470_v11 = vmul.f32 1.442695, %v4461_v23  ;;  %v4245_v36 = vsel %vm512_vm4, %v12898_v20, 0.0  ;;  %v4472_v62 = vmul.f32 1.442695, %v4462_v46 }
 0xc24   :  { %v4474_v56 = vmul.f32 1.442695, %v4463_v6  ;;  %v4701_v28 = vmax.f32 %v4699_v12, %v4700_v38  ;;  %v4247_v1 = vsel %vm512_vm4, %v12904_v26, 0.0  ;;  %v4249_v9 = vsel %vm512_vm4, %v12913_v45, 0.0 }
 0xc25   :  { %v4244_v53 = vadd.f32 %v4243_v4, %v4242_v10  ;;  %10743 = vpow2.f32 %v4468_v50  ;;  %v4476_v24 = vmul.f32 1.442695, %v4464_v22  ;;  %v4478_v63 = vmul.f32 1.442695, %v4465_v39 }
 0xc26   :  { %10745 = vpow2.f32 %v4470_v11  ;;  %v4702_v25 = vrot.slane %v4701_v28, 4  ;;  %v4480_v34 = vmul.f32 1.442695, %v4466_v44  ;;  %v4482_v18 = vmul.f32 1.442695, %v4467_v58 }
 0xc27   :  { %v4246_v61 = vadd.f32 %v4245_v36, %v4244_v53  ;;  %10747 = vpow2.f32 %v4472_v62  ;;  %v12923_v7 = vpop.f32.mrb[108].mxu1  ;;  %v4937_v59 = vsel %vm512_vm4, %v12887_v15, -inf  ;;  %v4935_v16 = vsel %vm512_vm4, %v12896_v27, -inf }
 0xc28   :  { %10749 = vpow2.f32 %v4474_v56  ;;  %v4703_v33 = vmax.f32 %v4701_v28, %v4702_v25  ;;  %v12929_v60 = vpop.f32.mrb[109].mxu1  ;;  %v4938_v14 = vsel %vm512_vm4, %v12902_v51, -inf  ;;  %v4943_v21 = vsel %vm512_vm4, %v12923_v7, -inf }
 0xc29   :  { %v4248_v0 = vadd.f32 %v4247_v1, %v4246_v61  ;;  %v4939_v38 = vsel %vm512_vm4, %v12929_v60, -inf  ;;  %v12937_v55 = vpop.f32.mrb[110].mxu1  ;;  %10751 = vpow2.f32 %v4476_v24  ;;  %v4944_v12 = vmax.f32 %v4937_v59, %v4943_v21 }
 0xc2a   :  { %v4704_v47 = vrot.slane %v4703_v33, 2  ;;  %v4940_v40 = vmax.f32 %v4935_v16, %v4939_v38  ;;  %v12939_v17 = vpop.f32.mrb[111].mxu1  ;;  %v4936_v23 = vsel %vm512_vm4, %v12911_v48, -inf  ;;  %v4945_v46 = vsel %vm512_vm4, %v12937_v55, -inf }
 0xc2b   :  { %v4250_v52 = vadd.f32 %v4249_v9, %v4248_v0  ;;  %v4941_v42 = vsel %vm512_vm4, %v12939_v17, -inf  ;;  %10753 = vpow2.f32 %v4478_v63  ;;  %v4946_v22 = vmax.f32 %v4938_v14, %v4945_v46 }
 0xc2c   :  { %v4705_v6 = vmax.f32 %v4703_v33, %v4704_v47  ;;  %v4942_v2 = vmax.f32 %v4936_v23, %v4941_v42  ;;  %10755 = vpow2.f32 %v4480_v34 }
 0xc2d   :  { %v4251_v39 = vrot.slane %v4250_v52, 4  ;;  %v4948_v58 = vmax.f32 %v4944_v12, %v4946_v22  ;;  %10757 = vpow2.f32 %v4482_v18 }
 0xc2e   :  { %v4706_v44 = vrot.slane %v4705_v6, 1  ;;  %v4947_v10 = vmax.f32 %v4940_v40, %v4942_v2 }
 0xc2f   :  { %v12947_v4 = vpop.eup %10743  ;;  %v4252_v50 = vadd.f32 %v4251_v39, %v4250_v52 }
 0xc30   :  { %v12949_v11 = vpop.eup %10745  ;;  %v4484_v36 = vsel %vm512_vm4, %v12947_v4, 0.0  ;;  %v4707_v62 = vmax.f32 %v4705_v6, %v4706_v44  ;;  %v4949_v56 = vmax.f32 %v4947_v10, %v4948_v58 }
 0xc31   :  { %v12953_v28 = vpop.eup %10747  ;;  %v4253_v53 = vrot.slane %v4252_v50, 2  ;;  %v4485_v1 = vsel %vm512_vm4, %v12949_v11, 0.0 }
 0xc32   :  { %v12957_v9 = vpop.eup %10749  ;;  %v4486_v24 = vadd.f32 %v4485_v1, %v4484_v36  ;;  %v4708_v63 = vsub.f32 %v12845_v35, %v4707_v62  ;;  %v4709_v25 = vsub.f32 %v12849_v3, %v4707_v62  ;;  %v4487_v34 = vsel %vm512_vm4, %v12953_v28, 0.0 }
 0xc33   :  { %v4254_v61 = vadd.f32 %v4253_v53, %v4252_v50  ;;  %v4710_v18 = vsub.f32 %v12843_v49, %v4707_v62  ;;  %v4711_v33 = vsub.f32 %v12847_v13, %v4707_v62  ;;  %v12965_v59 = vpop.eup %10751  ;;  %v4712_v0 = vsub.f32 %v12857_v8, %v4707_v62 }
 0xc34   :  { %v4488_v16 = vadd.f32 %v4487_v34, %v4486_v24  ;;  %v4713_v14 = vsub.f32 %v12869_v5, %v4707_v62  ;;  %v4489_v35 = vsel %vm512_vm4, %v12957_v9, 0.0  ;;  %v4714_v3 = vsub.f32 %v12851_v43, %v4707_v62 }
 0xc35   :  { %v4255_v21 = vrot.slane %v4254_v61, 1  ;;  %v4715_v38 = vsub.f32 %v12863_v54, %v4707_v62  ;;  %v12973_v47 = vpop.eup %10753  ;;  %v4716_v12 = vmul.f32 1.442695, %v4708_v63  ;;  %v4718_v13 = vmul.f32 1.442695, %v4709_v25 }
 0xc36   :  { %v4490_v49 = vadd.f32 %v4489_v35, %v4488_v16  ;;  %v4491_v52 = vsel %vm512_vm4, %v12965_v59, 0.0  ;;  %v4720_v8 = vmul.f32 1.442695, %v4710_v18  ;;  %v12977_v23 = vpop.eup %10755  ;;  %v4722_v46 = vmul.f32 1.442695, %v4711_v33 }
 0xc37   :  { %v4256_v40 = vadd.f32 %v4255_v21, %v4254_v61  ;;  %10759 = vpow2.f32 %v4716_v12  ;;  %v4493_v43 = vsel %vm512_vm4, %v12973_v47, 0.0  ;;  %v4724_v54 = vmul.f32 1.442695, %v4712_v0  ;;  %v12981_v6 = vpop.eup %10757 }
 0xc38   :  { %v4492_v5 = vadd.f32 %v4491_v52, %v4490_v49  ;;  %v4950_v42 = vrot.slane %v4949_v56, 4  ;;  %v4726_v2 = vmul.f32 1.442695, %v4713_v14  ;;  %v4495_v39 = vsel %vm512_vm4, %v12977_v23, 0.0 }
 0xc39   :  { %10761 = vrcp.f32 %v4256_v40  ;;  %v4728_v44 = vmul.f32 1.442695, %v4714_v3  ;;  %v4497_v50 = vsel %vm512_vm4, %v12981_v6, 0.0  ;;  %v4730_v53 = vmul.f32 1.442695, %v4715_v38 }
 0xc3a   :  { %v4494_v22 = vadd.f32 %v4493_v43, %v4492_v5  ;;  %10763 = vpow2.f32 %v4718_v13  ;;  %v4951_v58 = vmax.f32 %v4949_v56, %v4950_v42 }
 0xc3b   :  { %10765 = vpow2.f32 %v4720_v8 }
 0xc3c   :  { %v4496_v10 = vadd.f32 %v4495_v39, %v4494_v22  ;;  %10767 = vpow2.f32 %v4722_v46  ;;  %v4952_v36 = vrot.slane %v4951_v58, 2 }
 0xc3d   :  { %10769 = vpow2.f32 %v4724_v54 }
 0xc3e   :  { %v4498_v62 = vadd.f32 %v4497_v50, %v4496_v10  ;;  %10771 = vpow2.f32 %v4726_v2  ;;  %v4953_v1 = vmax.f32 %v4951_v58, %v4952_v36 }
 0xc3f   :  { %10773 = vpow2.f32 %v4728_v44 }
 0xc40   :  { %v4499_v24 = vrot.slane %v4498_v62, 4  ;;  %v4954_v63 = vrot.slane %v4953_v1, 1  ;;  %10775 = vpow2.f32 %v4730_v53 }
 0xc41   :  { %v12987_v25 = vpop.eup %10759 }
 0xc42   :  { %v4500_v61 = vadd.f32 %v4499_v24, %v4498_v62  ;;  %v4732_v56 = vsel %vm512_vm4, %v12987_v25, 0.0  ;;  %v4955_v18 = vmax.f32 %v4953_v1, %v4954_v63 }
 0xc43   :  { %v10762_v34 = vpop.eup %10761 }
 0xc44   :  { %v12991_v33 = vpop.eup %10763  ;;  %v4501_v16 = vrot.slane %v4500_v61, 2  ;;  %v4258_v0 = vmul.f32 %v10762_v34, %v12875_v41  ;;  %v4259_v14 = vmul.f32 %v10762_v34, %v12877_v31  ;;  %v4260_v21 = vmul.f32 %v10762_v34, %v12881_v32 }
 0xc45   :  { %v12996_v35 = vpop.eup %10765  ;;  %v4733_v3 = vsel %vm512_vm4, %v12991_v33, 0.0  ;;  %v4956_v38 = vsub.f32 %v12896_v27, %v4955_v18  ;;  %v4957_v49 = vsub.f32 %v12911_v48, %v4955_v18  ;;  %v4958_v12 = vsub.f32 %v12887_v15, %v4955_v18 }
 0xc46   :  { %v13003_v13 = vpop.eup %10767  ;;  %v4502_v40 = vadd.f32 %v4501_v16, %v4500_v61  ;;  %v4734_v52 = vadd.f32 %v4733_v3, %v4732_v56  ;;  %v4959_v41 = vsub.f32 %v12902_v51, %v4955_v18  ;;  %v4735_v32 = vsel %vm512_vm4, %v12996_v35, 0.0 }
 0xc47   :  { %v13006_v31 = vpop.eup %10769  ;;  %v4960_v8 = vsub.f32 %v12929_v60, %v4955_v18  ;;  %v4961_v5 = vsub.f32 %v12939_v17, %v4955_v18  ;;  %v4962_v27 = vsub.f32 %v12923_v7, %v4955_v18  ;;  %v4963_v43 = vsub.f32 %v12937_v55, %v4955_v18 }
 0xc48   :  { %v13013_v48 = vpop.eup %10771  ;;  %v4503_v15 = vrot.slane %v4502_v40, 1  ;;  %v4736_v46 = vadd.f32 %v4735_v32, %v4734_v52  ;;  %v4737_v51 = vsel %vm512_vm4, %v13003_v13, 0.0  ;;  %v4964_v42 = vmul.f32 1.442695, %v4956_v38 }
 0xc49   :  { %v13016_v54 = vpop.eup %10773  ;;  %v4966_v22 = vmul.f32 1.442695, %v4957_v49  ;;  %v4266_v2 = vpack.c.bf16 %v4259_v14, %v4258_v0  ;;  %v4968_v44 = vmul.f32 1.442695, %v4958_v12  ;;  %v4739_v7 = vsel %vm512_vm4, %v13006_v31, 0.0 }
 0xc4a   :  { %v4504_v39 = vadd.f32 %v4503_v15, %v4502_v40  ;;  %v4738_v60 = vadd.f32 %v4737_v51, %v4736_v46  ;;  %10777 = vpow2.f32 %v4964_v42  ;;  %v4970_v17 = vmul.f32 1.442695, %v4959_v41  ;;  %v13027_v50 = vpop.eup %10775 }
 0xc4b   :  { %9664 = vmatpush3.bf16.msra.mxu0 %v4266_v2  ;;  %v4741_v55 = vsel %vm512_vm4, %v13013_v48, 0.0  ;;  %v4743_v10 = vsel %vm512_vm4, %v13016_v54, 0.0  ;;  %v4972_v36 = vmul.f32 1.442695, %v4960_v8  ;;  %v4261_v62 = vmul.f32 %v10762_v34, %v12885_v30  ;;  %v4272_v2 = vpop.permute.xlu0 %4271 }
 0xc4c   :  { %10779 = vrcp.f32 %v4504_v39  ;;  %v4740_v58 = vadd.f32 %v4739_v7, %v4738_v60  ;;  %9665 = vmatprep.subr.bf16.mxu0 %v14565_v19  ;;  %v4262_v53 = vmul.f32 %v10762_v34, %v12889_v57  ;;  %v4263_v24 = vmul.f32 %v10762_v34, %v12898_v20 }
 0xc4d   :  { %10781 = vpow2.f32 %v4966_v22  ;;  %v4264_v63 = vmul.f32 %v10762_v34, %v12904_v26  ;;  %v4974_v61 = vmul.f32 1.442695, %v4961_v5  ;;  %v4267_v56 = vpack.c.bf16 %v4261_v62, %v4260_v21 }
 0xc4e   :  { %v4742_v1 = vadd.f32 %v4741_v55, %v4740_v58  ;;  %10783 = vpow2.f32 %v4968_v44  ;;  %v4265_v18 = vmul.f32 %v10762_v34, %v12913_v45  ;;  %v4268_v0 = vpack.c.bf16 %v4263_v24, %v4262_v53 }
 0xc4f   :  { %10785 = vpow2.f32 %v4970_v17  ;;  %v4745_v14 = vsel %vm512_vm4, %v13027_v50, 0.0  ;;  %v4976_v30 = vmul.f32 1.442695, %v4962_v27  ;;  %9666 = vmatpush3.bf16.msra.mxu0 %v4267_v56  ;;  %v4978_v38 = vmul.f32 1.442695, %v4963_v43 }
 0xc50   :  { %v4744_v16 = vadd.f32 %v4743_v10, %v4742_v1  ;;  %10787 = vpow2.f32 %v4972_v36  ;;  %v4269_v57 = vpack.c.bf16 %v4265_v18, %v4264_v63  ;;  %9667 = vmatprep.subr.bf16.mxu0 %v14565_v19 }
 0xc51   :  { %10789 = vpow2.f32 %v4974_v61 }
 0xc52   :  { %v4746_v3 = vadd.f32 %v4745_v14, %v4744_v16  ;;  %10791 = vpow2.f32 %v4976_v30 }
 0xc53   :  { %9668 = vmatpush3.bf16.msra.mxu0 %v4268_v0  ;;  %10793 = vpow2.f32 %v4978_v38  ;;  %v4520_v0 = vpop.permute.xlu1 %4519 }
 0xc54   :  { %v4747_v20 = vrot.slane %v4746_v3, 4  ;;  %v13037_v26 = vpop.eup %10777  ;;  %9669 = vmatprep.subr.bf16.mxu0 %v14565_v19 }
 0xc55   :  { %v4980_v21 = vsel %vm512_vm4, %v13037_v26, 0.0 }
 0xc56   :  { %v10780_v45 = vpop.eup %10779  ;;  %v4748_v34 = vadd.f32 %v4747_v20, %v4746_v3 }
 0xc57   :  { %v13042_v49 = vpop.eup %10781  ;;  %v4506_v12 = vmul.f32 %v10780_v45, %v12947_v4  ;;  %v4507_v40 = vmul.f32 %v10780_v45, %v12949_v11  ;;  %v4508_v52 = vmul.f32 %v10780_v45, %v12953_v28  ;;  %v4509_v41 = vmul.f32 %v10780_v45, %v12957_v9  ;;  %9670 = vmatpush3.bf16.msra.mxu0 %v4269_v57 }
 0xc58   :  { %v13048_v32 = vpop.eup %10783  ;;  %v4749_v8 = vrot.slane %v4748_v34, 2  ;;  %v4981_v5 = vsel %vm512_vm4, %v13042_v49, 0.0  ;;  %v4510_v27 = vmul.f32 %v10780_v45, %v12965_v59  ;;  %v4511_v15 = vmul.f32 %v10780_v45, %v12973_v47  ;;  %9685 = vmatprep.subr.bf16.mxu0 %v14565_v19 }
 0xc59   :  { %v13054_v46 = vpop.eup %10785  ;;  %v4982_v43 = vadd.f32 %v4981_v5, %v4980_v21  ;;  %v4514_v4 = vpack.c.bf16 %v4507_v40, %v4506_v12  ;;  %v4515_v11 = vpack.c.bf16 %v4509_v41, %v4508_v52  ;;  %v4983_v28 = vsel %vm512_vm4, %v13048_v32, 0.0  ;;  %v4768_v41 = vpop.permute.xlu0 %4767 }
 0xc5a   :  { %v4750_v51 = vadd.f32 %v4749_v8, %v4748_v34  ;;  %v4516_v9 = vpack.c.bf16 %v4511_v15, %v4510_v27  ;;  %v4512_v42 = vmul.f32 %v10780_v45, %v12977_v23  ;;  %v13060_v22 = vpop.eup %10787  ;;  %v4513_v47 = vmul.f32 %v10780_v45, %v12981_v6  ;;  %9672 = vmatmul.mubr.msk.bf16.vlgmr.msra.gmra.mrb[104].mxu0 %vm512_vm4, %v4272_v2 }
 0xc5b   :  { %v4984_v59 = vadd.f32 %v4983_v28, %v4982_v43  ;;  %v4985_v60 = vsel %vm512_vm4, %v13054_v46, 0.0  ;;  %v13066_v44 = vpop.eup %10789  ;;  %9686 = vmatpush3.bf16.msra.mxu0 %v4514_v4  ;;  %9693 = vmatprep.mubr.msk.bf16.mxu0 %vm10953_vm3, %v14565_v19  ;;  %v4987_v58 = vsel %vm512_vm4, %v13060_v22, 0.0 }
 0xc5c   :  { %v4751_v39 = vrot.slane %v4750_v51, 1  ;;  %v4517_v17 = vpack.c.bf16 %v4513_v47, %v4512_v42  ;;  %9687 = vmatprep.subr.bf16.mxu0 %v14565_v19  ;;  %v10792_v6 = vpop.eup %10791  ;;  %v4989_v36 = vsel %vm512_vm4, %v13066_v44, 0.0 }
 0xc5d   :  { %v4986_v7 = vadd.f32 %v4985_v60, %v4984_v59  ;;  %v10794_v10 = vpop.eup %10793  ;;  %v4991_v53 = vsel %vm512_vm4, %v10792_v6, 0.0 }
 0xc5e   :  { %v4752_v23 = vadd.f32 %v4751_v39, %v4750_v51  ;;  %v4993_v24 = vsel %vm512_vm4, %v10794_v10, 0.0 }
 0xc5f   :  { %v4988_v55 = vadd.f32 %v4987_v58, %v4986_v7  ;;  %9688 = vmatpush3.bf16.msra.mxu0 %v4515_v11 }
 0xc60   :  { %10795 = vrcp.f32 %v4752_v23  ;;  %9689 = vmatprep.subr.bf16.mxu0 %v14565_v19 }
 0xc61   :  { %v4990_v62 = vadd.f32 %v4989_v36, %v4988_v55 }
 0xc63   :  { %v4992_v1 = vadd.f32 %v4991_v53, %v4990_v62  ;;  %9690 = vmatpush3.bf16.msra.mxu0 %v4516_v9 }
 0xc64   :  { %9691 = vmatprep.subr.bf16.mxu0 %v14565_v19 }
 0xc65   :  { %v4994_v63 = vadd.f32 %v4993_v24, %v4992_v1 }
 0xc67   :  { %v4995_v61 = vrot.slane %v4994_v63, 4  ;;  %9692 = vmatpush3.bf16.msra.mxu0 %v4517_v17 }
 0xc68   :  { %9707 = vmatprep.subr.bf16.mxu0 %v14565_v19 }
 0xc69   :  { %v4996_v56 = vadd.f32 %v4995_v61, %v4994_v63  ;;  %v8767_v63 = vld [vmem:[%s14506_s8 + $0x20] sm:$0xff]  ;;  %v8769_v61 = vld [vmem:[%s14506_s8 + $0x30] sm:$0xff] }
 0xc6a   :  { %v10796_v18 = vpop.eup %10795  ;;  %9694 = vmatmul.mubr.msk.bf16.vlgmr.msra.gmra.mrb[108].mxu0 %vm512_vm4, %v4520_v0 }
 0xc6b   :  { %v4997_v16 = vrot.slane %v4996_v56, 2  ;;  %v4754_v14 = vmul.f32 %v10796_v18, %v12987_v25  ;;  %v4755_v30 = vmul.f32 %v10796_v18, %v12991_v33  ;;  %v4756_v57 = vmul.f32 %v10796_v18, %v12996_v35  ;;  %9715 = vmatprep.mubr.msk.bf16.mxu0 %vm10953_vm3, %v14565_v19 }
 0xc6c   :  { %v4757_v3 = vmul.f32 %v10796_v18, %v13003_v13  ;;  %v4758_v38 = vmul.f32 %v10796_v18, %v13006_v31  ;;  %v4759_v20 = vmul.f32 %v10796_v18, %v13013_v48  ;;  %v4760_v45 = vmul.f32 %v10796_v18, %v13016_v54 }
 0xc6d   :  { %v4998_v34 = vadd.f32 %v4997_v16, %v4996_v56  ;;  %v4762_v21 = vpack.c.bf16 %v4755_v30, %v4754_v14  ;;  %v4761_v12 = vmul.f32 %v10796_v18, %v13027_v50  ;;  %v8775_v56 = vld [vmem:[%s14507_s9 + $0x40] sm:$0xff]  ;;  %v8777_v30 = vld [vmem:[%s14507_s9 + $0x50] sm:$0xff] }
 0xc6e   :  { %v4763_v25 = vpack.c.bf16 %v4757_v3, %v4756_v57  ;;  %v4764_v33 = vpack.c.bf16 %v4759_v20, %v4758_v38  ;;  %v8779_v18 = vld [vmem:[%s14508_s10 + $0x40] sm:$0xff]  ;;  %v8781_v3 = vld [vmem:[%s14508_s10 + $0x50] sm:$0xff] }
 0xc6f   :  { %v4999_v35 = vrot.slane %v4998_v34, 1  ;;  %9708 = vmatpush3.bf16.msra.mxu0 %v4762_v21  ;;  %v4765_v40 = vpack.c.bf16 %v4761_v12, %v4760_v45  ;;  %v8791_v38 = vld [vmem:[%s14509_s12 + $0x40] sm:$0xff]  ;;  %v8793_v20 = vld [vmem:[%s14509_s12 + $0x50] sm:$0xff] }
 0xc70   :  { %9709 = vmatprep.subr.bf16.mxu0 %v14565_v19  ;;  %v10479_v45 = vld [vmem:[%s14505_s7 + $0x10] sm:$0xff]  }
 0xc71   :  { %v5000_v13 = vadd.f32 %v4999_v35, %v4998_v34  ;;  %9745 = vmatprep.mubr.msk.bf16.mxu1 %vm224_vm0, %v10479_v45  ;;  %v8795_v34 = vld [vmem:[%s14509_s12 + $0x60] sm:$0xff] }
 0xc73   :  { %10797 = vrcp.f32 %v5000_v13  ;;  %9710 = vmatpush3.bf16.msra.mxu0 %v4763_v25  ;;  %v8768_v13 = vld [vmem:[%s14506_s8 + $0x28] sm:$0xff] }
 0xc74   :  { %9711 = vmatprep.subr.bf16.mxu0 %v14565_v19 }
 0xc76   :  { %v13094_v31 = vpop.f32.mrb[88].mxu0 }
 0xc77   :  { %9712 = vmatpush3.bf16.msra.mxu0 %v4764_v33  ;;  %v9585_v48 = vpop.f32.mrb[89].mxu0 }
 0xc78   :  { %9713 = vmatprep.subr.bf16.mxu0 %v14565_v19  ;;  %v3345_v54 = vpop.f32.mrb[90].mxu0  ;;  %v8770_v48 = vld [vmem:[%s14506_s8 + $0x38] sm:$0xff] }
 0xc79   :  { %v9586_v50 = vpop.f32.mrb[91].mxu0  ;;  %v8776_v54 = vld [vmem:[%s14507_s9 + $0x48] sm:$0xff] }
 0xc7a   :  { %v8780_v50 = vld [vmem:[%s14508_s10 + $0x48] sm:$0xff] }
 0xc7b   :  { %9714 = vmatpush3.bf16.msra.mxu0 %v4765_v40  ;;  %v8797_v40 = vld [vmem:[%s14509_s12 + $0x70] sm:$0xff] }
 0xc7c   :  { %9729 = vmatprep.subr.bf16.mxu0 %v14565_v19 }
 0xc7d   :  { %v10798_v52 = vpop.eup %10797 }
 0xc7e   :  { %9716 = vmatmul.mubr.msk.bf16.vlgmr.msra.gmra.mrb[112].mxu0 %vm512_vm4, %v4768_v41  ;;  %v5002_v8 = vmul.f32 %v10798_v52, %v13037_v26  ;;  %v5003_v5 = vmul.f32 %v10798_v52, %v13042_v49  ;;  %v5004_v27 = vmul.f32 %v10798_v52, %v13048_v32  ;;  %v5005_v15 = vmul.f32 %v10798_v52, %v13054_v46  ;;  %v8782_v41 = vld [vmem:[%s14508_s10 + $0x58] sm:$0xff] }
 0xc7f   :  { %v5006_v43 = vmul.f32 %v10798_v52, %v13060_v22  ;;  %v5007_v4 = vmul.f32 %v10798_v52, %v13066_v44  ;;  %v5008_v11 = vmul.f32 %v10798_v52, %v10792_v6  ;;  %v5009_v51 = vmul.f32 %v10798_v52, %v10794_v10  ;;  %9737 = vmatprep.mubr.msk.bf16.mxu0 %vm10953_vm3, %v14565_v19  ;;  %v5016_v22 = vpop.permute.xlu1 %5015  ;;  %v8778_v52 = vld [vmem:[%s14507_s9 + $0x58] sm:$0xff] }
 0xc80   :  { %v5010_v28 = vpack.c.bf16 %v5003_v5, %v5002_v8  ;;  %v5011_v9 = vpack.c.bf16 %v5005_v15, %v5004_v27  ;;  %v8792_v8 = vld [vmem:[%s14509_s12 + $0x48] sm:$0xff]  ;;  %v8794_v5 = vld [vmem:[%s14509_s12 + $0x58] sm:$0xff] }
 0xc81   :  { %v5012_v42 = vpack.c.bf16 %v5007_v4, %v5006_v43  ;;  %v5013_v59 = vpack.c.bf16 %v5009_v51, %v5008_v11  ;;  %v8796_v27 = vld [vmem:[%s14509_s12 + $0x68] sm:$0xff]  ;;  %v8798_v15 = vld [vmem:[%s14509_s12 + $0x78] sm:$0xff] }
 0xc82   :  { %9730 = vmatpush3.bf16.msra.mxu0 %v5010_v28 }
 0xc83   :  { %9731 = vmatprep.subr.bf16.mxu0 %v14565_v19 }
 0xc86   :  { %9732 = vmatpush3.bf16.msra.mxu0 %v5011_v9  ;;  %v13108_v26 = vpop.f32.mrb[92].mxu0 }
 0xc87   :  { %9733 = vmatprep.subr.bf16.mxu0 %v14565_v19  ;;  %v9607_v49 = vpop.f32.mrb[93].mxu0 }
 0xc88   :  { %v3585_v32 = vpop.f32.mrb[94].mxu0 }
 0xc89   :  { %v9608_v46 = vpop.f32.mrb[95].mxu0 }
 0xc8a   :  { %9734 = vmatpush3.bf16.msra.mxu0 %v5012_v42 }
 0xc8b   :  { %9735 = vmatprep.subr.bf16.mxu0 %v14565_v19 }
 0xc8e   :  { %9736 = vmatpush3.bf16.msra.mxu0 %v5013_v59 }
 0xc91   :  { %9738 = vmatmul.mubr.msk.bf16.vlgmr.msra.gmra.mrb[116].mxu0 %vm512_vm4, %v5016_v22 }
 0xc9a   :  { %v13112_v2 = vpop.f32.mrb[96].mxu0 }
 0xc9b   :  { %v9629_v47 = vpop.f32.mrb[97].mxu0 }
 0xc9c   :  { %v3825_v39 = vpop.f32.mrb[98].mxu0  ;;  %v157_v47 = vld [vmem:[%s14514_s2 + $0x8] sm:$0xff] }
 0xc9d   :  { %v9630_v60 = vpop.f32.mrb[99].mxu0  ;;  %v158_v39 = vld [vmem:[%s14514_s2 + $0x10] sm:$0xff] }
 0xc9e   :  { %v159_v60 = vld [vmem:[%s14514_s2 + $0x18] sm:$0xff] }
 0xcad   :  { %v13114_v44 = vpop.f32.mrb[100].mxu0 }
 0xcae   :  { %v9651_v7 = vpop.f32.mrb[101].mxu0 }
 0xcaf   :  { %v4065_v17 = vpop.f32.mrb[102].mxu0  ;;  %v161_v7 = vld [vmem:[%s14514_s2 + $0x28] sm:$0xff] }
 0xcb0   :  { %v9652_v23 = vpop.f32.mrb[103].mxu0  ;;  %v162_v17 = vld [vmem:[%s14514_s2 + $0x30] sm:$0xff] }
 0xcb1   :  { %v163_v23 = vld [vmem:[%s14514_s2 + $0x38] sm:$0xff] }
 0xd2d   :  { %v4310_v58 = vpop.f32.mrb[104].mxu0 }
 0xd2e   :  { %v9673_v6 = vpop.f32.mrb[105].mxu0 }
 0xd2f   :  { %v4313_v55 = vpop.f32.mrb[106].mxu0  ;;  %v165_v6 = vld [vmem:[%s14514_s2 + $0x48] sm:$0xff] }
 0xd30   :  { %v9674_v10 = vpop.f32.mrb[107].mxu0  ;;  %v166_v55 = vld [vmem:[%s14514_s2 + $0x50] sm:$0xff] }
 0xd3d   :  { %v4558_v36 = vpop.f32.mrb[108].mxu0 }
 0xd3e   :  { %v10303_v62 = vpack.i.bf16 %v4558_v36, %v4310_v58  ;;  %v9695_v53 = vpop.f32.mrb[109].mxu0  ;;  %v164_v58 = vld [vmem:[%s14514_s2 + $0x40] sm:$0xff] }
 0xd3f   :  { %v4561_v1 = vpop.f32.mrb[110].mxu0 }
 0xd40   :  { %10304 = vrot.lane.b32.xlu0 %v10303_v62, %s10951_s20  ;;  %v9696_v24 = vpop.f32.mrb[111].mxu0 }
 0xd41   :  { %v167_v24 = vld [vmem:[%s14514_s2 + $0x58] sm:$0xff] }
 0xd44   :  { %5094 = vperm.xlu0 %10165, %v8767_v63  }
 0xd48   :  { %5104 = vperm.xlu0 %10165, %v8769_v61  }
 0xd4c   :  { %5223 = vperm.xlu0 %10165, %v8775_v56  }
 0xd50   :  { %5247 = vperm.xlu0 %10165, %v8779_v18  }
 0xd51   :  { %v4806_v16 = vpop.f32.mrb[112].mxu0 }
 0xd52   :  { %v9717_v0 = vpop.f32.mrb[113].mxu0 }
 0xd53   :  { %v4809_v14 = vpop.f32.mrb[114].mxu0 }
 0xd54   :  { %v9718_v57 = vpop.f32.mrb[115].mxu0  ;;  %5233 = vperm.xlu0 %10165, %v8777_v30   ;;  %v168_v14 = vld [vmem:[%s14514_s2 + $0x60] sm:$0xff] }
 0xd58   :  { %5257 = vperm.xlu0 %10165, %v8781_v3  }
 0xd5c   :  { %5291 = vperm.xlu0 %10165, %v8791_v38  }
 0xd60   :  { %5301 = vperm.xlu0 %10165, %v8793_v20   ;;  %v169_v20 = vld [vmem:[%s14514_s2 + $0x68] sm:$0xff] }
 0xd64   :  { %v5054_v21 = vpop.f32.mrb[116].mxu0  ;;  %5311 = vperm.xlu0 %10165, %v8795_v34  }
 0xd65   :  { %v10308_v12 = vpack.i.bf16 %v5054_v21, %v4806_v16  ;;  %v9739_v25 = vpop.f32.mrb[117].mxu0  ;;  %v170_v21 = vld [vmem:[%s14514_s2 + $0x70] sm:$0xff] }
 0xd66   :  { %v5057_v33 = vpop.f32.mrb[118].mxu0 }
 0xd67   :  { %10309 = vrot.lane.b32.xlu1 %v10308_v12, %s10951_s20  ;;  %v9740_v35 = vpop.f32.mrb[119].mxu0  ;;  %v171_v33 = vld [vmem:[%s14514_s2 + $0x78] sm:$0xff] }
 0xd68   :  { %5321 = vperm.xlu0 %10165, %v8797_v40  }
 0xd6b   :  { %5099 = vperm.xlu1 %10166, %v8768_v13  }
 0xd6f   :  { %5109 = vperm.xlu1 %10166, %v8770_v48  }
 0xd73   :  { %5228 = vperm.xlu1 %10166, %v8776_v54  }
 0xd77   :  { %5252 = vperm.xlu1 %10166, %v8780_v50  }
 0xd7b   :  { %5238 = vperm.xlu1 %10166, %v8778_v52  }
 0xd7f   :  { %5262 = vperm.xlu1 %10166, %v8782_v41  }
 0xd83   :  { %5296 = vperm.xlu1 %10166, %v8792_v8  }
 0xd87   :  { %5306 = vperm.xlu1 %10166, %v8794_v5  }
 0xd8b   :  { %5316 = vperm.xlu1 %10166, %v8796_v27  }
 0xd8f   :  { %5326 = vperm.xlu1 %10166, %v8798_v15  }
 0xdb2   :  { %v10305_v43 = vpop.permute.xlu0 %10304 }
 0xdb3   :  { %v10307_v4 = vunpack.i.h.bf16 %v10305_v43  ;;  %v10306_v11 = vunpack.i.l.bf16 %v10305_v43 }
 0xdb5   :  { %v5076_v51 = vsel %vm512_vm4, %v13094_v31, %v10306_v11  ;;  %v5077_v28 = vsel %vm512_vm4, %v13108_v26, %v10307_v4  ;;  %v10480_v31 = vld [vmem:[%s14505_s7 + $0x18] sm:$0xff]   ;;  %v10481_v26 = vld [vmem:[%s14511_s11 + $0x20] sm:$0xff]  }
 0xdb6   :  { %v5085_v9 = vpack.c.bf16 %v5077_v28, %v5076_v51  ;;  %9753 = vmatprep.mubr.msk.bf16.mxu0 %vm224_vm0, %v10481_v26 }
 0xdb8   :  { %9741 = vmatprep.subr.bf16.mxu1 %v5085_v9 }
 0xdb9   :  { %9742 = vmatpush3.bf16.msra.mxu1 %v5085_v9 }
 0xdc3   :  { %v5095_v10 = vpop.permute.xlu0 %5094 }
 0xdc7   :  { %v5105_v18 = vpop.permute.xlu0 %5104 }
 0xdd9   :  { %v10310_v42 = vpop.permute.xlu1 %10309 }
 0xdda   :  { %v10312_v59 = vunpack.i.h.bf16 %v10310_v42  ;;  %v10311_v49 = vunpack.i.l.bf16 %v10310_v42 }
 0xddc   :  { %v5078_v32 = vsel %vm512_vm4, %v13112_v2, %v10311_v49  ;;  %v5079_v46 = vsel %vm512_vm4, %v13114_v44, %v10312_v59  ;;  %v156_v2 = vld [vmem:[%s14514_s2] sm:$0xff]  ;;  %v5224_v49 = vpop.permute.xlu0 %5223 }
 0xddd   :  { %v5086_v22 = vpack.c.bf16 %v5079_v46, %v5078_v32  ;;  %172 = vxpose.xlu0.b32.start [1/16] (narrow) %v156_v2, 32  ;;  %v160_v44 = vld [vmem:[%s14514_s2 + $0x20] sm:$0xff] }
 0xddf   :  { %9743 = vmatprep.subr.bf16.mxu1 %v5086_v22 }
 0xde0   :  { %9744 = vmatpush3.bf16.msra.mxu1 %v5086_v22 }
 0xde1   :  { %173 = vxpose.xlu0.b32.cont [2/16] (narrow) %v157_v47, 32 }
 0xde3   :  { %9746 = vmatmul.mubr.msk.bf16.vlgmr.msra.gmra.mrb[112].mxu1 %vm224_vm0, %v10480_v31  ;;  %v5248_v31 = vpop.permute.xlu0 %5247 }
 0xde5   :  { %174 = vxpose.xlu0.b32.cont [3/16] (narrow) %v158_v39, 32 }
 0xde7   :  { %v5234_v2 = vpop.permute.xlu0 %5233 }
 0xde9   :  { %175 = vxpose.xlu0.b32.cont [4/16] (narrow) %v159_v60, 32 }
 0xdea   :  { %v5100_v62 = vpop.permute.xlu1 %5099 }
 0xded   :  { %176 = vxpose.xlu0.b32.cont [5/16] (narrow) %v160_v44, 32 }
 0xdee   :  { %v5110_v30 = vpop.permute.xlu1 %5109 }
 0xdf1   :  { %177 = vxpose.xlu0.b32.cont [6/16] (narrow) %v161_v7, 32 }
 0xdf2   :  { %v5229_v32 = vpop.permute.xlu1 %5228 }
 0xdf5   :  { %178 = vxpose.xlu0.b32.cont [7/16] (narrow) %v162_v17, 32 }
 0xdf6   :  { %v5253_v26 = vpop.permute.xlu1 %5252 }
 0xdf9   :  { %179 = vxpose.xlu0.b32.cont [8/16] (narrow) %v163_v23, 32 }
 0xdfa   :  { %v5239_v47 = vpop.permute.xlu1 %5238 }
 0xdfd   :  { %180 = vxpose.xlu0.b32.cont [9/16] (narrow) %v164_v58, 32 }
 0xe01   :  { %181 = vxpose.xlu0.b32.cont [10/16] (narrow) %v165_v6, 32 }
 0xe05   :  { %182 = vxpose.xlu0.b32.cont [11/16] (narrow) %v166_v55, 32 }
 0xe09   :  { %183 = vxpose.xlu0.b32.cont [12/16] (narrow) %v167_v24, 32 }
 0xe0d   :  { %184 = vxpose.xlu0.b32.cont [13/16] (narrow) %v168_v14, 32  ;;  %v10486_v14 = vld [vmem:[%s14548_s4 + $0x28] sm:$0xff]  }
 0xe11   :  { %185 = vxpose.xlu0.b32.cont [14/16] (narrow) %v169_v20, 32 }
 0xe15   :  { %186 = vxpose.xlu0.b32.cont [15/16] (narrow) %v170_v21, 32 }
 0xe19   :  { %187 = vxpose.xlu0.b32.end [16/16] (narrow) %v171_v33, 32 }
 0xeb6   :  { %v9747_v36 = vpop.f32.mrb[112].mxu1 }
 0xeb7   :  { %v5162_v53 = vpop.f32.mrb[113].mxu1  ;;  %v5171_v16 = vadd.f32 %v9747_v36, %v5105_v18  ;;  %v5263_v36 = vpop.permute.xlu1 %5262  ;;  %v10483_v18 = vld [vmem:[%s14511_s11 + $0x30] sm:$0xff]  }
 0xeb8   :  { %v9748_v1 = vpop.f32.mrb[114].mxu1  ;;  %v5163_v61 = vadd.f32 %v5162_v53, %v5095_v10  ;;  %v5258_v10 = vpop.permute.xlu0 %5257 }
 0xeb9   :  { %v5165_v63 = vpop.f32.mrb[115].mxu1  ;;  %v5174_v57 = vadd.f32 %v9748_v1, %v5110_v30  ;;  %v10487_v30 = vld [vmem:[%s14513_s13 + $0x10] sm:$0xff]  }
 0xeba   :  { %v5166_v56 = vadd.f32 %v5165_v63, %v5100_v62  ;;  %9769 = vmatprep.mubr.msk.bf16.mxu1 %vm512_vm4, %v10487_v30 }
 0xebc   :  { %v5187_v0 = vadd.f32 %v5166_v56, %v5163_v61 }
 0xebe   :  { %v5188_v3 = vadd.f32 %v5187_v0, %v5171_v16  ;;  %v10485_v0 = vld [vmem:[%s14548_s4 + $0x20] sm:$0xff]  }
 0xec0   :  { %v5189_v38 = vadd.f32 %v5188_v3, %v5174_v57 }
 0xec2   :  { %v5190_v45 = vrot.slane %v5189_v38, 4 }
 0xec4   :  { %v5191_v34 = vadd.f32 %v5190_v45, %v5189_v38  ;;  %v5297_v38 = vpop.permute.xlu1 %5296 }
 0xec6   :  { %v5192_v12 = vrot.slane %v5191_v34, 2 }
 0xec8   :  { %v5193_v25 = vadd.f32 %v5192_v12, %v5191_v34  ;;  %v5307_v45 = vpop.permute.xlu1 %5306 }
 0xeca   :  { %v5194_v35 = vrot.slane %v5193_v25, 1 }
 0xecc   :  { %v5195_v40 = vadd.f32 %v5194_v35, %v5193_v25 }
 0xece   :  { %v5196_v13 = vmul.f32 0.03125, %v5195_v40 }
 0xed0   :  { %v5197_v48 = vsub.f32 %v5163_v61, %v5196_v13  ;;  %v5198_v54 = vsub.f32 %v5166_v56, %v5196_v13  ;;  %v5199_v50 = vsub.f32 %v5171_v16, %v5196_v13  ;;  %v5200_v52 = vsub.f32 %v5174_v57, %v5196_v13  ;;  %v10482_v56 = vld [vmem:[%s14511_s11 + $0x28] sm:$0xff]   ;;  %v10484_v16 = vld [vmem:[%s14511_s11 + $0x38] sm:$0xff]   ;;  %v5292_v57 = vpop.permute.xlu0 %5291 }
 0xed2   :  { %v5201_v41 = vmul.f32 %v5197_v48, %v5197_v48  ;;  %v5202_v8 = vmul.f32 %v5198_v54, %v5198_v54  ;;  %v5203_v5 = vmul.f32 %v5199_v50, %v5199_v50  ;;  %v5204_v15 = vmul.f32 %v5200_v52, %v5200_v52 }
 0xed4   :  { %v5205_v27 = vadd.f32 %v5202_v8, %v5201_v41  ;;  %v5302_v3 = vpop.permute.xlu0 %5301 }
 0xed6   :  { %v5206_v43 = vadd.f32 %v5205_v27, %v5203_v5 }
 0xed8   :  { %v5207_v4 = vadd.f32 %v5206_v43, %v5204_v15  ;;  %v5312_v20 = vpop.permute.xlu0 %5311 }
 0xeda   :  { %v5208_v11 = vrot.slane %v5207_v4, 4 }
 0xedc   :  { %v5209_v51 = vadd.f32 %v5208_v11, %v5207_v4  ;;  %v5322_v21 = vpop.permute.xlu0 %5321 }
 0xede   :  { %v5210_v28 = vrot.slane %v5209_v51, 2 }
 0xee0   :  { %v5211_v9 = vadd.f32 %v5210_v28, %v5209_v51  ;;  %v188_v41 = vpop.trf.xlu0 }
 0xee2   :  { %v5212_v42 = vrot.slane %v5211_v9, 1 }
 0xee4   :  { %v5213_v59 = vadd.f32 %v5212_v42, %v5211_v9 }
 0xee6   :  { %v5214_v46 = vmul.f32 0.03125, %v5213_v59 }
 0xee8   :  { %v5215_v22 = vadd.f32 1e-05, %v5214_v46 }
 0xeea   :  { %10799 = vrsqrt.f32 %v5215_v22 }
 0xef4   :  { %v10800_v39 = vpop.eup %10799 }
 0xef5   :  { %v5218_v60 = vmul.f32 %v10800_v39, %v5198_v54  ;;  %v5217_v44 = vmul.f32 %v10800_v39, %v5197_v48  ;;  %v5219_v7 = vmul.f32 %v10800_v39, %v5199_v50  ;;  %v5220_v17 = vmul.f32 %v10800_v39, %v5200_v52  ;;  %v5317_v48 = vpop.permute.xlu1 %5316 }
 0xef7   :  { %v5242_v23 = vmul.f32 %v5229_v32, %v5218_v60  ;;  %v5241_v58 = vmul.f32 %v5224_v49, %v5217_v44  ;;  %v5243_v6 = vmul.f32 %v5234_v2, %v5219_v7  ;;  %v5244_v55 = vmul.f32 %v5239_v47, %v5220_v17  ;;  %v189_v49 = vpop.trf.xlu0  ;;  %v8831_v47 = vld [vmem:[%s14504_s5 + $0x40] sm:$0xff]  ;;  %v8832_v17 = vld [vmem:[%s14504_s5 + $0x48] sm:$0xff] }
 0xef9   :  { %v13246_v62 = vadd.f32 %v5248_v31, %v5241_v58  ;;  %v13248_v53 = vadd.f32 %v5253_v26, %v5242_v23  ;;  %v13250_v1 = vadd.f32 %v5258_v10, %v5243_v6  ;;  %v13252_v24 = vadd.f32 %v5263_v36, %v5244_v55  ;;  %v5327_v51 = vpop.permute.xlu1 %5326 }
 0xefa   :  { %v5713_v36 = vpack.c.bf16 %v189_v49, %v188_v41  ;;  %v8834_v41 = vld [vmem:[%s14504_s5 + $0x58] sm:$0xff] }
 0xefb   :  { %v5278_v63 = vpack.c.bf16 %v13248_v53, %v13246_v62  ;;  %v5279_v61 = vpack.c.bf16 %v13252_v24, %v13250_v1  ;;  %v190_v44 = vpop.trf.xlu0 }
 0xefd   :  { %9749 = vmatprep.subr.bf16.mxu0 %v5278_v63 }
 0xefe   :  { %9750 = vmatpush3.bf16.msra.mxu0 %v5278_v63  ;;  %v10488_v63 = vld [vmem:[%s14513_s13 + $0x18] sm:$0xff]  }
 0xeff   :  { %9751 = vmatprep.subr.bf16.mxu0 %v5279_v61 }
 0xf02   :  { %9752 = vmatpush3.bf16.msra.mxu0 %v5279_v61 }
 0xf03   :  { %9773 = vmatprep.subr.bf16.mxu0 %v12282_v29 }
 0xf05   :  { %9754 = vmatmul.mubr.msk.bf16.vlgmr.msra.gmra.mrb[120].mxu0 %vm224_vm0, %v10482_v56 }
 0xf06   :  { %9774 = vmatpush3.bf16.msra.mxu0 %v12282_v29  ;;  %9757 = vmatprep.mubr.msk.bf16.mxu0 %vm224_vm0, %v10483_v18  ;;  %v191_v18 = vpop.trf.xlu0 }
 0xf07   :  { %9775 = vmatprep.subr.bf16.mxu0 %v12284_v37 }
 0xf0a   :  { %9776 = vmatpush3.bf16.msra.mxu0 %v12284_v37 }
 0xf0d   :  { %9758 = vmatmul.mubr.msk.bf16.gmra.mrb[124].mxu0 %vm224_vm0, %v10484_v16  ;;  %v10489_v16 = vld [vmem:[%s14547_s0 + $0x40] sm:$0xff]  }
 0xf0e   :  { %9777 = vmatprep.mubr.msk.bf16.mxu0 %vm224_vm0, %v10485_v0  ;;  %v5714_v0 = vpack.c.bf16 %v191_v18, %v190_v44 }
 0xf15   :  { %9778 = vmatmul.mubr.msk.bf16.vlgmr.msra.gmra.mrb[128].mxu0 %vm224_vm0, %v10486_v14  ;;  %v10490_v14 = vld [vmem:[%s14547_s0 + $0x48] sm:$0xff]  }
 0xfd8   :  { %v9755_v34 = vpop.f32.mrb[120].mxu0 }
 0xfd9   :  { %v5404_v12 = vadd.f32 %v9755_v34, %v5302_v3  ;;  %v5395_v25 = vpop.f32.mrb[121].mxu0  ;;  %v8850_v34 = vld [vmem:[%s14553_s3 + $0x98] sm:$0xff] }
 0xfda   :  { %v5396_v33 = vadd.f32 %v5395_v25, %v5292_v57  ;;  %v9756_v35 = vpop.f32.mrb[122].mxu0  ;;  %v8848_v25 = vld [vmem:[%s14553_s3 + $0x88] sm:$0xff] }
 0xfdb   :  { %v5407_v40 = vadd.f32 %v9756_v35, %v5307_v45  ;;  %v5398_v13 = vpop.f32.mrb[123].mxu0  ;;  %v5428_v50 = vmax.f32 %v5404_v12, 0.0  ;;  %v8847_v12 = vld [vmem:[%s14553_s3 + $0x80] sm:$0xff] }
 0xfdc   :  { %v5399_v54 = vadd.f32 %v5398_v13, %v5297_v38  ;;  %v5426_v8 = vmax.f32 %v5396_v33, 0.0 }
 0xfdd   :  { %v5429_v52 = vmax.f32 %v5407_v40, 0.0 }
 0xfde   :  { %v5427_v5 = vmax.f32 %v5399_v54, 0.0 }
 0xfdf   :  { %v5440_v27 = vpack.c.bf16 %v5429_v52, %v5428_v50 }
 0xfe0   :  { %v5439_v15 = vpack.c.bf16 %v5427_v5, %v5426_v8  ;;  %v9759_v43 = vpop.f32.mrb[124].mxu0 }
 0xfe1   :  { %v5420_v4 = vadd.f32 %v9759_v43, %v5322_v21  ;;  %v5411_v11 = vpop.f32.mrb[125].mxu0 }
 0xfe2   :  { %v5412_v28 = vadd.f32 %v5411_v11, %v5312_v20  ;;  %v9760_v9 = vpop.f32.mrb[126].mxu0  ;;  %9761 = vmatprep.subr.bf16.mxu1 %v5439_v15  ;;  %v8849_v20 = vld [vmem:[%s14553_s3 + $0x90] sm:$0xff] }
 0xfe3   :  { %v5423_v42 = vadd.f32 %v9760_v9, %v5327_v51  ;;  %v5414_v59 = vpop.f32.mrb[127].mxu0  ;;  %9762 = vmatpush3.bf16.msra.mxu1 %v5439_v15  ;;  %v5432_v46 = vmax.f32 %v5420_v4, 0.0  ;;  %v10492_v15 = vld [vmem:[%s14547_s0 + $0x58] sm:$0xff]  }
 0xfe4   :  { %v5415_v32 = vadd.f32 %v5414_v59, %v5317_v48  ;;  %9763 = vmatprep.subr.bf16.mxu1 %v5440_v27  ;;  %v5430_v31 = vmax.f32 %v5412_v28, 0.0 }
 0xfe5   :  { %v5433_v22 = vmax.f32 %v5423_v42, 0.0 }
 0xfe6   :  { %v5431_v26 = vmax.f32 %v5415_v32, 0.0 }
 0xfe7   :  { %v5442_v2 = vpack.c.bf16 %v5433_v22, %v5432_v46  ;;  %9764 = vmatpush3.bf16.msra.mxu1 %v5440_v27  ;;  %v10491_v27 = vld [vmem:[%s14547_s0 + $0x50] sm:$0xff]  }
 0xfe8   :  { %v5441_v39 = vpack.c.bf16 %v5431_v26, %v5430_v31  ;;  %v13289_v60 = vpop.f32.mrb[128].mxu0  ;;  %v8833_v22 = vld [vmem:[%s14504_s5 + $0x50] sm:$0xff] }
 0xfe9   :  { %v5689_v7 = vpop.f32.mrb[129].mxu0 }
 0xfea   :  { %9765 = vmatprep.subr.bf16.mxu1 %v5441_v39  ;;  %v5690_v23 = vadd.f32 %v8831_v47, %v5689_v7  ;;  %v9780_v58 = vpop.f32.mrb[130].mxu0  ;;  %v5698_v47 = vadd.f32 %v13289_v60, %v8833_v22 }
 0xfeb   :  { %9766 = vmatpush3.bf16.msra.mxu1 %v5441_v39  ;;  %v5692_v6 = vpop.f32.mrb[131].mxu0  ;;  %v5701_v8 = vadd.f32 %v9780_v58, %v8834_v41 }
 0xfec   :  { %9767 = vmatprep.subr.bf16.mxu1 %v5442_v2  ;;  %v5857_v55 = vpack.c.bf16 %v5690_v23, %v5690_v23  ;;  %v5693_v10 = vadd.f32 %v8832_v17, %v5692_v6  ;;  %v13374_v23 = vpack.c.bf16 %v5698_v47, %v5698_v47 }
 0xfed   :  { %v13341_v5 = vpack.c.bf16 %v5701_v8, %v5701_v8 }
 0xfee   :  { %v13297_v61 = vpack.c.bf16 %v5693_v10, %v5693_v10  ;;  %6822 = vrot.lane.b32.xlu1 %v5857_v55, %s10951_s20  ;;  %10049 = vmatprep.subr.msk.bf16.mxu0 %vm443_vm1, %v5857_v55  ;;  %v5871_v56 = vsel %vm443_vm1, %v5857_v55, 0 }
 0xfef   :  { %9768 = vmatpush3.bf16.msra.mxu1 %v5442_v2  ;;  %9794 = vmatpush3.bf16.msra.mxu0 %v5871_v56 }
 0xff0   :  { %9781 = vmatprep.subr.bf16.mxu1 %v5713_v36  ;;  %10050 = vmatprep.subr.msk.bf16.mxu0 %vm443_vm1, %v13297_v61  ;;  %v6111_v58 = vsel %vm443_vm1, %v13297_v61, 0 }
 0xff2   :  { %9770 = vmatmul.mubr.msk.bf16.vlgmr.msra.gmra.mrb[116].mxu1 %vm512_vm4, %v10488_v63  ;;  %7070 = vrot.lane.b32.xlu1 %v13297_v61, %s10951_s20 }
 0xff3   :  { %9782 = vmatpush3.bf16.msra.mxu1 %v5713_v36  ;;  %9785 = vmatprep.mubr.msk.bf16.mxu1 %vm224_vm0, %v10489_v16 }
 0xff4   :  { %9783 = vmatprep.subr.bf16.mxu1 %v5714_v0 }
 0xff7   :  { %9784 = vmatpush3.bf16.msra.mxu1 %v5714_v0 }
 0xff8   :  { %9803 = vmatprep.subr.bf16.mxu1 %v14565_v19 }
 0xffa   :  { %9786 = vmatmul.mubr.msk.bf16.vlgmr.msra.gmra.mrb[120].mxu1 %vm224_vm0, %v10490_v14 }
 0xffb   :  { %9789 = vmatprep.mubr.msk.bf16.mxu1 %vm224_vm0, %v10491_v27 }
0x1002   :  { %9790 = vmatmul.mubr.msk.bf16.gmra.mrb[124].mxu1 %vm224_vm0, %v10492_v15 }
0x1003   :  { %9811 = vmatprep.mubr.msk.bf16.mxu1 %vm10953_vm3, %v14565_v19 }
0x1060   :  { %v13355_v43 = vpop.permute.xlu1 %6822 }
0x1064   :  { %v13357_v4 = vpop.permute.xlu1 %7070 }
0x10c5   :  { %v13316_v30 = vpop.f32.mrb[116].mxu1 }
0x10c6   :  { %v13318_v57 = vpop.f32.mrb[117].mxu1 }
0x10c7   :  { %v13320_v3 = vpop.f32.mrb[118].mxu1 }
0x10c8   :  { %v13322_v38 = vpop.f32.mrb[119].mxu1 }
0x10cd   :  { %v9787_v45 = vpop.f32.mrb[120].mxu1 }
0x10ce   :  { %v5790_v21 = vpop.f32.mrb[121].mxu1  ;;  %v5799_v35 = vadd.f32 %v9787_v45, %v8849_v20 }
0x10cf   :  { %v9788_v33 = vpop.f32.mrb[122].mxu1  ;;  %v5791_v48 = vadd.f32 %v8847_v12, %v5790_v21 }
0x10d0   :  { %v5802_v40 = vadd.f32 %v9788_v33, %v8850_v34  ;;  %v5793_v13 = vpop.f32.mrb[123].mxu1 }
0x10d1   :  { %v5794_v54 = vadd.f32 %v8848_v25, %v5793_v13  ;;  %v6351_v13 = vsel %vm443_vm1, %v13374_v23, 0 }
0x10d2   :  { %v10355_v50 = vpack.i.bf16 %v5802_v40, %v5799_v35 }
0x10d3   :  { %v10402_v52 = vpack.i.bf16 %v5794_v54, %v5791_v48 }
0x10d4   :  { %10314 = vxpose.xlu0.b32.start.end [1/1] (short) (narrow) %v10355_v50, 64 }
0x10d5   :  { %10361 = vxpose.xlu1.b32.start.end [1/1] (short) (narrow) %v10402_v52, 64 }
0x110f   :  { %10403 = vrot.lane.b32.xlu1 %v10402_v52, %s10951_s20 }
0x1119   :  { %10356 = vrot.lane.b32.xlu0 %v10355_v50, %s10951_s20 }
0x111d   :  { %7566 = vrot.lane.b32.xlu0 %v13341_v5, %s10951_s20 }
0x1154   :  { %v13359_v11 = vpop.trf.xlu0 }
0x1155   :  { %v10362_v51 = vpop.trf.xlu1  ;;  %v10316_v50 = vunpack.i.l.bf16 %v13359_v11 }
0x1156   :  { %v10363_v28 = vunpack.i.l.bf16 %v10362_v51  ;;  %v10366_v0 = vunpack.i.h.bf16 %v10362_v51 }
0x1158   :  { %v13361_v9 = vpop.trf.xlu0 }
0x1159   :  { %v10367_v42 = vpop.trf.xlu1  ;;  %v10321_v52 = vunpack.i.l.bf16 %v13361_v9 }
0x115a   :  { %v10368_v59 = vunpack.i.l.bf16 %v10367_v42  ;;  %v10371_v61 = vunpack.i.h.bf16 %v10367_v42 }
0x115b   :  { %v6333_v27 = vpack.c.bf16 %v10321_v52, %v10316_v50 }
0x115c   :  { %v5853_v49 = vpack.c.bf16 %v10368_v59, %v10363_v28  ;;  %v13363_v32 = vpop.trf.xlu0  ;;  %v6093_v34 = vpack.c.bf16 %v10371_v61, %v10366_v0 }
0x115d   :  { %v10372_v46 = vpop.trf.xlu1  ;;  %v10326_v15 = vunpack.i.l.bf16 %v13363_v32 }
0x115e   :  { %9795 = vmatprep.mubr.msk.bf16.mxu0 %vm430_vm2, %v5853_v49  ;;  %v10373_v31 = vunpack.i.l.bf16 %v10372_v46  ;;  %v10376_v21 = vunpack.i.h.bf16 %v10372_v46 }
0x1160   :  { %v13369_v26 = vpop.trf.xlu0 }
0x1161   :  { %v10377_v2 = vpop.trf.xlu1  ;;  %v10331_v51 = vunpack.i.l.bf16 %v13369_v26 }
0x1162   :  { %v10378_v39 = vunpack.i.l.bf16 %v10377_v2  ;;  %v10381_v12 = vunpack.i.h.bf16 %v10377_v2 }
0x1163   :  { %v6334_v49 = vpack.c.bf16 %v10331_v51, %v10326_v15 }
0x1164   :  { %v5854_v44 = vpack.c.bf16 %v10378_v39, %v10373_v31  ;;  %v13372_v7 = vpop.trf.xlu0  ;;  %v6094_v35 = vpack.c.bf16 %v10381_v12, %v10376_v21  ;;  %v6591_v31 = vsel %vm443_vm1, %v13341_v5, 0  ;;  %v10319_v39 = vunpack.i.h.bf16 %v13359_v11 }
0x1165   :  { %v10382_v17 = vpop.trf.xlu1  ;;  %v10336_v28 = vunpack.i.l.bf16 %v13372_v7  ;;  %v6837_v11 = vsel %vm443_vm1, %v13355_v43, 0 }
0x1166   :  { %9796 = vmatmul.mubr.msk.bf16.vlgmr.msra.gmra.mrb[132].mxu0 %vm430_vm2, %v5854_v44  ;;  %v10383_v6 = vunpack.i.l.bf16 %v10382_v17  ;;  %v10386_v25 = vunpack.i.h.bf16 %v10382_v17  ;;  %v10324_v44 = vunpack.i.h.bf16 %v13361_v9 }
0x1167   :  { %9816 = vmatpush3.bf16.msra.mxu0 %v6111_v58 }
0x1168   :  { %10051 = vmatprep.subr.msk.bf16.mxu0 %vm443_vm1, %v13374_v23  ;;  %v13381_v55 = vpop.trf.xlu0  ;;  %v6573_v58 = vpack.c.bf16 %v10324_v44, %v10319_v39 }
0x1169   :  { %v10387_v60 = vpop.trf.xlu1  ;;  %v10341_v42 = vunpack.i.l.bf16 %v13381_v55 }
0x116a   :  { %v10388_v10 = vunpack.i.l.bf16 %v10387_v60  ;;  %v10391_v33 = vunpack.i.h.bf16 %v10387_v60  ;;  %v10339_v60 = vunpack.i.h.bf16 %v13372_v7 }
0x116b   :  { %v6335_v22 = vpack.c.bf16 %v10341_v42, %v10336_v28 }
0x116c   :  { %v5855_v36 = vpack.c.bf16 %v10388_v10, %v10383_v6  ;;  %v13383_v63 = vpop.trf.xlu0  ;;  %v6095_v40 = vpack.c.bf16 %v10391_v33, %v10386_v25  ;;  %v10334_v6 = vunpack.i.h.bf16 %v13369_v26  ;;  %v10344_v10 = vunpack.i.h.bf16 %v13381_v55 }
0x116d   :  { %v10392_v56 = vpop.trf.xlu1  ;;  %v10346_v2 = vunpack.i.l.bf16 %v13383_v63  ;;  %v10349_v9 = vunpack.i.h.bf16 %v13383_v63 }
0x116e   :  { %9799 = vmatprep.mubr.msk.bf16.mxu0 %vm430_vm2, %v5855_v36  ;;  %v10393_v18 = vunpack.i.l.bf16 %v10392_v56  ;;  %v10396_v48 = vunpack.i.h.bf16 %v10392_v56  ;;  %v6575_v56 = vpack.c.bf16 %v10344_v10, %v10339_v60  ;;  %v9791_v10 = vpop.f32.mrb[124].mxu1 }
0x1170   :  { %v13386_v16 = vpop.trf.xlu0 }
0x1171   :  { %v10397_v14 = vpop.trf.xlu1  ;;  %v10351_v47 = vunpack.i.l.bf16 %v13386_v16 }
0x1172   :  { %v10398_v20 = vunpack.i.l.bf16 %v10397_v14  ;;  %v10401_v54 = vunpack.i.h.bf16 %v10397_v14 }
0x1173   :  { %v6336_v17 = vpack.c.bf16 %v10351_v47, %v10346_v2 }
0x1174   :  { %v5856_v45 = vpack.c.bf16 %v10398_v20, %v10393_v18  ;;  %v6096_v8 = vpack.c.bf16 %v10401_v54, %v10396_v48 }
0x1176   :  { %9800 = vmatmul.mubr.msk.bf16.gmra.mrb[136].mxu0 %vm430_vm2, %v5856_v45 }
0x1177   :  { %9817 = vmatprep.mubr.msk.bf16.mxu0 %vm430_vm2, %v6093_v34 }
0x117e   :  { %9818 = vmatmul.mubr.msk.bf16.vlgmr.msra.gmra.mrb[140].mxu0 %vm430_vm2, %v6094_v35 }
0x117f   :  { %9838 = vmatpush3.bf16.msra.mxu0 %v6351_v13  ;;  %9821 = vmatprep.mubr.msk.bf16.mxu0 %vm430_vm2, %v6095_v40 }
0x1180   :  { %10052 = vmatprep.subr.msk.bf16.mxu0 %vm443_vm1, %v13341_v5  ;;  %v10329_v5 = vunpack.i.h.bf16 %v13363_v32  ;;  %v10354_v32 = vunpack.i.h.bf16 %v13386_v16 }
0x1181   :  { %v10404_v41 = vpop.permute.xlu1 %10403 }
0x1182   :  { %10408 = vxpose.xlu1.b32.start.end [1/1] (short) (narrow) %v10404_v41, 64  ;;  %v6574_v36 = vpack.c.bf16 %v10334_v6, %v10329_v5  ;;  %v6576_v26 = vpack.c.bf16 %v10354_v32, %v10349_v9 }
0x1186   :  { %9822 = vmatmul.mubr.msk.bf16.gmra.mrb[144].mxu0 %vm430_vm2, %v6096_v8 }
0x1187   :  { %9839 = vmatprep.mubr.msk.bf16.mxu0 %vm430_vm2, %v6333_v27 }
0x118b   :  { %v10357_v59 = vpop.permute.xlu0 %10356 }
0x118c   :  { %v10358_v46 = vunpack.i.l.bf16 %v10357_v59  ;;  %v10359_v7 = vunpack.i.h.bf16 %v10357_v59 }
0x118e   :  { %7281 = vxpose.xlu0.b32.start.end [1/1] (short) (narrow) %v10358_v46, 64  ;;  %9840 = vmatmul.mubr.msk.bf16.vlgmr.msra.gmra.mrb[148].mxu0 %vm430_vm2, %v6334_v49 }
0x118f   :  { %9860 = vmatpush3.bf16.msra.mxu0 %v6591_v31  ;;  %9843 = vmatprep.mubr.msk.bf16.mxu0 %vm430_vm2, %v6335_v22 }
0x1190   :  { %10053 = vmatprep.subr.msk.bf16.mxu0 %vm443_vm1, %v13355_v43  ;;  %v13431_v43 = vpop.permute.xlu0 %7566 }
0x1196   :  { %9844 = vmatmul.mubr.msk.bf16.gmra.mrb[152].mxu0 %vm430_vm2, %v6336_v17 }
0x1197   :  { %9861 = vmatprep.mubr.msk.bf16.mxu0 %vm430_vm2, %v6573_v58 }
0x119e   :  { %9862 = vmatmul.mubr.msk.bf16.vlgmr.msra.gmra.mrb[156].mxu0 %vm430_vm2, %v6574_v36 }
0x119f   :  { %9882 = vmatpush3.bf16.msra.mxu0 %v6837_v11  ;;  %9865 = vmatprep.mubr.msk.bf16.mxu0 %vm430_vm2, %v6575_v56  ;;  %v5806_v56 = vpop.f32.mrb[125].mxu1  ;;  %v8851_v11 = vld [vmem:[%s14553_s3 + $0xa0] sm:$0xff] }
0x11a0   :  { %10054 = vmatprep.subr.msk.bf16.mxu0 %vm443_vm1, %v13357_v4 }
0x11a6   :  { %9866 = vmatmul.mubr.msk.bf16.gmra.mrb[160].mxu0 %vm430_vm2, %v6576_v26  ;;  %v5807_v26 = vadd.f32 %v8851_v11, %v5806_v56 }
0x11ab   :  { %7529 = vxpose.xlu0.b32.start.end [1/1] (short) (narrow) %v10359_v7, 64  ;;  %v13451_v7 = vpack.c.bf16 %v5807_v26, %v5807_v26 }
0x11bc   :  { %7318 = vrot.lane.b32.xlu1 %v13374_v23, %s10951_s20  ;;  %v7085_v23 = vsel %vm443_vm1, %v13357_v4, 0 }
0x11c0   :  { %6984 = vrot.lane.b32.xlu1 %v13451_v7, %s10951_s20 }
0x1202   :  { %v10409_v55 = vpop.trf.xlu1 }
0x1203   :  { %v10410_v0 = vunpack.i.l.bf16 %v10409_v55  ;;  %v10413_v28 = vunpack.i.h.bf16 %v10409_v55 }
0x1206   :  { %v10414_v18 = vpop.trf.xlu1 }
0x1207   :  { %v10415_v61 = vunpack.i.l.bf16 %v10414_v18  ;;  %v10418_v41 = vunpack.i.h.bf16 %v10414_v18 }
0x1209   :  { %v6817_v63 = vpack.c.bf16 %v10415_v61, %v10410_v0  ;;  %v7065_v59 = vpack.c.bf16 %v10418_v41, %v10413_v28 }
0x120a   :  { %v10419_v14 = vpop.trf.xlu1 }
0x120b   :  { %9883 = vmatprep.mubr.msk.bf16.mxu0 %vm430_vm2, %v6817_v63  ;;  %v10420_v34 = vunpack.i.l.bf16 %v10419_v14  ;;  %v10423_v31 = vunpack.i.h.bf16 %v10419_v14 }
0x120e   :  { %v7297_v16 = vpop.trf.xlu0  ;;  %v10424_v20 = vpop.trf.xlu1 }
0x120f   :  { %v10425_v21 = vunpack.i.l.bf16 %v10424_v20  ;;  %v10428_v4 = vunpack.i.h.bf16 %v10424_v20  ;;  %v7581_v20 = vsel %vm443_vm1, %v13431_v43, 0 }
0x1211   :  { %v6818_v12 = vpack.c.bf16 %v10425_v21, %v10420_v34  ;;  %v7066_v47 = vpack.c.bf16 %v10428_v4, %v10423_v31  ;;  %v9792_v34 = vpop.f32.mrb[126].mxu1 }
0x1212   :  { %v7298_v45 = vpop.trf.xlu0  ;;  %v10429_v25 = vpop.trf.xlu1 }
0x1213   :  { %9884 = vmatmul.mubr.msk.bf16.vlgmr.msra.gmra.mrb[164].mxu0 %vm430_vm2, %v6818_v12  ;;  %v10430_v13 = vunpack.i.l.bf16 %v10429_v25  ;;  %v10433_v2 = vunpack.i.h.bf16 %v10429_v25  ;;  %v7313_v9 = vpack.c.bf16 %v7298_v45, %v7297_v16  ;;  %v8853_v12 = vld [vmem:[%s14553_s3 + $0xb0] sm:$0xff]  ;;  %v5809_v25 = vpop.f32.mrb[127].mxu1 }
0x1214   :  { %9904 = vmatpush3.bf16.msra.mxu0 %v7085_v23 }
0x1216   :  { %v7299_v33 = vpop.trf.xlu0  ;;  %v10434_v35 = vpop.trf.xlu1 }
0x1217   :  { %v10435_v48 = vunpack.i.l.bf16 %v10434_v35  ;;  %v10438_v46 = vunpack.i.h.bf16 %v10434_v35 }
0x1219   :  { %v6819_v54 = vpack.c.bf16 %v10435_v48, %v10430_v13  ;;  %v7067_v39 = vpack.c.bf16 %v10438_v46, %v10433_v2 }
0x121a   :  { %v7300_v40 = vpop.trf.xlu0  ;;  %v10439_v50 = vpop.trf.xlu1 }
0x121b   :  { %9887 = vmatprep.mubr.msk.bf16.mxu0 %vm430_vm2, %v6819_v54  ;;  %v10440_v15 = vunpack.i.l.bf16 %v10439_v50  ;;  %v10443_v6 = vunpack.i.h.bf16 %v10439_v50  ;;  %v7314_v14 = vpack.c.bf16 %v7300_v40, %v7299_v33  ;;  %v8852_v33 = vld [vmem:[%s14553_s3 + $0xa8] sm:$0xff]  ;;  %v5815_v40 = vadd.f32 %v9791_v10, %v8853_v12  ;;  %v8854_v54 = vld [vmem:[%s14553_s3 + $0xb8] sm:$0xff] }
0x121d   :  { %v13502_v46 = vpack.c.bf16 %v5815_v40, %v5815_v40 }
0x121e   :  { %v7301_v52 = vpop.trf.xlu0  ;;  %v10444_v8 = vpop.trf.xlu1 }
0x121f   :  { %v10445_v51 = vunpack.i.l.bf16 %v10444_v8  ;;  %v10448_v17 = vunpack.i.h.bf16 %v10444_v8 }
0x1221   :  { %v6820_v42 = vpack.c.bf16 %v10445_v51, %v10440_v15  ;;  %v7068_v36 = vpack.c.bf16 %v10448_v17, %v10443_v6 }
0x1222   :  { %v7302_v27 = vpop.trf.xlu0 }
0x1223   :  { %9888 = vmatmul.mubr.msk.bf16.gmra.mrb[168].mxu0 %vm430_vm2, %v6820_v42  ;;  %v7315_v16 = vpack.c.bf16 %v7302_v27, %v7301_v52 }
0x1224   :  { %9905 = vmatprep.mubr.msk.bf16.mxu0 %vm430_vm2, %v7065_v59 }
0x1226   :  { %v7303_v49 = vpop.trf.xlu0 }
0x122a   :  { %v7304_v22 = vpop.trf.xlu0 }
0x122b   :  { %9906 = vmatmul.mubr.msk.bf16.vlgmr.msra.gmra.mrb[172].mxu0 %vm430_vm2, %v7066_v47  ;;  %v7316_v21 = vpack.c.bf16 %v7304_v22, %v7303_v49  ;;  %v5818_v22 = vadd.f32 %v9792_v34, %v8854_v54 }
0x122c   :  { %9909 = vmatprep.mubr.msk.bf16.mxu0 %vm430_vm2, %v7067_v39 }
0x122d   :  { %v13512_v6 = vpack.c.bf16 %v5818_v22, %v5818_v22 }
0x122e   :  { %v7545_v44 = vpop.trf.xlu0  ;;  %v7319_v58 = vpop.permute.xlu1 %7318 }
0x122f   :  { %v7333_v60 = vsel %vm443_vm1, %v7319_v58, 0  ;;  %10055 = vmatprep.subr.msk.bf16.mxu0 %vm443_vm1, %v7319_v58 }
0x1230   :  { %9926 = vmatpush3.bf16.msra.mxu0 %v7333_v60 }
0x1231   :  { %10056 = vmatprep.subr.msk.bf16.mxu0 %vm443_vm1, %v13431_v43  ;;  %v5810_v43 = vadd.f32 %v8852_v33, %v5809_v25 }
0x1232   :  { %v7546_v5 = vpop.trf.xlu0 }
0x1233   :  { %9910 = vmatmul.mubr.msk.bf16.gmra.mrb[176].mxu0 %vm430_vm2, %v7068_v36  ;;  %v7561_v23 = vpack.c.bf16 %v7546_v5, %v7545_v44  ;;  %v13475_v13 = vpack.c.bf16 %v5810_v43, %v5810_v43 }
0x1234   :  { %9927 = vmatprep.mubr.msk.bf16.mxu0 %vm430_vm2, %v7313_v9 }
0x1235   :  { %7232 = vrot.lane.b32.xlu1 %v13475_v13, %s10951_s20 }
0x1236   :  { %v7547_v32 = vpop.trf.xlu0 }
0x1239   :  { %v13453_v55 = vpop.f32.mrb[132].mxu0  ;;  %7480 = vrot.lane.b32.xlu1 %v13502_v46, %s10951_s20 }
0x123a   :  { %v13455_v18 = vpop.f32.mrb[133].mxu0  ;;  %v7548_v0 = vpop.trf.xlu0  ;;  %v5940_v50 = vsel %vm512_vm4, %v13453_v55, -inf }
0x123b   :  { %v13459_v61 = vpop.f32.mrb[134].mxu0  ;;  %9928 = vmatmul.mubr.msk.bf16.vlgmr.msra.gmra.mrb[180].mxu0 %vm430_vm2, %v7314_v14  ;;  %v5938_v8 = vsel %vm512_vm4, %v13455_v18, -inf  ;;  %v7562_v31 = vpack.c.bf16 %v7548_v0, %v7547_v32 }
0x123c   :  { %v13461_v63 = vpop.f32.mrb[135].mxu0  ;;  %9948 = vmatpush3.bf16.msra.mxu0 %v7581_v20  ;;  %9931 = vmatprep.mubr.msk.bf16.mxu0 %vm430_vm2, %v7315_v16  ;;  %v5941_v27 = vsel %vm512_vm4, %v13459_v61, -inf }
0x123d   :  { %v5939_v2 = vsel %vm512_vm4, %v13461_v63, -inf  ;;  %7728 = vrot.lane.b32.xlu1 %v13512_v6, %s10951_s20 }
0x123e   :  { %v7549_v45 = vpop.trf.xlu0 }
0x1242   :  { %v7550_v35 = vpop.trf.xlu0 }
0x1243   :  { %9932 = vmatmul.mubr.msk.bf16.gmra.mrb[184].mxu0 %vm430_vm2, %v7316_v21  ;;  %v7563_v44 = vpack.c.bf16 %v7550_v35, %v7549_v45 }
0x1244   :  { %9949 = vmatprep.mubr.msk.bf16.mxu0 %vm430_vm2, %v7561_v23 }
0x1246   :  { %v7551_v4 = vpop.trf.xlu0 }
0x1249   :  { %v13477_v48 = vpop.f32.mrb[136].mxu0 }
0x124a   :  { %v5946_v52 = vsel %vm512_vm4, %v13477_v48, -inf  ;;  %v13486_v41 = vpop.f32.mrb[137].mxu0  ;;  %v7552_v56 = vpop.trf.xlu0 }
0x124b   :  { %v5947_v15 = vmax.f32 %v5940_v50, %v5946_v52  ;;  %v5942_v51 = vsel %vm512_vm4, %v13486_v41, -inf  ;;  %v13496_v28 = vpop.f32.mrb[138].mxu0  ;;  %9950 = vmatmul.mubr.msk.bf16.vlgmr.msra.gmra.mrb[188].mxu0 %vm430_vm2, %v7562_v31  ;;  %v7564_v26 = vpack.c.bf16 %v7552_v56, %v7551_v4 }
0x124c   :  { %v5943_v42 = vmax.f32 %v5938_v8, %v5942_v51  ;;  %v5948_v59 = vsel %vm512_vm4, %v13496_v28, -inf  ;;  %v13500_v49 = vpop.f32.mrb[139].mxu0  ;;  %9953 = vmatprep.mubr.msk.bf16.mxu0 %vm430_vm2, %v7563_v44 }
0x124d   :  { %v5949_v47 = vmax.f32 %v5941_v27, %v5948_v59  ;;  %v5944_v39 = vsel %vm512_vm4, %v13500_v49, -inf }
0x124e   :  { %v5945_v17 = vmax.f32 %v5939_v2, %v5944_v39 }
0x124f   :  { %v5951_v58 = vmax.f32 %v5947_v15, %v5949_v47 }
0x1250   :  { %v5950_v5 = vmax.f32 %v5943_v42, %v5945_v17 }
0x1251   :  { %v13514_v60 = vpop.f32.mrb[140].mxu0 }
0x1252   :  { %v5952_v10 = vmax.f32 %v5950_v5, %v5951_v58  ;;  %v13516_v36 = vpop.f32.mrb[141].mxu0  ;;  %v6180_v45 = vsel %vm512_vm4, %v13514_v60, -inf }
0x1253   :  { %v13520_v11 = vpop.f32.mrb[142].mxu0  ;;  %9954 = vmatmul.mubr.msk.bf16.gmra.mrb[192].mxu0 %vm430_vm2, %v7564_v26  ;;  %v6178_v12 = vsel %vm512_vm4, %v13516_v36, -inf }
0x1254   :  { %v5953_v9 = vrot.slane %v5952_v10, 4  ;;  %v13522_v32 = vpop.f32.mrb[143].mxu0  ;;  %v6181_v43 = vsel %vm512_vm4, %v13520_v11, -inf }
0x1255   :  { %v6179_v52 = vsel %vm512_vm4, %v13522_v32, -inf }
0x1256   :  { %v5954_v0 = vmax.f32 %v5952_v10, %v5953_v9 }
0x1258   :  { %v5955_v14 = vrot.slane %v5954_v0, 2 }
0x1259   :  { %v13525_v16 = vpop.f32.mrb[144].mxu0 }
0x125a   :  { %v5956_v20 = vmax.f32 %v5954_v0, %v5955_v14  ;;  %v6186_v34 = vsel %vm512_vm4, %v13525_v16, -inf  ;;  %v13531_v21 = vpop.f32.mrb[145].mxu0 }
0x125b   :  { %v6187_v25 = vmax.f32 %v6180_v45, %v6186_v34  ;;  %v6182_v33 = vsel %vm512_vm4, %v13531_v21, -inf  ;;  %v13537_v23 = vpop.f32.mrb[146].mxu0 }
0x125c   :  { %v5957_v35 = vrot.slane %v5956_v20, 1  ;;  %v6183_v40 = vmax.f32 %v6178_v12, %v6182_v33  ;;  %v6188_v54 = vsel %vm512_vm4, %v13537_v23, -inf  ;;  %v13543_v50 = vpop.f32.mrb[147].mxu0 }
0x125d   :  { %v6189_v8 = vmax.f32 %v6181_v43, %v6188_v54  ;;  %v6184_v27 = vsel %vm512_vm4, %v13543_v50, -inf }
0x125e   :  { %v5958_v15 = vmax.f32 %v5956_v20, %v5957_v35  ;;  %v6185_v51 = vmax.f32 %v6179_v52, %v6184_v27 }
0x125f   :  { %v6191_v42 = vmax.f32 %v6187_v25, %v6189_v8 }
0x1260   :  { %v5959_v59 = vsub.f32 %v13455_v18, %v5958_v15  ;;  %v5960_v4 = vsub.f32 %v13461_v63, %v5958_v15  ;;  %v5961_v22 = vsub.f32 %v13453_v55, %v5958_v15  ;;  %v5962_v31 = vsub.f32 %v13459_v61, %v5958_v15 }
0x1261   :  { %v5963_v2 = vsub.f32 %v13486_v41, %v5958_v15  ;;  %v5964_v47 = vsub.f32 %v13500_v49, %v5958_v15  ;;  %v5965_v39 = vsub.f32 %v13477_v48, %v5958_v15  ;;  %v5966_v44 = vsub.f32 %v13496_v28, %v5958_v15  ;;  %v13557_v17 = vpop.f32.mrb[148].mxu0 }
0x1262   :  { %v5967_v58 = vmul.f32 1.442695, %v5959_v59  ;;  %v5969_v5 = vmul.f32 1.442695, %v5960_v4  ;;  %v5971_v10 = vmul.f32 1.442695, %v5961_v22  ;;  %v6190_v18 = vmax.f32 %v6183_v40, %v6185_v51 }
0x1263   :  { %v5973_v56 = vmul.f32 1.442695, %v5962_v31  ;;  %v5975_v63 = vmul.f32 1.442695, %v5963_v2  ;;  %v13559_v9 = vpop.f32.mrb[149].mxu0  ;;  %v6420_v45 = vsel %vm512_vm4, %v13557_v17, -inf }
0x1264   :  { %10801 = vpow2.f32 %v5967_v58  ;;  %v6192_v55 = vmax.f32 %v6190_v18, %v6191_v42  ;;  %v5977_v61 = vmul.f32 1.442695, %v5964_v47  ;;  %v13561_v41 = vpop.f32.mrb[150].mxu0  ;;  %v5979_v48 = vmul.f32 1.442695, %v5965_v39 }
0x1265   :  { %10803 = vpow2.f32 %v5969_v5  ;;  %v13563_v28 = vpop.f32.mrb[151].mxu0  ;;  %v5981_v26 = vmul.f32 1.442695, %v5966_v44  ;;  %v6418_v25 = vsel %vm512_vm4, %v13559_v9, -inf  ;;  %v6421_v54 = vsel %vm512_vm4, %v13561_v41, -inf }
0x1266   :  { %10805 = vpow2.f32 %v5971_v10  ;;  %v6193_v49 = vrot.slane %v6192_v55, 4  ;;  %v6419_v15 = vsel %vm512_vm4, %v13563_v28, -inf }
0x1267   :  { %10807 = vpow2.f32 %v5973_v56 }
0x1268   :  { %10809 = vpow2.f32 %v5975_v63  ;;  %v6194_v0 = vmax.f32 %v6192_v55, %v6193_v49 }
0x1269   :  { %10811 = vpow2.f32 %v5977_v61  ;;  %v13565_v14 = vpop.f32.mrb[152].mxu0 }
0x126a   :  { %10813 = vpow2.f32 %v5979_v48  ;;  %v6195_v20 = vrot.slane %v6194_v0, 2  ;;  %v6426_v34 = vsel %vm512_vm4, %v13565_v14, -inf  ;;  %v13571_v12 = vpop.f32.mrb[153].mxu0 }
0x126b   :  { %10815 = vpow2.f32 %v5981_v26  ;;  %v6427_v33 = vmax.f32 %v6420_v45, %v6426_v34  ;;  %v6422_v35 = vsel %vm512_vm4, %v13571_v12, -inf  ;;  %v13577_v43 = vpop.f32.mrb[154].mxu0 }
0x126c   :  { %v6196_v40 = vmax.f32 %v6194_v0, %v6195_v20  ;;  %v6423_v52 = vmax.f32 %v6418_v25, %v6422_v35  ;;  %v6428_v8 = vsel %vm512_vm4, %v13577_v43, -inf  ;;  %v13583_v27 = vpop.f32.mrb[155].mxu0 }
0x126d   :  { %v6429_v51 = vmax.f32 %v6421_v54, %v6428_v8  ;;  %v6424_v42 = vsel %vm512_vm4, %v13583_v27, -inf }
0x126e   :  { %v13589_v59 = vpop.eup %10801  ;;  %v6197_v4 = vrot.slane %v6196_v40, 1  ;;  %v6425_v22 = vmax.f32 %v6419_v15, %v6424_v42 }
0x126f   :  { %v13591_v31 = vpop.eup %10803  ;;  %v5983_v2 = vsel %vm512_vm4, %v13589_v59, 0.0  ;;  %v6431_v47 = vmax.f32 %v6427_v33, %v6429_v51 }
0x1270   :  { %v13595_v39 = vpop.eup %10805  ;;  %v5984_v44 = vsel %vm512_vm4, %v13591_v31, 0.0  ;;  %v6198_v58 = vmax.f32 %v6196_v40, %v6197_v4  ;;  %v6430_v5 = vmax.f32 %v6423_v52, %v6425_v22 }
0x1271   :  { %v13599_v10 = vpop.eup %10807  ;;  %v5985_v18 = vadd.f32 %v5984_v44, %v5983_v2  ;;  %v13601_v56 = vpop.f32.mrb[156].mxu0  ;;  %v5986_v55 = vsel %vm512_vm4, %v13595_v39, 0.0 }
0x1272   :  { %v13603_v63 = vpop.eup %10809  ;;  %v6199_v61 = vsub.f32 %v13516_v36, %v6198_v58  ;;  %v6200_v48 = vsub.f32 %v13522_v32, %v6198_v58  ;;  %v6201_v49 = vsub.f32 %v13514_v60, %v6198_v58  ;;  %v13610_v26 = vpop.f32.mrb[157].mxu0  ;;  %v6202_v45 = vsub.f32 %v13520_v11, %v6198_v58 }
0x1273   :  { %v13612_v0 = vpop.eup %10811  ;;  %v5987_v20 = vadd.f32 %v5986_v55, %v5985_v18  ;;  %v6203_v34 = vsub.f32 %v13531_v21, %v6198_v58  ;;  %v13616_v25 = vpop.f32.mrb[158].mxu0  ;;  %v5988_v36 = vsel %vm512_vm4, %v13599_v10, 0.0  ;;  %v6204_v32 = vsub.f32 %v13543_v50, %v6198_v58 }
0x1274   :  { %v13618_v33 = vpop.eup %10813  ;;  %v6205_v60 = vsub.f32 %v13525_v16, %v6198_v58  ;;  %v6206_v35 = vsub.f32 %v13537_v23, %v6198_v58  ;;  %v13625_v40 = vpop.f32.mrb[159].mxu0  ;;  %v5990_v21 = vsel %vm512_vm4, %v13603_v63, 0.0  ;;  %v6207_v52 = vmul.f32 1.442695, %v6199_v61 }
0x1275   :  { %v13627_v54 = vpop.eup %10815  ;;  %v5989_v11 = vadd.f32 %v5988_v36, %v5987_v20  ;;  %v6209_v8 = vmul.f32 1.442695, %v6200_v48  ;;  %v5992_v15 = vsel %vm512_vm4, %v13612_v0, 0.0  ;;  %v6211_v51 = vmul.f32 1.442695, %v6201_v49 }
0x1276   :  { %v6213_v42 = vmul.f32 1.442695, %v6202_v45  ;;  %v6432_v50 = vmax.f32 %v6430_v5, %v6431_v47  ;;  %v5994_v16 = vsel %vm512_vm4, %v13618_v33, 0.0  ;;  %v5996_v23 = vsel %vm512_vm4, %v13627_v54, 0.0 }
0x1277   :  { %v5991_v4 = vadd.f32 %v5990_v21, %v5989_v11  ;;  %10817 = vpow2.f32 %v6207_v52  ;;  %v6215_v22 = vmul.f32 1.442695, %v6203_v34  ;;  %v6217_v2 = vmul.f32 1.442695, %v6204_v32 }
0x1278   :  { %10819 = vpow2.f32 %v6209_v8  ;;  %v6433_v44 = vrot.slane %v6432_v50, 4  ;;  %v6219_v18 = vmul.f32 1.442695, %v6205_v60  ;;  %v6221_v55 = vmul.f32 1.442695, %v6206_v35 }
0x1279   :  { %v5993_v58 = vadd.f32 %v5992_v15, %v5991_v4  ;;  %10821 = vpow2.f32 %v6211_v51  ;;  %v13637_v61 = vpop.f32.mrb[160].mxu0  ;;  %v6660_v5 = vsel %vm512_vm4, %v13601_v56, -inf  ;;  %v6658_v48 = vsel %vm512_vm4, %v13610_v26, -inf }
0x127a   :  { %10823 = vpow2.f32 %v6213_v42  ;;  %v6434_v47 = vmax.f32 %v6432_v50, %v6433_v44  ;;  %v13643_v49 = vpop.f32.mrb[161].mxu0  ;;  %v6661_v45 = vsel %vm512_vm4, %v13616_v25, -inf  ;;  %v6666_v34 = vsel %vm512_vm4, %v13637_v61, -inf }
0x127b   :  { %v5995_v20 = vadd.f32 %v5994_v16, %v5993_v58  ;;  %v6662_v36 = vsel %vm512_vm4, %v13643_v49, -inf  ;;  %v13651_v32 = vpop.f32.mrb[162].mxu0  ;;  %10825 = vpow2.f32 %v6215_v22  ;;  %v6667_v35 = vmax.f32 %v6660_v5, %v6666_v34 }
0x127c   :  { %v6435_v60 = vrot.slane %v6434_v47, 2  ;;  %v6663_v11 = vmax.f32 %v6658_v48, %v6662_v36  ;;  %v13653_v21 = vpop.f32.mrb[163].mxu0  ;;  %v6659_v8 = vsel %vm512_vm4, %v13625_v40, -inf  ;;  %v6668_v15 = vsel %vm512_vm4, %v13651_v32, -inf }
0x127d   :  { %v5997_v52 = vadd.f32 %v5996_v23, %v5995_v20  ;;  %v6664_v51 = vsel %vm512_vm4, %v13653_v21, -inf  ;;  %10827 = vpow2.f32 %v6217_v2  ;;  %v6669_v50 = vmax.f32 %v6661_v45, %v6668_v15 }
0x127e   :  { %v6436_v42 = vmax.f32 %v6434_v47, %v6435_v60  ;;  %v6665_v4 = vmax.f32 %v6659_v8, %v6664_v51  ;;  %10829 = vpow2.f32 %v6219_v18 }
0x127f   :  { %v5998_v16 = vrot.slane %v5997_v52, 4  ;;  %v6671_v44 = vmax.f32 %v6667_v35, %v6669_v50  ;;  %10831 = vpow2.f32 %v6221_v55 }
0x1280   :  { %v6437_v22 = vrot.slane %v6436_v42, 1  ;;  %v6670_v58 = vmax.f32 %v6663_v11, %v6665_v4 }
0x1281   :  { %v13661_v5 = vpop.eup %10817  ;;  %v5999_v23 = vadd.f32 %v5998_v16, %v5997_v52 }
0x1282   :  { %v13663_v48 = vpop.eup %10819  ;;  %v6223_v20 = vsel %vm512_vm4, %v13661_v5, 0.0  ;;  %v6438_v34 = vmax.f32 %v6436_v42, %v6437_v22  ;;  %v6672_v36 = vmax.f32 %v6670_v58, %v6671_v44 }
0x1283   :  { %v13667_v2 = vpop.eup %10821  ;;  %v6000_v47 = vrot.slane %v5999_v23, 2  ;;  %v6224_v18 = vsel %vm512_vm4, %v13663_v48, 0.0 }
0x1284   :  { %v13671_v45 = vpop.eup %10823  ;;  %v6225_v60 = vadd.f32 %v6224_v18, %v6223_v20  ;;  %v6439_v35 = vsub.f32 %v13559_v9, %v6438_v34  ;;  %v6440_v11 = vsub.f32 %v13563_v28, %v6438_v34  ;;  %v6226_v55 = vsel %vm512_vm4, %v13667_v2, 0.0 }
0x1285   :  { %v6001_v52 = vadd.f32 %v6000_v47, %v5999_v23  ;;  %v6441_v8 = vsub.f32 %v13557_v17, %v6438_v34  ;;  %v6442_v15 = vsub.f32 %v13561_v41, %v6438_v34  ;;  %v13679_v51 = vpop.eup %10825  ;;  %v6443_v50 = vsub.f32 %v13571_v12, %v6438_v34 }
0x1286   :  { %v6227_v42 = vadd.f32 %v6226_v55, %v6225_v60  ;;  %v6444_v4 = vsub.f32 %v13583_v27, %v6438_v34  ;;  %v6228_v9 = vsel %vm512_vm4, %v13671_v45, 0.0  ;;  %v6445_v28 = vsub.f32 %v13565_v14, %v6438_v34 }
0x1287   :  { %v6002_v16 = vrot.slane %v6001_v52, 1  ;;  %v6446_v22 = vsub.f32 %v13577_v43, %v6438_v34  ;;  %v13687_v44 = vpop.eup %10827  ;;  %v6447_v58 = vmul.f32 1.442695, %v6439_v35  ;;  %v6449_v41 = vmul.f32 1.442695, %v6440_v11 }
0x1288   :  { %v6229_v17 = vadd.f32 %v6228_v9, %v6227_v42  ;;  %v6230_v20 = vsel %vm512_vm4, %v13679_v51, 0.0  ;;  %v6451_v12 = vmul.f32 1.442695, %v6441_v8  ;;  %v13691_v47 = vpop.eup %10829  ;;  %v6453_v18 = vmul.f32 1.442695, %v6442_v15 }
0x1289   :  { %v6003_v23 = vadd.f32 %v6002_v16, %v6001_v52  ;;  %10833 = vpow2.f32 %v6447_v58  ;;  %v6232_v14 = vsel %vm512_vm4, %v13687_v44, 0.0  ;;  %v6455_v43 = vmul.f32 1.442695, %v6443_v50  ;;  %v13695_v60 = vpop.eup %10831 }
0x128a   :  { %v6231_v27 = vadd.f32 %v6230_v20, %v6229_v17  ;;  %v6673_v34 = vrot.slane %v6672_v36, 4  ;;  %v6457_v11 = vmul.f32 1.442695, %v6444_v4  ;;  %v6234_v52 = vsel %vm512_vm4, %v13691_v47, 0.0 }
0x128b   :  { %10835 = vrcp.f32 %v6003_v23  ;;  %v6459_v55 = vmul.f32 1.442695, %v6445_v28  ;;  %v6236_v15 = vsel %vm512_vm4, %v13695_v60, 0.0  ;;  %v6461_v9 = vmul.f32 1.442695, %v6446_v22 }
0x128c   :  { %v6233_v35 = vadd.f32 %v6232_v14, %v6231_v27  ;;  %10837 = vpow2.f32 %v6449_v41  ;;  %v6674_v8 = vmax.f32 %v6672_v36, %v6673_v34 }
0x128d   :  { %10839 = vpow2.f32 %v6451_v12 }
0x128e   :  { %v6235_v42 = vadd.f32 %v6234_v52, %v6233_v35  ;;  %10841 = vpow2.f32 %v6453_v18  ;;  %v6675_v16 = vrot.slane %v6674_v8, 2 }
0x128f   :  { %10843 = vpow2.f32 %v6455_v43 }
0x1290   :  { %v6237_v50 = vadd.f32 %v6236_v15, %v6235_v42  ;;  %10845 = vpow2.f32 %v6457_v11  ;;  %v6676_v17 = vmax.f32 %v6674_v8, %v6675_v16 }
0x1291   :  { %10847 = vpow2.f32 %v6459_v55 }
0x1292   :  { %v6238_v58 = vrot.slane %v6237_v50, 4  ;;  %v6677_v4 = vrot.slane %v6676_v17, 1  ;;  %10849 = vpow2.f32 %v6461_v9 }
0x1293   :  { %v13701_v41 = vpop.eup %10833 }
0x1294   :  { %v6239_v23 = vadd.f32 %v6238_v58, %v6237_v50  ;;  %v6463_v36 = vsel %vm512_vm4, %v13701_v41, 0.0  ;;  %v6678_v28 = vmax.f32 %v6676_v17, %v6677_v4 }
0x1295   :  { %v10836_v20 = vpop.eup %10835 }
0x1296   :  { %v13705_v12 = vpop.eup %10837  ;;  %v6240_v27 = vrot.slane %v6239_v23, 2  ;;  %v6005_v18 = vmul.f32 %v10836_v20, %v13589_v59  ;;  %v6006_v14 = vmul.f32 %v10836_v20, %v13591_v31  ;;  %v6007_v22 = vmul.f32 %v10836_v20, %v13595_v39 }
0x1297   :  { %v13710_v43 = vpop.eup %10839  ;;  %v6464_v34 = vsel %vm512_vm4, %v13705_v12, 0.0  ;;  %v6679_v35 = vsub.f32 %v13610_v26, %v6678_v28  ;;  %v6680_v11 = vsub.f32 %v13625_v40, %v6678_v28  ;;  %v6681_v52 = vsub.f32 %v13601_v56, %v6678_v28 }
0x1298   :  { %v13717_v55 = vpop.eup %10841  ;;  %v6241_v8 = vadd.f32 %v6240_v27, %v6239_v23  ;;  %v6465_v42 = vadd.f32 %v6464_v34, %v6463_v36  ;;  %v6682_v59 = vsub.f32 %v13616_v25, %v6678_v28  ;;  %v6466_v39 = vsel %vm512_vm4, %v13710_v43, 0.0 }
0x1299   :  { %v13720_v31 = vpop.eup %10843  ;;  %v6683_v15 = vsub.f32 %v13643_v49, %v6678_v28  ;;  %v6684_v16 = vsub.f32 %v13653_v21, %v6678_v28  ;;  %v6685_v26 = vsub.f32 %v13637_v61, %v6678_v28  ;;  %v6686_v9 = vsub.f32 %v13651_v32, %v6678_v28 }
0x129a   :  { %v13727_v40 = vpop.eup %10845  ;;  %v6242_v56 = vrot.slane %v6241_v8, 1  ;;  %v6467_v50 = vadd.f32 %v6466_v39, %v6465_v42  ;;  %v6468_v25 = vsel %vm512_vm4, %v13717_v55, 0.0  ;;  %v6687_v58 = vmul.f32 1.442695, %v6679_v35 }
0x129b   :  { %v13730_v17 = vpop.eup %10847  ;;  %v6689_v4 = vmul.f32 1.442695, %v6680_v11  ;;  %v6014_v23 = vpack.c.bf16 %v6006_v14, %v6005_v18  ;;  %v6691_v27 = vmul.f32 1.442695, %v6681_v52  ;;  %v6470_v61 = vsel %vm512_vm4, %v13720_v31, 0.0 }
0x129c   :  { %v6243_v36 = vadd.f32 %v6242_v56, %v6241_v8  ;;  %v6469_v49 = vadd.f32 %v6468_v25, %v6467_v50  ;;  %10851 = vpow2.f32 %v6687_v58  ;;  %v6693_v21 = vmul.f32 1.442695, %v6682_v59  ;;  %v13741_v18 = vpop.eup %10849 }
0x129d   :  { %9804 = vmatpush3.bf16.msra.mxu1 %v6014_v23  ;;  %v6472_v32 = vsel %vm512_vm4, %v13727_v40, 0.0  ;;  %v6474_v28 = vsel %vm512_vm4, %v13730_v17, 0.0  ;;  %v6695_v14 = vmul.f32 1.442695, %v6683_v15  ;;  %v6008_v35 = vmul.f32 %v10836_v20, %v13599_v10 }
0x129e   :  { %10853 = vrcp.f32 %v6243_v36  ;;  %v6471_v34 = vadd.f32 %v6470_v61, %v6469_v49  ;;  %9805 = vmatprep.subr.bf16.mxu1 %v14565_v19  ;;  %v6009_v11 = vmul.f32 %v10836_v20, %v13603_v63  ;;  %v6010_v8 = vmul.f32 %v10836_v20, %v13612_v0 }
0x129f   :  { %10855 = vpow2.f32 %v6689_v4  ;;  %v6011_v42 = vmul.f32 %v10836_v20, %v13618_v33  ;;  %v6697_v59 = vmul.f32 1.442695, %v6684_v16  ;;  %v6015_v39 = vpack.c.bf16 %v6008_v35, %v6007_v22 }
0x12a0   :  { %v6473_v52 = vadd.f32 %v6472_v32, %v6471_v34  ;;  %10857 = vpow2.f32 %v6691_v27  ;;  %v6012_v56 = vmul.f32 %v10836_v20, %v13627_v54  ;;  %v6016_v25 = vpack.c.bf16 %v6010_v8, %v6009_v11 }
0x12a1   :  { %10859 = vpow2.f32 %v6693_v21  ;;  %v6476_v15 = vsel %vm512_vm4, %v13741_v18, 0.0  ;;  %v6699_v10 = vmul.f32 1.442695, %v6685_v26  ;;  %9806 = vmatpush3.bf16.msra.mxu1 %v6015_v39  ;;  %v6701_v4 = vmul.f32 1.442695, %v6686_v9 }
0x12a2   :  { %v6475_v50 = vadd.f32 %v6474_v28, %v6473_v52  ;;  %10861 = vpow2.f32 %v6695_v14  ;;  %v6017_v63 = vpack.c.bf16 %v6012_v56, %v6011_v42  ;;  %9807 = vmatprep.subr.bf16.mxu1 %v14565_v19 }
0x12a3   :  { %10863 = vpow2.f32 %v6697_v59 }
0x12a4   :  { %v6477_v58 = vadd.f32 %v6476_v15, %v6475_v50  ;;  %10865 = vpow2.f32 %v6699_v10 }
0x12a5   :  { %9808 = vmatpush3.bf16.msra.mxu1 %v6016_v25  ;;  %10867 = vpow2.f32 %v6701_v4 }
0x12a6   :  { %v6478_v0 = vrot.slane %v6477_v58, 4  ;;  %v13751_v33 = vpop.eup %10851  ;;  %9809 = vmatprep.subr.bf16.mxu1 %v14565_v19 }
0x12a7   :  { %v6703_v22 = vsel %vm512_vm4, %v13751_v33, 0.0 }
0x12a8   :  { %v10854_v54 = vpop.eup %10853  ;;  %v6479_v20 = vadd.f32 %v6478_v0, %v6477_v58 }
0x12a9   :  { %v13756_v16 = vpop.eup %10855  ;;  %v6245_v26 = vmul.f32 %v10854_v54, %v13661_v5  ;;  %v6246_v9 = vmul.f32 %v10854_v54, %v13663_v48  ;;  %v6247_v23 = vmul.f32 %v10854_v54, %v13667_v2  ;;  %v6248_v36 = vmul.f32 %v10854_v54, %v13671_v45  ;;  %9810 = vmatpush3.bf16.msra.mxu1 %v6017_v63 }
0x12aa   :  { %v13762_v49 = vpop.eup %10857  ;;  %v6480_v27 = vrot.slane %v6479_v20, 2  ;;  %v6704_v61 = vsel %vm512_vm4, %v13756_v16, 0.0  ;;  %v6249_v21 = vmul.f32 %v10854_v54, %v13679_v51  ;;  %v6250_v34 = vmul.f32 %v10854_v54, %v13687_v44  ;;  %9825 = vmatprep.subr.bf16.mxu1 %v14565_v19 }
0x12ab   :  { %v13768_v32 = vpop.eup %10859  ;;  %v6705_v28 = vadd.f32 %v6704_v61, %v6703_v22  ;;  %v6254_v5 = vpack.c.bf16 %v6246_v9, %v6245_v26  ;;  %v6255_v48 = vpack.c.bf16 %v6248_v36, %v6247_v23  ;;  %v6706_v2 = vsel %vm512_vm4, %v13762_v49, 0.0 }
0x12ac   :  { %v6481_v14 = vadd.f32 %v6480_v27, %v6479_v20  ;;  %v6256_v45 = vpack.c.bf16 %v6250_v34, %v6249_v21  ;;  %v6251_v35 = vmul.f32 %v10854_v54, %v13691_v47  ;;  %v13774_v11 = vpop.eup %10861  ;;  %v6252_v44 = vmul.f32 %v10854_v54, %v13695_v60  ;;  %9812 = vmatmul.mubr.msk.bf16.vlgmr.msra.gmra.mrb[128].mxu1 %vm512_vm4, %v13451_v7 }
0x12ad   :  { %v6707_v51 = vadd.f32 %v6706_v2, %v6705_v28  ;;  %v6708_v8 = vsel %vm512_vm4, %v13768_v32, 0.0  ;;  %v10864_v42 = vpop.eup %10863  ;;  %9826 = vmatpush3.bf16.msra.mxu1 %v6254_v5  ;;  %9833 = vmatprep.mubr.msk.bf16.mxu1 %vm10953_vm3, %v14565_v19  ;;  %v6710_v56 = vsel %vm512_vm4, %v13774_v11, 0.0 }
0x12ae   :  { %v6482_v52 = vrot.slane %v6481_v14, 1  ;;  %v6257_v39 = vpack.c.bf16 %v6252_v44, %v6251_v35  ;;  %9827 = vmatprep.subr.bf16.mxu1 %v14565_v19  ;;  %v10866_v60 = vpop.eup %10865  ;;  %v6712_v15 = vsel %vm512_vm4, %v10864_v42, 0.0 }
0x12af   :  { %v6709_v59 = vadd.f32 %v6708_v8, %v6707_v51  ;;  %v10868_v25 = vpop.eup %10867  ;;  %v6714_v10 = vsel %vm512_vm4, %v10866_v60, 0.0 }
0x12b0   :  { %v6483_v47 = vadd.f32 %v6482_v52, %v6481_v14  ;;  %v6716_v58 = vsel %vm512_vm4, %v10868_v25, 0.0 }
0x12b1   :  { %v6711_v50 = vadd.f32 %v6710_v56, %v6709_v59  ;;  %9828 = vmatpush3.bf16.msra.mxu1 %v6255_v48 }
0x12b2   :  { %10869 = vrcp.f32 %v6483_v47  ;;  %9829 = vmatprep.subr.bf16.mxu1 %v14565_v19 }
0x12b3   :  { %v6713_v7 = vadd.f32 %v6712_v15, %v6711_v50 }
0x12b5   :  { %v6715_v63 = vadd.f32 %v6714_v10, %v6713_v7  ;;  %9830 = vmatpush3.bf16.msra.mxu1 %v6256_v45 }
0x12b6   :  { %9831 = vmatprep.subr.bf16.mxu1 %v14565_v19 }
0x12b7   :  { %v6717_v4 = vadd.f32 %v6716_v58, %v6715_v63 }
0x12b9   :  { %v6718_v0 = vrot.slane %v6717_v4, 4  ;;  %9832 = vmatpush3.bf16.msra.mxu1 %v6257_v39 }
0x12ba   :  { %9847 = vmatprep.subr.bf16.mxu1 %v14565_v19 }
0x12bb   :  { %v6719_v54 = vadd.f32 %v6718_v0, %v6717_v4 }
0x12bc   :  { %v10870_v20 = vpop.eup %10869  ;;  %9834 = vmatmul.mubr.msk.bf16.vlgmr.msra.gmra.mrb[132].mxu1 %vm512_vm4, %v13475_v13 }
0x12bd   :  { %v6720_v22 = vrot.slane %v6719_v54, 2  ;;  %v6485_v26 = vmul.f32 %v10870_v20, %v13701_v41  ;;  %v6486_v9 = vmul.f32 %v10870_v20, %v13705_v12  ;;  %v6487_v23 = vmul.f32 %v10870_v20, %v13710_v43  ;;  %9855 = vmatprep.mubr.msk.bf16.mxu1 %vm10953_vm3, %v14565_v19 }
0x12be   :  { %v6488_v36 = vmul.f32 %v10870_v20, %v13717_v55  ;;  %v6489_v27 = vmul.f32 %v10870_v20, %v13720_v31  ;;  %v6490_v61 = vmul.f32 %v10870_v20, %v13727_v40  ;;  %v6491_v21 = vmul.f32 %v10870_v20, %v13730_v17 }
0x12bf   :  { %v6721_v34 = vadd.f32 %v6720_v22, %v6719_v54  ;;  %v6494_v28 = vpack.c.bf16 %v6486_v9, %v6485_v26  ;;  %v6492_v5 = vmul.f32 %v10870_v20, %v13741_v18 }
0x12c0   :  { %v6495_v41 = vpack.c.bf16 %v6488_v36, %v6487_v23  ;;  %v6496_v12 = vpack.c.bf16 %v6490_v61, %v6489_v27 }
0x12c1   :  { %v6722_v43 = vrot.slane %v6721_v34, 1  ;;  %9848 = vmatpush3.bf16.msra.mxu1 %v6494_v28  ;;  %v6497_v13 = vpack.c.bf16 %v6492_v5, %v6491_v21 }
0x12c2   :  { %9849 = vmatprep.subr.bf16.mxu1 %v14565_v19 }
0x12c3   :  { %v6723_v55 = vadd.f32 %v6722_v43, %v6721_v34 }
0x12c5   :  { %10871 = vrcp.f32 %v6723_v55  ;;  %9850 = vmatpush3.bf16.msra.mxu1 %v6495_v41 }
0x12c6   :  { %9851 = vmatprep.subr.bf16.mxu1 %v14565_v19 }
0x12c9   :  { %9852 = vmatpush3.bf16.msra.mxu1 %v6496_v12 }
0x12ca   :  { %9853 = vmatprep.subr.bf16.mxu1 %v14565_v19 }
0x12cd   :  { %9854 = vmatpush3.bf16.msra.mxu1 %v6497_v13 }
0x12ce   :  { %9869 = vmatprep.subr.bf16.mxu1 %v14565_v19 }
0x12cf   :  { %v10872_v31 = vpop.eup %10871 }
0x12d0   :  { %9856 = vmatmul.mubr.msk.bf16.vlgmr.msra.gmra.mrb[136].mxu1 %vm512_vm4, %v13502_v46  ;;  %v6725_v40 = vmul.f32 %v10872_v31, %v13751_v33  ;;  %v6726_v17 = vmul.f32 %v10872_v31, %v13756_v16  ;;  %v6727_v18 = vmul.f32 %v10872_v31, %v13762_v49  ;;  %v6728_v48 = vmul.f32 %v10872_v31, %v13768_v32 }
0x12d1   :  { %v6729_v14 = vmul.f32 %v10872_v31, %v13774_v11  ;;  %v6730_v2 = vmul.f32 %v10872_v31, %v10864_v42  ;;  %v6731_v45 = vmul.f32 %v10872_v31, %v10866_v60  ;;  %v6732_v35 = vmul.f32 %v10872_v31, %v10868_v25  ;;  %9877 = vmatprep.mubr.msk.bf16.mxu1 %vm10953_vm3, %v14565_v19 }
0x12d2   :  { %v6734_v51 = vpack.c.bf16 %v6726_v17, %v6725_v40  ;;  %v6735_v44 = vpack.c.bf16 %v6728_v48, %v6727_v18 }
0x12d3   :  { %v6736_v52 = vpack.c.bf16 %v6730_v2, %v6729_v14  ;;  %v6737_v46 = vpack.c.bf16 %v6732_v35, %v6731_v45 }
0x12d4   :  { %9870 = vmatpush3.bf16.msra.mxu1 %v6734_v51 }
0x12d5   :  { %9871 = vmatprep.subr.bf16.mxu1 %v14565_v19 }
0x12d8   :  { %9872 = vmatpush3.bf16.msra.mxu1 %v6735_v44 }
0x12d9   :  { %9873 = vmatprep.subr.bf16.mxu1 %v14565_v19 }
0x12dc   :  { %9874 = vmatpush3.bf16.msra.mxu1 %v6736_v52 }
0x12dd   :  { %9875 = vmatprep.subr.bf16.mxu1 %v14565_v19 }
0x12e0   :  { %9876 = vmatpush3.bf16.msra.mxu1 %v6737_v46 }
0x12e1   :  { %9891 = vmatprep.subr.bf16.mxu1 %v14565_v19 }
0x12e3   :  { %9878 = vmatmul.mubr.msk.bf16.vlgmr.msra.gmra.mrb[140].mxu1 %vm512_vm4, %v13512_v6 }
0x12e4   :  { %9899 = vmatprep.mubr.msk.bf16.mxu1 %vm10953_vm3, %v14565_v19 }
0x12e6   :  { %v9885_v33 = vpop.f32.mrb[164].mxu0 }
0x12e7   :  { %v6873_v16 = vpop.f32.mrb[165].mxu0  ;;  %v6906_v8 = vsel %vm512_vm4, %v9885_v33, -inf }
0x12e8   :  { %v9886_v49 = vpop.f32.mrb[166].mxu0  ;;  %v6904_v39 = vsel %vm512_vm4, %v6873_v16, -inf }
0x12e9   :  { %v6876_v32 = vpop.f32.mrb[167].mxu0  ;;  %v6907_v60 = vsel %vm512_vm4, %v9886_v49, -inf }
0x12ea   :  { %v6905_v7 = vsel %vm512_vm4, %v6876_v32, -inf }
0x12f6   :  { %v13825_v11 = vpop.f32.mrb[168].mxu0 }
0x12f7   :  { %v6912_v42 = vsel %vm512_vm4, %v13825_v11, -inf  ;;  %v6889_v59 = vpop.f32.mrb[169].mxu0 }
0x12f8   :  { %v6913_v47 = vmax.f32 %v6906_v8, %v6912_v42  ;;  %v6908_v6 = vsel %vm512_vm4, %v6889_v59, -inf  ;;  %v13832_v56 = vpop.f32.mrb[170].mxu0 }
0x12f9   :  { %v6909_v50 = vmax.f32 %v6904_v39, %v6908_v6  ;;  %v6914_v25 = vsel %vm512_vm4, %v13832_v56, -inf  ;;  %v6892_v15 = vpop.f32.mrb[171].mxu0 }
0x12fa   :  { %v6915_v10 = vmax.f32 %v6907_v60, %v6914_v25  ;;  %v6910_v63 = vsel %vm512_vm4, %v6892_v15, -inf }
0x12fb   :  { %v6911_v58 = vmax.f32 %v6905_v7, %v6910_v63 }
0x12fc   :  { %v6917_v4 = vmax.f32 %v6913_v47, %v6915_v10 }
0x12fd   :  { %v6916_v0 = vmax.f32 %v6909_v50, %v6911_v58 }
0x12fe   :  { %v13839_v54 = vpop.f32.mrb[172].mxu0 }
0x12ff   :  { %v6918_v20 = vmax.f32 %v6916_v0, %v6917_v4  ;;  %v13841_v22 = vpop.f32.mrb[173].mxu0  ;;  %v7154_v34 = vsel %vm512_vm4, %v13839_v54, -inf }
0x1300   :  { %v13843_v26 = vpop.f32.mrb[174].mxu0  ;;  %v7152_v41 = vsel %vm512_vm4, %v13841_v22, -inf }
0x1301   :  { %v6919_v9 = vrot.slane %v6918_v20, 4  ;;  %v13845_v23 = vpop.f32.mrb[175].mxu0  ;;  %v7155_v31 = vsel %vm512_vm4, %v13843_v26, -inf }
0x1302   :  { %v7153_v48 = vsel %vm512_vm4, %v13845_v23, -inf }
0x1303   :  { %v6920_v36 = vmax.f32 %v6918_v20, %v6919_v9 }
0x1305   :  { %v6921_v27 = vrot.slane %v6920_v36, 2 }
0x1306   :  { %v13847_v61 = vpop.f32.mrb[176].mxu0 }
0x1307   :  { %v6922_v21 = vmax.f32 %v6920_v36, %v6921_v27  ;;  %v7160_v28 = vsel %vm512_vm4, %v13847_v61, -inf  ;;  %v13853_v5 = vpop.f32.mrb[177].mxu0 }
0x1308   :  { %v7161_v12 = vmax.f32 %v7154_v34, %v7160_v28  ;;  %v7156_v43 = vsel %vm512_vm4, %v13853_v5, -inf  ;;  %v13859_v13 = vpop.f32.mrb[178].mxu0 }
0x1309   :  { %v6923_v55 = vrot.slane %v6922_v21, 1  ;;  %v7157_v40 = vmax.f32 %v7152_v41, %v7156_v43  ;;  %v7162_v17 = vsel %vm512_vm4, %v13859_v13, -inf  ;;  %v13865_v18 = vpop.f32.mrb[179].mxu0 }
0x130a   :  { %v7163_v14 = vmax.f32 %v7155_v31, %v7162_v17  ;;  %v7158_v2 = vsel %vm512_vm4, %v13865_v18, -inf }
0x130b   :  { %v6924_v45 = vmax.f32 %v6922_v21, %v6923_v55  ;;  %v7159_v35 = vmax.f32 %v7153_v48, %v7158_v2 }
0x130c   :  { %v7165_v51 = vmax.f32 %v7161_v12, %v7163_v14 }
0x130d   :  { %v6925_v44 = vsub.f32 %v6873_v16, %v6924_v45  ;;  %v6926_v52 = vsub.f32 %v6876_v32, %v6924_v45  ;;  %v6927_v46 = vsub.f32 %v9885_v33, %v6924_v45  ;;  %v6928_v8 = vsub.f32 %v9886_v49, %v6924_v45 }
0x130e   :  { %v6929_v42 = vsub.f32 %v6889_v59, %v6924_v45  ;;  %v6930_v39 = vsub.f32 %v6892_v15, %v6924_v45  ;;  %v6931_v47 = vsub.f32 %v13825_v11, %v6924_v45  ;;  %v6932_v6 = vsub.f32 %v13832_v56, %v6924_v45  ;;  %v13873_v60 = vpop.f32.mrb[180].mxu0 }
0x130f   :  { %v6933_v50 = vmul.f32 1.442695, %v6925_v44  ;;  %v6935_v25 = vmul.f32 1.442695, %v6926_v52  ;;  %v6937_v7 = vmul.f32 1.442695, %v6927_v46  ;;  %v7164_v10 = vmax.f32 %v7157_v40, %v7159_v35 }
0x1310   :  { %v6939_v63 = vmul.f32 1.442695, %v6928_v8  ;;  %v6941_v58 = vmul.f32 1.442695, %v6929_v42  ;;  %v13875_v16 = vpop.f32.mrb[181].mxu0  ;;  %v7402_v9 = vsel %vm512_vm4, %v13873_v60, -inf }
0x1311   :  { %10873 = vpow2.f32 %v6933_v50  ;;  %v7166_v4 = vmax.f32 %v7164_v10, %v7165_v51  ;;  %v6943_v33 = vmul.f32 1.442695, %v6930_v39  ;;  %v13877_v49 = vpop.f32.mrb[182].mxu0  ;;  %v6945_v32 = vmul.f32 1.442695, %v6931_v47 }
0x1312   :  { %10875 = vpow2.f32 %v6935_v25  ;;  %v13879_v59 = vpop.f32.mrb[183].mxu0  ;;  %v6947_v56 = vmul.f32 1.442695, %v6932_v6  ;;  %v7400_v21 = vsel %vm512_vm4, %v13875_v16, -inf  ;;  %v7403_v43 = vsel %vm512_vm4, %v13877_v49, -inf }
0x1313   :  { %10877 = vpow2.f32 %v6937_v7  ;;  %v7167_v11 = vrot.slane %v7166_v4, 4  ;;  %v7401_v17 = vsel %vm512_vm4, %v13879_v59, -inf }
0x1314   :  { %10879 = vpow2.f32 %v6939_v63 }
0x1315   :  { %10881 = vpow2.f32 %v6941_v58  ;;  %v7168_v15 = vmax.f32 %v7166_v4, %v7167_v11 }
0x1316   :  { %10883 = vpow2.f32 %v6943_v33  ;;  %v13881_v0 = vpop.f32.mrb[184].mxu0 }
0x1317   :  { %10885 = vpow2.f32 %v6945_v32  ;;  %v7169_v20 = vrot.slane %v7168_v15, 2  ;;  %v7408_v36 = vsel %vm512_vm4, %v13881_v0, -inf  ;;  %v13887_v27 = vpop.f32.mrb[185].mxu0 }
0x1318   :  { %10887 = vpow2.f32 %v6947_v56  ;;  %v7409_v34 = vmax.f32 %v7402_v9, %v7408_v36  ;;  %v7404_v28 = vsel %vm512_vm4, %v13887_v27, -inf  ;;  %v13893_v41 = vpop.f32.mrb[186].mxu0 }
0x1319   :  { %v7170_v12 = vmax.f32 %v7168_v15, %v7169_v20  ;;  %v7405_v55 = vmax.f32 %v7400_v21, %v7404_v28  ;;  %v7410_v31 = vsel %vm512_vm4, %v13893_v41, -inf  ;;  %v13899_v40 = vpop.f32.mrb[187].mxu0 }
0x131a   :  { %v7411_v48 = vmax.f32 %v7403_v43, %v7410_v31  ;;  %v7406_v14 = vsel %vm512_vm4, %v13899_v40, -inf }
0x131b   :  { %v13905_v2 = vpop.eup %10873  ;;  %v7171_v45 = vrot.slane %v7170_v12, 1  ;;  %v7407_v35 = vmax.f32 %v7401_v17, %v7406_v14 }
0x131c   :  { %v13907_v51 = vpop.eup %10875  ;;  %v6949_v44 = vsel %vm512_vm4, %v13905_v2, 0.0  ;;  %v7413_v52 = vmax.f32 %v7409_v34, %v7411_v48 }
0x131d   :  { %v13911_v46 = vpop.eup %10877  ;;  %v6950_v8 = vsel %vm512_vm4, %v13907_v51, 0.0  ;;  %v7172_v42 = vmax.f32 %v7170_v12, %v7171_v45  ;;  %v7412_v39 = vmax.f32 %v7405_v55, %v7407_v35 }
0x131e   :  { %v13915_v47 = vpop.eup %10879  ;;  %v6951_v6 = vadd.f32 %v6950_v8, %v6949_v44  ;;  %v13917_v50 = vpop.f32.mrb[188].mxu0  ;;  %v6952_v7 = vsel %vm512_vm4, %v13911_v46, 0.0 }
0x131f   :  { %v13919_v25 = vpop.eup %10881  ;;  %v7173_v10 = vsub.f32 %v13841_v22, %v7172_v42  ;;  %v7174_v63 = vsub.f32 %v13845_v23, %v7172_v42  ;;  %v7175_v58 = vsub.f32 %v13839_v54, %v7172_v42  ;;  %v13926_v4 = vpop.f32.mrb[189].mxu0  ;;  %v7176_v11 = vsub.f32 %v13843_v26, %v7172_v42 }
0x1320   :  { %v13928_v33 = vpop.eup %10883  ;;  %v6953_v32 = vadd.f32 %v6952_v7, %v6951_v6  ;;  %v7177_v56 = vsub.f32 %v13853_v5, %v7172_v42  ;;  %v13932_v15 = vpop.f32.mrb[190].mxu0  ;;  %v6954_v22 = vsel %vm512_vm4, %v13915_v47, 0.0  ;;  %v7178_v23 = vsub.f32 %v13865_v18, %v7172_v42 }
0x1321   :  { %v13934_v20 = vpop.eup %10885  ;;  %v7179_v54 = vsub.f32 %v13847_v61, %v7172_v42  ;;  %v7180_v9 = vsub.f32 %v13859_v13, %v7172_v42  ;;  %v13941_v36 = vpop.f32.mrb[191].mxu0  ;;  %v6956_v5 = vsel %vm512_vm4, %v13919_v25, 0.0  ;;  %v7181_v34 = vmul.f32 1.442695, %v7173_v10 }
0x1322   :  { %v13943_v21 = vpop.eup %10887  ;;  %v6955_v26 = vadd.f32 %v6954_v22, %v6953_v32  ;;  %v7183_v28 = vmul.f32 1.442695, %v7174_v63  ;;  %v6958_v12 = vsel %vm512_vm4, %v13928_v33, 0.0  ;;  %v7185_v43 = vmul.f32 1.442695, %v7175_v58 }
0x1323   :  { %v7187_v55 = vmul.f32 1.442695, %v7176_v11  ;;  %v7414_v18 = vmax.f32 %v7412_v39, %v7413_v52  ;;  %v6960_v61 = vsel %vm512_vm4, %v13934_v20, 0.0  ;;  %v6962_v13 = vsel %vm512_vm4, %v13943_v21, 0.0 }
0x1324   :  { %v6957_v31 = vadd.f32 %v6956_v5, %v6955_v26  ;;  %10889 = vpow2.f32 %v7181_v34  ;;  %v7189_v17 = vmul.f32 1.442695, %v7177_v56  ;;  %v7191_v48 = vmul.f32 1.442695, %v7178_v23 }
0x1325   :  { %10891 = vpow2.f32 %v7183_v28  ;;  %v7415_v14 = vrot.slane %v7414_v18, 4  ;;  %v7193_v35 = vmul.f32 1.442695, %v7179_v54  ;;  %v7195_v44 = vmul.f32 1.442695, %v7180_v9 }
0x1326   :  { %v6959_v45 = vadd.f32 %v6958_v12, %v6957_v31  ;;  %10893 = vpow2.f32 %v7185_v43  ;;  %v13953_v8 = vpop.f32.mrb[192].mxu0  ;;  %v7650_v42 = vsel %vm512_vm4, %v13917_v50, -inf  ;;  %v7648_v39 = vsel %vm512_vm4, %v13926_v4, -inf }
0x1327   :  { %10895 = vpow2.f32 %v7187_v55  ;;  %v7416_v52 = vmax.f32 %v7414_v18, %v7415_v14  ;;  %v13959_v6 = vpop.f32.mrb[193].mxu0  ;;  %v7651_v10 = vsel %vm512_vm4, %v13932_v15, -inf  ;;  %v7656_v63 = vsel %vm512_vm4, %v13953_v8, -inf }
0x1328   :  { %v6961_v7 = vadd.f32 %v6960_v61, %v6959_v45  ;;  %v7652_v58 = vsel %vm512_vm4, %v13959_v6, -inf  ;;  %v13967_v32 = vpop.f32.mrb[194].mxu0  ;;  %10897 = vpow2.f32 %v7189_v17  ;;  %v7657_v56 = vmax.f32 %v7650_v42, %v7656_v63 }
0x1329   :  { %v7417_v11 = vrot.slane %v7416_v52, 2  ;;  %v7653_v22 = vmax.f32 %v7648_v39, %v7652_v58  ;;  %v13969_v23 = vpop.f32.mrb[195].mxu0  ;;  %v7649_v9 = vsel %vm512_vm4, %v13941_v36, -inf  ;;  %v7658_v26 = vsel %vm512_vm4, %v13967_v32, -inf }
0x132a   :  { %v6963_v54 = vadd.f32 %v6962_v13, %v6961_v7  ;;  %v7654_v5 = vsel %vm512_vm4, %v13969_v23, -inf  ;;  %10899 = vpow2.f32 %v7191_v48  ;;  %v7659_v28 = vmax.f32 %v7651_v10, %v7658_v26 }
0x132b   :  { %v7418_v34 = vmax.f32 %v7416_v52, %v7417_v11  ;;  %v7655_v12 = vmax.f32 %v7649_v9, %v7654_v5  ;;  %10901 = vpow2.f32 %v7193_v35 }
0x132c   :  { %v6964_v43 = vrot.slane %v6963_v54, 4  ;;  %v7661_v18 = vmax.f32 %v7657_v56, %v7659_v28  ;;  %10903 = vpow2.f32 %v7195_v44 }
0x132d   :  { %v7419_v55 = vrot.slane %v7418_v34, 1  ;;  %v7660_v31 = vmax.f32 %v7653_v22, %v7655_v12 }
0x132e   :  { %v13977_v61 = vpop.eup %10889  ;;  %v6965_v13 = vadd.f32 %v6964_v43, %v6963_v54 }
0x132f   :  { %v13979_v17 = vpop.eup %10891  ;;  %v7197_v14 = vsel %vm512_vm4, %v13977_v61, 0.0  ;;  %v7420_v45 = vmax.f32 %v7418_v34, %v7419_v55  ;;  %v7662_v42 = vmax.f32 %v7660_v31, %v7661_v18 }
0x1330   :  { %v13983_v48 = vpop.eup %10893  ;;  %v6966_v52 = vrot.slane %v6965_v13, 2  ;;  %v7198_v35 = vsel %vm512_vm4, %v13979_v17, 0.0 }
0x1331   :  { %v13987_v39 = vpop.eup %10895  ;;  %v7199_v7 = vadd.f32 %v7198_v35, %v7197_v14  ;;  %v7421_v10 = vsub.f32 %v13875_v16, %v7420_v45  ;;  %v7422_v63 = vsub.f32 %v13879_v59, %v7420_v45  ;;  %v7200_v44 = vsel %vm512_vm4, %v13983_v48, 0.0 }
0x1332   :  { %v6967_v58 = vadd.f32 %v6966_v52, %v6965_v13  ;;  %v7423_v11 = vsub.f32 %v13873_v60, %v7420_v45  ;;  %v7424_v56 = vsub.f32 %v13877_v49, %v7420_v45  ;;  %v13995_v22 = vpop.eup %10897  ;;  %v7425_v9 = vsub.f32 %v13887_v27, %v7420_v45 }
0x1333   :  { %v7201_v54 = vadd.f32 %v7200_v44, %v7199_v7  ;;  %v7426_v26 = vsub.f32 %v13899_v40, %v7420_v45  ;;  %v7202_v16 = vsel %vm512_vm4, %v13987_v39, 0.0  ;;  %v7427_v59 = vsub.f32 %v13881_v0, %v7420_v45 }
0x1334   :  { %v6968_v5 = vrot.slane %v6967_v58, 1  ;;  %v7428_v34 = vsub.f32 %v13893_v41, %v7420_v45  ;;  %v14003_v28 = vpop.eup %10899  ;;  %v7429_v12 = vmul.f32 1.442695, %v7421_v10  ;;  %v7431_v49 = vmul.f32 1.442695, %v7422_v63 }
0x1335   :  { %v7203_v60 = vadd.f32 %v7202_v16, %v7201_v54  ;;  %v7204_v55 = vsel %vm512_vm4, %v13995_v22, 0.0  ;;  %v7433_v27 = vmul.f32 1.442695, %v7423_v11  ;;  %v14007_v18 = vpop.eup %10901  ;;  %v7435_v31 = vmul.f32 1.442695, %v7424_v56 }
0x1336   :  { %v6969_v43 = vadd.f32 %v6968_v5, %v6967_v58  ;;  %10905 = vpow2.f32 %v7429_v12  ;;  %v7206_v0 = vsel %vm512_vm4, %v14003_v28, 0.0  ;;  %v7437_v41 = vmul.f32 1.442695, %v7425_v9  ;;  %v14011_v14 = vpop.eup %10903 }
0x1337   :  { %v7205_v40 = vadd.f32 %v7204_v55, %v7203_v60  ;;  %v7663_v13 = vrot.slane %v7662_v42, 4  ;;  %v7439_v52 = vmul.f32 1.442695, %v7426_v26  ;;  %v7208_v35 = vsel %vm512_vm4, %v14007_v18, 0.0 }
0x1338   :  { %10907 = vrcp.f32 %v6969_v43  ;;  %v7441_v7 = vmul.f32 1.442695, %v7427_v59  ;;  %v7210_v58 = vsel %vm512_vm4, %v14011_v14, 0.0  ;;  %v7443_v56 = vmul.f32 1.442695, %v7428_v34 }
0x1339   :  { %v7207_v45 = vadd.f32 %v7206_v0, %v7205_v40  ;;  %10909 = vpow2.f32 %v7431_v49  ;;  %v7664_v10 = vmax.f32 %v7662_v42, %v7663_v13 }
0x133a   :  { %10911 = vpow2.f32 %v7433_v27 }
0x133b   :  { %v7209_v63 = vadd.f32 %v7208_v35, %v7207_v45  ;;  %10913 = vpow2.f32 %v7435_v31  ;;  %v7665_v44 = vrot.slane %v7664_v10, 2 }
0x133c   :  { %10915 = vpow2.f32 %v7437_v41 }
0x133d   :  { %v7211_v11 = vadd.f32 %v7210_v58, %v7209_v63  ;;  %10917 = vpow2.f32 %v7439_v52  ;;  %v7666_v54 = vmax.f32 %v7664_v10, %v7665_v44 }
0x133e   :  { %10919 = vpow2.f32 %v7441_v7 }
0x133f   :  { %v7212_v9 = vrot.slane %v7211_v11, 4  ;;  %v7667_v26 = vrot.slane %v7666_v54, 1  ;;  %10921 = vpow2.f32 %v7443_v56 }
0x1340   :  { %v14017_v5 = vpop.eup %10905 }
0x1341   :  { %v7213_v16 = vadd.f32 %v7212_v9, %v7211_v11  ;;  %v7445_v42 = vsel %vm512_vm4, %v14017_v5, 0.0  ;;  %v7668_v59 = vmax.f32 %v7666_v54, %v7667_v26 }
0x1342   :  { %v10908_v60 = vpop.eup %10907 }
0x1343   :  { %v14021_v12 = vpop.eup %10909  ;;  %v7214_v49 = vrot.slane %v7213_v16, 2  ;;  %v6971_v43 = vmul.f32 %v10908_v60, %v13905_v2  ;;  %v6972_v55 = vmul.f32 %v10908_v60, %v13907_v51  ;;  %v6973_v34 = vmul.f32 %v10908_v60, %v13911_v46 }
0x1344   :  { %v14026_v27 = vpop.eup %10911  ;;  %v7446_v40 = vsel %vm512_vm4, %v14021_v12, 0.0  ;;  %v7669_v31 = vsub.f32 %v13926_v4, %v7668_v59  ;;  %v7670_v0 = vsub.f32 %v13941_v36, %v7668_v59  ;;  %v7671_v41 = vsub.f32 %v13917_v50, %v7668_v59 }
0x1345   :  { %v14033_v13 = vpop.eup %10913  ;;  %v7215_v45 = vadd.f32 %v7214_v49, %v7213_v16  ;;  %v7447_v52 = vadd.f32 %v7446_v40, %v7445_v42  ;;  %v7672_v2 = vsub.f32 %v13932_v15, %v7668_v59  ;;  %v7448_v46 = vsel %vm512_vm4, %v14026_v27, 0.0 }
0x1346   :  { %v14036_v51 = vpop.eup %10915  ;;  %v7673_v35 = vsub.f32 %v13959_v6, %v7668_v59  ;;  %v7674_v7 = vsub.f32 %v13969_v23, %v7668_v59  ;;  %v7675_v4 = vsub.f32 %v13953_v8, %v7668_v59  ;;  %v7676_v63 = vsub.f32 %v13967_v32, %v7668_v59 }
0x1347   :  { %v14043_v36 = vpop.eup %10917  ;;  %v7216_v50 = vrot.slane %v7215_v45, 1  ;;  %v7449_v10 = vadd.f32 %v7448_v46, %v7447_v52  ;;  %v7450_v15 = vsel %vm512_vm4, %v14033_v13, 0.0  ;;  %v7677_v44 = vmul.f32 1.442695, %v7669_v31 }
0x1348   :  { %v14046_v58 = vpop.eup %10919  ;;  %v7679_v11 = vmul.f32 1.442695, %v7670_v0  ;;  %v6979_v56 = vpack.c.bf16 %v6972_v55, %v6971_v43  ;;  %v7681_v9 = vmul.f32 1.442695, %v7671_v41  ;;  %v7452_v8 = vsel %vm512_vm4, %v14036_v51, 0.0 }
0x1349   :  { %v7217_v54 = vadd.f32 %v7216_v50, %v7215_v45  ;;  %v7451_v6 = vadd.f32 %v7450_v15, %v7449_v10  ;;  %10923 = vpow2.f32 %v7677_v44  ;;  %v7683_v23 = vmul.f32 1.442695, %v7672_v2  ;;  %v14057_v42 = vpop.eup %10921 }
0x134a   :  { %9892 = vmatpush3.bf16.msra.mxu1 %v6979_v56  ;;  %v7454_v32 = vsel %vm512_vm4, %v14043_v36, 0.0  ;;  %v7456_v16 = vsel %vm512_vm4, %v14046_v58, 0.0  ;;  %v7685_v59 = vmul.f32 1.442695, %v7673_v35  ;;  %v6974_v49 = vmul.f32 %v10908_v60, %v13915_v47 }
0x134b   :  { %10925 = vrcp.f32 %v7217_v54  ;;  %v7453_v26 = vadd.f32 %v7452_v8, %v7451_v6  ;;  %9893 = vmatprep.subr.bf16.mxu1 %v14565_v19  ;;  %v6975_v43 = vmul.f32 %v10908_v60, %v13919_v25  ;;  %v6976_v40 = vmul.f32 %v10908_v60, %v13928_v33 }
0x134c   :  { %10927 = vpow2.f32 %v7679_v11  ;;  %v6977_v31 = vmul.f32 %v10908_v60, %v13934_v20  ;;  %v7687_v0 = vmul.f32 1.442695, %v7674_v7  ;;  %v6980_v41 = vpack.c.bf16 %v6974_v49, %v6973_v34 }
0x134d   :  { %v7455_v55 = vadd.f32 %v7454_v32, %v7453_v26  ;;  %10929 = vpow2.f32 %v7681_v9  ;;  %v6978_v45 = vmul.f32 %v10908_v60, %v13943_v21  ;;  %v6981_v2 = vpack.c.bf16 %v6976_v40, %v6975_v43 }
0x134e   :  { %10931 = vpow2.f32 %v7683_v23  ;;  %v7458_v46 = vsel %vm512_vm4, %v14057_v42, 0.0  ;;  %v7689_v47 = vmul.f32 1.442695, %v7675_v4  ;;  %9894 = vmatpush3.bf16.msra.mxu1 %v6980_v41  ;;  %v7691_v50 = vmul.f32 1.442695, %v7676_v63 }
0x134f   :  { %v7457_v52 = vadd.f32 %v7456_v16, %v7455_v55  ;;  %10933 = vpow2.f32 %v7685_v59  ;;  %v6982_v25 = vpack.c.bf16 %v6978_v45, %v6977_v31  ;;  %9895 = vmatprep.subr.bf16.mxu1 %v14565_v19  ;;  %v6985_v16 = vpop.permute.xlu1 %6984 }
0x1350   :  { %10935 = vpow2.f32 %v7687_v0 }
0x1351   :  { %v7459_v35 = vadd.f32 %v7458_v46, %v7457_v52  ;;  %10937 = vpow2.f32 %v7689_v47 }
0x1352   :  { %9896 = vmatpush3.bf16.msra.mxu1 %v6981_v2  ;;  %10939 = vpow2.f32 %v7691_v50 }
0x1353   :  { %v7460_v33 = vrot.slane %v7459_v35, 4  ;;  %v14067_v20 = vpop.eup %10923  ;;  %9897 = vmatprep.subr.bf16.mxu1 %v14565_v19 }
0x1354   :  { %v7693_v34 = vsel %vm512_vm4, %v14067_v20, 0.0 }
0x1355   :  { %v10926_v21 = vpop.eup %10925  ;;  %v7461_v60 = vadd.f32 %v7460_v33, %v7459_v35 }
0x1356   :  { %v14072_v7 = vpop.eup %10927  ;;  %v7219_v4 = vmul.f32 %v10926_v21, %v13977_v61  ;;  %v7220_v10 = vmul.f32 %v10926_v21, %v13979_v17  ;;  %v7221_v63 = vmul.f32 %v10926_v21, %v13983_v48  ;;  %v7222_v15 = vmul.f32 %v10926_v21, %v13987_v39  ;;  %9898 = vmatpush3.bf16.msra.mxu1 %v6982_v25 }
0x1357   :  { %v14078_v44 = vpop.eup %10929  ;;  %v7462_v11 = vrot.slane %v7461_v60, 2  ;;  %v7694_v56 = vsel %vm512_vm4, %v14072_v7, 0.0  ;;  %v7223_v54 = vmul.f32 %v10926_v21, %v13995_v22  ;;  %v7224_v6 = vmul.f32 %v10926_v21, %v14003_v28  ;;  %9913 = vmatprep.subr.bf16.mxu1 %v14565_v19 }
0x1358   :  { %v14084_v9 = vpop.eup %10931  ;;  %v7695_v8 = vadd.f32 %v7694_v56, %v7693_v34  ;;  %v7227_v61 = vpack.c.bf16 %v7220_v10, %v7219_v4  ;;  %v7228_v17 = vpack.c.bf16 %v7222_v15, %v7221_v63  ;;  %v7696_v48 = vsel %vm512_vm4, %v14078_v44, 0.0 }
0x1359   :  { %v7463_v23 = vadd.f32 %v7462_v11, %v7461_v60  ;;  %v7229_v39 = vpack.c.bf16 %v7224_v6, %v7223_v54  ;;  %v7225_v26 = vmul.f32 %v10926_v21, %v14007_v18  ;;  %v14090_v32 = vpop.eup %10933  ;;  %v7226_v28 = vmul.f32 %v10926_v21, %v14011_v14  ;;  %9900 = vmatmul.mubr.msk.bf16.vlgmr.msra.gmra.mrb[144].mxu1 %vm512_vm4, %v6985_v16  ;;  %v7233_v60 = vpop.permute.xlu1 %7232 }
0x135a   :  { %v7697_v22 = vadd.f32 %v7696_v48, %v7695_v8  ;;  %v7698_v49 = vsel %vm512_vm4, %v14084_v9, 0.0  ;;  %v14096_v43 = vpop.eup %10935  ;;  %9914 = vmatpush3.bf16.msra.mxu1 %v7227_v61  ;;  %9921 = vmatprep.mubr.msk.bf16.mxu1 %vm10953_vm3, %v14565_v19  ;;  %v7700_v31 = vsel %vm512_vm4, %v14090_v32, 0.0 }
0x135b   :  { %v7464_v59 = vrot.slane %v7463_v23, 1  ;;  %v7230_v40 = vpack.c.bf16 %v7226_v28, %v7225_v26  ;;  %9915 = vmatprep.subr.bf16.mxu1 %v14565_v19  ;;  %v10938_v14 = vpop.eup %10937  ;;  %v7702_v45 = vsel %vm512_vm4, %v14096_v43, 0.0 }
0x135c   :  { %v7699_v55 = vadd.f32 %v7698_v49, %v7697_v22  ;;  %v10940_v41 = vpop.eup %10939  ;;  %v7704_v2 = vsel %vm512_vm4, %v10938_v14, 0.0 }
0x135d   :  { %v7465_v18 = vadd.f32 %v7464_v59, %v7463_v23  ;;  %v7706_v47 = vsel %vm512_vm4, %v10940_v41, 0.0 }
0x135e   :  { %v7701_v0 = vadd.f32 %v7700_v31, %v7699_v55  ;;  %9916 = vmatpush3.bf16.msra.mxu1 %v7228_v17 }
0x135f   :  { %10941 = vrcp.f32 %v7465_v18  ;;  %9917 = vmatprep.subr.bf16.mxu1 %v14565_v19 }
0x1360   :  { %v7703_v52 = vadd.f32 %v7702_v45, %v7701_v0 }
0x1362   :  { %v7705_v46 = vadd.f32 %v7704_v2, %v7703_v52  ;;  %9918 = vmatpush3.bf16.msra.mxu1 %v7229_v39 }
0x1363   :  { %9919 = vmatprep.subr.bf16.mxu1 %v14565_v19 }
0x1364   :  { %v7707_v25 = vadd.f32 %v7706_v47, %v7705_v46 }
0x1366   :  { %v7708_v35 = vrot.slane %v7707_v25, 4  ;;  %9920 = vmatpush3.bf16.msra.mxu1 %v7230_v40 }
0x1367   :  { %9935 = vmatprep.subr.bf16.mxu1 %v14565_v19 }
0x1368   :  { %v7709_v50 = vadd.f32 %v7708_v35, %v7707_v25 }
0x1369   :  { %v10942_v33 = vpop.eup %10941  ;;  %9922 = vmatmul.mubr.msk.bf16.vlgmr.msra.gmra.mrb[148].mxu1 %vm512_vm4, %v7233_v60 }
0x136a   :  { %v7710_v21 = vrot.slane %v7709_v50, 2  ;;  %v7467_v34 = vmul.f32 %v10942_v33, %v14017_v5  ;;  %v7468_v4 = vmul.f32 %v10942_v33, %v14021_v12  ;;  %v7469_v10 = vmul.f32 %v10942_v33, %v14026_v27  ;;  %9943 = vmatprep.mubr.msk.bf16.mxu1 %vm10953_vm3, %v14565_v19 }
0x136b   :  { %v7470_v63 = vmul.f32 %v10942_v33, %v14033_v13  ;;  %v7471_v15 = vmul.f32 %v10942_v33, %v14036_v51  ;;  %v7472_v11 = vmul.f32 %v10942_v33, %v14043_v36  ;;  %v7473_v56 = vmul.f32 %v10942_v33, %v14046_v58  ;;  %v7481_v36 = vpop.permute.xlu1 %7480 }
0x136c   :  { %v7711_v54 = vadd.f32 %v7710_v21, %v7709_v50  ;;  %v7475_v6 = vpack.c.bf16 %v7468_v4, %v7467_v34  ;;  %v7474_v8 = vmul.f32 %v10942_v33, %v14057_v42  ;;  %v8907_v4 = vld [vmem:[%s14506_s8 + $0x40] sm:$0xff] }
0x136d   :  { %v7476_v5 = vpack.c.bf16 %v7470_v63, %v7469_v10  ;;  %v7477_v12 = vpack.c.bf16 %v7472_v11, %v7471_v15  ;;  %v8908_v10 = vld [vmem:[%s14506_s8 + $0x48] sm:$0xff]  ;;  %v8909_v63 = vld [vmem:[%s14506_s8 + $0x50] sm:$0xff]  ;;  %v8910_v15 = vld [vmem:[%s14506_s8 + $0x58] sm:$0xff] }
0x136e   :  { %v7712_v27 = vrot.slane %v7711_v54, 1  ;;  %9936 = vmatpush3.bf16.msra.mxu1 %v7475_v6  ;;  %v7478_v61 = vpack.c.bf16 %v7474_v8, %v7473_v56  ;;  %v8915_v6 = vld [vmem:[%s14507_s9 + $0x80] sm:$0xff] }
0x136f   :  { %9937 = vmatprep.subr.bf16.mxu1 %v14565_v19 }
0x1370   :  { %v7713_v13 = vadd.f32 %v7712_v27, %v7711_v54  ;;  %v8920_v27 = vld [vmem:[%s14508_s10 + $0x88] sm:$0xff] }
0x1372   :  { %10943 = vrcp.f32 %v7713_v13  ;;  %9938 = vmatpush3.bf16.msra.mxu1 %v7476_v5  ;;  %v8916_v5 = vld [vmem:[%s14507_s9 + $0x88] sm:$0xff]  ;;  %v8917_v13 = vld [vmem:[%s14507_s9 + $0x90] sm:$0xff] }
0x1373   :  { %9939 = vmatprep.subr.bf16.mxu1 %v14565_v19 }
0x1376   :  { %9940 = vmatpush3.bf16.msra.mxu1 %v7477_v12  ;;  %v8919_v12 = vld [vmem:[%s14508_s10 + $0x80] sm:$0xff] }
0x1377   :  { %9941 = vmatprep.subr.bf16.mxu1 %v14565_v19 }
0x137a   :  { %9942 = vmatpush3.bf16.msra.mxu1 %v7478_v61  ;;  %v10493_v61 = vld [vmem:[%s14505_s7 + $0x20] sm:$0xff]  }
0x137b   :  { %9957 = vmatprep.subr.bf16.mxu1 %v14565_v19  ;;  %9973 = vmatprep.mubr.msk.bf16.mxu0 %vm224_vm0, %v10493_v61  ;;  %v8559_v61 = vld [vmem:[%s14515_s16] sm:$0xff] }
0x137c   :  { %v10944_v51 = vpop.eup %10943 }
0x137d   :  { %9944 = vmatmul.mubr.msk.bf16.vlgmr.msra.gmra.mrb[152].mxu1 %vm512_vm4, %v7481_v36  ;;  %v7715_v58 = vmul.f32 %v10944_v51, %v14067_v20  ;;  %v7716_v42 = vmul.f32 %v10944_v51, %v14072_v7  ;;  %v7717_v17 = vmul.f32 %v10944_v51, %v14078_v44  ;;  %v7718_v23 = vmul.f32 %v10944_v51, %v14084_v9 }
0x137e   :  { %v7719_v39 = vmul.f32 %v10944_v51, %v14090_v32  ;;  %v7720_v26 = vmul.f32 %v10944_v51, %v14096_v43  ;;  %v7721_v22 = vmul.f32 %v10944_v51, %v10938_v14  ;;  %v7722_v16 = vmul.f32 %v10944_v51, %v10940_v41  ;;  %9965 = vmatprep.mubr.msk.bf16.mxu1 %vm10953_vm3, %v14565_v19  ;;  %v7729_v43 = vpop.permute.xlu1 %7728 }
0x137f   :  { %v14130_v48 = vpop.f32.mrb[128].mxu1  ;;  %v7723_v59 = vpack.c.bf16 %v7716_v42, %v7715_v58  ;;  %v7724_v20 = vpack.c.bf16 %v7718_v23, %v7717_v17  ;;  %v8918_v23 = vld [vmem:[%s14507_s9 + $0x98] sm:$0xff] }
0x1380   :  { %v9813_v28 = vpop.f32.mrb[129].mxu1  ;;  %v7725_v7 = vpack.c.bf16 %v7720_v26, %v7719_v39  ;;  %v7726_v55 = vpack.c.bf16 %v7722_v16, %v7721_v22  ;;  %v8936_v39 = vld [vmem:[%s14509_s12 + $0xa8] sm:$0xff]  ;;  %v8921_v26 = vld [vmem:[%s14508_s10 + $0x90] sm:$0xff]  ;;  %v8938_v22 = vld [vmem:[%s14509_s12 + $0xb8] sm:$0xff] }
0x1381   :  { %v6058_v49 = vpop.f32.mrb[130].mxu1  ;;  %9958 = vmatpush3.bf16.msra.mxu1 %v7723_v59  ;;  %v8922_v16 = vld [vmem:[%s14508_s10 + $0x98] sm:$0xff]  ;;  %v8812_v28 = vld [vmem:[%s14510_s14 + $0x28] sm:$0xff]  ;;  %v8931_v59 = vld [vmem:[%s14509_s12 + $0x80] sm:$0xff] }
0x1382   :  { %v9814_v44 = vpop.f32.mrb[131].mxu1  ;;  %9959 = vmatprep.subr.bf16.mxu1 %v14565_v19  ;;  %v8932_v49 = vld [vmem:[%s14509_s12 + $0x88] sm:$0xff] }
0x1383   :  { %v8954_v44 = vld [vmem:[%s14510_s14 + $0x58] sm:$0xff] }
0x1385   :  { %9960 = vmatpush3.bf16.msra.mxu1 %v7724_v20  ;;  %v8814_v20 = vld [vmem:[%s14510_s14 + $0x38] sm:$0xff] }
0x1386   :  { %9961 = vmatprep.subr.bf16.mxu1 %v14565_v19 }
0x1389   :  { %9962 = vmatpush3.bf16.msra.mxu1 %v7725_v7  ;;  %v8952_v7 = vld [vmem:[%s14510_s14 + $0x48] sm:$0xff] }
0x138a   :  { %9963 = vmatprep.subr.bf16.mxu1 %v14565_v19 }
0x138d   :  { %9964 = vmatpush3.bf16.msra.mxu1 %v7726_v55  ;;  %v8933_v55 = vld [vmem:[%s14509_s12 + $0x90] sm:$0xff] }
0x138f   :  { %v14139_v9 = vpop.f32.mrb[132].mxu1 }
0x1390   :  { %v9835_v32 = vpop.f32.mrb[133].mxu1  ;;  %9966 = vmatmul.mubr.msk.bf16.vlgmr.msra.gmra.mrb[156].mxu1 %vm512_vm4, %v7729_v43  ;;  %v8820_v43 = vld [vmem:[%s14507_s9 + $0x68] sm:$0xff] }
0x1391   :  { %v6298_v40 = vpop.f32.mrb[134].mxu1  ;;  %v8934_v32 = vld [vmem:[%s14509_s12 + $0x98] sm:$0xff] }
0x1392   :  { %v9836_v18 = vpop.f32.mrb[135].mxu1  ;;  %v8935_v40 = vld [vmem:[%s14509_s12 + $0xa0] sm:$0xff] }
0x1393   :  { %v8824_v18 = vld [vmem:[%s14508_s10 + $0x68] sm:$0xff] }
0x13a3   :  { %v14142_v31 = vpop.f32.mrb[136].mxu1 }
0x13a4   :  { %v9857_v14 = vpop.f32.mrb[137].mxu1 }
0x13a5   :  { %v6538_v0 = vpop.f32.mrb[138].mxu1  ;;  %v8937_v14 = vld [vmem:[%s14509_s12 + $0xb0] sm:$0xff] }
0x13a6   :  { %v9858_v41 = vpop.f32.mrb[139].mxu1  ;;  %v8822_v0 = vld [vmem:[%s14507_s9 + $0x78] sm:$0xff] }
0x13a7   :  { %v8811_v41 = vld [vmem:[%s14510_s14 + $0x20] sm:$0xff] }
0x13b6   :  { %v14144_v45 = vpop.f32.mrb[140].mxu1 }
0x13b7   :  { %v9879_v52 = vpop.f32.mrb[141].mxu1 }
0x13b8   :  { %v6778_v2 = vpop.f32.mrb[142].mxu1  ;;  %v8826_v52 = vld [vmem:[%s14508_s10 + $0x78] sm:$0xff] }
0x13b9   :  { %v9880_v46 = vpop.f32.mrb[143].mxu1  ;;  %v8813_v2 = vld [vmem:[%s14510_s14 + $0x30] sm:$0xff] }
0x13ba   :  { %v8960_v46 = vld [vmem:[%s14507_s9 + $0xa8] sm:$0xff] }
0x142c   :  { %v7023_v19 = vpop.f32.mrb[144].mxu1 }
0x142d   :  { %v9901_v47 = vpop.f32.mrb[145].mxu1 }
0x142e   :  { %v7026_v25 = vpop.f32.mrb[146].mxu1  ;;  %v8964_v47 = vld [vmem:[%s14508_s10 + $0xa8] sm:$0xff] }
0x142f   :  { %v9902_v35 = vpop.f32.mrb[147].mxu1  ;;  %v8953_v25 = vld [vmem:[%s14510_s14 + $0x50] sm:$0xff] }
0x1430   :  { %v8962_v35 = vld [vmem:[%s14507_s9 + $0xb8] sm:$0xff] }
0x143c   :  { %v7271_v50 = vpop.f32.mrb[148].mxu1 }
0x143d   :  { %v10449_v33 = vpack.i.bf16 %v7271_v50, %v7023_v19  ;;  %v9923_v21 = vpop.f32.mrb[149].mxu1  ;;  %v8951_v19 = vld [vmem:[%s14510_s14 + $0x40] sm:$0xff] }
0x143e   :  { %v7274_v60 = vpop.f32.mrb[150].mxu1  ;;  %v8819_v50 = vld [vmem:[%s14507_s9 + $0x60] sm:$0xff] }
0x143f   :  { %10450 = vrot.lane.b32.xlu1 %v10449_v33, %s10951_s20  ;;  %v9924_v34 = vpop.f32.mrb[151].mxu1  ;;  %v8966_v33 = vld [vmem:[%s14508_s10 + $0xb8] sm:$0xff]  ;;  %v8823_v21 = vld [vmem:[%s14508_s10 + $0x60] sm:$0xff]  ;;  %v8560_v60 = vld [vmem:[%s14515_s16 + $0x8] sm:$0xff] }
0x1440   :  { %v8821_v34 = vld [vmem:[%s14507_s9 + $0x70] sm:$0xff] }
0x1443   :  { %7807 = vperm.xlu1 %10166, %v8907_v4   ;;  %v8562_v4 = vld [vmem:[%s14515_s16 + $0x18] sm:$0xff] }
0x1447   :  { %7812 = vperm.xlu1 %10166, %v8908_v10   ;;  %v8825_v10 = vld [vmem:[%s14508_s10 + $0x70] sm:$0xff] }
0x144b   :  { %7817 = vperm.xlu1 %10166, %v8909_v63   ;;  %v8959_v63 = vld [vmem:[%s14507_s9 + $0xa0] sm:$0xff] }
0x144f   :  { %7822 = vperm.xlu1 %10166, %v8910_v15   ;;  %v8963_v15 = vld [vmem:[%s14508_s10 + $0xa0] sm:$0xff] }
0x1450   :  { %v7519_v11 = vpop.f32.mrb[152].mxu1 }
0x1451   :  { %v9945_v56 = vpop.f32.mrb[153].mxu1 }
0x1452   :  { %v7522_v54 = vpop.f32.mrb[154].mxu1 }
0x1453   :  { %v9946_v8 = vpop.f32.mrb[155].mxu1  ;;  %7936 = vperm.xlu1 %10166, %v8915_v6  }
0x1454   :  { %v8965_v8 = vld [vmem:[%s14508_s10 + $0xb0] sm:$0xff] }
0x1457   :  { %7941 = vperm.xlu1 %10166, %v8916_v5  }
0x145b   :  { %7960 = vperm.xlu1 %10166, %v8919_v12  }
0x145f   :  { %7965 = vperm.xlu1 %10166, %v8920_v27  }
0x1463   :  { %v7767_v51 = vpop.f32.mrb[156].mxu1  ;;  %7946 = vperm.xlu1 %10166, %v8917_v13   ;;  %v8561_v13 = vld [vmem:[%s14515_s16 + $0x10] sm:$0xff] }
0x1464   :  { %v10454_v36 = vpack.i.bf16 %v7767_v51, %v7519_v11  ;;  %v9967_v58 = vpop.f32.mrb[157].mxu1  ;;  %v8961_v11 = vld [vmem:[%s14507_s9 + $0xb0] sm:$0xff] }
0x1465   :  { %v7770_v42 = vpop.f32.mrb[158].mxu1 }
0x1466   :  { %10455 = vrot.lane.b32.xlu0 %v10454_v36, %s10951_s20  ;;  %v9968_v17 = vpop.f32.mrb[159].mxu1 }
0x1467   :  { %7951 = vperm.xlu1 %10166, %v8918_v23  }
0x146a   :  { %8029 = vperm.xlu0 %10165, %v8936_v39  }
0x146b   :  { %7970 = vperm.xlu1 %10166, %v8921_v26  }
0x146e   :  { %8039 = vperm.xlu0 %10165, %v8938_v22  }
0x146f   :  { %7975 = vperm.xlu1 %10166, %v8922_v16  }
0x1472   :  { %5455 = vperm.xlu0 %10165, %v8812_v28  }
0x1473   :  { %8004 = vperm.xlu1 %10166, %v8931_v59   ;;  %v10494_v59 = vld [vmem:[%s14505_s7 + $0x28] sm:$0xff]  }
0x1476   :  { %5465 = vperm.xlu0 %10165, %v8814_v20  }
0x1477   :  { %8009 = vperm.xlu1 %10166, %v8932_v49  }
0x147a   :  { %8168 = vperm.xlu0 %10165, %v8952_v7  }
0x147b   :  { %8014 = vperm.xlu1 %10166, %v8933_v55  }
0x147e   :  { %8178 = vperm.xlu0 %10165, %v8954_v44  }
0x147f   :  { %8019 = vperm.xlu1 %10166, %v8934_v32  }
0x1482   :  { %5588 = vperm.xlu0 %10165, %v8820_v43  }
0x1483   :  { %8024 = vperm.xlu1 %10166, %v8935_v40  }
0x1486   :  { %5612 = vperm.xlu0 %10165, %v8824_v18  }
0x1487   :  { %8034 = vperm.xlu1 %10166, %v8937_v14  }
0x148a   :  { %5598 = vperm.xlu0 %10165, %v8822_v0  }
0x148b   :  { %5450 = vperm.xlu1 %10166, %v8811_v41  }
0x148e   :  { %5622 = vperm.xlu0 %10165, %v8826_v52  }
0x148f   :  { %5460 = vperm.xlu1 %10166, %v8813_v2  }
0x1492   :  { %8301 = vperm.xlu0 %10165, %v8960_v46  }
0x1493   :  { %8163 = vperm.xlu1 %10166, %v8951_v19  }
0x1496   :  { %8325 = vperm.xlu0 %10165, %v8964_v47  }
0x1497   :  { %8173 = vperm.xlu1 %10166, %v8953_v25  }
0x149a   :  { %8311 = vperm.xlu0 %10165, %v8962_v35  }
0x149b   :  { %5583 = vperm.xlu1 %10166, %v8819_v50  }
0x149e   :  { %8335 = vperm.xlu0 %10165, %v8966_v33  }
0x149f   :  { %5607 = vperm.xlu1 %10166, %v8823_v21  }
0x14a2   :  { %8570 = vperm.xlu0 %10165, %v8560_v60  }
0x14a3   :  { %5593 = vperm.xlu1 %10166, %v8821_v34  }
0x14a6   :  { %8580 = vperm.xlu0 %10165, %v8562_v4  }
0x14a7   :  { %5617 = vperm.xlu1 %10166, %v8825_v10  }
0x14ab   :  { %8296 = vperm.xlu1 %10166, %v8959_v63  }
0x14af   :  { %8320 = vperm.xlu1 %10166, %v8963_v15  }
0x14b1   :  { %v10451_v56 = vpop.permute.xlu1 %10450 }
0x14b2   :  { %v10453_v54 = vunpack.i.h.bf16 %v10451_v56  ;;  %v10452_v6 = vunpack.i.l.bf16 %v10451_v56 }
0x14b3   :  { %8306 = vperm.xlu1 %10166, %v8961_v11  }
0x14b4   :  { %v7789_v5 = vsel %vm512_vm4, %v14130_v48, %v10452_v6  ;;  %v7790_v12 = vsel %vm512_vm4, %v14139_v9, %v10453_v54 }
0x14b5   :  { %v7798_v27 = vpack.c.bf16 %v7790_v12, %v7789_v5 }
0x14b7   :  { %8330 = vperm.xlu1 %10166, %v8965_v8   ;;  %9969 = vmatprep.subr.bf16.mxu0 %v7798_v27 }
0x14b8   :  { %9970 = vmatpush3.bf16.msra.mxu0 %v7798_v27 }
0x14bb   :  { %8565 = vperm.xlu1 %10166, %v8559_v61  }
0x14bf   :  { %8575 = vperm.xlu1 %10166, %v8561_v13  }
0x14c2   :  { %v14300_v51 = vpop.permute.xlu1 %7807 }
0x14c6   :  { %v14302_v48 = vpop.permute.xlu1 %7812 }
0x14ca   :  { %v14304_v36 = vpop.permute.xlu1 %7817 }
0x14ce   :  { %v14306_v9 = vpop.permute.xlu1 %7822 }
0x14d2   :  { %v14308_v58 = vpop.permute.xlu1 %7936 }
0x14d6   :  { %v14310_v17 = vpop.permute.xlu1 %7941 }
0x14d8   :  { %v10456_v42 = vpop.permute.xlu0 %10455 }
0x14d9   :  { %v10458_v23 = vunpack.i.h.bf16 %v10456_v42  ;;  %v10457_v39 = vunpack.i.l.bf16 %v10456_v42 }
0x14da   :  { %v14316_v28 = vpop.permute.xlu1 %7960 }
0x14db   :  { %v7791_v26 = vsel %vm512_vm4, %v14142_v31, %v10457_v39  ;;  %v7792_v22 = vsel %vm512_vm4, %v14144_v45, %v10458_v23 }
0x14dc   :  { %v7799_v16 = vpack.c.bf16 %v7792_v22, %v7791_v26 }
0x14de   :  { %9971 = vmatprep.subr.bf16.mxu0 %v7799_v16  ;;  %v14321_v20 = vpop.permute.xlu1 %7965 }
0x14df   :  { %9972 = vmatpush3.bf16.msra.mxu0 %v7799_v16 }
0x14e2   :  { %9974 = vmatmul.mubr.msk.bf16.vlgmr.msra.gmra.mrb[196].mxu0 %vm224_vm0, %v10494_v59  ;;  %v14324_v49 = vpop.permute.xlu1 %7946 }
0x14e6   :  { %v14326_v7 = vpop.permute.xlu1 %7951 }
0x14e9   :  { %v14336_v32 = vpop.permute.xlu0 %8029 }
0x14ea   :  { %v14328_v31 = vpop.permute.xlu1 %7970 }
0x14ed   :  { %v14342_v18 = vpop.permute.xlu0 %8039 }
0x14ee   :  { %v14330_v45 = vpop.permute.xlu1 %7975 }
0x14f1   :  { %v5456_v0 = vpop.permute.xlu0 %5455 }
0x14f2   :  { %v14332_v55 = vpop.permute.xlu1 %8004  ;;  %v5522_v52 = vadd.f32 %v13322_v38, %v5456_v0 }
0x14f4   :  { %v5534_v47 = vadd.f32 %v5522_v52, %v13248_v53 }
0x14f5   :  { %v5466_v19 = vpop.permute.xlu0 %5465 }
0x14f6   :  { %v14334_v44 = vpop.permute.xlu1 %8009  ;;  %v5530_v50 = vadd.f32 %v13320_v3, %v5466_v19 }
0x14f8   :  { %v5536_v34 = vadd.f32 %v5530_v50, %v13252_v24 }
0x14f9   :  { %v14356_v61 = vpop.permute.xlu0 %8168 }
0x14fa   :  { %v14338_v43 = vpop.permute.xlu1 %8014 }
0x14fd   :  { %v14360_v26 = vpop.permute.xlu0 %8178 }
0x14fe   :  { %v14340_v40 = vpop.permute.xlu1 %8019 }
0x1501   :  { %v5589_v52 = vpop.permute.xlu0 %5588 }
0x1502   :  { %v14344_v14 = vpop.permute.xlu1 %8024 }
0x1506   :  { %v14346_v41 = vpop.permute.xlu1 %8034 }
0x150a   :  { %v5451_v2 = vpop.permute.xlu1 %5450 }
0x150b   :  { %v5519_v46 = vadd.f32 %v13318_v57, %v5451_v2 }
0x150d   :  { %v5533_v25 = vadd.f32 %v5519_v46, %v13246_v62 }
0x150e   :  { %v5461_v35 = vpop.permute.xlu1 %5460 }
0x150f   :  { %v5547_v33 = vadd.f32 %v5534_v47, %v5533_v25  ;;  %v5527_v21 = vadd.f32 %v13316_v30, %v5461_v35 }
0x1511   :  { %v5535_v60 = vadd.f32 %v5527_v21, %v13250_v1 }
0x1512   :  { %v14358_v13 = vpop.permute.xlu1 %8163 }
0x1513   :  { %v5548_v4 = vadd.f32 %v5547_v33, %v5535_v60 }
0x1515   :  { %v5549_v38 = vadd.f32 %v5548_v4, %v5536_v34 }
0x1516   :  { %v14362_v22 = vpop.permute.xlu1 %8173 }
0x1517   :  { %v5550_v10 = vrot.slane %v5549_v38, 4 }
0x1519   :  { %v5551_v63 = vadd.f32 %v5550_v10, %v5549_v38 }
0x151a   :  { %v5584_v2 = vpop.permute.xlu1 %5583 }
0x151b   :  { %v5552_v57 = vrot.slane %v5551_v63, 2 }
0x151d   :  { %v5553_v15 = vadd.f32 %v5552_v57, %v5551_v63 }
0x151f   :  { %v5554_v11 = vrot.slane %v5553_v15, 1 }
0x1521   :  { %v5555_v53 = vadd.f32 %v5554_v11, %v5553_v15 }
0x1523   :  { %v5556_v56 = vmul.f32 0.03125, %v5555_v53 }
0x1525   :  { %v5559_v62 = vsub.f32 %v5535_v60, %v5556_v56  ;;  %v5557_v54 = vsub.f32 %v5533_v25, %v5556_v56  ;;  %v5558_v6 = vsub.f32 %v5534_v47, %v5556_v56  ;;  %v5560_v3 = vsub.f32 %v5536_v34, %v5556_v56  ;;  %v5613_v47 = vpop.permute.xlu0 %5612  ;;  %v5608_v25 = vpop.permute.xlu1 %5607 }
0x1527   :  { %v5561_v8 = vmul.f32 %v5557_v54, %v5557_v54  ;;  %v5562_v5 = vmul.f32 %v5558_v6, %v5558_v6  ;;  %v5563_v30 = vmul.f32 %v5559_v62, %v5559_v62  ;;  %v5564_v1 = vmul.f32 %v5560_v3, %v5560_v3 }
0x1529   :  { %v5565_v12 = vadd.f32 %v5562_v5, %v5561_v8  ;;  %v5599_v35 = vpop.permute.xlu0 %5598  ;;  %v5594_v50 = vpop.permute.xlu1 %5593 }
0x152b   :  { %v5566_v27 = vadd.f32 %v5565_v12, %v5563_v30 }
0x152d   :  { %v5567_v24 = vadd.f32 %v5566_v27, %v5564_v1  ;;  %v5623_v15 = vpop.permute.xlu0 %5622  ;;  %v5618_v11 = vpop.permute.xlu1 %5617 }
0x152f   :  { %v5568_v42 = vrot.slane %v5567_v24, 4 }
0x1531   :  { %v5569_v23 = vadd.f32 %v5568_v42, %v5567_v24 }
0x1533   :  { %v5570_v39 = vrot.slane %v5569_v23, 2 }
0x1535   :  { %v5571_v16 = vadd.f32 %v5570_v39, %v5569_v23 }
0x1537   :  { %v5572_v59 = vrot.slane %v5571_v16, 1 }
0x1539   :  { %v5573_v0 = vadd.f32 %v5572_v59, %v5571_v16 }
0x153b   :  { %v5574_v46 = vmul.f32 0.03125, %v5573_v0 }
0x153d   :  { %v5575_v19 = vadd.f32 1e-05, %v5574_v46 }
0x153f   :  { %10945 = vrsqrt.f32 %v5575_v19 }
0x1549   :  { %v10946_v33 = vpop.eup %10945 }
0x154a   :  { %v5577_v21 = vmul.f32 %v10946_v33, %v5557_v54  ;;  %v5578_v60 = vmul.f32 %v10946_v33, %v5558_v6  ;;  %v5579_v34 = vmul.f32 %v10946_v33, %v5559_v62  ;;  %v5580_v4 = vmul.f32 %v10946_v33, %v5560_v3  ;;  %v10495_v54 = vld [vmem:[%s14511_s11 + $0x40] sm:$0xff]  }
0x154b   :  { %9981 = vmatprep.mubr.msk.bf16.mxu1 %vm224_vm0, %v10495_v54 }
0x154c   :  { %v5601_v38 = vmul.f32 %v5584_v2, %v5577_v21  ;;  %v5602_v10 = vmul.f32 %v5589_v52, %v5578_v60  ;;  %v5603_v63 = vmul.f32 %v5594_v50, %v5579_v34  ;;  %v5604_v57 = vmul.f32 %v5599_v35, %v5580_v4 }
0x154e   :  { %v5625_v53 = vadd.f32 %v5608_v25, %v5601_v38  ;;  %v5626_v56 = vadd.f32 %v5613_v47, %v5602_v10  ;;  %v5627_v8 = vadd.f32 %v5618_v11, %v5603_v63  ;;  %v5628_v5 = vadd.f32 %v5623_v15, %v5604_v57 }
0x1550   :  { %v14364_v30 = vpack.c.bf16 %v5626_v56, %v5625_v53  ;;  %8591 = vst [vmem:[%s14516_s18] sm:$0xff] %v5625_v53  ;;  %8592 = vst [vmem:[%s14516_s18 + $0x8] sm:$0xff] %v5626_v56  ;;  %v14372_v62 = vpack.c.bf16 %v5628_v5, %v5627_v8 }
0x1551   :  { %8593 = vst [vmem:[%s14516_s18 + $0x10] sm:$0xff] %v5627_v8  ;;  %8594 = vst [vmem:[%s14516_s18 + $0x18] sm:$0xff] %v5628_v5 }
0x15b5   :  { %v9975_v6 = vpop.f32.mrb[196].mxu0 }
0x15b6   :  { %v7875_v3 = vpop.f32.mrb[197].mxu0  ;;  %v7884_v42 = vadd.f32 %v9975_v6, %v14304_v36 }
0x15b7   :  { %v9976_v12 = vpop.f32.mrb[198].mxu0  ;;  %v7876_v27 = vadd.f32 %v7875_v3, %v14300_v51 }
0x15b8   :  { %v7878_v1 = vpop.f32.mrb[199].mxu0  ;;  %v7887_v39 = vadd.f32 %v9976_v12, %v14306_v9 }
0x15b9   :  { %v7879_v24 = vadd.f32 %v7878_v1, %v14302_v48 }
0x15bb   :  { %v7900_v23 = vadd.f32 %v7879_v24, %v7876_v27 }
0x15bd   :  { %v7901_v16 = vadd.f32 %v7900_v23, %v7884_v42 }
0x15bf   :  { %v7902_v59 = vadd.f32 %v7901_v16, %v7887_v39 }
0x15c1   :  { %v7903_v0 = vrot.slane %v7902_v59, 4 }
0x15c3   :  { %v7904_v52 = vadd.f32 %v7903_v0, %v7902_v59 }
0x15c5   :  { %v7905_v2 = vrot.slane %v7904_v52, 2 }
0x15c7   :  { %v7906_v46 = vadd.f32 %v7905_v2, %v7904_v52 }
0x15c9   :  { %v7907_v19 = vrot.slane %v7906_v46, 1 }
0x15cb   :  { %v7908_v47 = vadd.f32 %v7907_v19, %v7906_v46 }
0x15cd   :  { %v7909_v25 = vmul.f32 0.03125, %v7908_v47 }
0x15cf   :  { %v7910_v35 = vsub.f32 %v7876_v27, %v7909_v25  ;;  %v7911_v50 = vsub.f32 %v7879_v24, %v7909_v25  ;;  %v7912_v33 = vsub.f32 %v7884_v42, %v7909_v25  ;;  %v7913_v51 = vsub.f32 %v7887_v39, %v7909_v25 }
0x15d1   :  { %v7914_v21 = vmul.f32 %v7910_v35, %v7910_v35  ;;  %v7915_v48 = vmul.f32 %v7911_v50, %v7911_v50  ;;  %v7916_v60 = vmul.f32 %v7912_v33, %v7912_v33  ;;  %v7917_v34 = vmul.f32 %v7913_v51, %v7913_v51 }
0x15d3   :  { %v7918_v36 = vadd.f32 %v7915_v48, %v7914_v21 }
0x15d5   :  { %v7919_v4 = vadd.f32 %v7918_v36, %v7916_v60 }
0x15d7   :  { %v7920_v9 = vadd.f32 %v7919_v4, %v7917_v34 }
0x15d9   :  { %v7921_v38 = vrot.slane %v7920_v9, 4 }
0x15db   :  { %v7922_v10 = vadd.f32 %v7921_v38, %v7920_v9 }
0x15dd   :  { %v7923_v63 = vrot.slane %v7922_v10, 2 }
0x15df   :  { %v7924_v57 = vadd.f32 %v7923_v63, %v7922_v10 }
0x15e1   :  { %v7925_v15 = vrot.slane %v7924_v57, 1 }
0x15e3   :  { %v7926_v11 = vadd.f32 %v7925_v15, %v7924_v57 }
0x15e5   :  { %v7927_v53 = vmul.f32 0.03125, %v7926_v11 }
0x15e7   :  { %v7928_v56 = vadd.f32 1e-05, %v7927_v53 }
0x15e9   :  { %10947 = vrsqrt.f32 %v7928_v56 }
0x15f3   :  { %v10948_v8 = vpop.eup %10947 }
0x15f4   :  { %v7931_v5 = vmul.f32 %v10948_v8, %v7911_v50  ;;  %v7930_v54 = vmul.f32 %v10948_v8, %v7910_v35  ;;  %v7932_v6 = vmul.f32 %v10948_v8, %v7912_v33  ;;  %v7933_v3 = vmul.f32 %v10948_v8, %v7913_v51 }
0x15f6   :  { %v7955_v12 = vmul.f32 %v14310_v17, %v7931_v5  ;;  %v7954_v1 = vmul.f32 %v14308_v58, %v7930_v54  ;;  %v7956_v27 = vmul.f32 %v14324_v49, %v7932_v6  ;;  %v7957_v24 = vmul.f32 %v14326_v7, %v7933_v3  ;;  %v10498_v49 = vld [vmem:[%s14511_s11 + $0x58] sm:$0xff]   ;;  %v10499_v7 = vld [vmem:[%s14517_s15 + $0x10] sm:$0xff]  }
0x15f8   :  { %v14393_v42 = vadd.f32 %v14316_v28, %v7954_v1  ;;  %v14396_v23 = vadd.f32 %v14321_v20, %v7955_v12  ;;  %v14399_v39 = vadd.f32 %v14328_v31, %v7956_v27  ;;  %v14402_v16 = vadd.f32 %v14330_v45, %v7957_v24  ;;  %v10496_v28 = vld [vmem:[%s14511_s11 + $0x48] sm:$0xff]   ;;  %v10497_v20 = vld [vmem:[%s14511_s11 + $0x50] sm:$0xff]   ;;  %v10500_v31 = vld [vmem:[%s14517_s15 + $0x18] sm:$0xff]  }
0x15f9   :  { %v10501_v45 = vld [vmem:[%s14513_s13 + $0x20] sm:$0xff]  }
0x15fa   :  { %v7991_v17 = vpack.c.bf16 %v14396_v23, %v14393_v42  ;;  %v7992_v58 = vpack.c.bf16 %v14402_v16, %v14399_v39  ;;  %9997 = vmatprep.mubr.msk.bf16.mxu0 %vm512_vm4, %v10501_v45 }
0x15fc   :  { %9977 = vmatprep.subr.bf16.mxu1 %v7991_v17 }
0x15fd   :  { %9978 = vmatpush3.bf16.msra.mxu1 %v7991_v17 }
0x15fe   :  { %9979 = vmatprep.subr.bf16.mxu1 %v7992_v58 }
0x1601   :  { %9980 = vmatpush3.bf16.msra.mxu1 %v7992_v58 }
0x1602   :  { %10001 = vmatprep.subr.bf16.mxu1 %v14364_v30 }
0x1604   :  { %9982 = vmatmul.mubr.msk.bf16.vlgmr.msra.gmra.mrb[160].mxu1 %vm224_vm0, %v10496_v28 }
0x1605   :  { %10002 = vmatpush3.bf16.msra.mxu1 %v14364_v30  ;;  %9985 = vmatprep.mubr.msk.bf16.mxu1 %vm224_vm0, %v10497_v20 }
0x1606   :  { %10003 = vmatprep.subr.bf16.mxu1 %v14372_v62 }
0x1609   :  { %10004 = vmatpush3.bf16.msra.mxu1 %v14372_v62 }
0x160a   :  { %10009 = vmatprep.subr.bf16.mxu1 %v12282_v29 }
0x160c   :  { %9986 = vmatmul.mubr.msk.bf16.gmra.mrb[164].mxu1 %vm224_vm0, %v10498_v49 }
0x160d   :  { %10005 = vmatprep.mubr.msk.bf16.mxu1 %vm224_vm0, %v10499_v7 }
0x1614   :  { %10006 = vmatmul.mubr.msk.bf16.vlgmr.msra.gmra.mrb[168].mxu1 %vm224_vm0, %v10500_v31 }
0x1615   :  { %10010 = vmatpush3.bf16.msra.mxu1 %v12282_v29 }
0x1616   :  { %10011 = vmatprep.subr.bf16.mxu1 %v12284_v37 }
0x1619   :  { %10012 = vmatpush3.bf16.msra.mxu1 %v12284_v37 }
0x16d7   :  { %v9983_v30 = vpop.f32.mrb[160].mxu1 }
0x16d8   :  { %v8117_v62 = vadd.f32 %v9983_v30, %v14338_v43  ;;  %v8108_v59 = vpop.f32.mrb[161].mxu1 }
0x16d9   :  { %v8109_v0 = vadd.f32 %v8108_v59, %v14332_v55  ;;  %v9984_v52 = vpop.f32.mrb[162].mxu1 }
0x16da   :  { %v8120_v2 = vadd.f32 %v9984_v52, %v14340_v40  ;;  %v8111_v29 = vpop.f32.mrb[163].mxu1  ;;  %v8141_v19 = vmax.f32 %v8117_v62, 0.0 }
0x16db   :  { %v8112_v46 = vadd.f32 %v8111_v29, %v14334_v44  ;;  %v8139_v47 = vmax.f32 %v8109_v0, 0.0 }
0x16dc   :  { %v8142_v37 = vmax.f32 %v8120_v2, 0.0 }
0x16dd   :  { %v8140_v25 = vmax.f32 %v8112_v46, 0.0  ;;  %v8302_v46 = vpop.permute.xlu0 %8301 }
0x16de   :  { %v8153_v35 = vpack.c.bf16 %v8142_v37, %v8141_v19  ;;  %v8297_v19 = vpop.permute.xlu1 %8296 }
0x16df   :  { %v8152_v50 = vpack.c.bf16 %v8140_v25, %v8139_v47  ;;  %v9987_v33 = vpop.f32.mrb[164].mxu1 }
0x16e0   :  { %v8133_v51 = vadd.f32 %v9987_v33, %v14346_v41  ;;  %v8124_v21 = vpop.f32.mrb[165].mxu1  ;;  %v10505_v41 = vld [vmem:[%s14517_s15 + $0x20] sm:$0xff]  }
0x16e1   :  { %v8125_v43 = vadd.f32 %v8124_v21, %v14344_v14  ;;  %v9988_v48 = vpop.f32.mrb[166].mxu1  ;;  %9989 = vmatprep.subr.bf16.mxu0 %v8152_v50  ;;  %v10502_v14 = vld [vmem:[%s14513_s13 + $0x28] sm:$0xff]   ;;  %v8326_v25 = vpop.permute.xlu0 %8325 }
0x16e2   :  { %v8136_v55 = vadd.f32 %v9988_v48, %v14342_v18  ;;  %v8127_v40 = vpop.f32.mrb[167].mxu1  ;;  %9990 = vmatpush3.bf16.msra.mxu0 %v8152_v50  ;;  %v8145_v60 = vmax.f32 %v8133_v51, 0.0  ;;  %v10504_v18 = vld [vmem:[%s14517_s15 + $0x8] sm:$0xff]  }
0x16e3   :  { %v8128_v44 = vadd.f32 %v8127_v40, %v14336_v32  ;;  %9991 = vmatprep.subr.bf16.mxu0 %v8153_v35  ;;  %v8143_v34 = vmax.f32 %v8125_v43, 0.0  ;;  %v10503_v32 = vld [vmem:[%s14517_s15] sm:$0xff]  }
0x16e4   :  { %v8146_v36 = vmax.f32 %v8136_v55, 0.0  ;;  %10013 = vmatprep.mubr.msk.bf16.mxu1 %vm224_vm0, %v10503_v32 }
0x16e5   :  { %v8144_v4 = vmax.f32 %v8128_v44, 0.0  ;;  %10014 = vmatmul.mubr.msk.bf16.vlgmr.msra.gmra.mrb[168].mxu1 %vm224_vm0, %v10504_v18  ;;  %v8312_v50 = vpop.permute.xlu0 %8311 }
0x16e6   :  { %v8155_v9 = vpack.c.bf16 %v8146_v36, %v8145_v60  ;;  %9992 = vmatpush3.bf16.msra.mxu0 %v8153_v35  ;;  %10021 = vmatprep.mubr.msk.bf16.mxu1 %vm224_vm0, %v10505_v41  ;;  %v8321_v35 = vpop.permute.xlu1 %8320 }
0x16e7   :  { %v8154_v38 = vpack.c.bf16 %v8144_v4, %v8143_v34 }
0x16e9   :  { %9993 = vmatprep.subr.bf16.mxu0 %v8154_v38  ;;  %v8336_v34 = vpop.permute.xlu0 %8335 }
0x16ea   :  { %9994 = vmatpush3.bf16.msra.mxu0 %v8154_v38  ;;  %v8307_v33 = vpop.permute.xlu1 %8306 }
0x16eb   :  { %9995 = vmatprep.subr.bf16.mxu0 %v8155_v9 }
0x16ee   :  { %9996 = vmatpush3.bf16.msra.mxu0 %v8155_v9  ;;  %v8331_v4 = vpop.permute.xlu1 %8330 }
0x16f1   :  { %9998 = vmatmul.mubr.msk.bf16.vlgmr.msra.gmra.mrb[200].mxu0 %vm512_vm4, %v10502_v14 }
0x17c4   :  { %v9999_v10 = vpop.f32.mrb[200].mxu0 }
0x17c5   :  { %v8231_v63 = vpop.f32.mrb[201].mxu0  ;;  %v8240_v53 = vadd.f32 %v9999_v10, %v14362_v22  ;;  %v10506_v10 = vld [vmem:[%s14517_s15 + $0x28] sm:$0xff]  }
0x17c6   :  { %v8232_v57 = vadd.f32 %v8231_v63, %v14358_v13  ;;  %v10000_v15 = vpop.f32.mrb[202].mxu0  ;;  %v8566_v63 = vpop.permute.xlu1 %8565 }
0x17c7   :  { %v8234_v11 = vpop.f32.mrb[203].mxu0  ;;  %v8243_v5 = vadd.f32 %v10000_v15, %v14360_v26  ;;  %v8248_v6 = vadd.f32 %v8240_v53, %v14399_v39 }
0x17c8   :  { %v8235_v56 = vadd.f32 %v8234_v11, %v14356_v61  ;;  %v8246_v8 = vadd.f32 %v8232_v57, %v14393_v42  ;;  %v8571_v57 = vpop.permute.xlu0 %8570 }
0x17c9   :  { %v8249_v12 = vadd.f32 %v8243_v5, %v14402_v16 }
0x17ca   :  { %v8247_v54 = vadd.f32 %v8235_v56, %v14396_v23  ;;  %v8576_v15 = vpop.permute.xlu1 %8575 }
0x17cc   :  { %v8260_v3 = vadd.f32 %v8247_v54, %v8246_v8 }
0x17ce   :  { %v8261_v1 = vadd.f32 %v8260_v3, %v8248_v6 }
0x17d0   :  { %v8262_v27 = vadd.f32 %v8261_v1, %v8249_v12 }
0x17d2   :  { %v8263_v13 = vrot.slane %v8262_v27, 4 }
0x17d4   :  { %v8264_v24 = vadd.f32 %v8263_v13, %v8262_v27 }
0x17d6   :  { %v8265_v17 = vrot.slane %v8264_v24, 2 }
0x17d8   :  { %v8266_v58 = vadd.f32 %v8265_v17, %v8264_v24 }
0x17da   :  { %v8267_v22 = vrot.slane %v8266_v58, 1 }
0x17dc   :  { %v8268_v28 = vadd.f32 %v8267_v22, %v8266_v58 }
0x17de   :  { %v8269_v61 = vmul.f32 0.03125, %v8268_v28 }
0x17e0   :  { %v8270_v20 = vsub.f32 %v8246_v8, %v8269_v61  ;;  %v8271_v42 = vsub.f32 %v8247_v54, %v8269_v61  ;;  %v8272_v49 = vsub.f32 %v8248_v6, %v8269_v61  ;;  %v8273_v26 = vsub.f32 %v8249_v12, %v8269_v61  ;;  %v8581_v8 = vpop.permute.xlu0 %8580 }
0x17e2   :  { %v8274_v7 = vmul.f32 %v8270_v20, %v8270_v20  ;;  %v8275_v23 = vmul.f32 %v8271_v42, %v8271_v42  ;;  %v8276_v31 = vmul.f32 %v8272_v49, %v8272_v49  ;;  %v8277_v45 = vmul.f32 %v8273_v26, %v8273_v26 }
0x17e4   :  { %v8278_v39 = vadd.f32 %v8275_v23, %v8274_v7 }
0x17e6   :  { %v8279_v30 = vadd.f32 %v8278_v39, %v8276_v31 }
0x17e8   :  { %v8280_v16 = vadd.f32 %v8279_v30, %v8277_v45 }
0x17ea   :  { %v8281_v62 = vrot.slane %v8280_v16, 4 }
0x17ec   :  { %v8282_v59 = vadd.f32 %v8281_v62, %v8280_v16 }
0x17ee   :  { %v8283_v0 = vrot.slane %v8282_v59, 2 }
0x17f0   :  { %v8284_v52 = vadd.f32 %v8283_v0, %v8282_v59 }
0x17f2   :  { %v8285_v2 = vrot.slane %v8284_v52, 1 }
0x17f4   :  { %v8286_v29 = vadd.f32 %v8285_v2, %v8284_v52 }
0x17f6   :  { %v8287_v37 = vmul.f32 0.03125, %v8286_v29 }
0x17f8   :  { %v8288_v47 = vadd.f32 1e-05, %v8287_v37 }
0x17fa   :  { %10949 = vrsqrt.f32 %v8288_v47 }
0x1804   :  { %v10950_v51 = vpop.eup %10949 }
0x1805   :  { %v8291_v21 = vmul.f32 %v10950_v51, %v8271_v42  ;;  %v8290_v43 = vmul.f32 %v10950_v51, %v8270_v20  ;;  %v8292_v48 = vmul.f32 %v10950_v51, %v8272_v49  ;;  %v8293_v55 = vmul.f32 %v10950_v51, %v8273_v26 }
0x1807   :  { %v8314_v40 = vmul.f32 %v8297_v19, %v8290_v43  ;;  %v8315_v44 = vmul.f32 %v8302_v46, %v8291_v21  ;;  %v8316_v60 = vmul.f32 %v8307_v33, %v8292_v48  ;;  %v8317_v36 = vmul.f32 %v8312_v50, %v8293_v55 }
0x1809   :  { %v8338_v9 = vadd.f32 %v8321_v35, %v8314_v40  ;;  %v8339_v38 = vadd.f32 %v8326_v25, %v8315_v44  ;;  %v8340_v14 = vadd.f32 %v8331_v4, %v8316_v60  ;;  %v8341_v32 = vadd.f32 %v8336_v34, %v8317_v36 }
0x180b   :  { %v8488_v18 = vpack.c.bf16 %v8339_v38, %v8338_v9  ;;  %8595 = vst [vmem:[%s14518_s19] sm:$0xff] %v8338_v9  ;;  %8596 = vst [vmem:[%s14518_s19 + $0x8] sm:$0xff] %v8339_v38  ;;  %v8489_v41 = vpack.c.bf16 %v8341_v32, %v8340_v14 }
0x180c   :  { %8597 = vst [vmem:[%s14518_s19 + $0x10] sm:$0xff] %v8340_v14  ;;  %8598 = vst [vmem:[%s14518_s19 + $0x18] sm:$0xff] %v8341_v32 }
0x180d   :  { %10017 = vmatprep.subr.bf16.mxu1 %v8488_v18 }
0x180e   :  { %10018 = vmatpush3.bf16.msra.mxu1 %v8488_v18 }
0x180f   :  { %10019 = vmatprep.subr.bf16.mxu1 %v8489_v41 }
0x1812   :  { %10020 = vmatpush3.bf16.msra.mxu1 %v8489_v41 }
0x1815   :  { %10022 = vmatmul.mubr.msk.bf16.vlgmr.msra.gmra.mrb[168].mxu1 %vm224_vm0, %v10506_v10 }
0x18e8   :  { %v10023_v11 = vpop.f32.mrb[168].mxu1 }
0x18e9   :  { %v8585_v53 = vadd.f32 %v10023_v11, %v8576_v15  ;;  %v8540_v56 = vpop.f32.mrb[169].mxu1 }
0x18ea   :  { %v8583_v5 = vadd.f32 %v8566_v63, %v8540_v56  ;;  %v10024_v54 = vpop.f32.mrb[170].mxu1 }
0x18eb   :  { %8589 = vst [vmem:[%s14519_s17 + $0x10] sm:$0xff] %v8585_v53  ;;  %v8586_v6 = vadd.f32 %v10024_v54, %v8581_v8  ;;  %v8543_v3 = vpop.f32.mrb[171].mxu1 }
0x18ec   :  { %8587 = vst [vmem:[%s14519_s17] sm:$0xff] %v8583_v5  ;;  %v8584_v12 = vadd.f32 %v8571_v57, %v8543_v3 }
0x18ed   :  { %8590 = vst [vmem:[%s14519_s17 + $0x18] sm:$0xff] %v8586_v6 }
0x18ee   :  { %8588 = vst [vmem:[%s14519_s17 + $0x8] sm:$0xff] %v8584_v12 }

</bundles_post_ra>
